<compile_context>
chip_gen: v7x
topology: tpu7x:2x2x1
jax: 0.10.0
libtpu: 0.0.40
codegen_flags: <defaults>
</compile_context>

<pallas_src>
import jax
import jax.numpy as jnp
from jax.experimental import pallas as pl
from jax.experimental.pallas import tpu as pltpu


def _round_up(x, m):
    return ((x + m - 1) // m) * m


# ---------------------------------------------------------------------------
# Fused Pallas kernel: full sequence, both LSTM layers, decoder matmul.
# ---------------------------------------------------------------------------

def _charrnn_fused_kernel(x_ref, w_ref, b_ref, wd_ref, bd_ref, h0_ref, c0_ref,
                          out_ref, hn_ref, cn_ref, hall_sc):
    S, Bp, Hp = x_ref.shape
    L = h0_ref.shape[0]

    def step(t, carry):
        hs, cs = carry
        x = x_ref[t]                                  # (Bp, Hp)
        new_hs, new_cs = [], []
        for l in range(L):
            # One MXU push per layer per timestep: [x, h] @ [W_ih^T; W_hh^T].
            xh = jnp.concatenate([x, hs[l]], axis=-1)             # (Bp, 2Hp)
            gates = (jnp.dot(xh, w_ref[l],
                             preferred_element_type=jnp.float32)
                     + b_ref[l])                                  # (Bp, 4Hp)
            # Gate slices are lane-aligned because Hp % 128 == 0.
            i_g = jax.nn.sigmoid(gates[:, 0 * Hp:1 * Hp])
            f_g = jax.nn.sigmoid(gates[:, 1 * Hp:2 * Hp])
            g_g = jnp.tanh(gates[:, 2 * Hp:3 * Hp])
            o_g = jax.nn.sigmoid(gates[:, 3 * Hp:4 * Hp])
            c_new = f_g * cs[l] + i_g * g_g
            h_new = o_g * jnp.tanh(c_new)
            new_hs.append(h_new)
            new_cs.append(c_new)
            x = h_new
            # TODO(synk): nn.LSTM inter-layer dropout (p=0.5) applies only in
            # training mode; inference semantics (identity) implemented here.
        hall_sc[t] = x                                 # top-layer hidden state
        return tuple(new_hs), tuple(new_cs)

    init = (tuple(h0_ref[l] for l in range(L)),
            tuple(c0_ref[l] for l in range(L)))
    hs, cs = jax.lax.fori_loop(0, S, step, init, unroll=True)

    for l in range(L):
        hn_ref[l] = hs[l]
        cn_ref[l] = cs[l]

    # Decoder: one big lane-dense matmul over all timesteps at once.
    hall = hall_sc[...].reshape(S * Bp, Hp)
    out_ref[...] = (jnp.dot(hall, wd_ref[...],
                            preferred_element_type=jnp.float32)
                    + bd_ref[...])


# ---------------------------------------------------------------------------
# Parameter preparation (padding + fusing into kernel layout)
# ---------------------------------------------------------------------------

def _pad_gate_weight(w, H, Hp):
    """w: (4H, H) PyTorch gate-stacked weight -> (Hp, 4Hp), gate blocks padded
    so each gate occupies its own 128-aligned lane block."""
    out = jnp.zeros((Hp, 4 * Hp), jnp.float32)
    for g in range(4):
        blk = w[g * H:(g + 1) * H, :].T                # (H, H) input-major
        out = out.at[:H, g * Hp:g * Hp + H].set(blk)
    return out


def _pad_gate_bias(b, H, Hp):
    out = jnp.zeros((4 * Hp,), jnp.float32)
    for g in range(4):
        out = out.at[g * Hp:g * Hp + H].set(b[g * H:(g + 1) * H])
    return out


def prepare_params(params, hidden_size, output_size):
    H, O = hidden_size, output_size
    Hp = _round_up(H, 128)
    Op = _round_up(O, 128)

    emb_p = jnp.pad(params["embedding"].astype(jnp.float32),
                    ((0, 0), (0, Hp - H)))

    w_list, b_list = [], []
    for (w_ih, w_hh, b_ih, b_hh) in params["lstm"]:
        w_x = _pad_gate_weight(w_ih, H, Hp)            # (Hp, 4Hp)
        w_h = _pad_gate_weight(w_hh, H, Hp)            # (Hp, 4Hp)
        w_list.append(jnp.concatenate([w_x, w_h], axis=0))   # (2Hp, 4Hp)
        b_list.append(_pad_gate_bias(b_ih + b_hh, H, Hp)[None, :])

    wd = jnp.zeros((Hp, Op), jnp.float32).at[:H, :O].set(params["dec_w"].T)
    bd = jnp.zeros((1, Op), jnp.float32).at[0, :O].set(params["dec_b"])

    return {
        "embedding": emb_p,                    # (V, Hp)
        "w_lstm": jnp.stack(w_list),           # (L, 2Hp, 4Hp)
        "b_lstm": jnp.stack(b_list),           # (L, 1, 4Hp)
        "dec_w": wd,                           # (Hp, Op)
        "dec_b": bd,                           # (1, Op)
        "H": H, "Hp": Hp, "O": O, "Op": Op,
    }


# ---------------------------------------------------------------------------
# Forward wrapper (mirror of LSTM.forward(inp, hidden))
# ---------------------------------------------------------------------------

def lstm_forward(kparams, tokens, hidden):
    """tokens: (S, B) int32; hidden = (h0, c0) each (L, B, H).
    Returns (logits (S*B, O), (h_n, c_n))."""
    h0, c0 = hidden
    S, B = tokens.shape
    L, _, H = h0.shape
    Hp, O, Op = kparams["Hp"], kparams["O"], kparams["Op"]
    Bp = _round_up(B, 8)

    # Embedding gather stays in XLA (data-dependent row gather).
    x = jnp.take(kparams["embedding"], tokens, axis=0)         # (S, B, Hp)
    x = jnp.pad(x, ((0, 0), (0, Bp - B), (0, 0)))              # (S, Bp, Hp)
    h0p = jnp.pad(h0.astype(jnp.float32), ((0, 0), (0, Bp - B), (0, Hp - H)))
    c0p = jnp.pad(c0.astype(jnp.float32), ((0, 0), (0, Bp - B), (0, Hp - H)))

    out_shapes = (
        jax.ShapeDtypeStruct((S * Bp, Op), jnp.float32),   # decoder logits
        jax.ShapeDtypeStruct((L, Bp, Hp), jnp.float32),    # h_n
        jax.ShapeDtypeStruct((L, Bp, Hp), jnp.float32),    # c_n
    )
    logits_p, hn_p, cn_p = pl.pallas_call(
        _charrnn_fused_kernel,
        out_shape=out_shapes,
        grid=(1,),
        in_specs=[
            pl.BlockSpec((S, Bp, Hp), lambda i: (0, 0, 0)),        # x
            pl.BlockSpec((L, 2 * Hp, 4 * Hp), lambda i: (0, 0, 0)),  # W lstm
            pl.BlockSpec((L, 1, 4 * Hp), lambda i: (0, 0, 0)),     # b lstm
            pl.BlockSpec((Hp, Op), lambda i: (0, 0)),              # W dec
            pl.BlockSpec((1, Op), lambda i: (0, 0)),               # b dec
            pl.BlockSpec((L, Bp, Hp), lambda i: (0, 0, 0)),        # h0
            pl.BlockSpec((L, Bp, Hp), lambda i: (0, 0, 0)),        # c0
        ],
        out_specs=[
            pl.BlockSpec((S * Bp, Op), lambda i: (0, 0)),
            pl.BlockSpec((L, Bp, Hp), lambda i: (0, 0, 0)),
            pl.BlockSpec((L, Bp, Hp), lambda i: (0, 0, 0)),
        ],
        scratch_shapes=[pltpu.VMEM((S, Bp, Hp), jnp.float32)],     # all h_top
        compiler_params=pltpu.CompilerParams(
            dimension_semantics=("arbitrary",)),
    )(x, kparams["w_lstm"], kparams["b_lstm"],
      kparams["dec_w"], kparams["dec_b"], h0p, c0p)

    logits = logits_p.reshape(S, Bp, Op)[:, :B, :O].reshape(S * B, O)
    h_n = hn_p[:, :B, :H]
    c_n = cn_p[:, :B, :H]
    return logits, (h_n, c_n)


# ---------------------------------------------------------------------------
# Deterministic parameter init (PyTorch-like layouts / distributions)
# ---------------------------------------------------------------------------

def init_params(key, input_size, hidden_size, output_size, n_layers):
    H = hidden_size
    k = 1.0 / (H ** 0.5)
    keys = jax.random.split(key, 3 + 4 * n_layers)
    params = {}
    params["embedding"] = jax.random.normal(
        keys[0], (input_size, H), jnp.float32)          # nn.Embedding ~ N(0,1)
    lstm = []
    ki = 1
    for _ in range(n_layers):
        w_ih = jax.random.uniform(keys[ki], (4 * H, H), jnp.float32, -k, k); ki += 1
        w_hh = jax.random.uniform(keys[ki], (4 * H, H), jnp.float32, -k, k); ki += 1
        b_ih = jax.random.uniform(keys[ki], (4 * H,), jnp.float32, -k, k); ki += 1
        b_hh = jax.random.uniform(keys[ki], (4 * H,), jnp.float32, -k, k); ki += 1
        lstm.append((w_ih, w_hh, b_ih, b_hh))
    params["lstm"] = lstm
    params["dec_w"] = jax.random.uniform(
        keys[ki], (output_size, H), jnp.float32, -k, k); ki += 1
    params["dec_b"] = jax.random.uniform(
        keys[ki], (output_size,), jnp.float32, -k, k)
    return params


# ---------------------------------------------------------------------------
# Pure-JAX reference (PyTorch semantics) for correctness check
# ---------------------------------------------------------------------------

def lstm_forward_ref(params, tokens, hidden):
    h0_all, c0_all = hidden
    x = jnp.take(params["embedding"], tokens, axis=0)
    H = x.shape[-1]
    h_finals, c_finals = [], []
    for layer, (w_ih, w_hh, b_ih, b_hh) in enumerate(params["lstm"]):
        def step(carry, x_t, w_ih=w_ih, w_hh=w_hh, b_ih=b_ih, b_hh=b_hh):
            h, c = carry
            gates = x_t @ w_ih.T + h @ w_hh.T + b_ih + b_hh
            i_g = jax.nn.sigmoid(gates[:, :H])
            f_g = jax.nn.sigmoid(gates[:, H:2 * H])
            g_g = jnp.tanh(gates[:, 2 * H:3 * H])
            o_g = jax.nn.sigmoid(gates[:, 3 * H:])
            c_new = f_g * c + i_g * g_g
            h_new = o_g * jnp.tanh(c_new)
            return (h_new, c_new), h_new

        (h_n, c_n), out = jax.lax.scan(step, (h0_all[layer], c0_all[layer]), x)
        h_finals.append(h_n)
        c_finals.append(c_n)
        x = out
    S, B, _ = x.shape
    logits = x.reshape(S * B, H) @ params["dec_w"].T + params["dec_b"]
    return logits, (jnp.stack(h_finals), jnp.stack(c_finals))


# ---------------------------------------------------------------------------

if __name__ == "__main__":
    input_size = 16     # vocab size
    hidden_size = 32
    output_size = 16
    n_layers = 2
    seq_len = 8
    batch = 2

    key = jax.random.PRNGKey(0)
    pkey, tkey = jax.random.split(key)
    params = init_params(pkey, input_size, hidden_size, output_size, n_layers)
    kparams = prepare_params(params, hidden_size, output_size)

    tokens = jax.random.randint(tkey, (seq_len, batch), 0, input_size, jnp.int32)
    h0 = jnp.zeros((n_layers, batch, hidden_size), jnp.float32)
    c0 = jnp.zeros((n_layers, batch, hidden_size), jnp.float32)

    logits, (h_n, c_n) = lstm_forward(kparams, tokens, (h0, c0))
    jax.block_until_ready((logits, h_n, c_n))

    ref_logits, (ref_h, ref_c) = lstm_forward_ref(params, tokens, (h0, c0))
    assert logits.shape == (seq_len * batch, output_size)
    assert h_n.shape == (n_layers, batch, hidden_size)
    assert c_n.shape == (n_layers, batch, hidden_size)
    assert jnp.allclose(logits, ref_logits, rtol=1e-5, atol=1e-5)
    assert jnp.allclose(h_n, ref_h, rtol=1e-5, atol=1e-5)
    assert jnp.allclose(c_n, ref_c, rtol=1e-5, atol=1e-5)

    print("KERNEL_OK")
</pallas_src>

<mosaic_0001>
module attributes {stable_mosaic.version = 11 : i64} {
  func.func @_charrnn_fused_kernel(%arg0: i32, %arg1: memref<8x8x128xf32, #tpu.memory_space<vmem>>, %arg2: memref<2x256x512xf32, #tpu.memory_space<vmem>>, %arg3: memref<2x1x512xf32, #tpu.memory_space<vmem>>, %arg4: memref<128x128xf32, #tpu.memory_space<vmem>>, %arg5: memref<1x128xf32, #tpu.memory_space<vmem>>, %arg6: memref<2x8x128xf32, #tpu.memory_space<vmem>>, %arg7: memref<2x8x128xf32, #tpu.memory_space<vmem>>, %arg8: memref<64x128xf32, #tpu.memory_space<vmem>>, %arg9: memref<2x8x128xf32, #tpu.memory_space<vmem>>, %arg10: memref<2x8x128xf32, #tpu.memory_space<vmem>>, %arg11: memref<8x8x128xf32, #tpu.memory_space<vmem>>) attributes {dimension_semantics = [#tpu.dimension_semantics<arbitrary>], iteration_bounds = array<i64: 1>, scalar_prefetch = 0 : i64, scratch_operands = 1 : i64, tpu.core_type = #tpu.core_type<tc>, window_params = [{pipeline_mode = #tpu.pipeline_mode<synchronous>, transform_indices = @transform_0, window_bounds = array<i64: 8, 8, 128>}, {pipeline_mode = #tpu.pipeline_mode<synchronous>, transform_indices = @transform_1, window_bounds = array<i64: 2, 256, 512>}, {pipeline_mode = #tpu.pipeline_mode<synchronous>, transform_indices = @transform_2, window_bounds = array<i64: 2, 1, 512>}, {pipeline_mode = #tpu.pipeline_mode<synchronous>, transform_indices = @transform_3, window_bounds = array<i64: 128, 128>}, {pipeline_mode = #tpu.pipeline_mode<synchronous>, transform_indices = @transform_4, window_bounds = array<i64: 1, 128>}, {pipeline_mode = #tpu.pipeline_mode<synchronous>, transform_indices = @transform_5, window_bounds = array<i64: 2, 8, 128>}, {pipeline_mode = #tpu.pipeline_mode<synchronous>, transform_indices = @transform_6, window_bounds = array<i64: 2, 8, 128>}, {pipeline_mode = #tpu.pipeline_mode<synchronous>, transform_indices = @transform_7, window_bounds = array<i64: 64, 128>}, {pipeline_mode = #tpu.pipeline_mode<synchronous>, transform_indices = @transform_8, window_bounds = array<i64: 2, 8, 128>}, {pipeline_mode = #tpu.pipeline_mode<synchronous>, transform_indices = @transform_9, window_bounds = array<i64: 2, 8, 128>}]} {
    %c0 = arith.constant 0 : index
    %c0_0 = arith.constant 0 : index
    %c0_1 = arith.constant 0 : index
    %0 = vector.load %arg6[%c0, %c0_0, %c0_1] : memref<2x8x128xf32, #tpu.memory_space<vmem>>, vector<1x8x128xf32>
    %1 = vector.shape_cast %0 : vector<1x8x128xf32> to vector<8x128xf32>
    %c1 = arith.constant 1 : index
    %c0_2 = arith.constant 0 : index
    %c0_3 = arith.constant 0 : index
    %2 = vector.load %arg6[%c1, %c0_2, %c0_3] : memref<2x8x128xf32, #tpu.memory_space<vmem>>, vector<1x8x128xf32>
    %3 = vector.shape_cast %2 : vector<1x8x128xf32> to vector<8x128xf32>
    %c0_4 = arith.constant 0 : index
    %c0_5 = arith.constant 0 : index
    %c0_6 = arith.constant 0 : index
    %4 = vector.load %arg7[%c0_4, %c0_5, %c0_6] : memref<2x8x128xf32, #tpu.memory_space<vmem>>, vector<1x8x128xf32>
    %5 = vector.shape_cast %4 : vector<1x8x128xf32> to vector<8x128xf32>
    %c1_7 = arith.constant 1 : index
    %c0_8 = arith.constant 0 : index
    %c0_9 = arith.constant 0 : index
    %6 = vector.load %arg7[%c1_7, %c0_8, %c0_9] : memref<2x8x128xf32, #tpu.memory_space<vmem>>, vector<1x8x128xf32>
    %7 = vector.shape_cast %6 : vector<1x8x128xf32> to vector<8x128xf32>
    %c0_i32 = arith.constant 0 : i32
    %8 = arith.index_cast %c0_i32 : i32 to index
    %c0_10 = arith.constant 0 : index
    %c0_11 = arith.constant 0 : index
    %9 = vector.load %arg1[%8, %c0_10, %c0_11] : memref<8x8x128xf32, #tpu.memory_space<vmem>>, vector<1x8x128xf32>
    %10 = vector.shape_cast %9 : vector<1x8x128xf32> to vector<8x128xf32>
    %11 = tpu.concatenate %10, %1 in 1 : vector<8x128xf32>, vector<8x128xf32> -> vector<8x256xf32>
    %c0_12 = arith.constant 0 : index
    %c0_13 = arith.constant 0 : index
    %c0_14 = arith.constant 0 : index
    %12 = vector.load %arg2[%c0_12, %c0_13, %c0_14] : memref<2x256x512xf32, #tpu.memory_space<vmem>>, vector<1x256x512xf32>
    %13 = vector.shape_cast %12 : vector<1x256x512xf32> to vector<256x512xf32>
    %cst = arith.constant dense<0.000000e+00> : vector<8x512xf32>
    %14 = tpu.matmul %11, %13, %cst {dimension_numbers = #tpu.dot_dimension_numbers<[1], [0], [0], [1], [0, 0, 1, 1], [], []>} : vector<8x256xf32>, vector<256x512xf32>, vector<8x512xf32> -> vector<8x512xf32>
    %c0_15 = arith.constant 0 : index
    %c0_16 = arith.constant 0 : index
    %c0_17 = arith.constant 0 : index
    %15 = vector.load %arg3[%c0_15, %c0_16, %c0_17] : memref<2x1x512xf32, #tpu.memory_space<vmem>>, vector<1x1x512xf32>
    %16 = vector.shape_cast %15 : vector<1x1x512xf32> to vector<1x512xf32>
    %17 = vector.broadcast %16 : vector<1x512xf32> to vector<8x512xf32>
    %18 = arith.addf %14, %17 : vector<8x512xf32>
    %19 = vector.extract_strided_slice %18 {offsets = [0, 0], sizes = [8, 128], strides = [1, 1]} : vector<8x512xf32> to vector<8x128xf32>
    %20 = arith.negf %19 : vector<8x128xf32>
    %21 = math.exp %20 : vector<8x128xf32>
    %cst_18 = arith.constant 1.000000e+00 : f32
    %22 = vector.broadcast %cst_18 : f32 to vector<8x128xf32>
    %23 = arith.addf %22, %21 : vector<8x128xf32>
    %24 = arith.divf %22, %23 : vector<8x128xf32>
    %25 = vector.extract_strided_slice %18 {offsets = [0, 128], sizes = [8, 128], strides = [1, 1]} : vector<8x512xf32> to vector<8x128xf32>
    %26 = arith.negf %25 : vector<8x128xf32>
    %27 = math.exp %26 : vector<8x128xf32>
    %cst_19 = arith.constant 1.000000e+00 : f32
    %28 = vector.broadcast %cst_19 : f32 to vector<8x128xf32>
    %29 = arith.addf %28, %27 : vector<8x128xf32>
    %30 = arith.divf %28, %29 : vector<8x128xf32>
    %31 = vector.extract_strided_slice %18 {offsets = [0, 256], sizes = [8, 128], strides = [1, 1]} : vector<8x512xf32> to vector<8x128xf32>
    %32 = math.tanh %31 : vector<8x128xf32>
    %33 = vector.extract_strided_slice %18 {offsets = [0, 384], sizes = [8, 128], strides = [1, 1]} : vector<8x512xf32> to vector<8x128xf32>
    %34 = arith.negf %33 : vector<8x128xf32>
    %35 = math.exp %34 : vector<8x128xf32>
    %cst_20 = arith.constant 1.000000e+00 : f32
    %36 = vector.broadcast %cst_20 : f32 to vector<8x128xf32>
    %37 = arith.addf %36, %35 : vector<8x128xf32>
    %38 = arith.divf %36, %37 : vector<8x128xf32>
    %39 = arith.mulf %30, %5 : vector<8x128xf32>
    %40 = arith.mulf %24, %32 : vector<8x128xf32>
    %41 = arith.addf %39, %40 : vector<8x128xf32>
    %42 = math.tanh %41 : vector<8x128xf32>
    %43 = arith.mulf %38, %42 : vector<8x128xf32>
    %44 = tpu.concatenate %43, %3 in 1 : vector<8x128xf32>, vector<8x128xf32> -> vector<8x256xf32>
    %c1_21 = arith.constant 1 : index
    %c0_22 = arith.constant 0 : index
    %c0_23 = arith.constant 0 : index
    %45 = vector.load %arg2[%c1_21, %c0_22, %c0_23] : memref<2x256x512xf32, #tpu.memory_space<vmem>>, vector<1x256x512xf32>
    %46 = vector.shape_cast %45 : vector<1x256x512xf32> to vector<256x512xf32>
    %cst_24 = arith.constant dense<0.000000e+00> : vector<8x512xf32>
    %47 = tpu.matmul %44, %46, %cst_24 {dimension_numbers = #tpu.dot_dimension_numbers<[1], [0], [0], [1], [0, 0, 1, 1], [], []>} : vector<8x256xf32>, vector<256x512xf32>, vector<8x512xf32> -> vector<8x512xf32>
    %c1_25 = arith.constant 1 : index
    %c0_26 = arith.constant 0 : index
    %c0_27 = arith.constant 0 : index
    %48 = vector.load %arg3[%c1_25, %c0_26, %c0_27] : memref<2x1x512xf32, #tpu.memory_space<vmem>>, vector<1x1x512xf32>
    %49 = vector.shape_cast %48 : vector<1x1x512xf32> to vector<1x512xf32>
    %50 = vector.broadcast %49 : vector<1x512xf32> to vector<8x512xf32>
    %51 = arith.addf %47, %50 : vector<8x512xf32>
    %52 = vector.extract_strided_slice %51 {offsets = [0, 0], sizes = [8, 128], strides = [1, 1]} : vector<8x512xf32> to vector<8x128xf32>
    %53 = arith.negf %52 : vector<8x128xf32>
    %54 = math.exp %53 : vector<8x128xf32>
    %cst_28 = arith.constant 1.000000e+00 : f32
    %55 = vector.broadcast %cst_28 : f32 to vector<8x128xf32>
    %56 = arith.addf %55, %54 : vector<8x128xf32>
    %57 = arith.divf %55, %56 : vector<8x128xf32>
    %58 = vector.extract_strided_slice %51 {offsets = [0, 128], sizes = [8, 128], strides = [1, 1]} : vector<8x512xf32> to vector<8x128xf32>
    %59 = arith.negf %58 : vector<8x128xf32>
    %60 = math.exp %59 : vector<8x128xf32>
    %cst_29 = arith.constant 1.000000e+00 : f32
    %61 = vector.broadcast %cst_29 : f32 to vector<8x128xf32>
    %62 = arith.addf %61, %60 : vector<8x128xf32>
    %63 = arith.divf %61, %62 : vector<8x128xf32>
    %64 = vector.extract_strided_slice %51 {offsets = [0, 256], sizes = [8, 128], strides = [1, 1]} : vector<8x512xf32> to vector<8x128xf32>
    %65 = math.tanh %64 : vector<8x128xf32>
    %66 = vector.extract_strided_slice %51 {offsets = [0, 384], sizes = [8, 128], strides = [1, 1]} : vector<8x512xf32> to vector<8x128xf32>
    %67 = arith.negf %66 : vector<8x128xf32>
    %68 = math.exp %67 : vector<8x128xf32>
    %cst_30 = arith.constant 1.000000e+00 : f32
    %69 = vector.broadcast %cst_30 : f32 to vector<8x128xf32>
    %70 = arith.addf %69, %68 : vector<8x128xf32>
    %71 = arith.divf %69, %70 : vector<8x128xf32>
    %72 = arith.mulf %63, %7 : vector<8x128xf32>
    %73 = arith.mulf %57, %65 : vector<8x128xf32>
    %74 = arith.addf %72, %73 : vector<8x128xf32>
    %75 = math.tanh %74 : vector<8x128xf32>
    %76 = arith.mulf %71, %75 : vector<8x128xf32>
    %77 = arith.index_cast %c0_i32 : i32 to index
    %c0_31 = arith.constant 0 : index
    %c0_32 = arith.constant 0 : index
    %78 = vector.load %arg11[%77, %c0_31, %c0_32] : memref<8x8x128xf32, #tpu.memory_space<vmem>>, vector<1x8x128xf32>
    %79 = vector.shape_cast %78 : vector<1x8x128xf32> to vector<8x128xf32>
    %80 = vector.shape_cast %76 : vector<8x128xf32> to vector<1x8x128xf32>
    tpu.vector_store %arg11[%77, %c0_31, %c0_32], %80 {strides = array<i32>} : memref<8x8x128xf32, #tpu.memory_space<vmem>>, vector<1x8x128xf32>,
    %c1_i32 = arith.constant 1 : i32
    %81 = arith.index_cast %c1_i32 : i32 to index
    %c0_33 = arith.constant 0 : index
    %c0_34 = arith.constant 0 : index
    %82 = vector.load %arg1[%81, %c0_33, %c0_34] : memref<8x8x128xf32, #tpu.memory_space<vmem>>, vector<1x8x128xf32>
    %83 = vector.shape_cast %82 : vector<1x8x128xf32> to vector<8x128xf32>
    %84 = tpu.concatenate %83, %43 in 1 : vector<8x128xf32>, vector<8x128xf32> -> vector<8x256xf32>
    %c0_35 = arith.constant 0 : index
    %c0_36 = arith.constant 0 : index
    %c0_37 = arith.constant 0 : index
    %85 = vector.load %arg2[%c0_35, %c0_36, %c0_37] : memref<2x256x512xf32, #tpu.memory_space<vmem>>, vector<1x256x512xf32>
    %86 = vector.shape_cast %85 : vector<1x256x512xf32> to vector<256x512xf32>
    %cst_38 = arith.constant dense<0.000000e+00> : vector<8x512xf32>
    %87 = tpu.matmul %84, %86, %cst_38 {dimension_numbers = #tpu.dot_dimension_numbers<[1], [0], [0], [1], [0, 0, 1, 1], [], []>} : vector<8x256xf32>, vector<256x512xf32>, vector<8x512xf32> -> vector<8x512xf32>
    %c0_39 = arith.constant 0 : index
    %c0_40 = arith.constant 0 : index
    %c0_41 = arith.constant 0 : index
    %88 = vector.load %arg3[%c0_39, %c0_40, %c0_41] : memref<2x1x512xf32, #tpu.memory_space<vmem>>, vector<1x1x512xf32>
    %89 = vector.shape_cast %88 : vector<1x1x512xf32> to vector<1x512xf32>
    %90 = vector.broadcast %89 : vector<1x512xf32> to vector<8x512xf32>
    %91 = arith.addf %87, %90 : vector<8x512xf32>
    %92 = vector.extract_strided_slice %91 {offsets = [0, 0], sizes = [8, 128], strides = [1, 1]} : vector<8x512xf32> to vector<8x128xf32>
    %93 = arith.negf %92 : vector<8x128xf32>
    %94 = math.exp %93 : vector<8x128xf32>
    %cst_42 = arith.constant 1.000000e+00 : f32
    %95 = vector.broadcast %cst_42 : f32 to vector<8x128xf32>
    %96 = arith.addf %95, %94 : vector<8x128xf32>
    %97 = arith.divf %95, %96 : vector<8x128xf32>
    %98 = vector.extract_strided_slice %91 {offsets = [0, 128], sizes = [8, 128], strides = [1, 1]} : vector<8x512xf32> to vector<8x128xf32>
    %99 = arith.negf %98 : vector<8x128xf32>
    %100 = math.exp %99 : vector<8x128xf32>
    %cst_43 = arith.constant 1.000000e+00 : f32
    %101 = vector.broadcast %cst_43 : f32 to vector<8x128xf32>
    %102 = arith.addf %101, %100 : vector<8x128xf32>
    %103 = arith.divf %101, %102 : vector<8x128xf32>
    %104 = vector.extract_strided_slice %91 {offsets = [0, 256], sizes = [8, 128], strides = [1, 1]} : vector<8x512xf32> to vector<8x128xf32>
    %105 = math.tanh %104 : vector<8x128xf32>
    %106 = vector.extract_strided_slice %91 {offsets = [0, 384], sizes = [8, 128], strides = [1, 1]} : vector<8x512xf32> to vector<8x128xf32>
    %107 = arith.negf %106 : vector<8x128xf32>
    %108 = math.exp %107 : vector<8x128xf32>
    %cst_44 = arith.constant 1.000000e+00 : f32
    %109 = vector.broadcast %cst_44 : f32 to vector<8x128xf32>
    %110 = arith.addf %109, %108 : vector<8x128xf32>
    %111 = arith.divf %109, %110 : vector<8x128xf32>
    %112 = arith.mulf %103, %41 : vector<8x128xf32>
    %113 = arith.mulf %97, %105 : vector<8x128xf32>
    %114 = arith.addf %112, %113 : vector<8x128xf32>
    %115 = math.tanh %114 : vector<8x128xf32>
    %116 = arith.mulf %111, %115 : vector<8x128xf32>
    %117 = tpu.concatenate %116, %76 in 1 : vector<8x128xf32>, vector<8x128xf32> -> vector<8x256xf32>
    %c1_45 = arith.constant 1 : index
    %c0_46 = arith.constant 0 : index
    %c0_47 = arith.constant 0 : index
    %118 = vector.load %arg2[%c1_45, %c0_46, %c0_47] : memref<2x256x512xf32, #tpu.memory_space<vmem>>, vector<1x256x512xf32>
    %119 = vector.shape_cast %118 : vector<1x256x512xf32> to vector<256x512xf32>
    %cst_48 = arith.constant dense<0.000000e+00> : vector<8x512xf32>
    %120 = tpu.matmul %117, %119, %cst_48 {dimension_numbers = #tpu.dot_dimension_numbers<[1], [0], [0], [1], [0, 0, 1, 1], [], []>} : vector<8x256xf32>, vector<256x512xf32>, vector<8x512xf32> -> vector<8x512xf32>
    %c1_49 = arith.constant 1 : index
    %c0_50 = arith.constant 0 : index
    %c0_51 = arith.constant 0 : index
    %121 = vector.load %arg3[%c1_49, %c0_50, %c0_51] : memref<2x1x512xf32, #tpu.memory_space<vmem>>, vector<1x1x512xf32>
    %122 = vector.shape_cast %121 : vector<1x1x512xf32> to vector<1x512xf32>
    %123 = vector.broadcast %122 : vector<1x512xf32> to vector<8x512xf32>
    %124 = arith.addf %120, %123 : vector<8x512xf32>
    %125 = vector.extract_strided_slice %124 {offsets = [0, 0], sizes = [8, 128], strides = [1, 1]} : vector<8x512xf32> to vector<8x128xf32>
    %126 = arith.negf %125 : vector<8x128xf32>
    %127 = math.exp %126 : vector<8x128xf32>
    %cst_52 = arith.constant 1.000000e+00 : f32
    %128 = vector.broadcast %cst_52 : f32 to vector<8x128xf32>
    %129 = arith.addf %128, %127 : vector<8x128xf32>
    %130 = arith.divf %128, %129 : vector<8x128xf32>
    %131 = vector.extract_strided_slice %124 {offsets = [0, 128], sizes = [8, 128], strides = [1, 1]} : vector<8x512xf32> to vector<8x128xf32>
    %132 = arith.negf %131 : vector<8x128xf32>
    %133 = math.exp %132 : vector<8x128xf32>
    %cst_53 = arith.constant 1.000000e+00 : f32
    %134 = vector.broadcast %cst_53 : f32 to vector<8x128xf32>
    %135 = arith.addf %134, %133 : vector<8x128xf32>
    %136 = arith.divf %134, %135 : vector<8x128xf32>
    %137 = vector.extract_strided_slice %124 {offsets = [0, 256], sizes = [8, 128], strides = [1, 1]} : vector<8x512xf32> to vector<8x128xf32>
    %138 = math.tanh %137 : vector<8x128xf32>
    %139 = vector.extract_strided_slice %124 {offsets = [0, 384], sizes = [8, 128], strides = [1, 1]} : vector<8x512xf32> to vector<8x128xf32>
    %140 = arith.negf %139 : vector<8x128xf32>
    %141 = math.exp %140 : vector<8x128xf32>
    %cst_54 = arith.constant 1.000000e+00 : f32
    %142 = vector.broadcast %cst_54 : f32 to vector<8x128xf32>
    %143 = arith.addf %142, %141 : vector<8x128xf32>
    %144 = arith.divf %142, %143 : vector<8x128xf32>
    %145 = arith.mulf %136, %74 : vector<8x128xf32>
    %146 = arith.mulf %130, %138 : vector<8x128xf32>
    %147 = arith.addf %145, %146 : vector<8x128xf32>
    %148 = math.tanh %147 : vector<8x128xf32>
    %149 = arith.mulf %144, %148 : vector<8x128xf32>
    %150 = arith.index_cast %c1_i32 : i32 to index
    %c0_55 = arith.constant 0 : index
    %c0_56 = arith.constant 0 : index
    %151 = vector.load %arg11[%150, %c0_55, %c0_56] : memref<8x8x128xf32, #tpu.memory_space<vmem>>, vector<1x8x128xf32>
    %152 = vector.shape_cast %151 : vector<1x8x128xf32> to vector<8x128xf32>
    %153 = vector.shape_cast %149 : vector<8x128xf32> to vector<1x8x128xf32>
    tpu.vector_store %arg11[%150, %c0_55, %c0_56], %153 {strides = array<i32>} : memref<8x8x128xf32, #tpu.memory_space<vmem>>, vector<1x8x128xf32>,
    %c2_i32 = arith.constant 2 : i32
    %154 = arith.index_cast %c2_i32 : i32 to index
    %c0_57 = arith.constant 0 : index
    %c0_58 = arith.constant 0 : index
    %155 = vector.load %arg1[%154, %c0_57, %c0_58] : memref<8x8x128xf32, #tpu.memory_space<vmem>>, vector<1x8x128xf32>
    %156 = vector.shape_cast %155 : vector<1x8x128xf32> to vector<8x128xf32>
    %157 = tpu.concatenate %156, %116 in 1 : vector<8x128xf32>, vector<8x128xf32> -> vector<8x256xf32>
    %c0_59 = arith.constant 0 : index
    %c0_60 = arith.constant 0 : index
    %c0_61 = arith.constant 0 : index
    %158 = vector.load %arg2[%c0_59, %c0_60, %c0_61] : memref<2x256x512xf32, #tpu.memory_space<vmem>>, vector<1x256x512xf32>
    %159 = vector.shape_cast %158 : vector<1x256x512xf32> to vector<256x512xf32>
    %cst_62 = arith.constant dense<0.000000e+00> : vector<8x512xf32>
    %160 = tpu.matmul %157, %159, %cst_62 {dimension_numbers = #tpu.dot_dimension_numbers<[1], [0], [0], [1], [0, 0, 1, 1], [], []>} : vector<8x256xf32>, vector<256x512xf32>, vector<8x512xf32> -> vector<8x512xf32>
    %c0_63 = arith.constant 0 : index
    %c0_64 = arith.constant 0 : index
    %c0_65 = arith.constant 0 : index
    %161 = vector.load %arg3[%c0_63, %c0_64, %c0_65] : memref<2x1x512xf32, #tpu.memory_space<vmem>>, vector<1x1x512xf32>
    %162 = vector.shape_cast %161 : vector<1x1x512xf32> to vector<1x512xf32>
    %163 = vector.broadcast %162 : vector<1x512xf32> to vector<8x512xf32>
    %164 = arith.addf %160, %163 : vector<8x512xf32>
    %165 = vector.extract_strided_slice %164 {offsets = [0, 0], sizes = [8, 128], strides = [1, 1]} : vector<8x512xf32> to vector<8x128xf32>
    %166 = arith.negf %165 : vector<8x128xf32>
    %167 = math.exp %166 : vector<8x128xf32>
    %cst_66 = arith.constant 1.000000e+00 : f32
    %168 = vector.broadcast %cst_66 : f32 to vector<8x128xf32>
    %169 = arith.addf %168, %167 : vector<8x128xf32>
    %170 = arith.divf %168, %169 : vector<8x128xf32>
    %171 = vector.extract_strided_slice %164 {offsets = [0, 128], sizes = [8, 128], strides = [1, 1]} : vector<8x512xf32> to vector<8x128xf32>
    %172 = arith.negf %171 : vector<8x128xf32>
    %173 = math.exp %172 : vector<8x128xf32>
    %cst_67 = arith.constant 1.000000e+00 : f32
    %174 = vector.broadcast %cst_67 : f32 to vector<8x128xf32>
    %175 = arith.addf %174, %173 : vector<8x128xf32>
    %176 = arith.divf %174, %175 : vector<8x128xf32>
    %177 = vector.extract_strided_slice %164 {offsets = [0, 256], sizes = [8, 128], strides = [1, 1]} : vector<8x512xf32> to vector<8x128xf32>
    %178 = math.tanh %177 : vector<8x128xf32>
    %179 = vector.extract_strided_slice %164 {offsets = [0, 384], sizes = [8, 128], strides = [1, 1]} : vector<8x512xf32> to vector<8x128xf32>
    %180 = arith.negf %179 : vector<8x128xf32>
    %181 = math.exp %180 : vector<8x128xf32>
    %cst_68 = arith.constant 1.000000e+00 : f32
    %182 = vector.broadcast %cst_68 : f32 to vector<8x128xf32>
    %183 = arith.addf %182, %181 : vector<8x128xf32>
    %184 = arith.divf %182, %183 : vector<8x128xf32>
    %185 = arith.mulf %176, %114 : vector<8x128xf32>
    %186 = arith.mulf %170, %178 : vector<8x128xf32>
    %187 = arith.addf %185, %186 : vector<8x128xf32>
    %188 = math.tanh %187 : vector<8x128xf32>
    %189 = arith.mulf %184, %188 : vector<8x128xf32>
    %190 = tpu.concatenate %189, %149 in 1 : vector<8x128xf32>, vector<8x128xf32> -> vector<8x256xf32>
    %c1_69 = arith.constant 1 : index
    %c0_70 = arith.constant 0 : index
    %c0_71 = arith.constant 0 : index
    %191 = vector.load %arg2[%c1_69, %c0_70, %c0_71] : memref<2x256x512xf32, #tpu.memory_space<vmem>>, vector<1x256x512xf32>
    %192 = vector.shape_cast %191 : vector<1x256x512xf32> to vector<256x512xf32>
    %cst_72 = arith.constant dense<0.000000e+00> : vector<8x512xf32>
    %193 = tpu.matmul %190, %192, %cst_72 {dimension_numbers = #tpu.dot_dimension_numbers<[1], [0], [0], [1], [0, 0, 1, 1], [], []>} : vector<8x256xf32>, vector<256x512xf32>, vector<8x512xf32> -> vector<8x512xf32>
    %c1_73 = arith.constant 1 : index
    %c0_74 = arith.constant 0 : index
    %c0_75 = arith.constant 0 : index
    %194 = vector.load %arg3[%c1_73, %c0_74, %c0_75] : memref<2x1x512xf32, #tpu.memory_space<vmem>>, vector<1x1x512xf32>
    %195 = vector.shape_cast %194 : vector<1x1x512xf32> to vector<1x512xf32>
    %196 = vector.broadcast %195 : vector<1x512xf32> to vector<8x512xf32>
    %197 = arith.addf %193, %196 : vector<8x512xf32>
    %198 = vector.extract_strided_slice %197 {offsets = [0, 0], sizes = [8, 128], strides = [1, 1]} : vector<8x512xf32> to vector<8x128xf32>
    %199 = arith.negf %198 : vector<8x128xf32>
    %200 = math.exp %199 : vector<8x128xf32>
    %cst_76 = arith.constant 1.000000e+00 : f32
    %201 = vector.broadcast %cst_76 : f32 to vector<8x128xf32>
    %202 = arith.addf %201, %200 : vector<8x128xf32>
    %203 = arith.divf %201, %202 : vector<8x128xf32>
    %204 = vector.extract_strided_slice %197 {offsets = [0, 128], sizes = [8, 128], strides = [1, 1]} : vector<8x512xf32> to vector<8x128xf32>
    %205 = arith.negf %204 : vector<8x128xf32>
    %206 = math.exp %205 : vector<8x128xf32>
    %cst_77 = arith.constant 1.000000e+00 : f32
    %207 = vector.broadcast %cst_77 : f32 to vector<8x128xf32>
    %208 = arith.addf %207, %206 : vector<8x128xf32>
    %209 = arith.divf %207, %208 : vector<8x128xf32>
    %210 = vector.extract_strided_slice %197 {offsets = [0, 256], sizes = [8, 128], strides = [1, 1]} : vector<8x512xf32> to vector<8x128xf32>
    %211 = math.tanh %210 : vector<8x128xf32>
    %212 = vector.extract_strided_slice %197 {offsets = [0, 384], sizes = [8, 128], strides = [1, 1]} : vector<8x512xf32> to vector<8x128xf32>
    %213 = arith.negf %212 : vector<8x128xf32>
    %214 = math.exp %213 : vector<8x128xf32>
    %cst_78 = arith.constant 1.000000e+00 : f32
    %215 = vector.broadcast %cst_78 : f32 to vector<8x128xf32>
    %216 = arith.addf %215, %214 : vector<8x128xf32>
    %217 = arith.divf %215, %216 : vector<8x128xf32>
    %218 = arith.mulf %209, %147 : vector<8x128xf32>
    %219 = arith.mulf %203, %211 : vector<8x128xf32>
    %220 = arith.addf %218, %219 : vector<8x128xf32>
    %221 = math.tanh %220 : vector<8x128xf32>
    %222 = arith.mulf %217, %221 : vector<8x128xf32>
    %223 = arith.index_cast %c2_i32 : i32 to index
    %c0_79 = arith.constant 0 : index
    %c0_80 = arith.constant 0 : index
    %224 = vector.load %arg11[%223, %c0_79, %c0_80] : memref<8x8x128xf32, #tpu.memory_space<vmem>>, vector<1x8x128xf32>
    %225 = vector.shape_cast %224 : vector<1x8x128xf32> to vector<8x128xf32>
    %226 = vector.shape_cast %222 : vector<8x128xf32> to vector<1x8x128xf32>
    tpu.vector_store %arg11[%223, %c0_79, %c0_80], %226 {strides = array<i32>} : memref<8x8x128xf32, #tpu.memory_space<vmem>>, vector<1x8x128xf32>,
    %c3_i32 = arith.constant 3 : i32
    %227 = arith.index_cast %c3_i32 : i32 to index
    %c0_81 = arith.constant 0 : index
    %c0_82 = arith.constant 0 : index
    %228 = vector.load %arg1[%227, %c0_81, %c0_82] : memref<8x8x128xf32, #tpu.memory_space<vmem>>, vector<1x8x128xf32>
    %229 = vector.shape_cast %228 : vector<1x8x128xf32> to vector<8x128xf32>
    %230 = tpu.concatenate %229, %189 in 1 : vector<8x128xf32>, vector<8x128xf32> -> vector<8x256xf32>
    %c0_83 = arith.constant 0 : index
    %c0_84 = arith.constant 0 : index
    %c0_85 = arith.constant 0 : index
    %231 = vector.load %arg2[%c0_83, %c0_84, %c0_85] : memref<2x256x512xf32, #tpu.memory_space<vmem>>, vector<1x256x512xf32>
    %232 = vector.shape_cast %231 : vector<1x256x512xf32> to vector<256x512xf32>
    %cst_86 = arith.constant dense<0.000000e+00> : vector<8x512xf32>
    %233 = tpu.matmul %230, %232, %cst_86 {dimension_numbers = #tpu.dot_dimension_numbers<[1], [0], [0], [1], [0, 0, 1, 1], [], []>} : vector<8x256xf32>, vector<256x512xf32>, vector<8x512xf32> -> vector<8x512xf32>
    %c0_87 = arith.constant 0 : index
    %c0_88 = arith.constant 0 : index
    %c0_89 = arith.constant 0 : index
    %234 = vector.load %arg3[%c0_87, %c0_88, %c0_89] : memref<2x1x512xf32, #tpu.memory_space<vmem>>, vector<1x1x512xf32>
    %235 = vector.shape_cast %234 : vector<1x1x512xf32> to vector<1x512xf32>
    %236 = vector.broadcast %235 : vector<1x512xf32> to vector<8x512xf32>
    %237 = arith.addf %233, %236 : vector<8x512xf32>
    %238 = vector.extract_strided_slice %237 {offsets = [0, 0], sizes = [8, 128], strides = [1, 1]} : vector<8x512xf32> to vector<8x128xf32>
    %239 = arith.negf %238 : vector<8x128xf32>
    %240 = math.exp %239 : vector<8x128xf32>
    %cst_90 = arith.constant 1.000000e+00 : f32
    %241 = vector.broadcast %cst_90 : f32 to vector<8x128xf32>
    %242 = arith.addf %241, %240 : vector<8x128xf32>
    %243 = arith.divf %241, %242 : vector<8x128xf32>
    %244 = vector.extract_strided_slice %237 {offsets = [0, 128], sizes = [8, 128], strides = [1, 1]} : vector<8x512xf32> to vector<8x128xf32>
    %245 = arith.negf %244 : vector<8x128xf32>
    %246 = math.exp %245 : vector<8x128xf32>
    %cst_91 = arith.constant 1.000000e+00 : f32
    %247 = vector.broadcast %cst_91 : f32 to vector<8x128xf32>
    %248 = arith.addf %247, %246 : vector<8x128xf32>
    %249 = arith.divf %247, %248 : vector<8x128xf32>
    %250 = vector.extract_strided_slice %237 {offsets = [0, 256], sizes = [8, 128], strides = [1, 1]} : vector<8x512xf32> to vector<8x128xf32>
    %251 = math.tanh %250 : vector<8x128xf32>
    %252 = vector.extract_strided_slice %237 {offsets = [0, 384], sizes = [8, 128], strides = [1, 1]} : vector<8x512xf32> to vector<8x128xf32>
    %253 = arith.negf %252 : vector<8x128xf32>
    %254 = math.exp %253 : vector<8x128xf32>
    %cst_92 = arith.constant 1.000000e+00 : f32
    %255 = vector.broadcast %cst_92 : f32 to vector<8x128xf32>
    %256 = arith.addf %255, %254 : vector<8x128xf32>
    %257 = arith.divf %255, %256 : vector<8x128xf32>
    %258 = arith.mulf %249, %187 : vector<8x128xf32>
    %259 = arith.mulf %243, %251 : vector<8x128xf32>
    %260 = arith.addf %258, %259 : vector<8x128xf32>
    %261 = math.tanh %260 : vector<8x128xf32>
    %262 = arith.mulf %257, %261 : vector<8x128xf32>
    %263 = tpu.concatenate %262, %222 in 1 : vector<8x128xf32>, vector<8x128xf32> -> vector<8x256xf32>
    %c1_93 = arith.constant 1 : index
    %c0_94 = arith.constant 0 : index
    %c0_95 = arith.constant 0 : index
    %264 = vector.load %arg2[%c1_93, %c0_94, %c0_95] : memref<2x256x512xf32, #tpu.memory_space<vmem>>, vector<1x256x512xf32>
    %265 = vector.shape_cast %264 : vector<1x256x512xf32> to vector<256x512xf32>
    %cst_96 = arith.constant dense<0.000000e+00> : vector<8x512xf32>
    %266 = tpu.matmul %263, %265, %cst_96 {dimension_numbers = #tpu.dot_dimension_numbers<[1], [0], [0], [1], [0, 0, 1, 1], [], []>} : vector<8x256xf32>, vector<256x512xf32>, vector<8x512xf32> -> vector<8x512xf32>
    %c1_97 = arith.constant 1 : index
    %c0_98 = arith.constant 0 : index
    %c0_99 = arith.constant 0 : index
    %267 = vector.load %arg3[%c1_97, %c0_98, %c0_99] : memref<2x1x512xf32, #tpu.memory_space<vmem>>, vector<1x1x512xf32>
    %268 = vector.shape_cast %267 : vector<1x1x512xf32> to vector<1x512xf32>
    %269 = vector.broadcast %268 : vector<1x512xf32> to vector<8x512xf32>
    %270 = arith.addf %266, %269 : vector<8x512xf32>
    %271 = vector.extract_strided_slice %270 {offsets = [0, 0], sizes = [8, 128], strides = [1, 1]} : vector<8x512xf32> to vector<8x128xf32>
    %272 = arith.negf %271 : vector<8x128xf32>
    %273 = math.exp %272 : vector<8x128xf32>
    %cst_100 = arith.constant 1.000000e+00 : f32
    %274 = vector.broadcast %cst_100 : f32 to vector<8x128xf32>
    %275 = arith.addf %274, %273 : vector<8x128xf32>
    %276 = arith.divf %274, %275 : vector<8x128xf32>
    %277 = vector.extract_strided_slice %270 {offsets = [0, 128], sizes = [8, 128], strides = [1, 1]} : vector<8x512xf32> to vector<8x128xf32>
    %278 = arith.negf %277 : vector<8x128xf32>
    %279 = math.exp %278 : vector<8x128xf32>
    %cst_101 = arith.constant 1.000000e+00 : f32
    %280 = vector.broadcast %cst_101 : f32 to vector<8x128xf32>
    %281 = arith.addf %280, %279 : vector<8x128xf32>
    %282 = arith.divf %280, %281 : vector<8x128xf32>
    %283 = vector.extract_strided_slice %270 {offsets = [0, 256], sizes = [8, 128], strides = [1, 1]} : vector<8x512xf32> to vector<8x128xf32>
    %284 = math.tanh %283 : vector<8x128xf32>
    %285 = vector.extract_strided_slice %270 {offsets = [0, 384], sizes = [8, 128], strides = [1, 1]} : vector<8x512xf32> to vector<8x128xf32>
    %286 = arith.negf %285 : vector<8x128xf32>
    %287 = math.exp %286 : vector<8x128xf32>
    %cst_102 = arith.constant 1.000000e+00 : f32
    %288 = vector.broadcast %cst_102 : f32 to vector<8x128xf32>
    %289 = arith.addf %288, %287 : vector<8x128xf32>
    %290 = arith.divf %288, %289 : vector<8x128xf32>
    %291 = arith.mulf %282, %220 : vector<8x128xf32>
    %292 = arith.mulf %276, %284 : vector<8x128xf32>
    %293 = arith.addf %291, %292 : vector<8x128xf32>
    %294 = math.tanh %293 : vector<8x128xf32>
    %295 = arith.mulf %290, %294 : vector<8x128xf32>
    %296 = arith.index_cast %c3_i32 : i32 to index
    %c0_103 = arith.constant 0 : index
    %c0_104 = arith.constant 0 : index
    %297 = vector.load %arg11[%296, %c0_103, %c0_104] : memref<8x8x128xf32, #tpu.memory_space<vmem>>, vector<1x8x128xf32>
    %298 = vector.shape_cast %297 : vector<1x8x128xf32> to vector<8x128xf32>
    %299 = vector.shape_cast %295 : vector<8x128xf32> to vector<1x8x128xf32>
    tpu.vector_store %arg11[%296, %c0_103, %c0_104], %299 {strides = array<i32>} : memref<8x8x128xf32, #tpu.memory_space<vmem>>, vector<1x8x128xf32>,
    %c4_i32 = arith.constant 4 : i32
    %300 = arith.index_cast %c4_i32 : i32 to index
    %c0_105 = arith.constant 0 : index
    %c0_106 = arith.constant 0 : index
    %301 = vector.load %arg1[%300, %c0_105, %c0_106] : memref<8x8x128xf32, #tpu.memory_space<vmem>>, vector<1x8x128xf32>
    %302 = vector.shape_cast %301 : vector<1x8x128xf32> to vector<8x128xf32>
    %303 = tpu.concatenate %302, %262 in 1 : vector<8x128xf32>, vector<8x128xf32> -> vector<8x256xf32>
    %c0_107 = arith.constant 0 : index
    %c0_108 = arith.constant 0 : index
    %c0_109 = arith.constant 0 : index
    %304 = vector.load %arg2[%c0_107, %c0_108, %c0_109] : memref<2x256x512xf32, #tpu.memory_space<vmem>>, vector<1x256x512xf32>
    %305 = vector.shape_cast %304 : vector<1x256x512xf32> to vector<256x512xf32>
    %cst_110 = arith.constant dense<0.000000e+00> : vector<8x512xf32>
    %306 = tpu.matmul %303, %305, %cst_110 {dimension_numbers = #tpu.dot_dimension_numbers<[1], [0], [0], [1], [0, 0, 1, 1], [], []>} : vector<8x256xf32>, vector<256x512xf32>, vector<8x512xf32> -> vector<8x512xf32>
    %c0_111 = arith.constant 0 : index
    %c0_112 = arith.constant 0 : index
    %c0_113 = arith.constant 0 : index
    %307 = vector.load %arg3[%c0_111, %c0_112, %c0_113] : memref<2x1x512xf32, #tpu.memory_space<vmem>>, vector<1x1x512xf32>
    %308 = vector.shape_cast %307 : vector<1x1x512xf32> to vector<1x512xf32>
    %309 = vector.broadcast %308 : vector<1x512xf32> to vector<8x512xf32>
    %310 = arith.addf %306, %309 : vector<8x512xf32>
    %311 = vector.extract_strided_slice %310 {offsets = [0, 0], sizes = [8, 128], strides = [1, 1]} : vector<8x512xf32> to vector<8x128xf32>
    %312 = arith.negf %311 : vector<8x128xf32>
    %313 = math.exp %312 : vector<8x128xf32>
    %cst_114 = arith.constant 1.000000e+00 : f32
    %314 = vector.broadcast %cst_114 : f32 to vector<8x128xf32>
    %315 = arith.addf %314, %313 : vector<8x128xf32>
    %316 = arith.divf %314, %315 : vector<8x128xf32>
    %317 = vector.extract_strided_slice %310 {offsets = [0, 128], sizes = [8, 128], strides = [1, 1]} : vector<8x512xf32> to vector<8x128xf32>
    %318 = arith.negf %317 : vector<8x128xf32>
    %319 = math.exp %318 : vector<8x128xf32>
    %cst_115 = arith.constant 1.000000e+00 : f32
    %320 = vector.broadcast %cst_115 : f32 to vector<8x128xf32>
    %321 = arith.addf %320, %319 : vector<8x128xf32>
    %322 = arith.divf %320, %321 : vector<8x128xf32>
    %323 = vector.extract_strided_slice %310 {offsets = [0, 256], sizes = [8, 128], strides = [1, 1]} : vector<8x512xf32> to vector<8x128xf32>
    %324 = math.tanh %323 : vector<8x128xf32>
    %325 = vector.extract_strided_slice %310 {offsets = [0, 384], sizes = [8, 128], strides = [1, 1]} : vector<8x512xf32> to vector<8x128xf32>
    %326 = arith.negf %325 : vector<8x128xf32>
    %327 = math.exp %326 : vector<8x128xf32>
    %cst_116 = arith.constant 1.000000e+00 : f32
    %328 = vector.broadcast %cst_116 : f32 to vector<8x128xf32>
    %329 = arith.addf %328, %327 : vector<8x128xf32>
    %330 = arith.divf %328, %329 : vector<8x128xf32>
    %331 = arith.mulf %322, %260 : vector<8x128xf32>
    %332 = arith.mulf %316, %324 : vector<8x128xf32>
    %333 = arith.addf %331, %332 : vector<8x128xf32>
    %334 = math.tanh %333 : vector<8x128xf32>
    %335 = arith.mulf %330, %334 : vector<8x128xf32>
    %336 = tpu.concatenate %335, %295 in 1 : vector<8x128xf32>, vector<8x128xf32> -> vector<8x256xf32>
    %c1_117 = arith.constant 1 : index
    %c0_118 = arith.constant 0 : index
    %c0_119 = arith.constant 0 : index
    %337 = vector.load %arg2[%c1_117, %c0_118, %c0_119] : memref<2x256x512xf32, #tpu.memory_space<vmem>>, vector<1x256x512xf32>
    %338 = vector.shape_cast %337 : vector<1x256x512xf32> to vector<256x512xf32>
    %cst_120 = arith.constant dense<0.000000e+00> : vector<8x512xf32>
    %339 = tpu.matmul %336, %338, %cst_120 {dimension_numbers = #tpu.dot_dimension_numbers<[1], [0], [0], [1], [0, 0, 1, 1], [], []>} : vector<8x256xf32>, vector<256x512xf32>, vector<8x512xf32> -> vector<8x512xf32>
    %c1_121 = arith.constant 1 : index
    %c0_122 = arith.constant 0 : index
    %c0_123 = arith.constant 0 : index
    %340 = vector.load %arg3[%c1_121, %c0_122, %c0_123] : memref<2x1x512xf32, #tpu.memory_space<vmem>>, vector<1x1x512xf32>
    %341 = vector.shape_cast %340 : vector<1x1x512xf32> to vector<1x512xf32>
    %342 = vector.broadcast %341 : vector<1x512xf32> to vector<8x512xf32>
    %343 = arith.addf %339, %342 : vector<8x512xf32>
    %344 = vector.extract_strided_slice %343 {offsets = [0, 0], sizes = [8, 128], strides = [1, 1]} : vector<8x512xf32> to vector<8x128xf32>
    %345 = arith.negf %344 : vector<8x128xf32>
    %346 = math.exp %345 : vector<8x128xf32>
    %cst_124 = arith.constant 1.000000e+00 : f32
    %347 = vector.broadcast %cst_124 : f32 to vector<8x128xf32>
    %348 = arith.addf %347, %346 : vector<8x128xf32>
    %349 = arith.divf %347, %348 : vector<8x128xf32>
    %350 = vector.extract_strided_slice %343 {offsets = [0, 128], sizes = [8, 128], strides = [1, 1]} : vector<8x512xf32> to vector<8x128xf32>
    %351 = arith.negf %350 : vector<8x128xf32>
    %352 = math.exp %351 : vector<8x128xf32>
    %cst_125 = arith.constant 1.000000e+00 : f32
    %353 = vector.broadcast %cst_125 : f32 to vector<8x128xf32>
    %354 = arith.addf %353, %352 : vector<8x128xf32>
    %355 = arith.divf %353, %354 : vector<8x128xf32>
    %356 = vector.extract_strided_slice %343 {offsets = [0, 256], sizes = [8, 128], strides = [1, 1]} : vector<8x512xf32> to vector<8x128xf32>
    %357 = math.tanh %356 : vector<8x128xf32>
    %358 = vector.extract_strided_slice %343 {offsets = [0, 384], sizes = [8, 128], strides = [1, 1]} : vector<8x512xf32> to vector<8x128xf32>
    %359 = arith.negf %358 : vector<8x128xf32>
    %360 = math.exp %359 : vector<8x128xf32>
    %cst_126 = arith.constant 1.000000e+00 : f32
    %361 = vector.broadcast %cst_126 : f32 to vector<8x128xf32>
    %362 = arith.addf %361, %360 : vector<8x128xf32>
    %363 = arith.divf %361, %362 : vector<8x128xf32>
    %364 = arith.mulf %355, %293 : vector<8x128xf32>
    %365 = arith.mulf %349, %357 : vector<8x128xf32>
    %366 = arith.addf %364, %365 : vector<8x128xf32>
    %367 = math.tanh %366 : vector<8x128xf32>
    %368 = arith.mulf %363, %367 : vector<8x128xf32>
    %369 = arith.index_cast %c4_i32 : i32 to index
    %c0_127 = arith.constant 0 : index
    %c0_128 = arith.constant 0 : index
    %370 = vector.load %arg11[%369, %c0_127, %c0_128] : memref<8x8x128xf32, #tpu.memory_space<vmem>>, vector<1x8x128xf32>
    %371 = vector.shape_cast %370 : vector<1x8x128xf32> to vector<8x128xf32>
    %372 = vector.shape_cast %368 : vector<8x128xf32> to vector<1x8x128xf32>
    tpu.vector_store %arg11[%369, %c0_127, %c0_128], %372 {strides = array<i32>} : memref<8x8x128xf32, #tpu.memory_space<vmem>>, vector<1x8x128xf32>,
    %c5_i32 = arith.constant 5 : i32
    %373 = arith.index_cast %c5_i32 : i32 to index
    %c0_129 = arith.constant 0 : index
    %c0_130 = arith.constant 0 : index
    %374 = vector.load %arg1[%373, %c0_129, %c0_130] : memref<8x8x128xf32, #tpu.memory_space<vmem>>, vector<1x8x128xf32>
    %375 = vector.shape_cast %374 : vector<1x8x128xf32> to vector<8x128xf32>
    %376 = tpu.concatenate %375, %335 in 1 : vector<8x128xf32>, vector<8x128xf32> -> vector<8x256xf32>
    %c0_131 = arith.constant 0 : index
    %c0_132 = arith.constant 0 : index
    %c0_133 = arith.constant 0 : index
    %377 = vector.load %arg2[%c0_131, %c0_132, %c0_133] : memref<2x256x512xf32, #tpu.memory_space<vmem>>, vector<1x256x512xf32>
    %378 = vector.shape_cast %377 : vector<1x256x512xf32> to vector<256x512xf32>
    %cst_134 = arith.constant dense<0.000000e+00> : vector<8x512xf32>
    %379 = tpu.matmul %376, %378, %cst_134 {dimension_numbers = #tpu.dot_dimension_numbers<[1], [0], [0], [1], [0, 0, 1, 1], [], []>} : vector<8x256xf32>, vector<256x512xf32>, vector<8x512xf32> -> vector<8x512xf32>
    %c0_135 = arith.constant 0 : index
    %c0_136 = arith.constant 0 : index
    %c0_137 = arith.constant 0 : index
    %380 = vector.load %arg3[%c0_135, %c0_136, %c0_137] : memref<2x1x512xf32, #tpu.memory_space<vmem>>, vector<1x1x512xf32>
    %381 = vector.shape_cast %380 : vector<1x1x512xf32> to vector<1x512xf32>
    %382 = vector.broadcast %381 : vector<1x512xf32> to vector<8x512xf32>
    %383 = arith.addf %379, %382 : vector<8x512xf32>
    %384 = vector.extract_strided_slice %383 {offsets = [0, 0], sizes = [8, 128], strides = [1, 1]} : vector<8x512xf32> to vector<8x128xf32>
    %385 = arith.negf %384 : vector<8x128xf32>
    %386 = math.exp %385 : vector<8x128xf32>
    %cst_138 = arith.constant 1.000000e+00 : f32
    %387 = vector.broadcast %cst_138 : f32 to vector<8x128xf32>
    %388 = arith.addf %387, %386 : vector<8x128xf32>
    %389 = arith.divf %387, %388 : vector<8x128xf32>
    %390 = vector.extract_strided_slice %383 {offsets = [0, 128], sizes = [8, 128], strides = [1, 1]} : vector<8x512xf32> to vector<8x128xf32>
    %391 = arith.negf %390 : vector<8x128xf32>
    %392 = math.exp %391 : vector<8x128xf32>
    %cst_139 = arith.constant 1.000000e+00 : f32
    %393 = vector.broadcast %cst_139 : f32 to vector<8x128xf32>
    %394 = arith.addf %393, %392 : vector<8x128xf32>
    %395 = arith.divf %393, %394 : vector<8x128xf32>
    %396 = vector.extract_strided_slice %383 {offsets = [0, 256], sizes = [8, 128], strides = [1, 1]} : vector<8x512xf32> to vector<8x128xf32>
    %397 = math.tanh %396 : vector<8x128xf32>
    %398 = vector.extract_strided_slice %383 {offsets = [0, 384], sizes = [8, 128], strides = [1, 1]} : vector<8x512xf32> to vector<8x128xf32>
    %399 = arith.negf %398 : vector<8x128xf32>
    %400 = math.exp %399 : vector<8x128xf32>
    %cst_140 = arith.constant 1.000000e+00 : f32
    %401 = vector.broadcast %cst_140 : f32 to vector<8x128xf32>
    %402 = arith.addf %401, %400 : vector<8x128xf32>
    %403 = arith.divf %401, %402 : vector<8x128xf32>
    %404 = arith.mulf %395, %333 : vector<8x128xf32>
    %405 = arith.mulf %389, %397 : vector<8x128xf32>
    %406 = arith.addf %404, %405 : vector<8x128xf32>
    %407 = math.tanh %406 : vector<8x128xf32>
    %408 = arith.mulf %403, %407 : vector<8x128xf32>
    %409 = tpu.concatenate %408, %368 in 1 : vector<8x128xf32>, vector<8x128xf32> -> vector<8x256xf32>
    %c1_141 = arith.constant 1 : index
    %c0_142 = arith.constant 0 : index
    %c0_143 = arith.constant 0 : index
    %410 = vector.load %arg2[%c1_141, %c0_142, %c0_143] : memref<2x256x512xf32, #tpu.memory_space<vmem>>, vector<1x256x512xf32>
    %411 = vector.shape_cast %410 : vector<1x256x512xf32> to vector<256x512xf32>
    %cst_144 = arith.constant dense<0.000000e+00> : vector<8x512xf32>
    %412 = tpu.matmul %409, %411, %cst_144 {dimension_numbers = #tpu.dot_dimension_numbers<[1], [0], [0], [1], [0, 0, 1, 1], [], []>} : vector<8x256xf32>, vector<256x512xf32>, vector<8x512xf32> -> vector<8x512xf32>
    %c1_145 = arith.constant 1 : index
    %c0_146 = arith.constant 0 : index
    %c0_147 = arith.constant 0 : index
    %413 = vector.load %arg3[%c1_145, %c0_146, %c0_147] : memref<2x1x512xf32, #tpu.memory_space<vmem>>, vector<1x1x512xf32>
    %414 = vector.shape_cast %413 : vector<1x1x512xf32> to vector<1x512xf32>
    %415 = vector.broadcast %414 : vector<1x512xf32> to vector<8x512xf32>
    %416 = arith.addf %412, %415 : vector<8x512xf32>
    %417 = vector.extract_strided_slice %416 {offsets = [0, 0], sizes = [8, 128], strides = [1, 1]} : vector<8x512xf32> to vector<8x128xf32>
    %418 = arith.negf %417 : vector<8x128xf32>
    %419 = math.exp %418 : vector<8x128xf32>
    %cst_148 = arith.constant 1.000000e+00 : f32
    %420 = vector.broadcast %cst_148 : f32 to vector<8x128xf32>
    %421 = arith.addf %420, %419 : vector<8x128xf32>
    %422 = arith.divf %420, %421 : vector<8x128xf32>
    %423 = vector.extract_strided_slice %416 {offsets = [0, 128], sizes = [8, 128], strides = [1, 1]} : vector<8x512xf32> to vector<8x128xf32>
    %424 = arith.negf %423 : vector<8x128xf32>
    %425 = math.exp %424 : vector<8x128xf32>
    %cst_149 = arith.constant 1.000000e+00 : f32
    %426 = vector.broadcast %cst_149 : f32 to vector<8x128xf32>
    %427 = arith.addf %426, %425 : vector<8x128xf32>
    %428 = arith.divf %426, %427 : vector<8x128xf32>
    %429 = vector.extract_strided_slice %416 {offsets = [0, 256], sizes = [8, 128], strides = [1, 1]} : vector<8x512xf32> to vector<8x128xf32>
    %430 = math.tanh %429 : vector<8x128xf32>
    %431 = vector.extract_strided_slice %416 {offsets = [0, 384], sizes = [8, 128], strides = [1, 1]} : vector<8x512xf32> to vector<8x128xf32>
    %432 = arith.negf %431 : vector<8x128xf32>
    %433 = math.exp %432 : vector<8x128xf32>
    %cst_150 = arith.constant 1.000000e+00 : f32
    %434 = vector.broadcast %cst_150 : f32 to vector<8x128xf32>
    %435 = arith.addf %434, %433 : vector<8x128xf32>
    %436 = arith.divf %434, %435 : vector<8x128xf32>
    %437 = arith.mulf %428, %366 : vector<8x128xf32>
    %438 = arith.mulf %422, %430 : vector<8x128xf32>
    %439 = arith.addf %437, %438 : vector<8x128xf32>
    %440 = math.tanh %439 : vector<8x128xf32>
    %441 = arith.mulf %436, %440 : vector<8x128xf32>
    %442 = arith.index_cast %c5_i32 : i32 to index
    %c0_151 = arith.constant 0 : index
    %c0_152 = arith.constant 0 : index
    %443 = vector.load %arg11[%442, %c0_151, %c0_152] : memref<8x8x128xf32, #tpu.memory_space<vmem>>, vector<1x8x128xf32>
    %444 = vector.shape_cast %443 : vector<1x8x128xf32> to vector<8x128xf32>
    %445 = vector.shape_cast %441 : vector<8x128xf32> to vector<1x8x128xf32>
    tpu.vector_store %arg11[%442, %c0_151, %c0_152], %445 {strides = array<i32>} : memref<8x8x128xf32, #tpu.memory_space<vmem>>, vector<1x8x128xf32>,
    %c6_i32 = arith.constant 6 : i32
    %446 = arith.index_cast %c6_i32 : i32 to index
    %c0_153 = arith.constant 0 : index
    %c0_154 = arith.constant 0 : index
    %447 = vector.load %arg1[%446, %c0_153, %c0_154] : memref<8x8x128xf32, #tpu.memory_space<vmem>>, vector<1x8x128xf32>
    %448 = vector.shape_cast %447 : vector<1x8x128xf32> to vector<8x128xf32>
    %449 = tpu.concatenate %448, %408 in 1 : vector<8x128xf32>, vector<8x128xf32> -> vector<8x256xf32>
    %c0_155 = arith.constant 0 : index
    %c0_156 = arith.constant 0 : index
    %c0_157 = arith.constant 0 : index
    %450 = vector.load %arg2[%c0_155, %c0_156, %c0_157] : memref<2x256x512xf32, #tpu.memory_space<vmem>>, vector<1x256x512xf32>
    %451 = vector.shape_cast %450 : vector<1x256x512xf32> to vector<256x512xf32>
    %cst_158 = arith.constant dense<0.000000e+00> : vector<8x512xf32>
    %452 = tpu.matmul %449, %451, %cst_158 {dimension_numbers = #tpu.dot_dimension_numbers<[1], [0], [0], [1], [0, 0, 1, 1], [], []>} : vector<8x256xf32>, vector<256x512xf32>, vector<8x512xf32> -> vector<8x512xf32>
    %c0_159 = arith.constant 0 : index
    %c0_160 = arith.constant 0 : index
    %c0_161 = arith.constant 0 : index
    %453 = vector.load %arg3[%c0_159, %c0_160, %c0_161] : memref<2x1x512xf32, #tpu.memory_space<vmem>>, vector<1x1x512xf32>
    %454 = vector.shape_cast %453 : vector<1x1x512xf32> to vector<1x512xf32>
    %455 = vector.broadcast %454 : vector<1x512xf32> to vector<8x512xf32>
    %456 = arith.addf %452, %455 : vector<8x512xf32>
    %457 = vector.extract_strided_slice %456 {offsets = [0, 0], sizes = [8, 128], strides = [1, 1]} : vector<8x512xf32> to vector<8x128xf32>
    %458 = arith.negf %457 : vector<8x128xf32>
    %459 = math.exp %458 : vector<8x128xf32>
    %cst_162 = arith.constant 1.000000e+00 : f32
    %460 = vector.broadcast %cst_162 : f32 to vector<8x128xf32>
    %461 = arith.addf %460, %459 : vector<8x128xf32>
    %462 = arith.divf %460, %461 : vector<8x128xf32>
    %463 = vector.extract_strided_slice %456 {offsets = [0, 128], sizes = [8, 128], strides = [1, 1]} : vector<8x512xf32> to vector<8x128xf32>
    %464 = arith.negf %463 : vector<8x128xf32>
    %465 = math.exp %464 : vector<8x128xf32>
    %cst_163 = arith.constant 1.000000e+00 : f32
    %466 = vector.broadcast %cst_163 : f32 to vector<8x128xf32>
    %467 = arith.addf %466, %465 : vector<8x128xf32>
    %468 = arith.divf %466, %467 : vector<8x128xf32>
    %469 = vector.extract_strided_slice %456 {offsets = [0, 256], sizes = [8, 128], strides = [1, 1]} : vector<8x512xf32> to vector<8x128xf32>
    %470 = math.tanh %469 : vector<8x128xf32>
    %471 = vector.extract_strided_slice %456 {offsets = [0, 384], sizes = [8, 128], strides = [1, 1]} : vector<8x512xf32> to vector<8x128xf32>
    %472 = arith.negf %471 : vector<8x128xf32>
    %473 = math.exp %472 : vector<8x128xf32>
    %cst_164 = arith.constant 1.000000e+00 : f32
    %474 = vector.broadcast %cst_164 : f32 to vector<8x128xf32>
    %475 = arith.addf %474, %473 : vector<8x128xf32>
    %476 = arith.divf %474, %475 : vector<8x128xf32>
    %477 = arith.mulf %468, %406 : vector<8x128xf32>
    %478 = arith.mulf %462, %470 : vector<8x128xf32>
    %479 = arith.addf %477, %478 : vector<8x128xf32>
    %480 = math.tanh %479 : vector<8x128xf32>
    %481 = arith.mulf %476, %480 : vector<8x128xf32>
    %482 = tpu.concatenate %481, %441 in 1 : vector<8x128xf32>, vector<8x128xf32> -> vector<8x256xf32>
    %c1_165 = arith.constant 1 : index
    %c0_166 = arith.constant 0 : index
    %c0_167 = arith.constant 0 : index
    %483 = vector.load %arg2[%c1_165, %c0_166, %c0_167] : memref<2x256x512xf32, #tpu.memory_space<vmem>>, vector<1x256x512xf32>
    %484 = vector.shape_cast %483 : vector<1x256x512xf32> to vector<256x512xf32>
    %cst_168 = arith.constant dense<0.000000e+00> : vector<8x512xf32>
    %485 = tpu.matmul %482, %484, %cst_168 {dimension_numbers = #tpu.dot_dimension_numbers<[1], [0], [0], [1], [0, 0, 1, 1], [], []>} : vector<8x256xf32>, vector<256x512xf32>, vector<8x512xf32> -> vector<8x512xf32>
    %c1_169 = arith.constant 1 : index
    %c0_170 = arith.constant 0 : index
    %c0_171 = arith.constant 0 : index
    %486 = vector.load %arg3[%c1_169, %c0_170, %c0_171] : memref<2x1x512xf32, #tpu.memory_space<vmem>>, vector<1x1x512xf32>
    %487 = vector.shape_cast %486 : vector<1x1x512xf32> to vector<1x512xf32>
    %488 = vector.broadcast %487 : vector<1x512xf32> to vector<8x512xf32>
    %489 = arith.addf %485, %488 : vector<8x512xf32>
    %490 = vector.extract_strided_slice %489 {offsets = [0, 0], sizes = [8, 128], strides = [1, 1]} : vector<8x512xf32> to vector<8x128xf32>
    %491 = arith.negf %490 : vector<8x128xf32>
    %492 = math.exp %491 : vector<8x128xf32>
    %cst_172 = arith.constant 1.000000e+00 : f32
    %493 = vector.broadcast %cst_172 : f32 to vector<8x128xf32>
    %494 = arith.addf %493, %492 : vector<8x128xf32>
    %495 = arith.divf %493, %494 : vector<8x128xf32>
    %496 = vector.extract_strided_slice %489 {offsets = [0, 128], sizes = [8, 128], strides = [1, 1]} : vector<8x512xf32> to vector<8x128xf32>
    %497 = arith.negf %496 : vector<8x128xf32>
    %498 = math.exp %497 : vector<8x128xf32>
    %cst_173 = arith.constant 1.000000e+00 : f32
    %499 = vector.broadcast %cst_173 : f32 to vector<8x128xf32>
    %500 = arith.addf %499, %498 : vector<8x128xf32>
    %501 = arith.divf %499, %500 : vector<8x128xf32>
    %502 = vector.extract_strided_slice %489 {offsets = [0, 256], sizes = [8, 128], strides = [1, 1]} : vector<8x512xf32> to vector<8x128xf32>
    %503 = math.tanh %502 : vector<8x128xf32>
    %504 = vector.extract_strided_slice %489 {offsets = [0, 384], sizes = [8, 128], strides = [1, 1]} : vector<8x512xf32> to vector<8x128xf32>
    %505 = arith.negf %504 : vector<8x128xf32>
    %506 = math.exp %505 : vector<8x128xf32>
    %cst_174 = arith.constant 1.000000e+00 : f32
    %507 = vector.broadcast %cst_174 : f32 to vector<8x128xf32>
    %508 = arith.addf %507, %506 : vector<8x128xf32>
    %509 = arith.divf %507, %508 : vector<8x128xf32>
    %510 = arith.mulf %501, %439 : vector<8x128xf32>
    %511 = arith.mulf %495, %503 : vector<8x128xf32>
    %512 = arith.addf %510, %511 : vector<8x128xf32>
    %513 = math.tanh %512 : vector<8x128xf32>
    %514 = arith.mulf %509, %513 : vector<8x128xf32>
    %515 = arith.index_cast %c6_i32 : i32 to index
    %c0_175 = arith.constant 0 : index
    %c0_176 = arith.constant 0 : index
    %516 = vector.load %arg11[%515, %c0_175, %c0_176] : memref<8x8x128xf32, #tpu.memory_space<vmem>>, vector<1x8x128xf32>
    %517 = vector.shape_cast %516 : vector<1x8x128xf32> to vector<8x128xf32>
    %518 = vector.shape_cast %514 : vector<8x128xf32> to vector<1x8x128xf32>
    tpu.vector_store %arg11[%515, %c0_175, %c0_176], %518 {strides = array<i32>} : memref<8x8x128xf32, #tpu.memory_space<vmem>>, vector<1x8x128xf32>,
    %c7_i32 = arith.constant 7 : i32
    %519 = arith.index_cast %c7_i32 : i32 to index
    %c0_177 = arith.constant 0 : index
    %c0_178 = arith.constant 0 : index
    %520 = vector.load %arg1[%519, %c0_177, %c0_178] : memref<8x8x128xf32, #tpu.memory_space<vmem>>, vector<1x8x128xf32>
    %521 = vector.shape_cast %520 : vector<1x8x128xf32> to vector<8x128xf32>
    %522 = tpu.concatenate %521, %481 in 1 : vector<8x128xf32>, vector<8x128xf32> -> vector<8x256xf32>
    %c0_179 = arith.constant 0 : index
    %c0_180 = arith.constant 0 : index
    %c0_181 = arith.constant 0 : index
    %523 = vector.load %arg2[%c0_179, %c0_180, %c0_181] : memref<2x256x512xf32, #tpu.memory_space<vmem>>, vector<1x256x512xf32>
    %524 = vector.shape_cast %523 : vector<1x256x512xf32> to vector<256x512xf32>
    %cst_182 = arith.constant dense<0.000000e+00> : vector<8x512xf32>
    %525 = tpu.matmul %522, %524, %cst_182 {dimension_numbers = #tpu.dot_dimension_numbers<[1], [0], [0], [1], [0, 0, 1, 1], [], []>} : vector<8x256xf32>, vector<256x512xf32>, vector<8x512xf32> -> vector<8x512xf32>
    %c0_183 = arith.constant 0 : index
    %c0_184 = arith.constant 0 : index
    %c0_185 = arith.constant 0 : index
    %526 = vector.load %arg3[%c0_183, %c0_184, %c0_185] : memref<2x1x512xf32, #tpu.memory_space<vmem>>, vector<1x1x512xf32>
    %527 = vector.shape_cast %526 : vector<1x1x512xf32> to vector<1x512xf32>
    %528 = vector.broadcast %527 : vector<1x512xf32> to vector<8x512xf32>
    %529 = arith.addf %525, %528 : vector<8x512xf32>
    %530 = vector.extract_strided_slice %529 {offsets = [0, 0], sizes = [8, 128], strides = [1, 1]} : vector<8x512xf32> to vector<8x128xf32>
    %531 = arith.negf %530 : vector<8x128xf32>
    %532 = math.exp %531 : vector<8x128xf32>
    %cst_186 = arith.constant 1.000000e+00 : f32
    %533 = vector.broadcast %cst_186 : f32 to vector<8x128xf32>
    %534 = arith.addf %533, %532 : vector<8x128xf32>
    %535 = arith.divf %533, %534 : vector<8x128xf32>
    %536 = vector.extract_strided_slice %529 {offsets = [0, 128], sizes = [8, 128], strides = [1, 1]} : vector<8x512xf32> to vector<8x128xf32>
    %537 = arith.negf %536 : vector<8x128xf32>
    %538 = math.exp %537 : vector<8x128xf32>
    %cst_187 = arith.constant 1.000000e+00 : f32
    %539 = vector.broadcast %cst_187 : f32 to vector<8x128xf32>
    %540 = arith.addf %539, %538 : vector<8x128xf32>
    %541 = arith.divf %539, %540 : vector<8x128xf32>
    %542 = vector.extract_strided_slice %529 {offsets = [0, 256], sizes = [8, 128], strides = [1, 1]} : vector<8x512xf32> to vector<8x128xf32>
    %543 = math.tanh %542 : vector<8x128xf32>
    %544 = vector.extract_strided_slice %529 {offsets = [0, 384], sizes = [8, 128], strides = [1, 1]} : vector<8x512xf32> to vector<8x128xf32>
    %545 = arith.negf %544 : vector<8x128xf32>
    %546 = math.exp %545 : vector<8x128xf32>
    %cst_188 = arith.constant 1.000000e+00 : f32
    %547 = vector.broadcast %cst_188 : f32 to vector<8x128xf32>
    %548 = arith.addf %547, %546 : vector<8x128xf32>
    %549 = arith.divf %547, %548 : vector<8x128xf32>
    %550 = arith.mulf %541, %479 : vector<8x128xf32>
    %551 = arith.mulf %535, %543 : vector<8x128xf32>
    %552 = arith.addf %550, %551 : vector<8x128xf32>
    %553 = math.tanh %552 : vector<8x128xf32>
    %554 = arith.mulf %549, %553 : vector<8x128xf32>
    %555 = tpu.concatenate %554, %514 in 1 : vector<8x128xf32>, vector<8x128xf32> -> vector<8x256xf32>
    %c1_189 = arith.constant 1 : index
    %c0_190 = arith.constant 0 : index
    %c0_191 = arith.constant 0 : index
    %556 = vector.load %arg2[%c1_189, %c0_190, %c0_191] : memref<2x256x512xf32, #tpu.memory_space<vmem>>, vector<1x256x512xf32>
    %557 = vector.shape_cast %556 : vector<1x256x512xf32> to vector<256x512xf32>
    %cst_192 = arith.constant dense<0.000000e+00> : vector<8x512xf32>
    %558 = tpu.matmul %555, %557, %cst_192 {dimension_numbers = #tpu.dot_dimension_numbers<[1], [0], [0], [1], [0, 0, 1, 1], [], []>} : vector<8x256xf32>, vector<256x512xf32>, vector<8x512xf32> -> vector<8x512xf32>
    %c1_193 = arith.constant 1 : index
    %c0_194 = arith.constant 0 : index
    %c0_195 = arith.constant 0 : index
    %559 = vector.load %arg3[%c1_193, %c0_194, %c0_195] : memref<2x1x512xf32, #tpu.memory_space<vmem>>, vector<1x1x512xf32>
    %560 = vector.shape_cast %559 : vector<1x1x512xf32> to vector<1x512xf32>
    %561 = vector.broadcast %560 : vector<1x512xf32> to vector<8x512xf32>
    %562 = arith.addf %558, %561 : vector<8x512xf32>
    %563 = vector.extract_strided_slice %562 {offsets = [0, 0], sizes = [8, 128], strides = [1, 1]} : vector<8x512xf32> to vector<8x128xf32>
    %564 = arith.negf %563 : vector<8x128xf32>
    %565 = math.exp %564 : vector<8x128xf32>
    %cst_196 = arith.constant 1.000000e+00 : f32
    %566 = vector.broadcast %cst_196 : f32 to vector<8x128xf32>
    %567 = arith.addf %566, %565 : vector<8x128xf32>
    %568 = arith.divf %566, %567 : vector<8x128xf32>
    %569 = vector.extract_strided_slice %562 {offsets = [0, 128], sizes = [8, 128], strides = [1, 1]} : vector<8x512xf32> to vector<8x128xf32>
    %570 = arith.negf %569 : vector<8x128xf32>
    %571 = math.exp %570 : vector<8x128xf32>
    %cst_197 = arith.constant 1.000000e+00 : f32
    %572 = vector.broadcast %cst_197 : f32 to vector<8x128xf32>
    %573 = arith.addf %572, %571 : vector<8x128xf32>
    %574 = arith.divf %572, %573 : vector<8x128xf32>
    %575 = vector.extract_strided_slice %562 {offsets = [0, 256], sizes = [8, 128], strides = [1, 1]} : vector<8x512xf32> to vector<8x128xf32>
    %576 = math.tanh %575 : vector<8x128xf32>
    %577 = vector.extract_strided_slice %562 {offsets = [0, 384], sizes = [8, 128], strides = [1, 1]} : vector<8x512xf32> to vector<8x128xf32>
    %578 = arith.negf %577 : vector<8x128xf32>
    %579 = math.exp %578 : vector<8x128xf32>
    %cst_198 = arith.constant 1.000000e+00 : f32
    %580 = vector.broadcast %cst_198 : f32 to vector<8x128xf32>
    %581 = arith.addf %580, %579 : vector<8x128xf32>
    %582 = arith.divf %580, %581 : vector<8x128xf32>
    %583 = arith.mulf %574, %512 : vector<8x128xf32>
    %584 = arith.mulf %568, %576 : vector<8x128xf32>
    %585 = arith.addf %583, %584 : vector<8x128xf32>
    %586 = math.tanh %585 : vector<8x128xf32>
    %587 = arith.mulf %582, %586 : vector<8x128xf32>
    %588 = arith.index_cast %c7_i32 : i32 to index
    %c0_199 = arith.constant 0 : index
    %c0_200 = arith.constant 0 : index
    %589 = vector.load %arg11[%588, %c0_199, %c0_200] : memref<8x8x128xf32, #tpu.memory_space<vmem>>, vector<1x8x128xf32>
    %590 = vector.shape_cast %589 : vector<1x8x128xf32> to vector<8x128xf32>
    %591 = vector.shape_cast %587 : vector<8x128xf32> to vector<1x8x128xf32>
    tpu.vector_store %arg11[%588, %c0_199, %c0_200], %591 {strides = array<i32>} : memref<8x8x128xf32, #tpu.memory_space<vmem>>, vector<1x8x128xf32>,
    %c8_i32 = arith.constant 8 : i32
    %c0_201 = arith.constant 0 : index
    %c0_202 = arith.constant 0 : index
    %c0_203 = arith.constant 0 : index
    %592 = vector.load %arg9[%c0_201, %c0_202, %c0_203] : memref<2x8x128xf32, #tpu.memory_space<vmem>>, vector<1x8x128xf32>
    %593 = vector.shape_cast %592 : vector<1x8x128xf32> to vector<8x128xf32>
    %594 = vector.shape_cast %554 : vector<8x128xf32> to vector<1x8x128xf32>
    tpu.vector_store %arg9[%c0_201, %c0_202, %c0_203], %594 {strides = array<i32>} : memref<2x8x128xf32, #tpu.memory_space<vmem>>, vector<1x8x128xf32>,
    %c0_204 = arith.constant 0 : index
    %c0_205 = arith.constant 0 : index
    %c0_206 = arith.constant 0 : index
    %595 = vector.load %arg10[%c0_204, %c0_205, %c0_206] : memref<2x8x128xf32, #tpu.memory_space<vmem>>, vector<1x8x128xf32>
    %596 = vector.shape_cast %595 : vector<1x8x128xf32> to vector<8x128xf32>
    %597 = vector.shape_cast %552 : vector<8x128xf32> to vector<1x8x128xf32>
    tpu.vector_store %arg10[%c0_204, %c0_205, %c0_206], %597 {strides = array<i32>} : memref<2x8x128xf32, #tpu.memory_space<vmem>>, vector<1x8x128xf32>,
    %c1_207 = arith.constant 1 : index
    %c0_208 = arith.constant 0 : index
    %c0_209 = arith.constant 0 : index
    %598 = vector.load %arg9[%c1_207, %c0_208, %c0_209] : memref<2x8x128xf32, #tpu.memory_space<vmem>>, vector<1x8x128xf32>
    %599 = vector.shape_cast %598 : vector<1x8x128xf32> to vector<8x128xf32>
    %600 = vector.shape_cast %587 : vector<8x128xf32> to vector<1x8x128xf32>
    tpu.vector_store %arg9[%c1_207, %c0_208, %c0_209], %600 {strides = array<i32>} : memref<2x8x128xf32, #tpu.memory_space<vmem>>, vector<1x8x128xf32>,
    %c1_210 = arith.constant 1 : index
    %c0_211 = arith.constant 0 : index
    %c0_212 = arith.constant 0 : index
    %601 = vector.load %arg10[%c1_210, %c0_211, %c0_212] : memref<2x8x128xf32, #tpu.memory_space<vmem>>, vector<1x8x128xf32>
    %602 = vector.shape_cast %601 : vector<1x8x128xf32> to vector<8x128xf32>
    %603 = vector.shape_cast %585 : vector<8x128xf32> to vector<1x8x128xf32>
    tpu.vector_store %arg10[%c1_210, %c0_211, %c0_212], %603 {strides = array<i32>} : memref<2x8x128xf32, #tpu.memory_space<vmem>>, vector<1x8x128xf32>,
    %c0_213 = arith.constant 0 : index
    %c0_214 = arith.constant 0 : index
    %c0_215 = arith.constant 0 : index
    %604 = vector.load %arg11[%c0_213, %c0_214, %c0_215] : memref<8x8x128xf32, #tpu.memory_space<vmem>>, vector<8x8x128xf32>
    %605 = vector.shape_cast %604 : vector<8x8x128xf32> to vector<64x128xf32>
    %c0_216 = arith.constant 0 : index
    %c0_217 = arith.constant 0 : index
    %606 = vector.load %arg4[%c0_216, %c0_217] : memref<128x128xf32, #tpu.memory_space<vmem>>, vector<128x128xf32>
    %cst_218 = arith.constant dense<0.000000e+00> : vector<64x128xf32>
    %607 = tpu.matmul %605, %606, %cst_218 {dimension_numbers = #tpu.dot_dimension_numbers<[1], [0], [0], [1], [0, 0, 1, 1], [], []>} : vector<64x128xf32>, vector<128x128xf32>, vector<64x128xf32> -> vector<64x128xf32>
    %c0_219 = arith.constant 0 : index
    %c0_220 = arith.constant 0 : index
    %608 = vector.load %arg5[%c0_219, %c0_220] : memref<1x128xf32, #tpu.memory_space<vmem>>, vector<1x128xf32>
    %609 = vector.broadcast %608 : vector<1x128xf32> to vector<64x128xf32>
    %610 = arith.addf %607, %609 : vector<64x128xf32>
    %c0_221 = arith.constant 0 : index
    %c0_222 = arith.constant 0 : index
    %611 = vector.load %arg8[%c0_221, %c0_222] : memref<64x128xf32, #tpu.memory_space<vmem>>, vector<64x128xf32>
    tpu.vector_store %arg8[%c0_221, %c0_222], %610 {strides = array<i32>} : memref<64x128xf32, #tpu.memory_space<vmem>>, vector<64x128xf32>,
    return
  }
  func.func @transform_0(%arg0: i32) -> (i32, i32, i32) {
    %c0_i32 = arith.constant 0 : i32
    %c0_i32_0 = arith.constant 0 : i32
    %c0_i32_1 = arith.constant 0 : i32
    %c0_i32_2 = arith.constant 0 : i32
    return %c0_i32, %c0_i32_0, %c0_i32_1 : i32, i32, i32
  }
  func.func @transform_1(%arg0: i32) -> (i32, i32, i32) {
    %c0_i32 = arith.constant 0 : i32
    %c0_i32_0 = arith.constant 0 : i32
    %c0_i32_1 = arith.constant 0 : i32
    %c0_i32_2 = arith.constant 0 : i32
    return %c0_i32, %c0_i32_0, %c0_i32_1 : i32, i32, i32
  }
  func.func @transform_2(%arg0: i32) -> (i32, i32, i32) {
    %c0_i32 = arith.constant 0 : i32
    %c0_i32_0 = arith.constant 0 : i32
    %c0_i32_1 = arith.constant 0 : i32
    %c0_i32_2 = arith.constant 0 : i32
    return %c0_i32, %c0_i32_0, %c0_i32_1 : i32, i32, i32
  }
  func.func @transform_3(%arg0: i32) -> (i32, i32) {
    %c0_i32 = arith.constant 0 : i32
    %c0_i32_0 = arith.constant 0 : i32
    %c0_i32_1 = arith.constant 0 : i32
    return %c0_i32, %c0_i32_0 : i32, i32
  }
  func.func @transform_4(%arg0: i32) -> (i32, i32) {
    %c0_i32 = arith.constant 0 : i32
    %c0_i32_0 = arith.constant 0 : i32
    %c0_i32_1 = arith.constant 0 : i32
    return %c0_i32, %c0_i32_0 : i32, i32
  }
  func.func @transform_5(%arg0: i32) -> (i32, i32, i32) {
    %c0_i32 = arith.constant 0 : i32
    %c0_i32_0 = arith.constant 0 : i32
    %c0_i32_1 = arith.constant 0 : i32
    %c0_i32_2 = arith.constant 0 : i32
    return %c0_i32, %c0_i32_0, %c0_i32_1 : i32, i32, i32
  }
  func.func @transform_6(%arg0: i32) -> (i32, i32, i32) {
    %c0_i32 = arith.constant 0 : i32
    %c0_i32_0 = arith.constant 0 : i32
    %c0_i32_1 = arith.constant 0 : i32
    %c0_i32_2 = arith.constant 0 : i32
    return %c0_i32, %c0_i32_0, %c0_i32_1 : i32, i32, i32
  }
  func.func @transform_7(%arg0: i32) -> (i32, i32) {
    %c0_i32 = arith.constant 0 : i32
    %c0_i32_0 = arith.constant 0 : i32
    %c0_i32_1 = arith.constant 0 : i32
    return %c0_i32, %c0_i32_0 : i32, i32
  }
  func.func @transform_8(%arg0: i32) -> (i32, i32, i32) {
    %c0_i32 = arith.constant 0 : i32
    %c0_i32_0 = arith.constant 0 : i32
    %c0_i32_1 = arith.constant 0 : i32
    %c0_i32_2 = arith.constant 0 : i32
    return %c0_i32, %c0_i32_0, %c0_i32_1 : i32, i32, i32
  }
  func.func @transform_9(%arg0: i32) -> (i32, i32, i32) {
    %c0_i32 = arith.constant 0 : i32
    %c0_i32_0 = arith.constant 0 : i32
    %c0_i32_1 = arith.constant 0 : i32
    %c0_i32_2 = arith.constant 0 : i32
    return %c0_i32, %c0_i32_0, %c0_i32_1 : i32, i32, i32
  }
}

</mosaic_0001>

<bundles_post_ra>
// kernel: tpu_custom_call.1
= control target key start
LH: loop header
LB: loop body
LE: loop exit
PB: predicated region body
PF: predicated region fallthrough
CT: control target
= control target key end

     0   :  { %15 = vsyncpa [#allocation4], 0  ;;  %s8429_s0 = inlined_call_operand.hbm [shape: f32[8,8,128], index: 0, kind: input, shape index: {}]   ;;  %s8430_s1 = inlined_call_operand.hbm [shape: f32[2,256,512], index: 1, kind: input, shape index: {}]   ;;  %s8431_s2 = inlined_call_operand.hbm [shape: f32[2,1,512], index: 2, kind: input, shape index: {}]   ;;  %s8432_s3 = inlined_call_operand.hbm [shape: f32[128,128], index: 3, kind: input, shape index: {}]   ;;  %s8433_s4 = inlined_call_operand.vmem [shape: f32[1,128], index: 4, kind: input, shape index: {}]   ;;  %s8434_s5 = inlined_call_operand.vmem [shape: f32[2,8,128], index: 5, kind: input, shape index: {}]   ;;  %s8435_s6 = inlined_call_operand.hbm [shape: f32[2,8,128], index: 6, kind: input, shape index: {}]   ;;  %s8436_s7 = inlined_call_operand.hbm [shape: f32[64,128], index: 7, kind: output, shape index: {0}]   ;;  %s8437_s8 = inlined_call_operand.hbm [shape: f32[2,8,128], index: 8, kind: output, shape index: {1}]   ;;  %s8438_s9 = inlined_call_operand.hbm [shape: f32[2,8,128], index: 9, kind: output, shape index: {2}]  }
   0x1   :  { %16 = vsyncpa [#allocation7], 0 }
   0x2   :  { %17 = vsyncpa [#allocation10], 0 }
   0x3   :  { %18 = vsyncpa [#allocation5], 0 }
   0x4   :  { %19 = vsyncpa [#allocation14], 0  ;;  %s8063_s30 = smov [#allocation6]   ;;  %s7877_s13 = scalar_lea.hbm %s8430_s1, 32768 }
   0x5   :  { %s37_s10 = sshll.u32 %s8063_s30, 4  ;;  %p7878_p0 = scmp.ne.s32.totalorder %s8430_s1, %s7877_s13  ;;  %s38_s10 = int_to_ptr.vmem [resolvable:$true] %s37_s10 }
   0x6   :  { %p7881_p1 = scmp.lt.u32.totalorder %s7877_s13, %s8430_s1 }
   0x8   :  { %p7883_p2 = pnand %p7881_p1, %p7878_p0 }
   0xa   :  { %7886 = shalt.err (!%p7883_p2)
}
   0xb   :  { %s7887_s18 = scalar_lea.vmem %s38_s10, 32768  ;;  %p7892_p4 = scmp.lt.s32.totalorder %s38_s10, %s38_s10 }
   0xc   :  { %p7888_p3 = scmp.ne.s32.totalorder %s38_s10, %s7887_s18  ;;  %p7893_p5 = scmp.lt.s32.totalorder %s7887_s18, %s7887_s18 }
   0xe   :  { %p7894_p6 = por %p7893_p5, %p7892_p4 }
  0x10   :  { %p7895_p7 = pnand %p7894_p6, %p7888_p3 }
  0x12   :  { %7898 = shalt.err (!%p7895_p7)
}
  0x13   :  { %s8064_s19 = smov 512   ;;  %s8065_s20 = smov 32  }
  0x14   :  { %43 = dma.hbm_to_vmem [thread:$0]  %s8430_s1, 32768, %s38_s10, [#allocation7], %s8064_s19, %s8064_s19, %s8065_s20  }
  0x15   :  { %s8066_s23 = smov [#allocation9]   ;;  %s8067_s25 = smov [#allocation3]  }
  0x16   :  { %s61_s24 = sshll.u32 %s8066_s23, 4  ;;  %s25_s26 = sshll.u32 %s8067_s25, 4  ;;  %s62_s24 = int_to_ptr.vmem [resolvable:$true] %s61_s24  ;;  %s26_s26 = int_to_ptr.vmem [resolvable:$true] %s25_s26 }
  0x17   :  { %s7899_s29 = scalar_lea.hbm %s8432_s3, 2048 }
  0x18   :  { %p7900_p8 = scmp.ne.s32.totalorder %s8432_s3, %s7899_s29  ;;  %p7903_p9 = scmp.lt.u32.totalorder %s7899_s29, %s8432_s3 }
  0x1a   :  { %p7905_p10 = pnand %p7903_p9, %p7900_p8 }
  0x1c   :  { %7908 = shalt.err (!%p7905_p10)
}
  0x1d   :  { %s7909_s1 = scalar_lea.vmem %s62_s24, 2048  ;;  %p7914_p12 = scmp.lt.s32.totalorder %s62_s24, %s62_s24 }
  0x1e   :  { %p7910_p11 = scmp.ne.s32.totalorder %s62_s24, %s7909_s1  ;;  %p7915_p13 = scmp.lt.s32.totalorder %s7909_s1, %s7909_s1 }
  0x20   :  { %p7916_p0 = por %p7915_p13, %p7914_p12 }
  0x22   :  { %p7917_p1 = pnand %p7916_p0, %p7910_p11 }
  0x24   :  { %7920 = shalt.err (!%p7917_p1)
}
  0x25   :  { %s8068_s10 = smov 128   ;;  %s8069_s14 = smov 8  }
  0x26   :  { %67 = dma.hbm_to_vmem [thread:$0]  %s8432_s3, 2048, %s62_s24, [#allocation10], %s8068_s10, %s8068_s10, %s8069_s14  }
  0x27   :  { %s7921_s19 = scalar_lea.hbm %s8429_s0, 1024 }
  0x28   :  { %p7922_p2 = scmp.ne.s32.totalorder %s8429_s0, %s7921_s19  ;;  %p7925_p3 = scmp.lt.u32.totalorder %s7921_s19, %s8429_s0 }
  0x2a   :  { %p7927_p4 = pnand %p7925_p3, %p7922_p2 }
  0x2c   :  { %7930 = shalt.err (!%p7927_p4)
}
  0x2d   :  { %s7931_s25 = scalar_lea.vmem %s26_s26, 1024  ;;  %p7936_p6 = scmp.lt.s32.totalorder %s26_s26, %s26_s26 }
  0x2e   :  { %p7932_p5 = scmp.ne.s32.totalorder %s26_s26, %s7931_s25  ;;  %p7937_p7 = scmp.lt.s32.totalorder %s7931_s25, %s7931_s25 }
  0x30   :  { %p7938_p8 = por %p7937_p7, %p7936_p6 }
  0x32   :  { %p7939_p9 = pnand %p7938_p8, %p7932_p5 }
  0x34   :  { %7942 = shalt.err (!%p7939_p9)
}
  0x35   :  { %31 = dma.hbm_to_vmem [thread:$0]  %s8429_s0, 1024, %s26_s26, [#allocation4], %s8068_s10, %s8068_s10, %s8069_s14  }
  0x36   :  { %s8070_s27 = smov [#allocation8]   ;;  %s7943_s11 = scalar_lea.hbm %s8431_s2, 128 }
  0x37   :  { %s49_s28 = sshll.u32 %s8070_s27, 4  ;;  %p7944_p10 = scmp.ne.s32.totalorder %s8431_s2, %s7943_s11  ;;  %s50_s28 = int_to_ptr.vmem [resolvable:$true] %s49_s28 }
  0x38   :  { %p7947_p11 = scmp.lt.u32.totalorder %s7943_s11, %s8431_s2 }
  0x3a   :  { %p7949_p12 = pnand %p7947_p11, %p7944_p10 }
  0x3c   :  { %7952 = shalt.err (!%p7949_p12)
}
  0x3d   :  { %s7953_s16 = scalar_lea.vmem %s50_s28, 128  ;;  %p7958_p0 = scmp.lt.s32.totalorder %s50_s28, %s50_s28 }
  0x3e   :  { %p7954_p13 = scmp.ne.s32.totalorder %s50_s28, %s7953_s16  ;;  %p7959_p1 = scmp.lt.s32.totalorder %s7953_s16, %s7953_s16 }
  0x40   :  { %p7960_p2 = por %p7959_p1, %p7958_p0 }
  0x42   :  { %p7961_p3 = pnand %p7960_p2, %p7954_p13 }
  0x44   :  { %7964 = shalt.err (!%p7961_p3)
}
  0x45   :  { %s8071_s0 = smov 64   ;;  %s8072_s26 = smov 4  }
  0x46   :  { %55 = dma.hbm_to_vmem [thread:$0]  %s8431_s2, 128, %s50_s28, [#allocation7], %s8071_s0, %s8071_s0, %s8072_s26  }
  0x47   :  { %s8073_s19 = smov [#allocation11]   ;;  %s7965_s23 = scalar_lea.hbm %s8435_s6, 256 }
  0x48   :  { %s77_s20 = sshll.u32 %s8073_s19, 4  ;;  %p7966_p4 = scmp.ne.s32.totalorder %s8435_s6, %s7965_s23  ;;  %s78_s20 = int_to_ptr.vmem [resolvable:$true] %s77_s20 }
  0x49   :  { %p7969_p5 = scmp.lt.u32.totalorder %s7965_s23, %s8435_s6 }
  0x4b   :  { %p7971_p6 = pnand %p7969_p5, %p7966_p4 }
  0x4d   :  { %7974 = shalt.err (!%p7971_p6)
}
  0x4e   :  { %s7975_s29 = scalar_lea.vmem %s78_s20, 256  ;;  %p7980_p8 = scmp.lt.s32.totalorder %s78_s20, %s78_s20 }
  0x4f   :  { %p7976_p7 = scmp.ne.s32.totalorder %s78_s20, %s7975_s29  ;;  %p7981_p9 = scmp.lt.s32.totalorder %s7975_s29, %s7975_s29 }
  0x51   :  { %p7982_p10 = por %p7981_p9, %p7980_p8 }
  0x53   :  { %p7983_p11 = pnand %p7982_p10, %p7976_p7 }
  0x55   :  { %7986 = shalt.err (!%p7983_p11)
}
  0x56   :  { %83 = dma.hbm_to_vmem [thread:$0]  %s8435_s6, 256, %s78_s20, [#allocation10], %s8068_s10, %s8068_s10, %s8069_s14  }
  0x57   :  { %8053 = dma.done.wait [#allocation4], 1024  }
  0x58   :  { %8054 = vsyncadd [#allocation4], 4294966272 }
  0x59   :  { %8055 = dma.done.wait [#allocation7], 32896  }
  0x5a   :  { %8056 = vsyncadd [#allocation7], 4294934400 }
  0x5b   :  { %8057 = dma.done.wait [#allocation10], 2304  }
  0x5c   :  { %8058 = vsyncadd [#allocation10], 4294964992  ;;  %v107_v0 = vld [vmem:[#allocation6 + $0x8] sm:$0xff]  ;;  %v106_v2 = vld [vmem:[#allocation6] sm:$0xff] }
  0x5d   :  { %v111_v1 = vld [vmem:[#allocation6 + $0x28] sm:$0xff]  ;;  %v110_v4 = vld [vmem:[#allocation6 + $0x20] sm:$0xff]  ;;  %v109_v18 = vld [vmem:[#allocation6 + $0x18] sm:$0xff] }
  0x5e   :  { %v5511_v3 = vpack.c.bf16 %v111_v1, %v107_v0  ;;  %v115_v5 = vld [vmem:[#allocation6 + $0x48] sm:$0xff]  ;;  %v5513_v7 = vpack.c.bf16 %v110_v4, %v106_v2  ;;  %v114_v9 = vld [vmem:[#allocation6 + $0x40] sm:$0xff]  ;;  %v113_v19 = vld [vmem:[#allocation6 + $0x38] sm:$0xff] }
  0x5f   :  { %v119_v6 = vld [vmem:[#allocation6 + $0x68] sm:$0xff]  ;;  %v118_v10 = vld [vmem:[#allocation6 + $0x60] sm:$0xff]  ;;  %v5575_v21 = vpack.c.bf16 %v113_v19, %v109_v18  ;;  %v108_v22 = vld [vmem:[#allocation6 + $0x10] sm:$0xff] }
  0x60   :  { %v5515_v8 = vpack.c.bf16 %v119_v6, %v115_v5  ;;  %v123_v11 = vld [vmem:[#allocation6 + $0x88] sm:$0xff]  ;;  %5512 = vmatprep.subr.bf16.mxu0 %v5511_v3  ;;  %v5517_v13 = vpack.c.bf16 %v118_v10, %v114_v9  ;;  %v122_v14 = vld [vmem:[#allocation6 + $0x80] sm:$0xff]  ;;  %v112_v23 = vld [vmem:[#allocation6 + $0x30] sm:$0xff] }
  0x61   :  { %v127_v12 = vld [vmem:[#allocation6 + $0xa8] sm:$0xff]  ;;  %5514 = vmatpush1.bf16.msra.mxu0 %v5513_v7  ;;  %v126_v15 = vld [vmem:[#allocation6 + $0xa0] sm:$0xff]  ;;  %v5577_v24 = vpack.c.bf16 %v112_v23, %v108_v22  ;;  %5576 = vmatprep.subr.bf16.mxu1 %v5575_v21  ;;  %v117_v26 = vld [vmem:[#allocation6 + $0x58] sm:$0xff] }
  0x62   :  { %5516 = vmatprep.subr.bf16.mxu0 %v5515_v8  ;;  %v5519_v16 = vpack.c.bf16 %v127_v12, %v123_v11  ;;  %v131_v17 = vld [vmem:[#allocation6 + $0xc8] sm:$0xff]  ;;  %v5521_v25 = vpack.c.bf16 %v126_v15, %v122_v14  ;;  %v121_v27 = vld [vmem:[#allocation6 + $0x78] sm:$0xff]  ;;  %v116_v28 = vld [vmem:[#allocation6 + $0x50] sm:$0xff] }
  0x63   :  { %v135_v20 = vld [vmem:[#allocation6 + $0xe8] sm:$0xff]  ;;  %v130_v30 = vld [vmem:[#allocation6 + $0xc0] sm:$0xff]  ;;  %5578 = vmatpush1.bf16.msra.mxu1 %v5577_v24  ;;  %v5579_v32 = vpack.c.bf16 %v121_v27, %v117_v26  ;;  %v120_v33 = vld [vmem:[#allocation6 + $0x70] sm:$0xff] }
  0x64   :  { %v5523_v29 = vpack.c.bf16 %v135_v20, %v131_v17  ;;  %v134_v31 = vld [vmem:[#allocation6 + $0xe0] sm:$0xff]  ;;  %v139_v34 = vld [vmem:[#allocation6 + $0x108] sm:$0xff]  ;;  %v5581_v36 = vpack.c.bf16 %v120_v33, %v116_v28  ;;  %v125_v37 = vld [vmem:[#allocation6 + $0x98] sm:$0xff] }
  0x65   :  { %5518 = vmatpush1.bf16.msra.mxu0 %v5517_v13  ;;  %v143_v35 = vld [vmem:[#allocation6 + $0x128] sm:$0xff]  ;;  %5580 = vmatprep.subr.bf16.mxu1 %v5579_v32  ;;  %v129_v38 = vld [vmem:[#allocation6 + $0xb8] sm:$0xff]  ;;  %v124_v39 = vld [vmem:[#allocation6 + $0x90] sm:$0xff]  ;;  %v5525_v41 = vpack.c.bf16 %v134_v31, %v130_v30 }
  0x66   :  { %5520 = vmatprep.subr.bf16.mxu0 %v5519_v16  ;;  %v128_v40 = vld [vmem:[#allocation6 + $0xb0] sm:$0xff]  ;;  %v138_v42 = vld [vmem:[#allocation6 + $0x100] sm:$0xff]  ;;  %v5583_v44 = vpack.c.bf16 %v129_v38, %v125_v37  ;;  %v5527_v45 = vpack.c.bf16 %v143_v35, %v139_v34  ;;  %v147_v46 = vld [vmem:[#allocation6 + $0x148] sm:$0xff] }
  0x67   :  { %v142_v43 = vld [vmem:[#allocation6 + $0x120] sm:$0xff]  ;;  %5582 = vmatpush1.bf16.msra.mxu1 %v5581_v36  ;;  %v5585_v47 = vpack.c.bf16 %v128_v40, %v124_v39  ;;  %v133_v48 = vld [vmem:[#allocation6 + $0xd8] sm:$0xff]  ;;  %v151_v50 = vld [vmem:[#allocation6 + $0x168] sm:$0xff] }
  0x68   :  { %v137_v49 = vld [vmem:[#allocation6 + $0xf8] sm:$0xff]  ;;  %5584 = vmatprep.subr.bf16.mxu1 %v5583_v44  ;;  %v132_v52 = vld [vmem:[#allocation6 + $0xd0] sm:$0xff]  ;;  %v5529_v54 = vpack.c.bf16 %v142_v43, %v138_v42  ;;  %v5531_v57 = vpack.c.bf16 %v151_v50, %v147_v46  ;;  %v146_v58 = vld [vmem:[#allocation6 + $0x140] sm:$0xff] }
  0x69   :  { %5522 = vmatpush1.bf16.msra.mxu0 %v5521_v25  ;;  %v5587_v51 = vpack.c.bf16 %v137_v49, %v133_v48  ;;  %v136_v53 = vld [vmem:[#allocation6 + $0xf0] sm:$0xff]  ;;  %v141_v55 = vld [vmem:[#allocation6 + $0x118] sm:$0xff]  ;;  %v150_v59 = vld [vmem:[#allocation6 + $0x160] sm:$0xff] }
  0x6a   :  { %5524 = vmatprep.subr.bf16.mxu0 %v5523_v29  ;;  %v145_v56 = vld [vmem:[#allocation6 + $0x138] sm:$0xff]  ;;  %v155_v60 = vld [vmem:[#allocation6 + $0x188] sm:$0xff]  ;;  %v5589_v61 = vpack.c.bf16 %v136_v53, %v132_v52  ;;  %v140_v0 = vld [vmem:[#allocation6 + $0x110] sm:$0xff]  ;;  %v5533_v4 = vpack.c.bf16 %v150_v59, %v146_v58 }
  0x6b   :  { %5586 = vmatpush1.bf16.msra.mxu1 %v5585_v47  ;;  %v159_v62 = vld [vmem:[#allocation6 + $0x1a8] sm:$0xff]  ;;  %v5591_v63 = vpack.c.bf16 %v145_v56, %v141_v55  ;;  %v144_v1 = vld [vmem:[#allocation6 + $0x130] sm:$0xff]  ;;  %v149_v2 = vld [vmem:[#allocation6 + $0x158] sm:$0xff] }
  0x6c   :  { %5588 = vmatprep.subr.bf16.mxu1 %v5587_v51  ;;  %v153_v3 = vld [vmem:[#allocation6 + $0x178] sm:$0xff]  ;;  %v5535_v5 = vpack.c.bf16 %v159_v62, %v155_v60  ;;  %v154_v6 = vld [vmem:[#allocation6 + $0x180] sm:$0xff]  ;;  %v163_v8 = vld [vmem:[#allocation6 + $0x1c8] sm:$0xff]  ;;  %v5593_v9 = vpack.c.bf16 %v144_v1, %v140_v0 }
  0x6d   :  { %5526 = vmatpush1.bf16.msra.mxu0 %v5525_v41  ;;  %v158_v7 = vld [vmem:[#allocation6 + $0x1a0] sm:$0xff]  ;;  %v167_v10 = vld [vmem:[#allocation6 + $0x1e8] sm:$0xff]  ;;  %v5595_v11 = vpack.c.bf16 %v153_v3, %v149_v2  ;;  %v148_v12 = vld [vmem:[#allocation6 + $0x150] sm:$0xff] }
  0x6e   :  { %5528 = vmatprep.subr.bf16.mxu0 %v5527_v45  ;;  %v152_v13 = vld [vmem:[#allocation6 + $0x170] sm:$0xff]  ;;  %v157_v14 = vld [vmem:[#allocation6 + $0x198] sm:$0xff]  ;;  %v5537_v16 = vpack.c.bf16 %v158_v7, %v154_v6  ;;  %v5539_v17 = vpack.c.bf16 %v167_v10, %v163_v8  ;;  %v162_v18 = vld [vmem:[#allocation6 + $0x1c0] sm:$0xff] }
  0x6f   :  { %5590 = vmatpush1.bf16.msra.mxu1 %v5589_v61  ;;  %v161_v15 = vld [vmem:[#allocation6 + $0x1b8] sm:$0xff]  ;;  %v166_v19 = vld [vmem:[#allocation6 + $0x1e0] sm:$0xff]  ;;  %v171_v20 = vld [vmem:[#allocation6 + $0x208] sm:$0xff]  ;;  %v5597_v21 = vpack.c.bf16 %v152_v13, %v148_v12 }
  0x70   :  { %5592 = vmatprep.subr.bf16.mxu1 %v5591_v63  ;;  %v175_v22 = vld [vmem:[#allocation6 + $0x228] sm:$0xff]  ;;  %v5599_v23 = vpack.c.bf16 %v161_v15, %v157_v14  ;;  %v156_v24 = vld [vmem:[#allocation6 + $0x190] sm:$0xff]  ;;  %v165_v26 = vld [vmem:[#allocation6 + $0x1d8] sm:$0xff]  ;;  %v5541_v28 = vpack.c.bf16 %v166_v19, %v162_v18 }
  0x71   :  { %5530 = vmatpush1.bf16.msra.mxu0 %v5529_v54  ;;  %v160_v25 = vld [vmem:[#allocation6 + $0x1b0] sm:$0xff]  ;;  %v169_v27 = vld [vmem:[#allocation6 + $0x1f8] sm:$0xff]  ;;  %v5543_v29 = vpack.c.bf16 %v175_v22, %v171_v20  ;;  %v170_v30 = vld [vmem:[#allocation6 + $0x200] sm:$0xff] }
  0x72   :  { %5532 = vmatprep.subr.bf16.mxu0 %v5531_v57  ;;  %v174_v31 = vld [vmem:[#allocation6 + $0x220] sm:$0xff]  ;;  %v179_v32 = vld [vmem:[#allocation6 + $0x248] sm:$0xff]  ;;  %v5601_v33 = vpack.c.bf16 %v160_v25, %v156_v24  ;;  %v5603_v35 = vpack.c.bf16 %v169_v27, %v165_v26  ;;  %v164_v36 = vld [vmem:[#allocation6 + $0x1d0] sm:$0xff] }
  0x73   :  { %5594 = vmatpush1.bf16.msra.mxu1 %v5593_v9  ;;  %v183_v34 = vld [vmem:[#allocation6 + $0x268] sm:$0xff]  ;;  %v168_v37 = vld [vmem:[#allocation6 + $0x1f0] sm:$0xff]  ;;  %v173_v38 = vld [vmem:[#allocation6 + $0x218] sm:$0xff]  ;;  %v5545_v40 = vpack.c.bf16 %v174_v31, %v170_v30 }
  0x74   :  { %5596 = vmatprep.subr.bf16.mxu1 %v5595_v11  ;;  %v177_v39 = vld [vmem:[#allocation6 + $0x238] sm:$0xff]  ;;  %v5547_v41 = vpack.c.bf16 %v183_v34, %v179_v32  ;;  %v178_v42 = vld [vmem:[#allocation6 + $0x240] sm:$0xff]  ;;  %v187_v44 = vld [vmem:[#allocation6 + $0x288] sm:$0xff]  ;;  %v5605_v45 = vpack.c.bf16 %v168_v37, %v164_v36 }
  0x75   :  { %5534 = vmatpush1.bf16.msra.mxu0 %v5533_v4  ;;  %v182_v43 = vld [vmem:[#allocation6 + $0x260] sm:$0xff]  ;;  %v191_v46 = vld [vmem:[#allocation6 + $0x2a8] sm:$0xff]  ;;  %v5607_v47 = vpack.c.bf16 %v177_v39, %v173_v38  ;;  %v172_v48 = vld [vmem:[#allocation6 + $0x210] sm:$0xff] }
  0x76   :  { %5536 = vmatprep.subr.bf16.mxu0 %v5535_v5  ;;  %v176_v49 = vld [vmem:[#allocation6 + $0x230] sm:$0xff]  ;;  %v181_v50 = vld [vmem:[#allocation6 + $0x258] sm:$0xff]  ;;  %v5549_v52 = vpack.c.bf16 %v182_v43, %v178_v42  ;;  %v186_v53 = vld [vmem:[#allocation6 + $0x280] sm:$0xff]  ;;  %v5551_v54 = vpack.c.bf16 %v191_v46, %v187_v44 }
  0x77   :  { %5598 = vmatpush1.bf16.msra.mxu1 %v5597_v21  ;;  %v185_v51 = vld [vmem:[#allocation6 + $0x278] sm:$0xff]  ;;  %v190_v55 = vld [vmem:[#allocation6 + $0x2a0] sm:$0xff]  ;;  %v195_v56 = vld [vmem:[#allocation6 + $0x2c8] sm:$0xff]  ;;  %v5609_v58 = vpack.c.bf16 %v176_v49, %v172_v48 }
  0x78   :  { %5600 = vmatprep.subr.bf16.mxu1 %v5599_v23  ;;  %v199_v57 = vld [vmem:[#allocation6 + $0x2e8] sm:$0xff]  ;;  %v5611_v59 = vpack.c.bf16 %v185_v51, %v181_v50  ;;  %v180_v60 = vld [vmem:[#allocation6 + $0x250] sm:$0xff]  ;;  %v99_v62 = vld [vmem:[%s8434_s5] sm:$0xff]  ;;  %v5553_v1 = vpack.c.bf16 %v190_v55, %v186_v53 }
  0x79   :  { %5538 = vmatpush1.bf16.msra.mxu0 %v5537_v16  ;;  %v184_v61 = vld [vmem:[#allocation6 + $0x270] sm:$0xff]  ;;  %v189_v63 = vld [vmem:[#allocation6 + $0x298] sm:$0xff]  ;;  %320 = vmatprep.mubr.f32.mxu0 %v99_v62  ;;  %v5555_v2 = vpack.c.bf16 %v199_v57, %v195_v56  ;;  %v194_v3 = vld [vmem:[#allocation6 + $0x2c0] sm:$0xff] }
  0x7a   :  { %5540 = vmatprep.subr.bf16.mxu0 %v5539_v17  ;;  %v193_v0 = vld [vmem:[#allocation6 + $0x2b8] sm:$0xff]  ;;  %391 = vmatprep.mubr.f32.mxu1 %v99_v62  ;;  %v198_v4 = vld [vmem:[#allocation6 + $0x2e0] sm:$0xff]  ;;  %v203_v5 = vld [vmem:[#allocation6 + $0x308] sm:$0xff]  ;;  %v5613_v6 = vpack.c.bf16 %v184_v61, %v180_v60 }
  0x7b   :  { %5602 = vmatpush1.bf16.msra.mxu1 %v5601_v33  ;;  %v207_v7 = vld [vmem:[#allocation6 + $0x328] sm:$0xff]  ;;  %v5615_v8 = vpack.c.bf16 %v193_v0, %v189_v63  ;;  %v188_v9 = vld [vmem:[#allocation6 + $0x290] sm:$0xff]  ;;  %v197_v11 = vld [vmem:[#allocation6 + $0x2d8] sm:$0xff]  ;;  %v5557_v13 = vpack.c.bf16 %v198_v4, %v194_v3 }
  0x7c   :  { %5604 = vmatprep.subr.bf16.mxu1 %v5603_v35  ;;  %v192_v10 = vld [vmem:[#allocation6 + $0x2b0] sm:$0xff]  ;;  %v201_v12 = vld [vmem:[#allocation6 + $0x2f8] sm:$0xff]  ;;  %v5559_v14 = vpack.c.bf16 %v207_v7, %v203_v5  ;;  %v202_v15 = vld [vmem:[#allocation6 + $0x300] sm:$0xff] }
  0x7d   :  { %5542 = vmatpush1.bf16.msra.mxu0 %v5541_v28  ;;  %v206_v16 = vld [vmem:[#allocation6 + $0x320] sm:$0xff]  ;;  %v211_v17 = vld [vmem:[#allocation6 + $0x348] sm:$0xff]  ;;  %v5617_v18 = vpack.c.bf16 %v192_v10, %v188_v9  ;;  %v5619_v20 = vpack.c.bf16 %v201_v12, %v197_v11  ;;  %v196_v21 = vld [vmem:[#allocation6 + $0x2d0] sm:$0xff] }
  0x7e   :  { %5544 = vmatprep.subr.bf16.mxu0 %v5543_v29  ;;  %v215_v19 = vld [vmem:[#allocation6 + $0x368] sm:$0xff]  ;;  %v200_v22 = vld [vmem:[#allocation6 + $0x2f0] sm:$0xff]  ;;  %v205_v23 = vld [vmem:[#allocation6 + $0x318] sm:$0xff]  ;;  %v5561_v25 = vpack.c.bf16 %v206_v16, %v202_v15 }
  0x7f   :  { %5606 = vmatpush1.bf16.msra.mxu1 %v5605_v45  ;;  %v209_v24 = vld [vmem:[#allocation6 + $0x338] sm:$0xff]  ;;  %v5563_v26 = vpack.c.bf16 %v215_v19, %v211_v17  ;;  %v210_v27 = vld [vmem:[#allocation6 + $0x340] sm:$0xff]  ;;  %v219_v29 = vld [vmem:[#allocation6 + $0x388] sm:$0xff]  ;;  %v5621_v30 = vpack.c.bf16 %v200_v22, %v196_v21 }
  0x80   :  { %5608 = vmatprep.subr.bf16.mxu1 %v5607_v47  ;;  %v214_v28 = vld [vmem:[#allocation6 + $0x360] sm:$0xff]  ;;  %v223_v31 = vld [vmem:[#allocation6 + $0x3a8] sm:$0xff]  ;;  %v5623_v32 = vpack.c.bf16 %v209_v24, %v205_v23  ;;  %v204_v33 = vld [vmem:[#allocation6 + $0x310] sm:$0xff] }
  0x81   :  { %5546 = vmatpush1.bf16.msra.mxu0 %v5545_v40  ;;  %v208_v34 = vld [vmem:[#allocation6 + $0x330] sm:$0xff]  ;;  %v213_v35 = vld [vmem:[#allocation6 + $0x358] sm:$0xff]  ;;  %v5565_v37 = vpack.c.bf16 %v214_v28, %v210_v27  ;;  %v5567_v38 = vpack.c.bf16 %v223_v31, %v219_v29  ;;  %v218_v39 = vld [vmem:[#allocation6 + $0x380] sm:$0xff] }
  0x82   :  { %5548 = vmatprep.subr.bf16.mxu0 %v5547_v41  ;;  %v217_v36 = vld [vmem:[#allocation6 + $0x378] sm:$0xff]  ;;  %v222_v40 = vld [vmem:[#allocation6 + $0x3a0] sm:$0xff]  ;;  %v227_v41 = vld [vmem:[#allocation6 + $0x3c8] sm:$0xff]  ;;  %v5625_v42 = vpack.c.bf16 %v208_v34, %v204_v33 }
  0x83   :  { %5610 = vmatpush1.bf16.msra.mxu1 %v5609_v58  ;;  %v231_v43 = vld [vmem:[#allocation6 + $0x3e8] sm:$0xff]  ;;  %v5627_v44 = vpack.c.bf16 %v217_v36, %v213_v35  ;;  %v212_v45 = vld [vmem:[#allocation6 + $0x350] sm:$0xff]  ;;  %v221_v47 = vld [vmem:[#allocation6 + $0x398] sm:$0xff]  ;;  %v5569_v49 = vpack.c.bf16 %v222_v40, %v218_v39 }
  0x84   :  { %5612 = vmatprep.subr.bf16.mxu1 %v5611_v59  ;;  %v216_v46 = vld [vmem:[#allocation6 + $0x370] sm:$0xff]  ;;  %v225_v48 = vld [vmem:[#allocation6 + $0x3b8] sm:$0xff]  ;;  %v5571_v50 = vpack.c.bf16 %v231_v43, %v227_v41  ;;  %v226_v51 = vld [vmem:[#allocation6 + $0x3c0] sm:$0xff] }
  0x85   :  { %5550 = vmatpush1.bf16.msra.mxu0 %v5549_v52  ;;  %v230_v52 = vld [vmem:[#allocation6 + $0x3e0] sm:$0xff]  ;;  %v5629_v53 = vpack.c.bf16 %v216_v46, %v212_v45  ;;  %v5631_v55 = vpack.c.bf16 %v225_v48, %v221_v47  ;;  %v224_v56 = vld [vmem:[#allocation6 + $0x3b0] sm:$0xff]  ;;  %v424_v57 = vld [vmem:[#allocation6 + $0x408] sm:$0xff] }
  0x86   :  { %5552 = vmatprep.subr.bf16.mxu0 %v5551_v54  ;;  %v220_v54 = vld [vmem:[#allocation6 + $0x390] sm:$0xff]  ;;  %v428_v58 = vld [vmem:[#allocation6 + $0x428] sm:$0xff]  ;;  %v229_v59 = vld [vmem:[#allocation6 + $0x3d8] sm:$0xff]  ;;  %v5573_v61 = vpack.c.bf16 %v230_v52, %v226_v51 }
  0x87   :  { %5614 = vmatpush1.bf16.msra.mxu1 %v5613_v6  ;;  %v233_v60 = vld [vmem:[#allocation6 + $0x3f8] sm:$0xff]  ;;  %v5633_v62 = vpack.c.bf16 %v224_v56, %v220_v54  ;;  %v228_v63 = vld [vmem:[#allocation6 + $0x3d0] sm:$0xff]  ;;  %v5639_v0 = vpack.c.bf16 %v428_v58, %v424_v57  ;;  %v432_v5 = vld [vmem:[#allocation6 + $0x448] sm:$0xff] }
  0x88   :  { %5616 = vmatprep.subr.bf16.mxu1 %v5615_v8  ;;  %v5635_v3 = vpack.c.bf16 %v233_v60, %v229_v59  ;;  %v232_v4 = vld [vmem:[#allocation6 + $0x3f0] sm:$0xff]  ;;  %v436_v6 = vld [vmem:[#allocation6 + $0x468] sm:$0xff]  ;;  %v426_v7 = vld [vmem:[#allocation6 + $0x418] sm:$0xff] }
  0x89   :  { %5554 = vmatpush1.bf16.msra.mxu0 %v5553_v1  ;;  %v423_v1 = vld [vmem:[#allocation6 + $0x400] sm:$0xff]  ;;  %v430_v8 = vld [vmem:[#allocation6 + $0x438] sm:$0xff]  ;;  %v5637_v11 = vpack.c.bf16 %v232_v4, %v228_v63  ;;  %v425_v12 = vld [vmem:[#allocation6 + $0x410] sm:$0xff] }
  0x8a   :  { %5556 = vmatprep.subr.bf16.mxu0 %v5555_v2  ;;  %v427_v2 = vld [vmem:[#allocation6 + $0x420] sm:$0xff]  ;;  %v5703_v16 = vpack.c.bf16 %v430_v8, %v426_v7  ;;  %v429_v17 = vld [vmem:[#allocation6 + $0x430] sm:$0xff]  ;;  %v444_v19 = vld [vmem:[#allocation6 + $0x4a8] sm:$0xff] }
  0x8b   :  { %5618 = vmatpush1.bf16.msra.mxu1 %v5617_v18  ;;  %v105_v9 = vld [vmem:[#allocation3] sm:$0xff]  ;;  %v5641_v10 = vpack.c.bf16 %v427_v2, %v423_v1  ;;  %v440_v18 = vld [vmem:[#allocation6 + $0x488] sm:$0xff]  ;;  %v438_v21 = vld [vmem:[#allocation6 + $0x478] sm:$0xff]  ;;  %v5705_v23 = vpack.c.bf16 %v429_v17, %v425_v12 }
  0x8c   :  { %5620 = vmatprep.subr.bf16.mxu1 %v5619_v20  ;;  %v435_v15 = vld [vmem:[#allocation6 + $0x460] sm:$0xff]  ;;  %v434_v20 = vld [vmem:[#allocation6 + $0x458] sm:$0xff]  ;;  %v433_v24 = vld [vmem:[#allocation6 + $0x450] sm:$0xff] }
  0x8d   :  { %5558 = vmatpush1.bf16.msra.mxu0 %v5557_v13  ;;  %v5643_v13 = vpack.c.bf16 %v436_v6, %v432_v5  ;;  %v443_v27 = vld [vmem:[#allocation6 + $0x4a0] sm:$0xff]  ;;  %v5707_v28 = vpack.c.bf16 %v438_v21, %v434_v20  ;;  %v437_v29 = vld [vmem:[#allocation6 + $0x470] sm:$0xff]  ;;  %v452_v31 = vld [vmem:[#allocation6 + $0x4e8] sm:$0xff] }
  0x8e   :  { %5560 = vmatprep.subr.bf16.mxu0 %v5559_v14  ;;  %v431_v14 = vld [vmem:[#allocation6 + $0x440] sm:$0xff]  ;;  %v446_v33 = vld [vmem:[#allocation6 + $0x4b8] sm:$0xff]  ;;  %v5709_v35 = vpack.c.bf16 %v437_v29, %v433_v24  ;;  %v441_v36 = vld [vmem:[#allocation6 + $0x490] sm:$0xff] }
  0x8f   :  { %5622 = vmatpush1.bf16.msra.mxu1 %v5621_v30  ;;  %v5645_v22 = vpack.c.bf16 %v435_v15, %v431_v14  ;;  %v448_v30 = vld [vmem:[#allocation6 + $0x4c8] sm:$0xff]  ;;  %v451_v39 = vld [vmem:[#allocation6 + $0x4e0] sm:$0xff]  ;;  %v445_v41 = vld [vmem:[#allocation6 + $0x4b0] sm:$0xff] }
  0x90   :  { %5624 = vmatprep.subr.bf16.mxu1 %v5623_v32  ;;  %v442_v32 = vld [vmem:[#allocation6 + $0x498] sm:$0xff]  ;;  %v460_v43 = vld [vmem:[#allocation6 + $0x528] sm:$0xff]  ;;  %v5713_v47 = vpack.c.bf16 %v445_v41, %v441_v36  ;;  %v449_v52 = vld [vmem:[#allocation6 + $0x4d0] sm:$0xff] }
  0x91   :  { %5562 = vmatpush1.bf16.msra.mxu0 %v5561_v25  ;;  %v5647_v25 = vpack.c.bf16 %v444_v19, %v440_v18  ;;  %v5711_v40 = vpack.c.bf16 %v446_v33, %v442_v32  ;;  %v454_v45 = vld [vmem:[#allocation6 + $0x4f8] sm:$0xff]  ;;  %v457_v59 = vld [vmem:[#allocation6 + $0x510] sm:$0xff]  ;;  %v468_v63 = vld [vmem:[#allocation6 + $0x568] sm:$0xff] }
  0x92   :  { %5564 = vmatprep.subr.bf16.mxu0 %v5563_v26  ;;  %v439_v26 = vld [vmem:[#allocation6 + $0x480] sm:$0xff]  ;;  %v458_v54 = vld [vmem:[#allocation6 + $0x518] sm:$0xff]  ;;  %v461_v60 = vld [vmem:[#allocation6 + $0x530] sm:$0xff] }
  0x93   :  { %5626 = vmatpush1.bf16.msra.mxu1 %v5625_v42  ;;  %v5649_v34 = vpack.c.bf16 %v443_v27, %v439_v26  ;;  %v456_v42 = vld [vmem:[#allocation6 + $0x508] sm:$0xff]  ;;  %v463_v1 = vld [vmem:[#allocation6 + $0x540] sm:$0xff]  ;;  %v470_v5 = vld [vmem:[#allocation6 + $0x578] sm:$0xff] }
  0x94   :  { %5628 = vmatprep.subr.bf16.mxu1 %v5627_v44  ;;  %v450_v44 = vld [vmem:[#allocation6 + $0x4d8] sm:$0xff]  ;;  %v5655_v48 = vpack.c.bf16 %v460_v43, %v456_v42  ;;  %v467_v2 = vld [vmem:[#allocation6 + $0x560] sm:$0xff]  ;;  %v465_v6 = vld [vmem:[#allocation6 + $0x550] sm:$0xff] }
  0x95   :  { %5566 = vmatpush1.bf16.msra.mxu0 %v5565_v37  ;;  %v5651_v37 = vpack.c.bf16 %v452_v31, %v448_v30  ;;  %v5715_v51 = vpack.c.bf16 %v454_v45, %v450_v44  ;;  %v5661_v4 = vpack.c.bf16 %v467_v2, %v463_v1  ;;  %v469_v7 = vld [vmem:[#allocation6 + $0x570] sm:$0xff]  ;;  %v475_v14 = vld [vmem:[#allocation6 + $0x5a0] sm:$0xff]  ;;  %v474_v15 = vld [vmem:[#allocation6 + $0x598] sm:$0xff] }
  0x96   :  { %5568 = vmatprep.subr.bf16.mxu0 %v5567_v38  ;;  %v447_v38 = vld [vmem:[#allocation6 + $0x4c0] sm:$0xff]  ;;  %v478_v17 = vld [vmem:[#allocation6 + $0x5b8] sm:$0xff]  ;;  %v473_v18 = vld [vmem:[#allocation6 + $0x590] sm:$0xff] }
  0x97   :  { %5630 = vmatpush1.bf16.msra.mxu1 %v5629_v53  ;;  %v5653_v46 = vpack.c.bf16 %v451_v39, %v447_v38  ;;  %v453_v53 = vld [vmem:[#allocation6 + $0x4f0] sm:$0xff]  ;;  %v5727_v20 = vpack.c.bf16 %v478_v17, %v474_v15  ;;  %v483_v26 = vld [vmem:[#allocation6 + $0x5e0] sm:$0xff]  ;;  %v482_v27 = vld [vmem:[#allocation6 + $0x5d8] sm:$0xff] }
  0x98   :  { %5632 = vmatprep.subr.bf16.mxu1 %v5631_v55  ;;  %v462_v55 = vld [vmem:[#allocation6 + $0x538] sm:$0xff]  ;;  %v5717_v57 = vpack.c.bf16 %v453_v53, %v449_v52  ;;  %v477_v19 = vld [vmem:[#allocation6 + $0x5b0] sm:$0xff]  ;;  %v491_v38 = vld [vmem:[#allocation6 + $0x620] sm:$0xff] }
  0x99   :  { %5570 = vmatpush1.bf16.msra.mxu0 %v5569_v49  ;;  %v455_v49 = vld [vmem:[#allocation6 + $0x500] sm:$0xff]  ;;  %v5719_v58 = vpack.c.bf16 %v462_v55, %v458_v54  ;;  %v5729_v21 = vpack.c.bf16 %v477_v19, %v473_v18  ;;  %v486_v29 = vld [vmem:[#allocation6 + $0x5f8] sm:$0xff]  ;;  %v481_v30 = vld [vmem:[#allocation6 + $0x5d0] sm:$0xff] }
  0x9a   :  { %5572 = vmatprep.subr.bf16.mxu0 %v5571_v50  ;;  %v459_v50 = vld [vmem:[#allocation6 + $0x520] sm:$0xff]  ;;  %v485_v31 = vld [vmem:[#allocation6 + $0x5f0] sm:$0xff]  ;;  %v5731_v32 = vpack.c.bf16 %v486_v29, %v482_v27  ;;  %v490_v39 = vld [vmem:[#allocation6 + $0x618] sm:$0xff] }
  0x9b   :  { %5634 = vmatpush1.bf16.msra.mxu1 %v5633_v62  ;;  %v5657_v56 = vpack.c.bf16 %v459_v50, %v455_v49  ;;  %v464_v62 = vld [vmem:[#allocation6 + $0x548] sm:$0xff]  ;;  %v5733_v33 = vpack.c.bf16 %v485_v31, %v481_v30  ;;  %v494_v41 = vld [vmem:[#allocation6 + $0x638] sm:$0xff]  ;;  %v489_v42 = vld [vmem:[#allocation6 + $0x610] sm:$0xff] }
  0x9c   :  { %5636 = vmatprep.subr.bf16.mxu1 %v5635_v3  ;;  %v466_v3 = vld [vmem:[#allocation6 + $0x558] sm:$0xff]  ;;  %v493_v43 = vld [vmem:[#allocation6 + $0x630] sm:$0xff]  ;;  %v5735_v44 = vpack.c.bf16 %v494_v41, %v490_v39  ;;  %v495_v49 = vld [vmem:[#allocation6 + $0x640] sm:$0xff] }
  0x9d   :  { %5574 = vmatpush1.bf16.msra.mxu0 %v5573_v61  ;;  %v5721_v61 = vpack.c.bf16 %v461_v60, %v457_v59  ;;  %v5723_v8 = vpack.c.bf16 %v470_v5, %v466_v3  ;;  %v5737_v45 = vpack.c.bf16 %v493_v43, %v489_v42  ;;  %v499_v50 = vld [vmem:[#allocation6 + $0x660] sm:$0xff]  ;;  %v502_v53 = vld [vmem:[#allocation6 + $0x678] sm:$0xff]  ;;  %v497_v54 = vld [vmem:[#allocation6 + $0x650] sm:$0xff] }
  0x9e   :  { %5640 = vmatprep.subr.bf16.mxu0 %v5639_v0  ;;  %v5659_v0 = vpack.c.bf16 %v468_v63, %v464_v62  ;;  %v5677_v52 = vpack.c.bf16 %v499_v50, %v495_v49  ;;  %v501_v55 = vld [vmem:[#allocation6 + $0x670] sm:$0xff]  ;;  %v508_v59 = vld [vmem:[#allocation6 + $0x6a8] sm:$0xff]  ;;  %v507_v62 = vld [vmem:[#allocation6 + $0x6a0] sm:$0xff] }
  0x9f   :  { %5638 = vmatpush1.bf16.msra.mxu1 %v5637_v11  ;;  %v476_v11 = vld [vmem:[#allocation6 + $0x5a8] sm:$0xff]  ;;  %v506_v63 = vld [vmem:[#allocation6 + $0x698] sm:$0xff]  ;;  %v505_v2 = vld [vmem:[#allocation6 + $0x690] sm:$0xff] }
  0xa0   :  { %321 = vmatmul.mubr.f32.vlgmr.msra.gmra.mrb[0].mxu0 %v105_v9  ;;  %5704 = vmatprep.subr.bf16.mxu1 %v5703_v16  ;;  %v510_v1 = vld [vmem:[#allocation6 + $0x6b8] sm:$0xff]  ;;  %v509_v3 = vld [vmem:[#allocation6 + $0x6b0] sm:$0xff]  ;;  %v520_v18 = vld [vmem:[#allocation6 + $0x708] sm:$0xff] }
  0xa1   :  { %5642 = vmatpush1.bf16.msra.mxu0 %v5641_v10  ;;  %v472_v10 = vld [vmem:[#allocation6 + $0x588] sm:$0xff]  ;;  %v5745_v5 = vpack.c.bf16 %v509_v3, %v505_v2  ;;  %v517_v15 = vld [vmem:[#allocation6 + $0x6f0] sm:$0xff] }
  0xa2   :  { %5644 = vmatprep.subr.bf16.mxu0 %v5643_v13  ;;  %392 = vmatmul.mubr.f32.vlgmr.msra.gmra.mrb[0].mxu1 %v105_v9  ;;  %v5725_v9 = vpack.c.bf16 %v469_v7, %v465_v6  ;;  %v5663_v12 = vpack.c.bf16 %v476_v11, %v472_v10  ;;  %v471_v13 = vld [vmem:[#allocation6 + $0x580] sm:$0xff]  ;;  %v512_v6 = vld [vmem:[#allocation6 + $0x6c8] sm:$0xff]  ;;  %v514_v11 = vld [vmem:[#allocation6 + $0x6d8] sm:$0xff] }
  0xa3   :  { %5706 = vmatpush1.bf16.msra.mxu1 %v5705_v23  ;;  %v5665_v16 = vpack.c.bf16 %v475_v14, %v471_v13  ;;  %v484_v23 = vld [vmem:[#allocation6 + $0x5e8] sm:$0xff]  ;;  %v515_v10 = vld [vmem:[#allocation6 + $0x6e0] sm:$0xff]  ;;  %v518_v13 = vld [vmem:[#allocation6 + $0x6f8] sm:$0xff] }
  0xa4   :  { %5708 = vmatprep.subr.bf16.mxu1 %v5707_v28  ;;  %v516_v7 = vld [vmem:[#allocation6 + $0x6e8] sm:$0xff]  ;;  %v513_v14 = vld [vmem:[#allocation6 + $0x6d0] sm:$0xff] }
  0xa5   :  { %5646 = vmatpush1.bf16.msra.mxu0 %v5645_v22  ;;  %v480_v22 = vld [vmem:[#allocation6 + $0x5c8] sm:$0xff]  ;;  %v5749_v17 = vpack.c.bf16 %v517_v15, %v513_v14  ;;  %v525_v27 = vld [vmem:[#allocation6 + $0x730] sm:$0xff] }
  0xa6   :  { %5648 = vmatprep.subr.bf16.mxu0 %v5647_v25  ;;  %v5667_v24 = vpack.c.bf16 %v484_v23, %v480_v22  ;;  %v479_v25 = vld [vmem:[#allocation6 + $0x5c0] sm:$0xff]  ;;  %v524_v19 = vld [vmem:[#allocation6 + $0x728] sm:$0xff]  ;;  %v522_v23 = vld [vmem:[#allocation6 + $0x718] sm:$0xff] }
  0xa7   :  { %5710 = vmatpush1.bf16.msra.mxu1 %v5709_v35  ;;  %v5669_v28 = vpack.c.bf16 %v483_v26, %v479_v25  ;;  %v492_v35 = vld [vmem:[#allocation6 + $0x628] sm:$0xff]  ;;  %v523_v22 = vld [vmem:[#allocation6 + $0x720] sm:$0xff]  ;;  %v526_v25 = vld [vmem:[#allocation6 + $0x738] sm:$0xff] }
  0xa8   :  { %5712 = vmatprep.subr.bf16.mxu1 %v5711_v40  ;;  %v521_v26 = vld [vmem:[#allocation6 + $0x710] sm:$0xff]  ;;  %v528_v30 = vld [vmem:[#allocation6 + $0x748] sm:$0xff] }
  0xa9   :  { %5650 = vmatpush1.bf16.msra.mxu0 %v5649_v34  ;;  %v488_v34 = vld [vmem:[#allocation6 + $0x608] sm:$0xff]  ;;  %v5753_v29 = vpack.c.bf16 %v525_v27, %v521_v26  ;;  %v533_v39 = vld [vmem:[#allocation6 + $0x770] sm:$0xff] }
  0xaa   :  { %5652 = vmatprep.subr.bf16.mxu0 %v5651_v37  ;;  %v5671_v36 = vpack.c.bf16 %v492_v35, %v488_v34  ;;  %v487_v37 = vld [vmem:[#allocation6 + $0x600] sm:$0xff]  ;;  %v532_v31 = vld [vmem:[#allocation6 + $0x768] sm:$0xff]  ;;  %v530_v35 = vld [vmem:[#allocation6 + $0x758] sm:$0xff] }
  0xab   :  { %5714 = vmatpush1.bf16.msra.mxu1 %v5713_v47  ;;  %v5673_v40 = vpack.c.bf16 %v491_v38, %v487_v37  ;;  %v500_v47 = vld [vmem:[#allocation6 + $0x668] sm:$0xff]  ;;  %v531_v34 = vld [vmem:[#allocation6 + $0x760] sm:$0xff]  ;;  %v534_v37 = vld [vmem:[#allocation6 + $0x778] sm:$0xff] }
  0xac   :  { %5716 = vmatprep.subr.bf16.mxu1 %v5715_v51  ;;  %v498_v51 = vld [vmem:[#allocation6 + $0x658] sm:$0xff]  ;;  %v529_v38 = vld [vmem:[#allocation6 + $0x750] sm:$0xff]  ;;  %v536_v42 = vld [vmem:[#allocation6 + $0x788] sm:$0xff] }
  0xad   :  { %5654 = vmatpush1.bf16.msra.mxu0 %v5653_v46  ;;  %v496_v46 = vld [vmem:[#allocation6 + $0x648] sm:$0xff]  ;;  %v5757_v41 = vpack.c.bf16 %v533_v39, %v529_v38 }
  0xae   :  { %5656 = vmatprep.subr.bf16.mxu0 %v5655_v48  ;;  %v5675_v48 = vpack.c.bf16 %v500_v47, %v496_v46  ;;  %v540_v43 = vld [vmem:[#allocation6 + $0x7a8] sm:$0xff]  ;;  %v539_v46 = vld [vmem:[#allocation6 + $0x7a0] sm:$0xff]  ;;  %v538_v47 = vld [vmem:[#allocation6 + $0x798] sm:$0xff] }
  0xaf   :  { %5718 = vmatpush1.bf16.msra.mxu1 %v5717_v57  ;;  %v5741_v57 = vpack.c.bf16 %v501_v55, %v497_v54  ;;  %v548_v55 = vld [vmem:[#allocation6 + $0x7e8] sm:$0xff] }
  0xb0   :  { %5720 = vmatprep.subr.bf16.mxu1 %v5719_v58  ;;  %v504_v58 = vld [vmem:[#allocation6 + $0x688] sm:$0xff] }
  0xb1   :  { %5658 = vmatpush1.bf16.msra.mxu0 %v5657_v56  ;;  %v5739_v56 = vpack.c.bf16 %v502_v53, %v498_v51  ;;  %v5679_v60 = vpack.c.bf16 %v508_v59, %v504_v58  ;;  %v537_v51 = vld [vmem:[#allocation6 + $0x790] sm:$0xff]  ;;  %v544_v53 = vld [vmem:[#allocation6 + $0x7c8] sm:$0xff]  ;;  %v546_v59 = vld [vmem:[#allocation6 + $0x7d8] sm:$0xff] }
  0xb2   :  { %5660 = vmatprep.subr.bf16.mxu0 %v5659_v0  ;;  %v5699_v58 = vpack.c.bf16 %v548_v55, %v544_v53  ;;  %v744_v2 = vld [vmem:[#allocation6 + $0x8] sm:$0xff]  ;;  %v754_v53 = vld [vmem:[#allocation6 + $0x58] sm:$0xff] }
  0xb3   :  { %5722 = vmatpush1.bf16.msra.mxu1 %v5721_v61  ;;  %v503_v61 = vld [vmem:[#allocation6 + $0x680] sm:$0xff]  ;;  %v748_v3 = vld [vmem:[#allocation6 + $0x28] sm:$0xff] }
  0xb4   :  { %5724 = vmatprep.subr.bf16.mxu1 %v5723_v8  ;;  %v5681_v0 = vpack.c.bf16 %v507_v62, %v503_v61  ;;  %v5683_v8 = vpack.c.bf16 %v516_v7, %v512_v6  ;;  %v545_v61 = vld [vmem:[#allocation6 + $0x7d0] sm:$0xff]  ;;  %v746_v6 = vld [vmem:[#allocation6 + $0x18] sm:$0xff] }
  0xb5   :  { %5662 = vmatpush1.bf16.msra.mxu0 %v5661_v4  ;;  %v5743_v4 = vpack.c.bf16 %v510_v1, %v506_v63  ;;  %v5393_v1 = vld [vmem:[%s8434_s5 + $0x8] sm:$0xff]  ;;  %v750_v7 = vld [vmem:[#allocation6 + $0x38] sm:$0xff] }
  0xb6   :  { %5664 = vmatprep.subr.bf16.mxu0 %v5663_v12  ;;  %638 = vmatprep.mubr.f32.mxu0 %v5393_v1 }
  0xb7   :  { %5726 = vmatpush1.bf16.msra.mxu1 %v5725_v9  ;;  %v511_v9 = vld [vmem:[#allocation6 + $0x6c0] sm:$0xff]  ;;  %709 = vmatprep.mubr.f32.mxu1 %v5393_v1 }
  0xb8   :  { %5728 = vmatprep.subr.bf16.mxu1 %v5727_v20  ;;  %v5685_v12 = vpack.c.bf16 %v515_v10, %v511_v9  ;;  %v5687_v20 = vpack.c.bf16 %v524_v19, %v520_v18  ;;  %v236_v9 = vlaneseq }
  0xb9   :  { %5666 = vmatpush1.bf16.msra.mxu0 %v5665_v16  ;;  %v5747_v16 = vpack.c.bf16 %v518_v13, %v514_v11 }
  0xba   :  { %5668 = vmatprep.subr.bf16.mxu0 %v5667_v24  ;;  %v237_v10 = vshrl.u32 %v236_v9, 7 }
  0xbb   :  { %5730 = vmatpush1.bf16.msra.mxu1 %v5729_v21  ;;  %v519_v21 = vld [vmem:[#allocation6 + $0x700] sm:$0xff] }
  0xbc   :  { %5732 = vmatprep.subr.bf16.mxu1 %v5731_v32  ;;  %v5689_v24 = vpack.c.bf16 %v523_v22, %v519_v21  ;;  %v5691_v32 = vpack.c.bf16 %v532_v31, %v528_v30  ;;  %v8202_v11 = vsub.s32 0, %v237_v10  ;;  %v8204_v13 = vsub.s32 1, %v237_v10 }
  0xbd   :  { %5670 = vmatpush1.bf16.msra.mxu0 %v5669_v28  ;;  %v5751_v28 = vpack.c.bf16 %v526_v25, %v522_v23 }
  0xbe   :  { %5672 = vmatprep.subr.bf16.mxu0 %v5671_v36 }
  0xbf   :  { %5734 = vmatpush1.bf16.msra.mxu1 %v5733_v33  ;;  %v527_v33 = vld [vmem:[#allocation6 + $0x740] sm:$0xff] }
  0xc0   :  { %5736 = vmatprep.subr.bf16.mxu1 %v5735_v44  ;;  %v5693_v36 = vpack.c.bf16 %v531_v34, %v527_v33  ;;  %v535_v44 = vld [vmem:[#allocation6 + $0x780] sm:$0xff] }
  0xc1   :  { %5674 = vmatpush1.bf16.msra.mxu0 %v5673_v40  ;;  %v5755_v40 = vpack.c.bf16 %v534_v37, %v530_v35  ;;  %v5697_v49 = vpack.c.bf16 %v539_v46, %v535_v44  ;;  %v102_v37 = vld [vmem:[#allocation11] sm:$0xff]  ;;  %v743_v44 = vld [vmem:[#allocation6] sm:$0xff] }
  0xc2   :  { %5676 = vmatprep.subr.bf16.mxu0 %v5675_v48  ;;  %v542_v48 = vld [vmem:[#allocation6 + $0x7b8] sm:$0xff] }
  0xc3   :  { %5738 = vmatpush1.bf16.msra.mxu1 %v5737_v45  ;;  %v5695_v45 = vpack.c.bf16 %v540_v43, %v536_v42  ;;  %v5759_v50 = vpack.c.bf16 %v542_v48, %v538_v47  ;;  %v752_v47 = vld [vmem:[#allocation6 + $0x48] sm:$0xff] }
  0xc4   :  { %5740 = vmatprep.subr.bf16.mxu1 %v5739_v56  ;;  %v543_v56 = vld [vmem:[#allocation6 + $0x7c0] sm:$0xff]  ;;  %v756_v48 = vld [vmem:[#allocation6 + $0x68] sm:$0xff] }
  0xc5   :  { %5678 = vmatpush1.bf16.msra.mxu0 %v5677_v52  ;;  %v541_v52 = vld [vmem:[#allocation6 + $0x7b0] sm:$0xff] }
  0xc6   :  { %5680 = vmatprep.subr.bf16.mxu0 %v5679_v60  ;;  %v5761_v54 = vpack.c.bf16 %v541_v52, %v537_v51  ;;  %v550_v60 = vld [vmem:[#allocation6 + $0x7f8] sm:$0xff] }
  0xc7   :  { %5742 = vmatpush1.bf16.msra.mxu1 %v5741_v57  ;;  %v547_v57 = vld [vmem:[#allocation6 + $0x7e0] sm:$0xff]  ;;  %v5763_v63 = vpack.c.bf16 %v550_v60, %v546_v59  ;;  %v760_v59 = vld [vmem:[#allocation6 + $0x88] sm:$0xff] }
  0xc8   :  { %5744 = vmatprep.subr.bf16.mxu1 %v5743_v4  ;;  %v5701_v62 = vpack.c.bf16 %v547_v57, %v543_v56  ;;  %v5771_v56 = vpack.c.bf16 %v756_v48, %v752_v47  ;;  %v751_v57 = vld [vmem:[#allocation6 + $0x40] sm:$0xff]  ;;  %v764_v60 = vld [vmem:[#allocation6 + $0xa8] sm:$0xff] }
  0xc9   :  { %5682 = vmatpush1.bf16.msra.mxu0 %v5681_v0  ;;  %v549_v0 = vld [vmem:[#allocation6 + $0x7f0] sm:$0xff]  ;;  %v787_v47 = vld [vmem:[#allocation6 + $0x160] sm:$0xff]  ;;  %v792_v48 = vld [vmem:[#allocation6 + $0x188] sm:$0xff] }
  0xca   :  { %5684 = vmatprep.subr.bf16.mxu0 %v5683_v8  ;;  %v5765_v4 = vpack.c.bf16 %v549_v0, %v545_v61  ;;  %v5831_v8 = vpack.c.bf16 %v750_v7, %v746_v6  ;;  %v757_v0 = vld [vmem:[#allocation6 + $0x70] sm:$0xff]  ;;  %v763_v6 = vld [vmem:[#allocation6 + $0xa0] sm:$0xff]  ;;  %v768_v7 = vld [vmem:[#allocation6 + $0xc8] sm:$0xff] }
  0xcb   :  { %5746 = vmatpush1.bf16.msra.mxu1 %v5745_v5  ;;  %v5767_v5 = vpack.c.bf16 %v748_v3, %v744_v2  ;;  %v762_v2 = vld [vmem:[#allocation6 + $0x98] sm:$0xff] }
  0xcc   :  { %5748 = vmatprep.subr.bf16.mxu1 %v5747_v16  ;;  %v8208_v16 = vsub.s32 3, %v237_v10  ;;  %v766_v3 = vld [vmem:[#allocation6 + $0xb8] sm:$0xff] }
  0xcd   :  { %5686 = vmatpush1.bf16.msra.mxu0 %v5685_v12  ;;  %v234_v12 = vld [vmem:[#allocation8] sm:$0xf] }
  0xce   :  { %5688 = vmatprep.subr.bf16.mxu0 %v5687_v20  ;;  %v239_v14 = vrot.slane %v234_v12, %v8202_v11  ;;  %v243_v15 = vrot.slane %v234_v12, %v8204_v13  ;;  %v251_v22 = vrot.slane %v234_v12, %v8208_v16 }
  0xcf   :  { %5750 = vmatpush1.bf16.msra.mxu1 %v5749_v17 }
  0xd0   :  { %5752 = vmatprep.subr.bf16.mxu1 %v5751_v28 }
  0xd1   :  { %5690 = vmatpush1.bf16.msra.mxu0 %v5689_v24  ;;  %v8211_v24 = vsub.s32 2, %v237_v10  ;;  %v5839_v10 = vpack.c.bf16 %v766_v3, %v762_v2  ;;  %v802_v3 = vld [vmem:[#allocation6 + $0x1d8] sm:$0xff] }
  0xd2   :  { %5692 = vmatprep.subr.bf16.mxu0 %v5691_v32 }
  0xd3   :  { %5754 = vmatpush1.bf16.msra.mxu1 %v5753_v29  ;;  %v247_v28 = vrot.slane %v234_v12, %v8211_v24  ;;  %v761_v12 = vld [vmem:[#allocation6 + $0x90] sm:$0xff] }
  0xd4   :  { %5756 = vmatprep.subr.bf16.mxu1 %v5755_v40 }
  0xd5   :  { %5694 = vmatpush1.bf16.msra.mxu0 %v5693_v36 }
  0xd6   :  { %5696 = vmatprep.subr.bf16.mxu0 %v5695_v45  ;;  %v747_v45 = vld [vmem:[#allocation6 + $0x20] sm:$0xff] }
  0xd7   :  { %5758 = vmatpush1.bf16.msra.mxu1 %v5757_v41  ;;  %v5769_v52 = vpack.c.bf16 %v747_v45, %v743_v44  ;;  %v790_v44 = vld [vmem:[#allocation6 + $0x178] sm:$0xff] }
  0xd8   :  { %5760 = vmatprep.subr.bf16.mxu1 %v5759_v50  ;;  %v749_v50 = vld [vmem:[#allocation6 + $0x30] sm:$0xff] }
  0xd9   :  { %5698 = vmatpush1.bf16.msra.mxu0 %v5697_v49  ;;  %v745_v49 = vld [vmem:[#allocation6 + $0x10] sm:$0xff] }
  0xda   :  { %5700 = vmatprep.subr.bf16.mxu0 %v5699_v58  ;;  %v755_v58 = vld [vmem:[#allocation6 + $0x60] sm:$0xff]  ;;  %v5833_v61 = vpack.c.bf16 %v749_v50, %v745_v49  ;;  %v796_v49 = vld [vmem:[#allocation6 + $0x1a8] sm:$0xff] }
  0xdb   :  { %5762 = vmatpush1.bf16.msra.mxu1 %v5761_v54  ;;  %v758_v54 = vld [vmem:[#allocation6 + $0x78] sm:$0xff]  ;;  %v5773_v1 = vpack.c.bf16 %v755_v58, %v751_v57  ;;  %v5791_v57 = vpack.c.bf16 %v796_v49, %v792_v48  ;;  %v791_v58 = vld [vmem:[#allocation6 + $0x180] sm:$0xff]  ;;  %v832_v49 = vld [vmem:[#allocation6 + $0x2c8] sm:$0xff] }
  0xdc   :  { %5764 = vmatprep.subr.bf16.mxu1 %v5763_v63  ;;  %v753_v63 = vld [vmem:[#allocation6 + $0x50] sm:$0xff]  ;;  %v827_v48 = vld [vmem:[#allocation6 + $0x2a0] sm:$0xff] }
  0xdd   :  { %5702 = vmatpush1.bf16.msra.mxu0 %v5701_v62  ;;  %v5835_v62 = vpack.c.bf16 %v758_v54, %v754_v53  ;;  %v5837_v9 = vpack.c.bf16 %v757_v0, %v753_v63  ;;  %v789_v53 = vld [vmem:[#allocation6 + $0x170] sm:$0xff] }
  0xde   :  { %5768 = vmatprep.subr.bf16.mxu0 %v5767_v5  ;;  %v759_v5 = vld [vmem:[#allocation6 + $0x80] sm:$0xff]  ;;  %v793_v0 = vld [vmem:[#allocation6 + $0x190] sm:$0xff] }
  0xdf   :  { %5766 = vmatpush1.bf16.msra.mxu1 %v5765_v4  ;;  %v5775_v4 = vpack.c.bf16 %v764_v60, %v760_v59  ;;  %v795_v59 = vld [vmem:[#allocation6 + $0x1a0] sm:$0xff]  ;;  %v800_v60 = vld [vmem:[#allocation6 + $0x1c8] sm:$0xff] }
  0xe0   :  { %5832 = vmatprep.subr.bf16.mxu1 %v5831_v8  ;;  %v772_v8 = vld [vmem:[#allocation6 + $0xe8] sm:$0xff]  ;;  %v5793_v2 = vpack.c.bf16 %v795_v59, %v791_v58  ;;  %v831_v59 = vld [vmem:[#allocation6 + $0x2c0] sm:$0xff] }
 0x173   :  { %v322_v17 = vpop.f32.mrb[0].mxu0 }
 0x174   :  { %v323_v18 = vadd.f32 %v322_v17, %v239_v14  ;;  %v324_v19 = vpop.f32.mrb[1].mxu0  ;;  %v765_v14 = vld [vmem:[#allocation6 + $0xb0] sm:$0xff]  ;;  %v770_v17 = vld [vmem:[#allocation6 + $0xd8] sm:$0xff] }
 0x175   :  { %v325_v20 = vadd.f32 %v324_v19, %v243_v15  ;;  %v393_v25 = vpop.f32.mrb[0].mxu1  ;;  %v5777_v15 = vpack.c.bf16 %v763_v6, %v759_v5  ;;  %v5779_v19 = vpack.c.bf16 %v772_v8, %v768_v7  ;;  %v799_v6 = vld [vmem:[#allocation6 + $0x1c0] sm:$0xff]  ;;  %v808_v8 = vld [vmem:[#allocation6 + $0x208] sm:$0xff] }
 0x176   :  { %v5394_v21 = vmul.f32 -1.442695, %v323_v18  ;;  %v395_v26 = vpop.f32.mrb[1].mxu1  ;;  %v394_v30 = vadd.f32 %v393_v25, %v247_v28  ;;  %v774_v18 = vld [vmem:[#allocation6 + $0xf8] sm:$0xff]  ;;  %v5841_v25 = vpack.c.bf16 %v765_v14, %v761_v12  ;;  %v773_v28 = vld [vmem:[#allocation6 + $0xf0] sm:$0xff]  ;;  %v803_v7 = vld [vmem:[#allocation6 + $0x1e0] sm:$0xff] }
 0x177   :  { %v5395_v23 = vmul.f32 -1.442695, %v325_v20  ;;  %v396_v27 = vadd.f32 %v395_v26, %v251_v22  ;;  %v767_v20 = vld [vmem:[#allocation6 + $0xc0] sm:$0xff]  ;;  %v776_v22 = vld [vmem:[#allocation6 + $0x108] sm:$0xff]  ;;  %v5843_v26 = vpack.c.bf16 %v774_v18, %v770_v17  ;;  %v801_v14 = vld [vmem:[#allocation6 + $0x1d0] sm:$0xff]  ;;  %v5797_v17 = vpack.c.bf16 %v803_v7, %v799_v6 }
 0x178   :  { %7621 = vpow2.f32 %v5394_v21  ;;  %v771_v21 = vld [vmem:[#allocation6 + $0xe0] sm:$0xff]  ;;  %v810_v18 = vld [vmem:[#allocation6 + $0x218] sm:$0xff] }
 0x179   :  { %7623 = vpow2.f32 %v5395_v23  ;;  %v5396_v29 = vmul.f32 -1.442695, %v396_v27  ;;  %v780_v23 = vld [vmem:[#allocation6 + $0x128] sm:$0xff]  ;;  %v769_v27 = vld [vmem:[#allocation6 + $0xd0] sm:$0xff]  ;;  %v839_v7 = vld [vmem:[#allocation6 + $0x300] sm:$0xff] }
 0x17b   :  { %7625 = vpow2.f32 %v5396_v29  ;;  %v5781_v29 = vpack.c.bf16 %v771_v21, %v767_v20  ;;  %v807_v21 = vld [vmem:[#allocation6 + $0x200] sm:$0xff] }
 0x17c   :  { %7627 = vtanh.f32 %v394_v30  ;;  %v778_v30 = vld [vmem:[#allocation6 + $0x118] sm:$0xff] }
 0x182   :  { %v7622_v31 = vpop.eup %7621 }
 0x183   :  { %v7624_v32 = vpop.eup %7623  ;;  %v401_v33 = vadd.f32 1.0, %v7622_v31  ;;  %v782_v31 = vld [vmem:[#allocation6 + $0x138] sm:$0xff] }
 0x184   :  { %v407_v34 = vadd.f32 1.0, %v7624_v32  ;;  %v5783_v32 = vpack.c.bf16 %v780_v23, %v776_v22  ;;  %v811_v22 = vld [vmem:[#allocation6 + $0x220] sm:$0xff]  ;;  %v816_v23 = vld [vmem:[#allocation6 + $0x248] sm:$0xff] }
 0x185   :  { %7629 = vrcp.f32 %v401_v33  ;;  %v7626_v35 = vpop.eup %7625  ;;  %v775_v33 = vld [vmem:[#allocation6 + $0x100] sm:$0xff] }
 0x186   :  { %7631 = vrcp.f32 %v407_v34  ;;  %v7628_v36 = vpop.eup %7627  ;;  %v414_v39 = vadd.f32 1.0, %v7626_v35  ;;  %v779_v34 = vld [vmem:[#allocation6 + $0x120] sm:$0xff]  ;;  %v784_v35 = vld [vmem:[#allocation6 + $0x148] sm:$0xff] }
 0x188   :  { %7633 = vrcp.f32 %v414_v39  ;;  %v777_v39 = vld [vmem:[#allocation6 + $0x110] sm:$0xff] }
 0x18f   :  { %v7630_v38 = vpop.eup %7629 }
 0x190   :  { %v7632_v40 = vpop.eup %7631  ;;  %v418_v41 = vmul.f32 %v7630_v38, %v7628_v36  ;;  %v788_v36 = vld [vmem:[#allocation6 + $0x168] sm:$0xff]  ;;  %v5847_v38 = vpack.c.bf16 %v782_v31, %v778_v30  ;;  %v5801_v30 = vpack.c.bf16 %v811_v22, %v807_v21  ;;  %v818_v31 = vld [vmem:[#allocation6 + $0x258] sm:$0xff]  ;;  %v847_v22 = vld [vmem:[#allocation6 + $0x340] sm:$0xff] }
 0x191   :  { %v417_v42 = vmul.f32 %v7632_v40, %v102_v37  ;;  %v5845_v37 = vpack.c.bf16 %v773_v28, %v769_v27  ;;  %v781_v40 = vld [vmem:[#allocation6 + $0x130] sm:$0xff]  ;;  %v5787_v45 = vpack.c.bf16 %v788_v36, %v784_v35  ;;  %v819_v35 = vld [vmem:[#allocation6 + $0x260] sm:$0xff]  ;;  %v824_v36 = vld [vmem:[#allocation6 + $0x288] sm:$0xff] }
 0x192   :  { %v7634_v46 = vpop.eup %7633  ;;  %v5849_v50 = vpack.c.bf16 %v781_v40, %v777_v39  ;;  %v809_v28 = vld [vmem:[#allocation6 + $0x210] sm:$0xff] }
 0x193   :  { %v8214_v43 = vadd.f32 %v418_v41, %v417_v42  ;;  %v5785_v41 = vpack.c.bf16 %v779_v34, %v775_v33  ;;  %v786_v42 = vld [vmem:[#allocation6 + $0x158] sm:$0xff]  ;;  %v815_v34 = vld [vmem:[#allocation6 + $0x240] sm:$0xff]  ;;  %v817_v40 = vld [vmem:[#allocation6 + $0x250] sm:$0xff] }
 0x195   :  { %7635 = vtanh.f32 %v8214_v43 }
 0x19f   :  { %v7636_v51 = vpop.eup %7635 }
 0x1a0   :  { %v421_v55 = vmul.f32 %v7636_v51, %v7634_v46  ;;  %v783_v46 = vld [vmem:[#allocation6 + $0x140] sm:$0xff]  ;;  %v5851_v51 = vpack.c.bf16 %v790_v44, %v786_v42  ;;  %v5805_v42 = vpack.c.bf16 %v819_v35, %v815_v34  ;;  %v826_v44 = vld [vmem:[#allocation6 + $0x298] sm:$0xff] }
 0x1a1   :  { %v5789_v54 = vpack.c.bf16 %v787_v47, %v783_v46  ;;  %v823_v47 = vld [vmem:[#allocation6 + $0x280] sm:$0xff] }
 0x1a2   :  { %639 = vmatmul.mubr.f32.vlgmr.msra.gmra.mrb[2].mxu0 %v421_v55  ;;  %710 = vmatmul.mubr.f32.vlgmr.msra.gmra.mrb[2].mxu1 %v421_v55  ;;  %v855_v35 = vld [vmem:[#allocation6 + $0x380] sm:$0xff] }
 0x1a3   :  { %5770 = vmatpush1.bf16.msra.mxu0 %v5769_v52  ;;  %957 = vmatprep.mubr.f32.mxu0 %v421_v55  ;;  %v785_v52 = vld [vmem:[#allocation6 + $0x150] sm:$0xff] }
 0x1a4   :  { %1028 = vmatprep.mubr.f32.mxu1 %v421_v55  ;;  %5772 = vmatprep.subr.bf16.mxu0 %v5771_v56  ;;  %v794_v55 = vld [vmem:[#allocation6 + $0x198] sm:$0xff] }
 0x1a5   :  { %5834 = vmatpush1.bf16.msra.mxu1 %v5833_v61  ;;  %v798_v56 = vld [vmem:[#allocation6 + $0x1b8] sm:$0xff]  ;;  %v804_v61 = vld [vmem:[#allocation6 + $0x1e8] sm:$0xff] }
 0x1a6   :  { %5836 = vmatprep.subr.bf16.mxu1 %v5835_v62  ;;  %v5853_v62 = vpack.c.bf16 %v789_v53, %v785_v52  ;;  %v5855_v63 = vpack.c.bf16 %v798_v56, %v794_v55  ;;  %v5795_v5 = vpack.c.bf16 %v804_v61, %v800_v60  ;;  %v825_v53 = vld [vmem:[#allocation6 + $0x290] sm:$0xff]  ;;  %v5809_v55 = vpack.c.bf16 %v827_v48, %v823_v47  ;;  %v834_v56 = vld [vmem:[#allocation6 + $0x2d8] sm:$0xff]  ;;  %v835_v60 = vld [vmem:[#allocation6 + $0x2e0] sm:$0xff] }
 0x1a7   :  { %5774 = vmatpush1.bf16.msra.mxu0 %v5773_v1  ;;  %v797_v1 = vld [vmem:[#allocation6 + $0x1b0] sm:$0xff]  ;;  %v840_v61 = vld [vmem:[#allocation6 + $0x308] sm:$0xff]  ;;  %v863_v48 = vld [vmem:[#allocation6 + $0x3c0] sm:$0xff] }
 0x1a8   :  { %5776 = vmatprep.subr.bf16.mxu0 %v5775_v4  ;;  %v806_v4 = vld [vmem:[#allocation6 + $0x1f8] sm:$0xff] }
 0x1a9   :  { %5838 = vmatpush1.bf16.msra.mxu1 %v5837_v9  ;;  %v812_v9 = vld [vmem:[#allocation6 + $0x228] sm:$0xff]  ;;  %v5859_v12 = vpack.c.bf16 %v806_v4, %v802_v3  ;;  %v5813_v3 = vpack.c.bf16 %v835_v60, %v831_v59  ;;  %v842_v4 = vld [vmem:[#allocation6 + $0x318] sm:$0xff]  ;;  %v1059_v59 = vld [vmem:[#allocation6 + $0x400] sm:$0xff] }
 0x1aa   :  { %5840 = vmatprep.subr.bf16.mxu1 %v5839_v10  ;;  %v5857_v10 = vpack.c.bf16 %v797_v1, %v793_v0  ;;  %v5799_v20 = vpack.c.bf16 %v812_v9, %v808_v8  ;;  %v833_v1 = vld [vmem:[#allocation6 + $0x2d0] sm:$0xff]  ;;  %v843_v8 = vld [vmem:[#allocation6 + $0x320] sm:$0xff]  ;;  %v848_v9 = vld [vmem:[#allocation6 + $0x348] sm:$0xff] }
 0x1ab   :  { %5778 = vmatpush1.bf16.msra.mxu0 %v5777_v15  ;;  %v805_v15 = vld [vmem:[#allocation6 + $0x1f0] sm:$0xff] }
 0x1ac   :  { %5780 = vmatprep.subr.bf16.mxu0 %v5779_v19  ;;  %v814_v19 = vld [vmem:[#allocation6 + $0x238] sm:$0xff] }
 0x1ad   :  { %5842 = vmatpush1.bf16.msra.mxu1 %v5841_v25  ;;  %v820_v25 = vld [vmem:[#allocation6 + $0x268] sm:$0xff]  ;;  %v5863_v27 = vpack.c.bf16 %v814_v19, %v810_v18  ;;  %v5817_v18 = vpack.c.bf16 %v843_v8, %v839_v7  ;;  %v850_v19 = vld [vmem:[#allocation6 + $0x358] sm:$0xff]  ;;  %v1067_v7 = vld [vmem:[#allocation6 + $0x440] sm:$0xff] }
 0x1ae   :  { %5844 = vmatprep.subr.bf16.mxu1 %v5843_v26  ;;  %v5861_v26 = vpack.c.bf16 %v805_v15, %v801_v14  ;;  %v5803_v33 = vpack.c.bf16 %v820_v25, %v816_v23  ;;  %v841_v15 = vld [vmem:[#allocation6 + $0x310] sm:$0xff]  ;;  %v851_v23 = vld [vmem:[#allocation6 + $0x360] sm:$0xff]  ;;  %v856_v25 = vld [vmem:[#allocation6 + $0x388] sm:$0xff] }
 0x1af   :  { %5782 = vmatpush1.bf16.msra.mxu0 %v5781_v29  ;;  %v813_v29 = vld [vmem:[#allocation6 + $0x230] sm:$0xff] }
 0x1b0   :  { %5784 = vmatprep.subr.bf16.mxu0 %v5783_v32  ;;  %v822_v32 = vld [vmem:[#allocation6 + $0x278] sm:$0xff] }
 0x1b1   :  { %5846 = vmatpush1.bf16.msra.mxu1 %v5845_v37  ;;  %v828_v37 = vld [vmem:[#allocation6 + $0x2a8] sm:$0xff]  ;;  %v5867_v39 = vpack.c.bf16 %v822_v32, %v818_v31  ;;  %v5821_v31 = vpack.c.bf16 %v851_v23, %v847_v22  ;;  %v858_v32 = vld [vmem:[#allocation6 + $0x398] sm:$0xff]  ;;  %v1075_v22 = vld [vmem:[#allocation6 + $0x480] sm:$0xff] }
 0x1b2   :  { %5848 = vmatprep.subr.bf16.mxu1 %v5847_v38  ;;  %v5865_v38 = vpack.c.bf16 %v813_v29, %v809_v28  ;;  %v5807_v46 = vpack.c.bf16 %v828_v37, %v824_v36  ;;  %v849_v29 = vld [vmem:[#allocation6 + $0x350] sm:$0xff]  ;;  %v859_v36 = vld [vmem:[#allocation6 + $0x3a0] sm:$0xff]  ;;  %v864_v37 = vld [vmem:[#allocation6 + $0x3c8] sm:$0xff] }
 0x1b3   :  { %5786 = vmatpush1.bf16.msra.mxu0 %v5785_v41  ;;  %v821_v41 = vld [vmem:[#allocation6 + $0x270] sm:$0xff]  ;;  %v1079_v23 = vld [vmem:[#allocation6 + $0x4a0] sm:$0xff] }
 0x1b4   :  { %5788 = vmatprep.subr.bf16.mxu0 %v5787_v45  ;;  %v830_v45 = vld [vmem:[#allocation6 + $0x2b8] sm:$0xff] }
 0x1b5   :  { %5850 = vmatpush1.bf16.msra.mxu1 %v5849_v50  ;;  %v836_v50 = vld [vmem:[#allocation6 + $0x2e8] sm:$0xff]  ;;  %v5871_v52 = vpack.c.bf16 %v830_v45, %v826_v44  ;;  %v5825_v44 = vpack.c.bf16 %v859_v36, %v855_v35  ;;  %v866_v45 = vld [vmem:[#allocation6 + $0x3d8] sm:$0xff]  ;;  %v1083_v36 = vld [vmem:[#allocation6 + $0x4c0] sm:$0xff] }
 0x1b6   :  { %5852 = vmatprep.subr.bf16.mxu1 %v5851_v51  ;;  %v5869_v51 = vpack.c.bf16 %v821_v41, %v817_v40  ;;  %v5811_v58 = vpack.c.bf16 %v836_v50, %v832_v49  ;;  %v857_v41 = vld [vmem:[#allocation6 + $0x390] sm:$0xff]  ;;  %v867_v49 = vld [vmem:[#allocation6 + $0x3e0] sm:$0xff] }
 0x1b7   :  { %5790 = vmatpush1.bf16.msra.mxu0 %v5789_v54  ;;  %v829_v54 = vld [vmem:[#allocation6 + $0x2b0] sm:$0xff] }
 0x1b8   :  { %5792 = vmatprep.subr.bf16.mxu0 %v5791_v57  ;;  %v838_v57 = vld [vmem:[#allocation6 + $0x2f8] sm:$0xff] }
 0x1b9   :  { %5854 = vmatpush1.bf16.msra.mxu1 %v5853_v62  ;;  %v844_v62 = vld [vmem:[#allocation6 + $0x328] sm:$0xff]  ;;  %v5875_v0 = vpack.c.bf16 %v838_v57, %v834_v56 }
 0x1ba   :  { %5856 = vmatprep.subr.bf16.mxu1 %v5855_v63  ;;  %v5873_v63 = vpack.c.bf16 %v829_v54, %v825_v53  ;;  %v5815_v6 = vpack.c.bf16 %v844_v62, %v840_v61  ;;  %v869_v53 = vld [vmem:[#allocation6 + $0x3f0] sm:$0xff]  ;;  %v5829_v54 = vpack.c.bf16 %v867_v49, %v863_v48  ;;  %v742_v56 = vld [vmem:[#allocation3 + $0x8] sm:$0xff]  ;;  %v1063_v61 = vld [vmem:[#allocation6 + $0x420] sm:$0xff] }
 0x1bb   :  { %5794 = vmatpush1.bf16.msra.mxu0 %v5793_v2  ;;  %v837_v2 = vld [vmem:[#allocation6 + $0x2f0] sm:$0xff]  ;;  %v1060_v57 = vld [vmem:[#allocation6 + $0x408] sm:$0xff]  ;;  %v1062_v62 = vld [vmem:[#allocation6 + $0x418] sm:$0xff] }
 0x1bc   :  { %5796 = vmatprep.subr.bf16.mxu0 %v5795_v5  ;;  %v846_v5 = vld [vmem:[#allocation6 + $0x338] sm:$0xff] }
 0x1bd   :  { %5858 = vmatpush1.bf16.msra.mxu1 %v5857_v10  ;;  %v852_v10 = vld [vmem:[#allocation6 + $0x368] sm:$0xff]  ;;  %v5879_v14 = vpack.c.bf16 %v846_v5, %v842_v4 }
 0x1be   :  { %5860 = vmatprep.subr.bf16.mxu1 %v5859_v12  ;;  %v5877_v12 = vpack.c.bf16 %v837_v2, %v833_v1  ;;  %v5819_v21 = vpack.c.bf16 %v852_v10, %v848_v9  ;;  %v1061_v2 = vld [vmem:[#allocation6 + $0x410] sm:$0xff]  ;;  %v1068_v5 = vld [vmem:[#allocation6 + $0x448] sm:$0xff]  ;;  %v1071_v9 = vld [vmem:[#allocation6 + $0x460] sm:$0xff] }
 0x1bf   :  { %5798 = vmatpush1.bf16.msra.mxu0 %v5797_v17  ;;  %v845_v17 = vld [vmem:[#allocation6 + $0x330] sm:$0xff]  ;;  %v1070_v10 = vld [vmem:[#allocation6 + $0x458] sm:$0xff] }
 0x1c0   :  { %5800 = vmatprep.subr.bf16.mxu0 %v5799_v20  ;;  %v854_v20 = vld [vmem:[#allocation6 + $0x378] sm:$0xff] }
 0x1c1   :  { %5862 = vmatpush1.bf16.msra.mxu1 %v5861_v26  ;;  %v860_v26 = vld [vmem:[#allocation6 + $0x3a8] sm:$0xff]  ;;  %v5883_v28 = vpack.c.bf16 %v854_v20, %v850_v19 }
 0x1c2   :  { %5864 = vmatprep.subr.bf16.mxu1 %v5863_v27  ;;  %v5881_v27 = vpack.c.bf16 %v845_v17, %v841_v15  ;;  %v5823_v34 = vpack.c.bf16 %v860_v26, %v856_v25  ;;  %v1069_v17 = vld [vmem:[#allocation6 + $0x450] sm:$0xff]  ;;  %v1076_v19 = vld [vmem:[#allocation6 + $0x488] sm:$0xff]  ;;  %v5905_v26 = vpack.c.bf16 %v1079_v23, %v1075_v22 }
 0x1c3   :  { %5802 = vmatpush1.bf16.msra.mxu0 %v5801_v30  ;;  %v853_v30 = vld [vmem:[#allocation6 + $0x370] sm:$0xff]  ;;  %v1120_v22 = vld [vmem:[#allocation6 + $0x5e8] sm:$0xff] }
 0x1c4   :  { %5804 = vmatprep.subr.bf16.mxu0 %v5803_v33  ;;  %v862_v33 = vld [vmem:[#allocation6 + $0x3b8] sm:$0xff] }
 0x1c5   :  { %5866 = vmatpush1.bf16.msra.mxu1 %v5865_v38  ;;  %v868_v38 = vld [vmem:[#allocation6 + $0x3e8] sm:$0xff]  ;;  %v5887_v40 = vpack.c.bf16 %v862_v33, %v858_v32 }
 0x1c6   :  { %5868 = vmatprep.subr.bf16.mxu1 %v5867_v39  ;;  %v5885_v39 = vpack.c.bf16 %v853_v30, %v849_v29  ;;  %v5827_v47 = vpack.c.bf16 %v868_v38, %v864_v37  ;;  %v1077_v29 = vld [vmem:[#allocation6 + $0x490] sm:$0xff]  ;;  %v1084_v32 = vld [vmem:[#allocation6 + $0x4c8] sm:$0xff]  ;;  %v1087_v37 = vld [vmem:[#allocation6 + $0x4e0] sm:$0xff] }
 0x1c7   :  { %5806 = vmatpush1.bf16.msra.mxu0 %v5805_v42  ;;  %v861_v42 = vld [vmem:[#allocation6 + $0x3b0] sm:$0xff]  ;;  %v1088_v33 = vld [vmem:[#allocation6 + $0x4e8] sm:$0xff]  ;;  %v1086_v38 = vld [vmem:[#allocation6 + $0x4d8] sm:$0xff] }
 0x1c8   :  { %5808 = vmatprep.subr.bf16.mxu0 %v5807_v46  ;;  %v870_v46 = vld [vmem:[#allocation6 + $0x3f8] sm:$0xff]  ;;  %v5889_v50 = vpack.c.bf16 %v861_v42, %v857_v41  ;;  %v5907_v35 = vpack.c.bf16 %v1088_v33, %v1084_v32  ;;  %v1089_v41 = vld [vmem:[#allocation6 + $0x4f0] sm:$0xff]  ;;  %v5909_v42 = vpack.c.bf16 %v1087_v37, %v1083_v36  ;;  %v1123_v37 = vld [vmem:[#allocation6 + $0x600] sm:$0xff] }
 0x1c9   :  { %5870 = vmatpush1.bf16.msra.mxu1 %v5869_v51  ;;  %v5891_v51 = vpack.c.bf16 %v870_v46, %v866_v45  ;;  %v1092_v45 = vld [vmem:[#allocation6 + $0x508] sm:$0xff] }
 0x1ca   :  { %5872 = vmatprep.subr.bf16.mxu1 %v5871_v52  ;;  %v865_v52 = vld [vmem:[#allocation6 + $0x3d0] sm:$0xff]  ;;  %v1096_v46 = vld [vmem:[#allocation6 + $0x528] sm:$0xff] }
 0x1cb   :  { %5810 = vmatpush1.bf16.msra.mxu0 %v5809_v55  ;;  %v5893_v55 = vpack.c.bf16 %v869_v53, %v865_v52  ;;  %v5911_v49 = vpack.c.bf16 %v1096_v46, %v1092_v45  ;;  %v1098_v52 = vld [vmem:[#allocation6 + $0x538] sm:$0xff] }
 0x1cc   :  { %5812 = vmatprep.subr.bf16.mxu0 %v5811_v58  ;;  %v1064_v58 = vld [vmem:[#allocation6 + $0x428] sm:$0xff] }
 0x1cd   :  { %5874 = vmatpush1.bf16.msra.mxu1 %v5873_v63  ;;  %v5895_v60 = vpack.c.bf16 %v1064_v58, %v1060_v57  ;;  %v1066_v63 = vld [vmem:[#allocation6 + $0x438] sm:$0xff]  ;;  %v1100_v58 = vld [vmem:[#allocation6 + $0x548] sm:$0xff] }
 0x1ce   :  { %5876 = vmatprep.subr.bf16.mxu1 %v5875_v0  ;;  %v5897_v0 = vpack.c.bf16 %v1063_v61, %v1059_v59  ;;  %v5959_v1 = vpack.c.bf16 %v1066_v63, %v1062_v62  ;;  %v1104_v59 = vld [vmem:[#allocation6 + $0x568] sm:$0xff]  ;;  %v1099_v61 = vld [vmem:[#allocation6 + $0x540] sm:$0xff]  ;;  %v1102_v63 = vld [vmem:[#allocation6 + $0x558] sm:$0xff] }
 0x1cf   :  { %5814 = vmatpush1.bf16.msra.mxu0 %v5813_v3  ;;  %v1065_v3 = vld [vmem:[#allocation6 + $0x430] sm:$0xff]  ;;  %v1103_v62 = vld [vmem:[#allocation6 + $0x560] sm:$0xff] }
 0x1d0   :  { %5816 = vmatprep.subr.bf16.mxu0 %v5815_v6  ;;  %v5961_v4 = vpack.c.bf16 %v1065_v3, %v1061_v2  ;;  %v1072_v6 = vld [vmem:[#allocation6 + $0x468] sm:$0xff]  ;;  %v1101_v2 = vld [vmem:[#allocation6 + $0x550] sm:$0xff] }
 0x1d1   :  { %5878 = vmatpush1.bf16.msra.mxu1 %v5877_v12  ;;  %v5899_v8 = vpack.c.bf16 %v1072_v6, %v1068_v5  ;;  %v1074_v12 = vld [vmem:[#allocation6 + $0x478] sm:$0xff]  ;;  %v1105_v3 = vld [vmem:[#allocation6 + $0x570] sm:$0xff]  ;;  %v1108_v6 = vld [vmem:[#allocation6 + $0x588] sm:$0xff] }
 0x1d2   :  { %5880 = vmatprep.subr.bf16.mxu1 %v5879_v14  ;;  %v5901_v14 = vpack.c.bf16 %v1071_v9, %v1067_v7  ;;  %v5963_v15 = vpack.c.bf16 %v1074_v12, %v1070_v10  ;;  %v5981_v5 = vpack.c.bf16 %v1105_v3, %v1101_v2  ;;  %v1112_v7 = vld [vmem:[#allocation6 + $0x5a8] sm:$0xff]  ;;  %v1107_v9 = vld [vmem:[#allocation6 + $0x580] sm:$0xff]  ;;  %v1110_v12 = vld [vmem:[#allocation6 + $0x598] sm:$0xff] }
 0x1d3   :  { %5818 = vmatpush1.bf16.msra.mxu0 %v5817_v18  ;;  %v1073_v18 = vld [vmem:[#allocation6 + $0x470] sm:$0xff]  ;;  %v1111_v10 = vld [vmem:[#allocation6 + $0x5a0] sm:$0xff]  ;;  %v1146_v2 = vld [vmem:[#allocation6 + $0x6b8] sm:$0xff] }
 0x1d4   :  { %5820 = vmatprep.subr.bf16.mxu0 %v5819_v21  ;;  %v5965_v20 = vpack.c.bf16 %v1073_v18, %v1069_v17  ;;  %v1080_v21 = vld [vmem:[#allocation6 + $0x4a8] sm:$0xff]  ;;  %v1109_v17 = vld [vmem:[#allocation6 + $0x590] sm:$0xff] }
 0x1d5   :  { %5882 = vmatpush1.bf16.msra.mxu1 %v5881_v27  ;;  %v5903_v25 = vpack.c.bf16 %v1080_v21, %v1076_v19  ;;  %v1078_v27 = vld [vmem:[#allocation6 + $0x498] sm:$0xff]  ;;  %v1113_v18 = vld [vmem:[#allocation6 + $0x5b0] sm:$0xff]  ;;  %v1116_v21 = vld [vmem:[#allocation6 + $0x5c8] sm:$0xff] }
 0x1d6   :  { %5884 = vmatprep.subr.bf16.mxu1 %v5883_v28  ;;  %v1082_v28 = vld [vmem:[#allocation6 + $0x4b8] sm:$0xff]  ;;  %v5923_v23 = vpack.c.bf16 %v1120_v22, %v1116_v21  ;;  %v1141_v3 = vld [vmem:[#allocation6 + $0x690] sm:$0xff]  ;;  %v1156_v22 = vld [vmem:[#allocation6 + $0x708] sm:$0xff] }
 0x1d7   :  { %5822 = vmatpush1.bf16.msra.mxu0 %v5821_v31  ;;  %v5967_v30 = vpack.c.bf16 %v1082_v28, %v1078_v27  ;;  %v1081_v31 = vld [vmem:[#allocation6 + $0x4b0] sm:$0xff]  ;;  %v1118_v27 = vld [vmem:[#allocation6 + $0x5d8] sm:$0xff] }
 0x1d8   :  { %5824 = vmatprep.subr.bf16.mxu0 %v5823_v34  ;;  %v5969_v34 = vpack.c.bf16 %v1081_v31, %v1077_v29  ;;  %v1122_v29 = vld [vmem:[#allocation6 + $0x5f8] sm:$0xff]  ;;  %v1121_v31 = vld [vmem:[#allocation6 + $0x5f0] sm:$0xff] }
 0x1d9   :  { %5886 = vmatpush1.bf16.msra.mxu1 %v5885_v39  ;;  %v1090_v39 = vld [vmem:[#allocation6 + $0x4f8] sm:$0xff]  ;;  %v5987_v32 = vpack.c.bf16 %v1122_v29, %v1118_v27  ;;  %v1159_v27 = vld [vmem:[#allocation6 + $0x720] sm:$0xff] }
 0x1da   :  { %5888 = vmatprep.subr.bf16.mxu1 %v5887_v40  ;;  %v1085_v40 = vld [vmem:[#allocation6 + $0x4d0] sm:$0xff] }
 0x1db   :  { %5826 = vmatpush1.bf16.msra.mxu0 %v5825_v44  ;;  %v5971_v44 = vpack.c.bf16 %v1090_v39, %v1086_v38  ;;  %v5973_v48 = vpack.c.bf16 %v1089_v41, %v1085_v40  ;;  %v1127_v38 = vld [vmem:[#allocation6 + $0x620] sm:$0xff]  ;;  %v1126_v39 = vld [vmem:[#allocation6 + $0x618] sm:$0xff] }
 0x1dc   :  { %5828 = vmatprep.subr.bf16.mxu0 %v5827_v47  ;;  %v1091_v47 = vld [vmem:[#allocation6 + $0x500] sm:$0xff]  ;;  %v5929_v40 = vpack.c.bf16 %v1127_v38, %v1123_v37  ;;  %v1130_v41 = vld [vmem:[#allocation6 + $0x638] sm:$0xff] }
 0x1dd   :  { %5890 = vmatpush1.bf16.msra.mxu1 %v5889_v50  ;;  %v1095_v50 = vld [vmem:[#allocation6 + $0x520] sm:$0xff]  ;;  %v5991_v45 = vpack.c.bf16 %v1130_v41, %v1126_v39 }
 0x1de   :  { %5892 = vmatprep.subr.bf16.mxu1 %v5891_v51  ;;  %v1094_v51 = vld [vmem:[#allocation6 + $0x518] sm:$0xff]  ;;  %v1163_v38 = vld [vmem:[#allocation6 + $0x740] sm:$0xff] }
 0x1df   :  { %5830 = vmatpush1.bf16.msra.mxu0 %v5829_v54  ;;  %v5975_v53 = vpack.c.bf16 %v1098_v52, %v1094_v51  ;;  %v5913_v54 = vpack.c.bf16 %v1095_v50, %v1091_v47  ;;  %v1132_v47 = vld [vmem:[#allocation6 + $0x648] sm:$0xff]  ;;  %v1131_v50 = vld [vmem:[#allocation6 + $0x640] sm:$0xff]  ;;  %v1134_v52 = vld [vmem:[#allocation6 + $0x658] sm:$0xff] }
 0x1e0   :  { %5896 = vmatprep.subr.bf16.mxu0 %v5895_v60  ;;  %v5915_v60 = vpack.c.bf16 %v1104_v59, %v1100_v58  ;;  %v1135_v51 = vld [vmem:[#allocation6 + $0x660] sm:$0xff]  ;;  %v1140_v59 = vld [vmem:[#allocation6 + $0x688] sm:$0xff] }
 0x1e1   :  { %5894 = vmatpush1.bf16.msra.mxu1 %v5893_v55  ;;  %v1093_v55 = vld [vmem:[#allocation6 + $0x510] sm:$0xff]  ;;  %v1167_v39 = vld [vmem:[#allocation6 + $0x760] sm:$0xff] }
 0x1e2   :  { %958 = vmatmul.mubr.f32.vlgmr.msra.gmra.mrb[4].mxu0 %v742_v56  ;;  %5960 = vmatprep.subr.bf16.mxu1 %v5959_v1  ;;  %v1106_v1 = vld [vmem:[#allocation6 + $0x578] sm:$0xff]  ;;  %v5949_v41 = vpack.c.bf16 %v1167_v39, %v1163_v38 }
 0x1e3   :  { %5898 = vmatpush1.bf16.msra.mxu0 %v5897_v0  ;;  %v5917_v0 = vpack.c.bf16 %v1103_v62, %v1099_v61  ;;  %v1139_v62 = vld [vmem:[#allocation6 + $0x680] sm:$0xff] }
 0x1e4   :  { %1029 = vmatmul.mubr.f32.vlgmr.msra.gmra.mrb[4].mxu1 %v742_v56  ;;  %5900 = vmatprep.subr.bf16.mxu0 %v5899_v8  ;;  %v1097_v56 = vld [vmem:[#allocation6 + $0x530] sm:$0xff]  ;;  %v5919_v8 = vpack.c.bf16 %v1112_v7, %v1108_v6  ;;  %v1148_v7 = vld [vmem:[#allocation6 + $0x6c8] sm:$0xff] }
 0x1e5   :  { %5962 = vmatpush1.bf16.msra.mxu1 %v5961_v4  ;;  %v5977_v57 = vpack.c.bf16 %v1097_v56, %v1093_v55  ;;  %v5979_v4 = vpack.c.bf16 %v1106_v1, %v1102_v63  ;;  %v1133_v55 = vld [vmem:[#allocation6 + $0x650] sm:$0xff]  ;;  %v1143_v63 = vld [vmem:[#allocation6 + $0x6a0] sm:$0xff] }
 0x1e6   :  { %5964 = vmatprep.subr.bf16.mxu1 %v5963_v15  ;;  %v1114_v15 = vld [vmem:[#allocation6 + $0x5b8] sm:$0xff]  ;;  %v1137_v56 = vld [vmem:[#allocation6 + $0x670] sm:$0xff]  ;;  %v5937_v1 = vpack.c.bf16 %v1143_v63, %v1139_v62  ;;  %v1179_v62 = vld [vmem:[#allocation6 + $0x7c0] sm:$0xff] }
 0x1e7   :  { %5902 = vmatpush1.bf16.msra.mxu0 %v5901_v14  ;;  %v5921_v14 = vpack.c.bf16 %v1111_v10, %v1107_v9  ;;  %v5983_v19 = vpack.c.bf16 %v1114_v15, %v1110_v12  ;;  %v5997_v58 = vpack.c.bf16 %v1137_v56, %v1133_v55  ;;  %v1147_v10 = vld [vmem:[#allocation6 + $0x6c0] sm:$0xff] }
 0x1e8   :  { %5904 = vmatprep.subr.bf16.mxu0 %v5903_v25  ;;  %v1115_v25 = vld [vmem:[#allocation6 + $0x5c0] sm:$0xff] }
 0x1e9   :  { %5966 = vmatpush1.bf16.msra.mxu1 %v5965_v20  ;;  %v5985_v20 = vpack.c.bf16 %v1113_v18, %v1109_v17  ;;  %v1151_v12 = vld [vmem:[#allocation6 + $0x6e0] sm:$0xff]  ;;  %v1154_v17 = vld [vmem:[#allocation6 + $0x6f8] sm:$0xff]  ;;  %v1149_v18 = vld [vmem:[#allocation6 + $0x6d0] sm:$0xff] }
 0x1ea   :  { %5968 = vmatprep.subr.bf16.mxu1 %v5967_v30  ;;  %v1117_v30 = vld [vmem:[#allocation6 + $0x5d0] sm:$0xff]  ;;  %v5941_v15 = vpack.c.bf16 %v1151_v12, %v1147_v10  ;;  %v1183_v63 = vld [vmem:[#allocation6 + $0x7e0] sm:$0xff] }
 0x1eb   :  { %5906 = vmatpush1.bf16.msra.mxu0 %v5905_v26  ;;  %v1119_v26 = vld [vmem:[#allocation6 + $0x5e0] sm:$0xff]  ;;  %v5989_v33 = vpack.c.bf16 %v1121_v31, %v1117_v30  ;;  %v1162_v30 = vld [vmem:[#allocation6 + $0x738] sm:$0xff]  ;;  %v1157_v31 = vld [vmem:[#allocation6 + $0x710] sm:$0xff] }
 0x1ec   :  { %5908 = vmatprep.subr.bf16.mxu0 %v5907_v35  ;;  %v5925_v28 = vpack.c.bf16 %v1119_v26, %v1115_v25  ;;  %v1128_v35 = vld [vmem:[#allocation6 + $0x628] sm:$0xff]  ;;  %v1155_v26 = vld [vmem:[#allocation6 + $0x700] sm:$0xff] }
 0x1ed   :  { %5970 = vmatpush1.bf16.msra.mxu1 %v5969_v34  ;;  %v1124_v34 = vld [vmem:[#allocation6 + $0x608] sm:$0xff]  ;;  %v5945_v29 = vpack.c.bf16 %v1159_v27, %v1155_v26  ;;  %v552_v12 = vld [vmem:[#allocation8 + $0x4] sm:$0xf] }
 0x1ee   :  { %5972 = vmatprep.subr.bf16.mxu1 %v5971_v44  ;;  %v5927_v36 = vpack.c.bf16 %v1128_v35, %v1124_v34  ;;  %v1129_v44 = vld [vmem:[#allocation6 + $0x630] sm:$0xff]  ;;  %v1164_v35 = vld [vmem:[#allocation6 + $0x748] sm:$0xff] }
 0x1ef   :  { %5910 = vmatpush1.bf16.msra.mxu0 %v5909_v42  ;;  %v1125_v42 = vld [vmem:[#allocation6 + $0x610] sm:$0xff] }
 0x1f0   :  { %5912 = vmatprep.subr.bf16.mxu0 %v5911_v49  ;;  %v5993_v46 = vpack.c.bf16 %v1129_v44, %v1125_v42  ;;  %v1170_v42 = vld [vmem:[#allocation6 + $0x778] sm:$0xff]  ;;  %v1165_v44 = vld [vmem:[#allocation6 + $0x750] sm:$0xff] }
 0x1f1   :  { %5974 = vmatpush1.bf16.msra.mxu1 %v5973_v48  ;;  %v1136_v48 = vld [vmem:[#allocation6 + $0x668] sm:$0xff] }
 0x1f2   :  { %5976 = vmatprep.subr.bf16.mxu1 %v5975_v53  ;;  %v5931_v49 = vpack.c.bf16 %v1136_v48, %v1132_v47  ;;  %v5933_v53 = vpack.c.bf16 %v1135_v51, %v1131_v50  ;;  %v1172_v48 = vld [vmem:[#allocation6 + $0x788] sm:$0xff]  ;;  %v1171_v50 = vld [vmem:[#allocation6 + $0x780] sm:$0xff] }
 0x1f3   :  { %5914 = vmatpush1.bf16.msra.mxu0 %v5913_v54  ;;  %v1138_v54 = vld [vmem:[#allocation6 + $0x678] sm:$0xff] }
 0x1f4   :  { %5916 = vmatprep.subr.bf16.mxu0 %v5915_v60  ;;  %v1144_v60 = vld [vmem:[#allocation6 + $0x6a8] sm:$0xff] }
 0x1f5   :  { %5978 = vmatpush1.bf16.msra.mxu1 %v5977_v57  ;;  %v5995_v57 = vpack.c.bf16 %v1138_v54, %v1134_v52  ;;  %v5935_v61 = vpack.c.bf16 %v1144_v60, %v1140_v59  ;;  %v1175_v52 = vld [vmem:[#allocation6 + $0x7a0] sm:$0xff]  ;;  %v1178_v54 = vld [vmem:[#allocation6 + $0x7b8] sm:$0xff]  ;;  %v1180_v59 = vld [vmem:[#allocation6 + $0x7c8] sm:$0xff] }
 0x1f6   :  { %5980 = vmatprep.subr.bf16.mxu1 %v5979_v4  ;;  %v1145_v4 = vld [vmem:[#allocation6 + $0x6b0] sm:$0xff]  ;;  %v5953_v55 = vpack.c.bf16 %v1175_v52, %v1171_v50 }
 0x1f7   :  { %5918 = vmatpush1.bf16.msra.mxu0 %v5917_v0  ;;  %v1142_v0 = vld [vmem:[#allocation6 + $0x698] sm:$0xff]  ;;  %v6001_v6 = vpack.c.bf16 %v1145_v4, %v1141_v3  ;;  %v1181_v3 = vld [vmem:[#allocation6 + $0x7d0] sm:$0xff]  ;;  %v5957_v4 = vpack.c.bf16 %v1183_v63, %v1179_v62 }
 0x1f8   :  { %5920 = vmatprep.subr.bf16.mxu0 %v5919_v8  ;;  %v1152_v8 = vld [vmem:[#allocation6 + $0x6e8] sm:$0xff] }
 0x1f9   :  { %5982 = vmatpush1.bf16.msra.mxu1 %v5981_v5  ;;  %v5999_v5 = vpack.c.bf16 %v1146_v2, %v1142_v0  ;;  %v5939_v9 = vpack.c.bf16 %v1152_v8, %v1148_v7  ;;  %v1186_v2 = vld [vmem:[#allocation6 + $0x7f8] sm:$0xff]  ;;  %v1380_v7 = vld [vmem:[#allocation6 + $0x8] sm:$0xff] }
 0x1fa   :  { %5984 = vmatprep.subr.bf16.mxu1 %v5983_v19  ;;  %v1153_v19 = vld [vmem:[#allocation6 + $0x6f0] sm:$0xff]  ;;  %v1384_v8 = vld [vmem:[#allocation6 + $0x28] sm:$0xff] }
 0x1fb   :  { %5922 = vmatpush1.bf16.msra.mxu0 %v5921_v14  ;;  %v1150_v14 = vld [vmem:[#allocation6 + $0x6d8] sm:$0xff]  ;;  %v6005_v21 = vpack.c.bf16 %v1153_v19, %v1149_v18  ;;  %v557_v18 = vrot.slane %v552_v12, %v8202_v11  ;;  %v561_v19 = vrot.slane %v552_v12, %v8204_v13 }
 0x1fc   :  { %5924 = vmatprep.subr.bf16.mxu0 %v5923_v23  ;;  %v1160_v23 = vld [vmem:[#allocation6 + $0x728] sm:$0xff] }
 0x1fd   :  { %5986 = vmatpush1.bf16.msra.mxu1 %v5985_v20  ;;  %v6003_v20 = vpack.c.bf16 %v1154_v17, %v1150_v14  ;;  %v5943_v25 = vpack.c.bf16 %v1160_v23, %v1156_v22  ;;  %v1382_v14 = vld [vmem:[#allocation6 + $0x18] sm:$0xff] }
 0x1fe   :  { %5988 = vmatprep.subr.bf16.mxu1 %v5987_v32  ;;  %v1161_v32 = vld [vmem:[#allocation6 + $0x730] sm:$0xff] }
 0x1ff   :  { %5926 = vmatpush1.bf16.msra.mxu0 %v5925_v28  ;;  %v1158_v28 = vld [vmem:[#allocation6 + $0x718] sm:$0xff]  ;;  %v6009_v34 = vpack.c.bf16 %v1161_v32, %v1157_v31  ;;  %v565_v31 = vrot.slane %v552_v12, %v8211_v24 }
 0x200   :  { %5928 = vmatprep.subr.bf16.mxu0 %v5927_v36  ;;  %v1168_v36 = vld [vmem:[#allocation6 + $0x768] sm:$0xff] }
 0x201   :  { %5990 = vmatpush1.bf16.msra.mxu1 %v5989_v33  ;;  %v6007_v33 = vpack.c.bf16 %v1162_v30, %v1158_v28  ;;  %v5947_v37 = vpack.c.bf16 %v1168_v36, %v1164_v35 }
 0x202   :  { %5992 = vmatprep.subr.bf16.mxu1 %v5991_v45  ;;  %v1169_v45 = vld [vmem:[#allocation6 + $0x770] sm:$0xff] }
 0x203   :  { %5930 = vmatpush1.bf16.msra.mxu0 %v5929_v40  ;;  %v1166_v40 = vld [vmem:[#allocation6 + $0x758] sm:$0xff]  ;;  %v6013_v47 = vpack.c.bf16 %v1169_v45, %v1165_v44 }
 0x204   :  { %5932 = vmatprep.subr.bf16.mxu0 %v5931_v49  ;;  %v1176_v49 = vld [vmem:[#allocation6 + $0x7a8] sm:$0xff] }
 0x205   :  { %5994 = vmatpush1.bf16.msra.mxu1 %v5993_v46  ;;  %v6011_v46 = vpack.c.bf16 %v1170_v42, %v1166_v40  ;;  %v5951_v51 = vpack.c.bf16 %v1176_v49, %v1172_v48  ;;  %v104_v40 = vld [vmem:[#allocation11 + $0x8] sm:$0xff] }
 0x206   :  { %5996 = vmatprep.subr.bf16.mxu1 %v5995_v57  ;;  %v1173_v57 = vld [vmem:[#allocation6 + $0x790] sm:$0xff] }
 0x207   :  { %5934 = vmatpush1.bf16.msra.mxu0 %v5933_v53  ;;  %v1174_v53 = vld [vmem:[#allocation6 + $0x798] sm:$0xff] }
 0x208   :  { %5936 = vmatprep.subr.bf16.mxu0 %v5935_v61  ;;  %v6015_v56 = vpack.c.bf16 %v1178_v54, %v1174_v53  ;;  %v1184_v61 = vld [vmem:[#allocation6 + $0x7e8] sm:$0xff] }
 0x209   :  { %5998 = vmatpush1.bf16.msra.mxu1 %v5997_v58  ;;  %v1177_v58 = vld [vmem:[#allocation6 + $0x7b0] sm:$0xff]  ;;  %v5955_v0 = vpack.c.bf16 %v1184_v61, %v1180_v59 }
 0x20a   :  { %6000 = vmatprep.subr.bf16.mxu1 %v5999_v5  ;;  %v6017_v60 = vpack.c.bf16 %v1177_v58, %v1173_v57 }
 0x20b   :  { %5938 = vmatpush1.bf16.msra.mxu0 %v5937_v1  ;;  %v1182_v1 = vld [vmem:[#allocation6 + $0x7d8] sm:$0xff] }
 0x20c   :  { %5940 = vmatprep.subr.bf16.mxu0 %v5939_v9  ;;  %v6019_v5 = vpack.c.bf16 %v1186_v2, %v1182_v1  ;;  %v6023_v9 = vpack.c.bf16 %v1384_v8, %v1380_v7 }
 0x20d   :  { %6002 = vmatpush1.bf16.msra.mxu1 %v6001_v6  ;;  %v1185_v6 = vld [vmem:[#allocation6 + $0x7f0] sm:$0xff] }
 0x20e   :  { %6004 = vmatprep.subr.bf16.mxu1 %v6003_v20  ;;  %v6021_v10 = vpack.c.bf16 %v1185_v6, %v1181_v3 }
 0x20f   :  { %5942 = vmatpush1.bf16.msra.mxu0 %v5941_v15  ;;  %v1386_v15 = vld [vmem:[#allocation6 + $0x38] sm:$0xff] }
 0x210   :  { %5944 = vmatprep.subr.bf16.mxu0 %v5943_v25  ;;  %v6087_v17 = vpack.c.bf16 %v1386_v15, %v1382_v14 }
 0x211   :  { %6006 = vmatpush1.bf16.msra.mxu1 %v6005_v21 }
 0x212   :  { %6008 = vmatprep.subr.bf16.mxu1 %v6007_v33 }
 0x213   :  { %5946 = vmatpush1.bf16.msra.mxu0 %v5945_v29  ;;  %v569_v29 = vrot.slane %v552_v12, %v8208_v16 }
 0x214   :  { %5948 = vmatprep.subr.bf16.mxu0 %v5947_v37 }
 0x215   :  { %6010 = vmatpush1.bf16.msra.mxu1 %v6009_v34 }
 0x216   :  { %6012 = vmatprep.subr.bf16.mxu1 %v6011_v46 }
 0x217   :  { %5950 = vmatpush1.bf16.msra.mxu0 %v5949_v41 }
 0x218   :  { %5952 = vmatprep.subr.bf16.mxu0 %v5951_v51  ;;  %v871_v51 = vld [vmem:[#allocation8] sm:$0xf] }
 0x219   :  { %6014 = vmatpush1.bf16.msra.mxu1 %v6013_v47  ;;  %v876_v52 = vrot.slane %v871_v51, %v8202_v11  ;;  %v880_v53 = vrot.slane %v871_v51, %v8204_v13 }
 0x21a   :  { %6016 = vmatprep.subr.bf16.mxu1 %v6015_v56 }
 0x21b   :  { %5954 = vmatpush1.bf16.msra.mxu0 %v5953_v55 }
 0x21c   :  { %5956 = vmatprep.subr.bf16.mxu0 %v5955_v0  ;;  %v884_v0 = vrot.slane %v871_v51, %v8211_v24 }
 0x21d   :  { %6018 = vmatpush1.bf16.msra.mxu1 %v6017_v60  ;;  %v888_v60 = vrot.slane %v871_v51, %v8208_v16 }
 0x21e   :  { %6020 = vmatprep.subr.bf16.mxu1 %v6019_v5 }
 0x21f   :  { %5958 = vmatpush1.bf16.msra.mxu0 %v5957_v4 }
 0x220   :  { %6024 = vmatprep.subr.bf16.mxu0 %v6023_v9 }
 0x221   :  { %6022 = vmatpush1.bf16.msra.mxu1 %v6021_v10 }
 0x222   :  { %6088 = vmatprep.subr.bf16.mxu1 %v6087_v17 }
 0x275   :  { %v640_v20 = vpop.f32.mrb[2].mxu0  ;;  %v711_v21 = vpop.f32.mrb[2].mxu1 }
 0x276   :  { %v641_v22 = vadd.f32 %v640_v20, %v557_v18  ;;  %v642_v23 = vpop.f32.mrb[3].mxu0  ;;  %v713_v25 = vpop.f32.mrb[3].mxu1  ;;  %v712_v33 = vadd.f32 %v711_v21, %v565_v31  ;;  %v1379_v18 = vld [vmem:[#allocation6] sm:$0xff]  ;;  %v1388_v21 = vld [vmem:[#allocation6 + $0x48] sm:$0xff] }
 0x277   :  { %v643_v26 = vadd.f32 %v642_v23, %v561_v19  ;;  %v714_v30 = vadd.f32 %v713_v25, %v569_v29  ;;  %v1383_v19 = vld [vmem:[#allocation6 + $0x20] sm:$0xff]  ;;  %v1381_v23 = vld [vmem:[#allocation6 + $0x10] sm:$0xff]  ;;  %v1394_v29 = vld [vmem:[#allocation6 + $0x78] sm:$0xff] }
 0x278   :  { %v5397_v27 = vmul.f32 -1.442695, %v641_v22  ;;  %v1392_v22 = vld [vmem:[#allocation6 + $0x68] sm:$0xff]  ;;  %v1385_v25 = vld [vmem:[#allocation6 + $0x30] sm:$0xff] }
 0x279   :  { %v5398_v28 = vmul.f32 -1.442695, %v643_v26  ;;  %v5399_v32 = vmul.f32 -1.442695, %v714_v30  ;;  %v6027_v31 = vpack.c.bf16 %v1392_v22, %v1388_v21  ;;  %v1419_v22 = vld [vmem:[#allocation6 + $0x140] sm:$0xff] }
 0x27a   :  { %7637 = vpow2.f32 %v5397_v27  ;;  %v6025_v27 = vpack.c.bf16 %v1383_v19, %v1379_v18  ;;  %v1422_v19 = vld [vmem:[#allocation6 + $0x158] sm:$0xff] }
 0x27b   :  { %7639 = vpow2.f32 %v5398_v28  ;;  %v1390_v28 = vld [vmem:[#allocation6 + $0x58] sm:$0xff] }
 0x27c   :  { %7641 = vpow2.f32 %v5399_v32  ;;  %v1387_v32 = vld [vmem:[#allocation6 + $0x40] sm:$0xff] }
 0x27d   :  { %7643 = vtanh.f32 %v712_v33  ;;  %v1396_v33 = vld [vmem:[#allocation6 + $0x88] sm:$0xff] }
 0x284   :  { %v7638_v34 = vpop.eup %7637 }
 0x285   :  { %v7640_v35 = vpop.eup %7639  ;;  %v719_v36 = vadd.f32 1.0, %v7638_v34  ;;  %v1400_v34 = vld [vmem:[#allocation6 + $0xa8] sm:$0xff] }
 0x286   :  { %v725_v37 = vadd.f32 1.0, %v7640_v35  ;;  %v7642_v38 = vpop.eup %7641  ;;  %v6089_v35 = vpack.c.bf16 %v1385_v25, %v1381_v23  ;;  %v1423_v23 = vld [vmem:[#allocation6 + $0x160] sm:$0xff]  ;;  %v1428_v25 = vld [vmem:[#allocation6 + $0x188] sm:$0xff] }
 0x287   :  { %7645 = vrcp.f32 %v719_v36  ;;  %v7644_v39 = vpop.eup %7643  ;;  %v732_v45 = vadd.f32 1.0, %v7642_v38  ;;  %v6091_v36 = vpack.c.bf16 %v1394_v29, %v1390_v28  ;;  %v1393_v38 = vld [vmem:[#allocation6 + $0x70] sm:$0xff] }
 0x288   :  { %7647 = vrcp.f32 %v725_v37  ;;  %v1389_v37 = vld [vmem:[#allocation6 + $0x50] sm:$0xff] }
 0x289   :  { %7649 = vrcp.f32 %v732_v45  ;;  %v1399_v45 = vld [vmem:[#allocation6 + $0xa0] sm:$0xff]  ;;  %v1421_v29 = vld [vmem:[#allocation6 + $0x150] sm:$0xff] }
 0x291   :  { %v7646_v41 = vpop.eup %7645 }
 0x292   :  { %v7648_v42 = vpop.eup %7647  ;;  %v736_v44 = vmul.f32 %v7646_v41, %v7644_v39  ;;  %v1402_v41 = vld [vmem:[#allocation6 + $0xb8] sm:$0xff] }
 0x293   :  { %v735_v46 = vmul.f32 %v7648_v42, %v104_v40  ;;  %v7650_v48 = vpop.eup %7649  ;;  %v1398_v40 = vld [vmem:[#allocation6 + $0x98] sm:$0xff]  ;;  %v6031_v42 = vpack.c.bf16 %v1400_v34, %v1396_v33  ;;  %v1427_v34 = vld [vmem:[#allocation6 + $0x180] sm:$0xff] }
 0x294   :  { %v6095_v51 = vpack.c.bf16 %v1402_v41, %v1398_v40  ;;  %v1429_v40 = vld [vmem:[#allocation6 + $0x190] sm:$0xff] }
 0x295   :  { %v8221_v47 = vadd.f32 %v736_v44, %v735_v46  ;;  %v1395_v44 = vld [vmem:[#allocation6 + $0x80] sm:$0xff]  ;;  %v1404_v46 = vld [vmem:[#allocation6 + $0xc8] sm:$0xff]  ;;  %v1433_v41 = vld [vmem:[#allocation6 + $0x1b0] sm:$0xff] }
 0x297   :  { %7651 = vtanh.f32 %v8221_v47 }
 0x2a1   :  { %v7652_v49 = vpop.eup %7651 }
 0x2a2   :  { %v8224_v50 = vmul.f32 %v7652_v49, %v7650_v48  ;;  %v1408_v48 = vld [vmem:[#allocation6 + $0xe8] sm:$0xff]  ;;  %v6093_v49 = vpack.c.bf16 %v1393_v38, %v1389_v37 }
 0x2a3   :  { %v1440_v37 = vld [vmem:[#allocation6 + $0x1e8] sm:$0xff] }
 0x2a4   :  { %1273 = vmatprep.mubr.f32.mxu0 %v8224_v50  ;;  %1344 = vmatprep.mubr.f32.mxu1 %v8224_v50 }
 0x2b5   :  { %v959_v54 = vpop.f32.mrb[4].mxu0 }
 0x2b6   :  { %v960_v55 = vadd.f32 %v959_v54, %v876_v52  ;;  %v961_v56 = vpop.f32.mrb[5].mxu0  ;;  %v1397_v52 = vld [vmem:[#allocation6 + $0x90] sm:$0xff]  ;;  %v6033_v54 = vpack.c.bf16 %v1399_v45, %v1395_v44  ;;  %v1438_v44 = vld [vmem:[#allocation6 + $0x1d8] sm:$0xff] }
 0x2b7   :  { %v962_v57 = vadd.f32 %v961_v56, %v880_v53  ;;  %v1030_v58 = vpop.f32.mrb[4].mxu1  ;;  %v1401_v53 = vld [vmem:[#allocation6 + $0xb0] sm:$0xff]  ;;  %v1410_v56 = vld [vmem:[#allocation6 + $0xf8] sm:$0xff] }
 0x2b8   :  { %v5400_v59 = vmul.f32 -1.442695, %v960_v55  ;;  %v1032_v61 = vpop.f32.mrb[5].mxu1  ;;  %v1031_v2 = vadd.f32 %v1030_v58, %v884_v0  ;;  %v1406_v55 = vld [vmem:[#allocation6 + $0xd8] sm:$0xff]  ;;  %v1403_v58 = vld [vmem:[#allocation6 + $0xc0] sm:$0xff]  ;;  %v1405_v0 = vld [vmem:[#allocation6 + $0xd0] sm:$0xff] }
 0x2b9   :  { %v5401_v62 = vmul.f32 -1.442695, %v962_v57  ;;  %v1033_v63 = vadd.f32 %v1032_v61, %v888_v60  ;;  %v6035_v57 = vpack.c.bf16 %v1408_v48, %v1404_v46  ;;  %v1412_v60 = vld [vmem:[#allocation6 + $0x108] sm:$0xff]  ;;  %v1442_v45 = vld [vmem:[#allocation6 + $0x1f8] sm:$0xff]  ;;  %v1435_v48 = vld [vmem:[#allocation6 + $0x1c0] sm:$0xff] }
 0x2ba   :  { %7653 = vpow2.f32 %v5400_v59  ;;  %v1407_v59 = vld [vmem:[#allocation6 + $0xe0] sm:$0xff]  ;;  %v1416_v61 = vld [vmem:[#allocation6 + $0x128] sm:$0xff] }
 0x2bb   :  { %7655 = vpow2.f32 %v5401_v62  ;;  %v5402_v1 = vmul.f32 -1.442695, %v1033_v63  ;;  %v6097_v62 = vpack.c.bf16 %v1401_v53, %v1397_v52  ;;  %v6099_v63 = vpack.c.bf16 %v1410_v56, %v1406_v55  ;;  %v1448_v52 = vld [vmem:[#allocation6 + $0x228] sm:$0xff]  ;;  %v1437_v55 = vld [vmem:[#allocation6 + $0x1d0] sm:$0xff] }
 0x2bc   :  { %v6113_v53 = vpack.c.bf16 %v1433_v41, %v1429_v40  ;;  %v1441_v56 = vld [vmem:[#allocation6 + $0x1f0] sm:$0xff]  ;;  %v1480_v40 = vld [vmem:[#allocation6 + $0x328] sm:$0xff] }
 0x2bd   :  { %7657 = vpow2.f32 %v5402_v1  ;;  %v1409_v1 = vld [vmem:[#allocation6 + $0xf0] sm:$0xff] }
 0x2be   :  { %7659 = vtanh.f32 %v1031_v2  ;;  %v6037_v2 = vpack.c.bf16 %v1407_v59, %v1403_v58  ;;  %v1446_v58 = vld [vmem:[#allocation6 + $0x218] sm:$0xff] }
 0x2bf   :  { %v1450_v59 = vld [vmem:[#allocation6 + $0x238] sm:$0xff] }
 0x2c4   :  { %v7654_v3 = vpop.eup %7653 }
 0x2c5   :  { %v7656_v4 = vpop.eup %7655  ;;  %v1038_v5 = vadd.f32 1.0, %v7654_v3  ;;  %v1414_v3 = vld [vmem:[#allocation6 + $0x118] sm:$0xff] }
 0x2c6   :  { %v1044_v6 = vadd.f32 1.0, %v7656_v4  ;;  %v1418_v4 = vld [vmem:[#allocation6 + $0x138] sm:$0xff] }
 0x2c7   :  { %7661 = vrcp.f32 %v1038_v5  ;;  %v7658_v7 = vpop.eup %7657  ;;  %v6039_v5 = vpack.c.bf16 %v1416_v61, %v1412_v60  ;;  %v1443_v61 = vld [vmem:[#allocation6 + $0x200] sm:$0xff] }
 0x2c8   :  { %7663 = vrcp.f32 %v1044_v6  ;;  %v7660_v8 = vpop.eup %7659  ;;  %v1051_v10 = vadd.f32 1.0, %v7658_v7  ;;  %v1411_v6 = vld [vmem:[#allocation6 + $0x100] sm:$0xff] }
 0x2c9   :  { %v1415_v7 = vld [vmem:[#allocation6 + $0x120] sm:$0xff] }
 0x2ca   :  { %7665 = vrcp.f32 %v1051_v10  ;;  %v6101_v10 = vpack.c.bf16 %v1409_v1, %v1405_v0  ;;  %v6041_v18 = vpack.c.bf16 %v1415_v7, %v1411_v6  ;;  %v1456_v0 = vld [vmem:[#allocation6 + $0x268] sm:$0xff]  ;;  %v6117_v1 = vpack.c.bf16 %v1441_v56, %v1437_v55  ;;  %v1454_v6 = vld [vmem:[#allocation6 + $0x258] sm:$0xff] }
 0x2cb   :  { %v1458_v7 = vld [vmem:[#allocation6 + $0x278] sm:$0xff]  ;;  %v1488_v55 = vld [vmem:[#allocation6 + $0x368] sm:$0xff] }
 0x2d1   :  { %v7662_v9 = vpop.eup %7661 }
 0x2d2   :  { %v7664_v12 = vpop.eup %7663  ;;  %v1055_v14 = vmul.f32 %v7662_v9, %v7660_v8  ;;  %v1420_v8 = vld [vmem:[#allocation6 + $0x148] sm:$0xff] }
 0x2d3   :  { %v1054_v15 = vmul.f32 %v7664_v12, %v8214_v43  ;;  %v1391_v43 = vld [vmem:[#allocation6 + $0x60] sm:$0xff]  ;;  %v1424_v9 = vld [vmem:[#allocation6 + $0x168] sm:$0xff]  ;;  %v6103_v12 = vpack.c.bf16 %v1418_v4, %v1414_v3  ;;  %v1445_v3 = vld [vmem:[#allocation6 + $0x210] sm:$0xff] }
 0x2d4   :  { %v7666_v20 = vpop.eup %7665  ;;  %v6029_v39 = vpack.c.bf16 %v1391_v43, %v1387_v32  ;;  %v6043_v21 = vpack.c.bf16 %v1424_v9, %v1420_v8  ;;  %v1430_v32 = vld [vmem:[#allocation6 + $0x198] sm:$0xff]  ;;  %v1449_v4 = vld [vmem:[#allocation6 + $0x230] sm:$0xff]  ;;  %v1451_v9 = vld [vmem:[#allocation6 + $0x240] sm:$0xff] }
 0x2d5   :  { %v8233_v17 = vadd.f32 %v1055_v14, %v1054_v15  ;;  %v1413_v14 = vld [vmem:[#allocation6 + $0x110] sm:$0xff]  ;;  %v1434_v43 = vld [vmem:[#allocation6 + $0x1b8] sm:$0xff] }
 0x2d6   :  { %v1417_v15 = vld [vmem:[#allocation6 + $0x130] sm:$0xff] }
 0x2d7   :  { %7667 = vtanh.f32 %v8233_v17 }
 0x2e1   :  { %v7668_v26 = vpop.eup %7667 }
 0x2e2   :  { %v1058_v30 = vmul.f32 %v7668_v26, %v7666_v20  ;;  %v1426_v20 = vld [vmem:[#allocation6 + $0x178] sm:$0xff]  ;;  %v1432_v26 = vld [vmem:[#allocation6 + $0x1a8] sm:$0xff] }
 0x2e3   :  { %v6107_v28 = vpack.c.bf16 %v1426_v20, %v1422_v19  ;;  %v6047_v33 = vpack.c.bf16 %v1432_v26, %v1428_v25  ;;  %v1453_v19 = vld [vmem:[#allocation6 + $0x250] sm:$0xff]  ;;  %v1459_v26 = vld [vmem:[#allocation6 + $0x280] sm:$0xff] }
 0x2e4   :  { %1274 = vmatmul.mubr.f32.vlgmr.msra.gmra.mrb[6].mxu0 %v1058_v30  ;;  %1345 = vmatmul.mubr.f32.vlgmr.msra.gmra.mrb[6].mxu1 %v1058_v30  ;;  %v1457_v20 = vld [vmem:[#allocation6 + $0x270] sm:$0xff] }
 0x2e5   :  { %6026 = vmatpush1.bf16.msra.mxu0 %v6025_v27  ;;  %1593 = vmatprep.mubr.f32.mxu0 %v1058_v30  ;;  %v6105_v27 = vpack.c.bf16 %v1417_v15, %v1413_v14  ;;  %v1464_v14 = vld [vmem:[#allocation6 + $0x2a8] sm:$0xff]  ;;  %v6121_v15 = vpack.c.bf16 %v1449_v4, %v1445_v3 }
 0x2e6   :  { %1664 = vmatprep.mubr.f32.mxu1 %v1058_v30  ;;  %6028 = vmatprep.subr.bf16.mxu0 %v6027_v31  ;;  %v1425_v30 = vld [vmem:[#allocation6 + $0x170] sm:$0xff]  ;;  %v6045_v31 = vpack.c.bf16 %v1423_v23, %v1419_v22  ;;  %v1462_v22 = vld [vmem:[#allocation6 + $0x298] sm:$0xff]  ;;  %v1496_v3 = vld [vmem:[#allocation6 + $0x3a8] sm:$0xff] }
 0x2e7   :  { %6090 = vmatpush1.bf16.msra.mxu1 %v6089_v35  ;;  %v1431_v35 = vld [vmem:[#allocation6 + $0x1a0] sm:$0xff]  ;;  %v6109_v38 = vpack.c.bf16 %v1425_v30, %v1421_v29  ;;  %v1466_v23 = vld [vmem:[#allocation6 + $0x2b8] sm:$0xff]  ;;  %v1472_v29 = vld [vmem:[#allocation6 + $0x2e8] sm:$0xff]  ;;  %v6125_v30 = vpack.c.bf16 %v1457_v20, %v1453_v19 }
 0x2e8   :  { %6092 = vmatprep.subr.bf16.mxu1 %v6091_v36  ;;  %v1436_v36 = vld [vmem:[#allocation6 + $0x1c8] sm:$0xff] }
 0x2e9   :  { %6030 = vmatpush1.bf16.msra.mxu0 %v6029_v39  ;;  %v6111_v39 = vpack.c.bf16 %v1434_v43, %v1430_v32  ;;  %v6051_v46 = vpack.c.bf16 %v1440_v37, %v1436_v36  ;;  %v1461_v32 = vld [vmem:[#allocation6 + $0x290] sm:$0xff]  ;;  %v1467_v37 = vld [vmem:[#allocation6 + $0x2c0] sm:$0xff]  ;;  %v1504_v19 = vld [vmem:[#allocation6 + $0x3e8] sm:$0xff] }
 0x2ea   :  { %6032 = vmatprep.subr.bf16.mxu0 %v6031_v42  ;;  %v6049_v42 = vpack.c.bf16 %v1431_v35, %v1427_v34  ;;  %v1465_v43 = vld [vmem:[#allocation6 + $0x2b0] sm:$0xff]  ;;  %v1470_v34 = vld [vmem:[#allocation6 + $0x2d8] sm:$0xff] }
 0x2eb   :  { %6094 = vmatpush1.bf16.msra.mxu1 %v6093_v49  ;;  %v1439_v49 = vld [vmem:[#allocation6 + $0x1e0] sm:$0xff]  ;;  %v1474_v35 = vld [vmem:[#allocation6 + $0x2f8] sm:$0xff]  ;;  %v6129_v41 = vpack.c.bf16 %v1465_v43, %v1461_v32  ;;  %v1501_v43 = vld [vmem:[#allocation6 + $0x3d0] sm:$0xff] }
 0x2ec   :  { %6096 = vmatprep.subr.bf16.mxu1 %v6095_v51  ;;  %v1444_v51 = vld [vmem:[#allocation6 + $0x208] sm:$0xff] }
 0x2ed   :  { %6034 = vmatpush1.bf16.msra.mxu0 %v6033_v54  ;;  %v6115_v54 = vpack.c.bf16 %v1442_v45, %v1438_v44  ;;  %v6055_v60 = vpack.c.bf16 %v1448_v52, %v1444_v51  ;;  %v1469_v44 = vld [vmem:[#allocation6 + $0x2d0] sm:$0xff]  ;;  %v1475_v52 = vld [vmem:[#allocation6 + $0x300] sm:$0xff] }
 0x2ee   :  { %6036 = vmatprep.subr.bf16.mxu0 %v6035_v57  ;;  %v6053_v57 = vpack.c.bf16 %v1439_v49, %v1435_v48  ;;  %v1473_v45 = vld [vmem:[#allocation6 + $0x2f0] sm:$0xff]  ;;  %v1478_v48 = vld [vmem:[#allocation6 + $0x318] sm:$0xff] }
 0x2ef   :  { %6098 = vmatpush1.bf16.msra.mxu1 %v6097_v62  ;;  %v1447_v62 = vld [vmem:[#allocation6 + $0x220] sm:$0xff]  ;;  %v1482_v49 = vld [vmem:[#allocation6 + $0x338] sm:$0xff]  ;;  %v6133_v56 = vpack.c.bf16 %v1473_v45, %v1469_v44 }
 0x2f0   :  { %6100 = vmatprep.subr.bf16.mxu1 %v6099_v63  ;;  %v1452_v63 = vld [vmem:[#allocation6 + $0x248] sm:$0xff]  ;;  %v1702_v44 = vld [vmem:[#allocation6 + $0x438] sm:$0xff] }
 0x2f1   :  { %6038 = vmatpush1.bf16.msra.mxu0 %v6037_v2  ;;  %v6119_v2 = vpack.c.bf16 %v1450_v59, %v1446_v58  ;;  %v6059_v8 = vpack.c.bf16 %v1456_v0, %v1452_v63  ;;  %v1477_v58 = vld [vmem:[#allocation6 + $0x310] sm:$0xff]  ;;  %v1483_v0 = vld [vmem:[#allocation6 + $0x340] sm:$0xff] }
 0x2f2   :  { %6040 = vmatprep.subr.bf16.mxu0 %v6039_v5  ;;  %v6057_v5 = vpack.c.bf16 %v1447_v62, %v1443_v61  ;;  %v1481_v59 = vld [vmem:[#allocation6 + $0x330] sm:$0xff]  ;;  %v1486_v61 = vld [vmem:[#allocation6 + $0x358] sm:$0xff] }
 0x2f3   :  { %6102 = vmatpush1.bf16.msra.mxu1 %v6101_v10  ;;  %v1455_v10 = vld [vmem:[#allocation6 + $0x260] sm:$0xff]  ;;  %v1490_v62 = vld [vmem:[#allocation6 + $0x378] sm:$0xff]  ;;  %v6137_v4 = vpack.c.bf16 %v1481_v59, %v1477_v58 }
 0x2f4   :  { %6104 = vmatprep.subr.bf16.mxu1 %v6103_v12  ;;  %v1460_v12 = vld [vmem:[#allocation6 + $0x288] sm:$0xff]  ;;  %v1710_v58 = vld [vmem:[#allocation6 + $0x478] sm:$0xff] }
 0x2f5   :  { %6042 = vmatpush1.bf16.msra.mxu0 %v6041_v18  ;;  %v6123_v18 = vpack.c.bf16 %v1458_v7, %v1454_v6  ;;  %v6063_v25 = vpack.c.bf16 %v1464_v14, %v1460_v12  ;;  %v1485_v6 = vld [vmem:[#allocation6 + $0x350] sm:$0xff]  ;;  %v1491_v14 = vld [vmem:[#allocation6 + $0x380] sm:$0xff] }
 0x2f6   :  { %6044 = vmatprep.subr.bf16.mxu0 %v6043_v21  ;;  %v6061_v21 = vpack.c.bf16 %v1455_v10, %v1451_v9  ;;  %v1489_v7 = vld [vmem:[#allocation6 + $0x370] sm:$0xff]  ;;  %v1494_v9 = vld [vmem:[#allocation6 + $0x398] sm:$0xff] }
 0x2f7   :  { %6106 = vmatpush1.bf16.msra.mxu1 %v6105_v27  ;;  %v1463_v27 = vld [vmem:[#allocation6 + $0x2a0] sm:$0xff]  ;;  %v1498_v10 = vld [vmem:[#allocation6 + $0x3b8] sm:$0xff]  ;;  %v6141_v20 = vpack.c.bf16 %v1489_v7, %v1485_v6 }
 0x2f8   :  { %6108 = vmatprep.subr.bf16.mxu1 %v6107_v28  ;;  %v1468_v28 = vld [vmem:[#allocation6 + $0x2c8] sm:$0xff]  ;;  %v1714_v6 = vld [vmem:[#allocation6 + $0x498] sm:$0xff] }
 0x2f9   :  { %6046 = vmatpush1.bf16.msra.mxu0 %v6045_v31  ;;  %v6127_v31 = vpack.c.bf16 %v1466_v23, %v1462_v22  ;;  %v6067_v36 = vpack.c.bf16 %v1472_v29, %v1468_v28  ;;  %v1493_v22 = vld [vmem:[#allocation6 + $0x390] sm:$0xff]  ;;  %v1499_v29 = vld [vmem:[#allocation6 + $0x3c0] sm:$0xff]  ;;  %v1718_v7 = vld [vmem:[#allocation6 + $0x4b8] sm:$0xff] }
 0x2fa   :  { %6048 = vmatprep.subr.bf16.mxu0 %v6047_v33  ;;  %v6065_v33 = vpack.c.bf16 %v1463_v27, %v1459_v26  ;;  %v1497_v23 = vld [vmem:[#allocation6 + $0x3b0] sm:$0xff]  ;;  %v1502_v26 = vld [vmem:[#allocation6 + $0x3d8] sm:$0xff] }
 0x2fb   :  { %6110 = vmatpush1.bf16.msra.mxu1 %v6109_v38  ;;  %v1471_v38 = vld [vmem:[#allocation6 + $0x2e0] sm:$0xff]  ;;  %v1506_v27 = vld [vmem:[#allocation6 + $0x3f8] sm:$0xff] }
 0x2fc   :  { %6112 = vmatprep.subr.bf16.mxu1 %v6111_v39  ;;  %v1476_v39 = vld [vmem:[#allocation6 + $0x308] sm:$0xff]  ;;  %v6147_v32 = vpack.c.bf16 %v1506_v27, %v1502_v26 }
 0x2fd   :  { %6050 = vmatpush1.bf16.msra.mxu0 %v6049_v42  ;;  %v6131_v42 = vpack.c.bf16 %v1474_v35, %v1470_v34  ;;  %v6071_v51 = vpack.c.bf16 %v1480_v40, %v1476_v39  ;;  %v1695_v39 = vld [vmem:[#allocation6 + $0x400] sm:$0xff] }
 0x2fe   :  { %6052 = vmatprep.subr.bf16.mxu0 %v6051_v46  ;;  %v6069_v46 = vpack.c.bf16 %v1471_v38, %v1467_v37  ;;  %v1696_v37 = vld [vmem:[#allocation6 + $0x408] sm:$0xff] }
 0x2ff   :  { %6114 = vmatpush1.bf16.msra.mxu1 %v6113_v53  ;;  %v1479_v53 = vld [vmem:[#allocation6 + $0x320] sm:$0xff]  ;;  %v1700_v38 = vld [vmem:[#allocation6 + $0x428] sm:$0xff] }
 0x300   :  { %6116 = vmatprep.subr.bf16.mxu1 %v6115_v54  ;;  %v1484_v54 = vld [vmem:[#allocation6 + $0x348] sm:$0xff]  ;;  %v6151_v40 = vpack.c.bf16 %v1700_v38, %v1696_v37  ;;  %v1729_v37 = vld [vmem:[#allocation6 + $0x510] sm:$0xff] }
 0x301   :  { %6054 = vmatpush1.bf16.msra.mxu0 %v6053_v57  ;;  %v6135_v57 = vpack.c.bf16 %v1482_v49, %v1478_v48  ;;  %v6075_v63 = vpack.c.bf16 %v1488_v55, %v1484_v54  ;;  %v1697_v48 = vld [vmem:[#allocation6 + $0x410] sm:$0xff]  ;;  %v1703_v54 = vld [vmem:[#allocation6 + $0x440] sm:$0xff] }
 0x302   :  { %6056 = vmatprep.subr.bf16.mxu0 %v6055_v60  ;;  %v6073_v60 = vpack.c.bf16 %v1479_v53, %v1475_v52  ;;  %v1701_v49 = vld [vmem:[#allocation6 + $0x430] sm:$0xff]  ;;  %v1704_v52 = vld [vmem:[#allocation6 + $0x448] sm:$0xff] }
 0x303   :  { %6118 = vmatpush1.bf16.msra.mxu1 %v6117_v1  ;;  %v1487_v1 = vld [vmem:[#allocation6 + $0x360] sm:$0xff]  ;;  %v1708_v53 = vld [vmem:[#allocation6 + $0x468] sm:$0xff]  ;;  %v1733_v38 = vld [vmem:[#allocation6 + $0x530] sm:$0xff] }
 0x304   :  { %6120 = vmatprep.subr.bf16.mxu1 %v6119_v2  ;;  %v1492_v2 = vld [vmem:[#allocation6 + $0x388] sm:$0xff]  ;;  %v6155_v55 = vpack.c.bf16 %v1708_v53, %v1704_v52  ;;  %v1741_v52 = vld [vmem:[#allocation6 + $0x570] sm:$0xff] }
 0x305   :  { %6058 = vmatpush1.bf16.msra.mxu0 %v6057_v5  ;;  %v6139_v5 = vpack.c.bf16 %v1490_v62, %v1486_v61  ;;  %v6079_v12 = vpack.c.bf16 %v1496_v3, %v1492_v2  ;;  %v1705_v61 = vld [vmem:[#allocation6 + $0x450] sm:$0xff]  ;;  %v1711_v2 = vld [vmem:[#allocation6 + $0x480] sm:$0xff] }
 0x306   :  { %6060 = vmatprep.subr.bf16.mxu0 %v6059_v8  ;;  %v6077_v8 = vpack.c.bf16 %v1487_v1, %v1483_v0  ;;  %v1709_v62 = vld [vmem:[#allocation6 + $0x470] sm:$0xff]  ;;  %v1716_v1 = vld [vmem:[#allocation6 + $0x4a8] sm:$0xff]  ;;  %v1715_v3 = vld [vmem:[#allocation6 + $0x4a0] sm:$0xff] }
 0x307   :  { %6122 = vmatpush1.bf16.msra.mxu1 %v6121_v15  ;;  %v1495_v15 = vld [vmem:[#allocation6 + $0x3a0] sm:$0xff]  ;;  %v6221_v0 = vpack.c.bf16 %v1709_v62, %v1705_v61  ;;  %v1750_v62 = vld [vmem:[#allocation6 + $0x5b8] sm:$0xff] }
 0x308   :  { %6124 = vmatprep.subr.bf16.mxu1 %v6123_v18  ;;  %v1500_v18 = vld [vmem:[#allocation6 + $0x3c8] sm:$0xff] }
 0x309   :  { %6062 = vmatpush1.bf16.msra.mxu0 %v6061_v21  ;;  %v6143_v21 = vpack.c.bf16 %v1498_v10, %v1494_v9  ;;  %v6083_v28 = vpack.c.bf16 %v1504_v19, %v1500_v18  ;;  %v6223_v9 = vpack.c.bf16 %v1718_v7, %v1714_v6  ;;  %v1717_v10 = vld [vmem:[#allocation6 + $0x4b0] sm:$0xff]  ;;  %v1719_v19 = vld [vmem:[#allocation6 + $0x4c0] sm:$0xff] }
 0x30a   :  { %6064 = vmatprep.subr.bf16.mxu0 %v6063_v25  ;;  %v6081_v25 = vpack.c.bf16 %v1495_v15, %v1491_v14  ;;  %v1724_v14 = vld [vmem:[#allocation6 + $0x4e8] sm:$0xff]  ;;  %v1751_v6 = vld [vmem:[#allocation6 + $0x5c0] sm:$0xff] }
 0x30b   :  { %6126 = vmatpush1.bf16.msra.mxu1 %v6125_v30  ;;  %v1503_v30 = vld [vmem:[#allocation6 + $0x3e0] sm:$0xff] }
 0x30c   :  { %6128 = vmatprep.subr.bf16.mxu1 %v6127_v31  ;;  %v6145_v31 = vpack.c.bf16 %v1497_v23, %v1493_v22  ;;  %v6085_v34 = vpack.c.bf16 %v1503_v30, %v1499_v29  ;;  %v1726_v22 = vld [vmem:[#allocation6 + $0x4f8] sm:$0xff]  ;;  %v1721_v23 = vld [vmem:[#allocation6 + $0x4d0] sm:$0xff]  ;;  %v1732_v29 = vld [vmem:[#allocation6 + $0x528] sm:$0xff] }
 0x30d   :  { %6066 = vmatpush1.bf16.msra.mxu0 %v6065_v33  ;;  %v1505_v33 = vld [vmem:[#allocation6 + $0x3f0] sm:$0xff]  ;;  %v1727_v30 = vld [vmem:[#allocation6 + $0x500] sm:$0xff] }
 0x30e   :  { %6068 = vmatprep.subr.bf16.mxu0 %v6067_v36  ;;  %v6149_v35 = vpack.c.bf16 %v1505_v33, %v1501_v43  ;;  %v1378_v36 = vld [vmem:[#allocation3 + $0x10] sm:$0xff]  ;;  %v1731_v43 = vld [vmem:[#allocation6 + $0x520] sm:$0xff]  ;;  %v1730_v33 = vld [vmem:[#allocation6 + $0x518] sm:$0xff] }
 0x30f   :  { %6130 = vmatpush1.bf16.msra.mxu1 %v6129_v41  ;;  %v1699_v41 = vld [vmem:[#allocation6 + $0x420] sm:$0xff] }
 0x310   :  { %6132 = vmatprep.subr.bf16.mxu1 %v6131_v42  ;;  %v1698_v42 = vld [vmem:[#allocation6 + $0x418] sm:$0xff]  ;;  %v6153_v45 = vpack.c.bf16 %v1699_v41, %v1695_v39  ;;  %v6233_v39 = vpack.c.bf16 %v1733_v38, %v1729_v37  ;;  %v1740_v41 = vld [vmem:[#allocation6 + $0x568] sm:$0xff]  ;;  %v1755_v7 = vld [vmem:[#allocation6 + $0x5e0] sm:$0xff] }
 0x311   :  { %6070 = vmatpush1.bf16.msra.mxu0 %v6069_v46  ;;  %v6215_v46 = vpack.c.bf16 %v1702_v44, %v1698_v42  ;;  %v1735_v44 = vld [vmem:[#allocation6 + $0x540] sm:$0xff]  ;;  %v1774_v38 = vld [vmem:[#allocation6 + $0x678] sm:$0xff] }
 0x312   :  { %6072 = vmatprep.subr.bf16.mxu0 %v6071_v51  ;;  %v6217_v51 = vpack.c.bf16 %v1701_v49, %v1697_v48  ;;  %v1742_v49 = vld [vmem:[#allocation6 + $0x578] sm:$0xff] }
 0x313   :  { %6134 = vmatpush1.bf16.msra.mxu1 %v6133_v56  ;;  %v1707_v56 = vld [vmem:[#allocation6 + $0x460] sm:$0xff] }
 0x314   :  { %6136 = vmatprep.subr.bf16.mxu1 %v6135_v57  ;;  %v1706_v57 = vld [vmem:[#allocation6 + $0x458] sm:$0xff]  ;;  %v6157_v59 = vpack.c.bf16 %v1707_v56, %v1703_v54  ;;  %v1748_v56 = vld [vmem:[#allocation6 + $0x5a8] sm:$0xff] }
 0x315   :  { %6074 = vmatpush1.bf16.msra.mxu0 %v6073_v60  ;;  %v6219_v60 = vpack.c.bf16 %v1710_v58, %v1706_v57  ;;  %v1743_v58 = vld [vmem:[#allocation6 + $0x580] sm:$0xff] }
 0x316   :  { %6076 = vmatprep.subr.bf16.mxu0 %v6075_v63  ;;  %v1712_v63 = vld [vmem:[#allocation6 + $0x488] sm:$0xff] }
 0x317   :  { %6138 = vmatpush1.bf16.msra.mxu1 %v6137_v4  ;;  %v6159_v4 = vpack.c.bf16 %v1716_v1, %v1712_v63  ;;  %v1745_v63 = vld [vmem:[#allocation6 + $0x590] sm:$0xff] }
 0x318   :  { %6140 = vmatprep.subr.bf16.mxu1 %v6139_v5  ;;  %v6161_v5 = vpack.c.bf16 %v1715_v3, %v1711_v2  ;;  %v1752_v3 = vld [vmem:[#allocation6 + $0x5c8] sm:$0xff] }
 0x319   :  { %6078 = vmatpush1.bf16.msra.mxu0 %v6077_v8  ;;  %v1713_v8 = vld [vmem:[#allocation6 + $0x490] sm:$0xff] }
 0x31a   :  { %6080 = vmatprep.subr.bf16.mxu0 %v6079_v12  ;;  %v1720_v12 = vld [vmem:[#allocation6 + $0x4c8] sm:$0xff]  ;;  %v6225_v15 = vpack.c.bf16 %v1717_v10, %v1713_v8  ;;  %v1754_v8 = vld [vmem:[#allocation6 + $0x5d8] sm:$0xff] }
 0x31b   :  { %6142 = vmatpush1.bf16.msra.mxu1 %v6141_v20  ;;  %v6163_v18 = vpack.c.bf16 %v1724_v14, %v1720_v12  ;;  %v1723_v20 = vld [vmem:[#allocation6 + $0x4e0] sm:$0xff]  ;;  %v1758_v10 = vld [vmem:[#allocation6 + $0x5f8] sm:$0xff]  ;;  %v1753_v12 = vld [vmem:[#allocation6 + $0x5d0] sm:$0xff] }
 0x31c   :  { %6144 = vmatprep.subr.bf16.mxu1 %v6143_v21  ;;  %v1722_v21 = vld [vmem:[#allocation6 + $0x4d8] sm:$0xff]  ;;  %v6165_v26 = vpack.c.bf16 %v1723_v20, %v1719_v19  ;;  %v1757_v14 = vld [vmem:[#allocation6 + $0x5f0] sm:$0xff]  ;;  %v1760_v19 = vld [vmem:[#allocation6 + $0x608] sm:$0xff] }
 0x31d   :  { %6082 = vmatpush1.bf16.msra.mxu0 %v6081_v25  ;;  %v1725_v25 = vld [vmem:[#allocation6 + $0x4f0] sm:$0xff]  ;;  %v6227_v27 = vpack.c.bf16 %v1726_v22, %v1722_v21  ;;  %v1764_v20 = vld [vmem:[#allocation6 + $0x628] sm:$0xff]  ;;  %v1759_v22 = vld [vmem:[#allocation6 + $0x600] sm:$0xff] }
 0x31e   :  { %6084 = vmatprep.subr.bf16.mxu0 %v6083_v28  ;;  %v1728_v28 = vld [vmem:[#allocation6 + $0x508] sm:$0xff]  ;;  %v6183_v21 = vpack.c.bf16 %v1764_v20, %v1760_v19  ;;  %v1797_v19 = vld [vmem:[#allocation6 + $0x730] sm:$0xff] }
 0x31f   :  { %6146 = vmatpush1.bf16.msra.mxu1 %v6145_v31  ;;  %v6229_v31 = vpack.c.bf16 %v1725_v25, %v1721_v23  ;;  %v1763_v23 = vld [vmem:[#allocation6 + $0x620] sm:$0xff]  ;;  %v1762_v25 = vld [vmem:[#allocation6 + $0x618] sm:$0xff] }
 0x320   :  { %6148 = vmatprep.subr.bf16.mxu1 %v6147_v32  ;;  %v6167_v32 = vpack.c.bf16 %v1732_v29, %v1728_v28  ;;  %v1761_v28 = vld [vmem:[#allocation6 + $0x610] sm:$0xff] }
 0x321   :  { %6086 = vmatpush1.bf16.msra.mxu0 %v6085_v34  ;;  %v1734_v34 = vld [vmem:[#allocation6 + $0x538] sm:$0xff]  ;;  %v1765_v29 = vld [vmem:[#allocation6 + $0x630] sm:$0xff] }
 0x322   :  { %6152 = vmatprep.subr.bf16.mxu0 %v6151_v40  ;;  %v1736_v40 = vld [vmem:[#allocation6 + $0x548] sm:$0xff] }
 0x323   :  { %6150 = vmatpush1.bf16.msra.mxu1 %v6149_v35  ;;  %v6231_v35 = vpack.c.bf16 %v1734_v34, %v1730_v33  ;;  %v6171_v42 = vpack.c.bf16 %v1740_v41, %v1736_v40  ;;  %v1767_v34 = vld [vmem:[#allocation6 + $0x640] sm:$0xff]  ;;  %v1773_v40 = vld [vmem:[#allocation6 + $0x670] sm:$0xff] }
 0x324   :  { %1594 = vmatmul.mubr.f32.vlgmr.msra.gmra.mrb[8].mxu0 %v1378_v36  ;;  %6216 = vmatprep.subr.bf16.mxu1 %v6215_v46  ;;  %v1738_v46 = vld [vmem:[#allocation6 + $0x558] sm:$0xff] }
 0x325   :  { %6154 = vmatpush1.bf16.msra.mxu0 %v6153_v45  ;;  %v1739_v45 = vld [vmem:[#allocation6 + $0x560] sm:$0xff]  ;;  %v6235_v53 = vpack.c.bf16 %v1742_v49, %v1738_v46 }
 0x326   :  { %1665 = vmatmul.mubr.f32.vlgmr.msra.gmra.mrb[8].mxu1 %v1378_v36  ;;  %6156 = vmatprep.subr.bf16.mxu0 %v6155_v55  ;;  %v6169_v36 = vpack.c.bf16 %v1731_v43, %v1727_v30  ;;  %v6173_v48 = vpack.c.bf16 %v1739_v45, %v1735_v44  ;;  %v1744_v55 = vld [vmem:[#allocation6 + $0x588] sm:$0xff]  ;;  %v1779_v49 = vld [vmem:[#allocation6 + $0x6a0] sm:$0xff] }
 0x327   :  { %6218 = vmatpush1.bf16.msra.mxu1 %v6217_v51  ;;  %v1737_v51 = vld [vmem:[#allocation6 + $0x550] sm:$0xff]  ;;  %v6175_v57 = vpack.c.bf16 %v1748_v56, %v1744_v55  ;;  %v1772_v43 = vld [vmem:[#allocation6 + $0x668] sm:$0xff] }
 0x328   :  { %6220 = vmatprep.subr.bf16.mxu1 %v6219_v60  ;;  %v6237_v54 = vpack.c.bf16 %v1741_v52, %v1737_v51  ;;  %v1746_v60 = vld [vmem:[#allocation6 + $0x598] sm:$0xff]  ;;  %v1776_v44 = vld [vmem:[#allocation6 + $0x688] sm:$0xff]  ;;  %v1781_v55 = vld [vmem:[#allocation6 + $0x6b0] sm:$0xff] }
 0x329   :  { %6158 = vmatpush1.bf16.msra.mxu0 %v6157_v59  ;;  %v1747_v59 = vld [vmem:[#allocation6 + $0x5a0] sm:$0xff]  ;;  %v6239_v1 = vpack.c.bf16 %v1750_v62, %v1746_v60  ;;  %v1780_v45 = vld [vmem:[#allocation6 + $0x6a8] sm:$0xff]  ;;  %v1778_v51 = vld [vmem:[#allocation6 + $0x698] sm:$0xff] }
 0x32a   :  { %6160 = vmatprep.subr.bf16.mxu0 %v6159_v4  ;;  %v6177_v61 = vpack.c.bf16 %v1747_v59, %v1743_v58  ;;  %v1756_v4 = vld [vmem:[#allocation6 + $0x5e8] sm:$0xff]  ;;  %v6191_v46 = vpack.c.bf16 %v1780_v45, %v1776_v44  ;;  %v1787_v62 = vld [vmem:[#allocation6 + $0x6e0] sm:$0xff]  ;;  %v1809_v44 = vld [vmem:[#allocation6 + $0x790] sm:$0xff] }
 0x32b   :  { %6222 = vmatpush1.bf16.msra.mxu1 %v6221_v0  ;;  %v1749_v0 = vld [vmem:[#allocation6 + $0x5b0] sm:$0xff]  ;;  %v1784_v58 = vld [vmem:[#allocation6 + $0x6c8] sm:$0xff] }
 0x32c   :  { %6224 = vmatprep.subr.bf16.mxu1 %v6223_v9  ;;  %v6241_v2 = vpack.c.bf16 %v1749_v0, %v1745_v63  ;;  %v6181_v9 = vpack.c.bf16 %v1755_v7, %v1751_v6  ;;  %v1788_v59 = vld [vmem:[#allocation6 + $0x6e8] sm:$0xff]  ;;  %v1786_v63 = vld [vmem:[#allocation6 + $0x6d8] sm:$0xff]  ;;  %v1813_v45 = vld [vmem:[#allocation6 + $0x7b0] sm:$0xff] }
 0x32d   :  { %6162 = vmatpush1.bf16.msra.mxu0 %v6161_v5  ;;  %v6179_v5 = vpack.c.bf16 %v1756_v4, %v1752_v3  ;;  %v6195_v60 = vpack.c.bf16 %v1788_v59, %v1784_v58  ;;  %v1789_v3 = vld [vmem:[#allocation6 + $0x6f0] sm:$0xff]  ;;  %v1792_v6 = vld [vmem:[#allocation6 + $0x708] sm:$0xff] }
 0x32e   :  { %6164 = vmatprep.subr.bf16.mxu0 %v6163_v18  ;;  %v6245_v18 = vpack.c.bf16 %v1757_v14, %v1753_v12  ;;  %v1796_v7 = vld [vmem:[#allocation6 + $0x728] sm:$0xff]  ;;  %v1794_v12 = vld [vmem:[#allocation6 + $0x718] sm:$0xff]  ;;  %v1821_v59 = vld [vmem:[#allocation6 + $0x7f0] sm:$0xff] }
 0x32f   :  { %6226 = vmatpush1.bf16.msra.mxu1 %v6225_v15  ;;  %v6243_v15 = vpack.c.bf16 %v1758_v10, %v1754_v8  ;;  %v6199_v8 = vpack.c.bf16 %v1796_v7, %v1792_v6  ;;  %v1795_v10 = vld [vmem:[#allocation6 + $0x720] sm:$0xff] }
 0x330   :  { %6228 = vmatprep.subr.bf16.mxu1 %v6227_v27  ;;  %v1766_v27 = vld [vmem:[#allocation6 + $0x638] sm:$0xff] }
 0x331   :  { %6166 = vmatpush1.bf16.msra.mxu0 %v6165_v26  ;;  %v6185_v26 = vpack.c.bf16 %v1763_v23, %v1759_v22  ;;  %v6247_v30 = vpack.c.bf16 %v1766_v27, %v1762_v25  ;;  %v1800_v22 = vld [vmem:[#allocation6 + $0x748] sm:$0xff]  ;;  %v1803_v27 = vld [vmem:[#allocation6 + $0x760] sm:$0xff] }
 0x332   :  { %6168 = vmatprep.subr.bf16.mxu0 %v6167_v32  ;;  %v1768_v32 = vld [vmem:[#allocation6 + $0x648] sm:$0xff] }
 0x333   :  { %6230 = vmatpush1.bf16.msra.mxu1 %v6229_v31  ;;  %v6249_v31 = vpack.c.bf16 %v1765_v29, %v1761_v28  ;;  %v6187_v33 = vpack.c.bf16 %v1772_v43, %v1768_v32  ;;  %v1804_v23 = vld [vmem:[#allocation6 + $0x768] sm:$0xff]  ;;  %v1802_v28 = vld [vmem:[#allocation6 + $0x758] sm:$0xff]  ;;  %v1805_v32 = vld [vmem:[#allocation6 + $0x770] sm:$0xff] }
 0x334   :  { %6232 = vmatprep.subr.bf16.mxu1 %v6231_v35  ;;  %v1771_v35 = vld [vmem:[#allocation6 + $0x660] sm:$0xff]  ;;  %v6203_v25 = vpack.c.bf16 %v1804_v23, %v1800_v22 }
 0x335   :  { %6170 = vmatpush1.bf16.msra.mxu0 %v6169_v36  ;;  %v1770_v36 = vld [vmem:[#allocation6 + $0x658] sm:$0xff]  ;;  %v6189_v37 = vpack.c.bf16 %v1771_v35, %v1767_v34  ;;  %v1808_v34 = vld [vmem:[#allocation6 + $0x788] sm:$0xff] }
 0x336   :  { %6172 = vmatprep.subr.bf16.mxu0 %v6171_v42  ;;  %v6251_v41 = vpack.c.bf16 %v1774_v38, %v1770_v36  ;;  %v1812_v35 = vld [vmem:[#allocation6 + $0x7a8] sm:$0xff]  ;;  %v1807_v36 = vld [vmem:[#allocation6 + $0x780] sm:$0xff] }
 0x337   :  { %6234 = vmatpush1.bf16.msra.mxu1 %v6233_v39  ;;  %v1769_v39 = vld [vmem:[#allocation6 + $0x650] sm:$0xff]  ;;  %v1811_v38 = vld [vmem:[#allocation6 + $0x7a0] sm:$0xff] }
 0x338   :  { %6236 = vmatprep.subr.bf16.mxu1 %v6235_v53  ;;  %v6253_v42 = vpack.c.bf16 %v1773_v40, %v1769_v39  ;;  %v1782_v53 = vld [vmem:[#allocation6 + $0x6b8] sm:$0xff] }
 0x339   :  { %6174 = vmatpush1.bf16.msra.mxu0 %v6173_v48  ;;  %v1775_v48 = vld [vmem:[#allocation6 + $0x680] sm:$0xff]  ;;  %v6255_v56 = vpack.c.bf16 %v1782_v53, %v1778_v51  ;;  %v1810_v39 = vld [vmem:[#allocation6 + $0x798] sm:$0xff] }
 0x33a   :  { %6176 = vmatprep.subr.bf16.mxu0 %v6175_v57  ;;  %v6193_v52 = vpack.c.bf16 %v1779_v49, %v1775_v48  ;;  %v1814_v40 = vld [vmem:[#allocation6 + $0x7b8] sm:$0xff]  ;;  %v6273_v48 = vpack.c.bf16 %v1813_v45, %v1809_v44  ;;  %v1820_v49 = vld [vmem:[#allocation6 + $0x7e8] sm:$0xff]  ;;  %v1815_v51 = vld [vmem:[#allocation6 + $0x7c0] sm:$0xff] }
 0x33b   :  { %6238 = vmatpush1.bf16.msra.mxu1 %v6237_v54  ;;  %v1777_v54 = vld [vmem:[#allocation6 + $0x690] sm:$0xff] }
 0x33c   :  { %6240 = vmatprep.subr.bf16.mxu1 %v6239_v1  ;;  %v6257_v57 = vpack.c.bf16 %v1781_v55, %v1777_v54  ;;  %v1790_v1 = vld [vmem:[#allocation6 + $0x6f8] sm:$0xff] }
 0x33d   :  { %6178 = vmatpush1.bf16.msra.mxu0 %v6177_v61  ;;  %v1783_v61 = vld [vmem:[#allocation6 + $0x6c0] sm:$0xff]  ;;  %v6259_v4 = vpack.c.bf16 %v1790_v1, %v1786_v63  ;;  %v1818_v54 = vld [vmem:[#allocation6 + $0x7d8] sm:$0xff] }
 0x33e   :  { %6180 = vmatprep.subr.bf16.mxu0 %v6179_v5  ;;  %v6197_v0 = vpack.c.bf16 %v1787_v62, %v1783_v61  ;;  %v1822_v55 = vld [vmem:[#allocation6 + $0x7f8] sm:$0xff]  ;;  %v2020_v61 = vld [vmem:[#allocation6 + $0x28] sm:$0xff] }
 0x33f   :  { %6242 = vmatpush1.bf16.msra.mxu1 %v6241_v2  ;;  %v1785_v2 = vld [vmem:[#allocation6 + $0x6d0] sm:$0xff]  ;;  %v6275_v58 = vpack.c.bf16 %v1822_v55, %v1818_v54  ;;  %v2018_v1 = vld [vmem:[#allocation6 + $0x18] sm:$0xff] }
 0x340   :  { %6244 = vmatprep.subr.bf16.mxu1 %v6243_v15  ;;  %v6261_v5 = vpack.c.bf16 %v1789_v3, %v1785_v2  ;;  %v1798_v15 = vld [vmem:[#allocation6 + $0x738] sm:$0xff] }
 0x341   :  { %6182 = vmatpush1.bf16.msra.mxu0 %v6181_v9  ;;  %v1791_v9 = vld [vmem:[#allocation6 + $0x700] sm:$0xff]  ;;  %v6263_v20 = vpack.c.bf16 %v1798_v15, %v1794_v12  ;;  %v2022_v2 = vld [vmem:[#allocation6 + $0x38] sm:$0xff] }
 0x342   :  { %6184 = vmatprep.subr.bf16.mxu0 %v6183_v21  ;;  %v6201_v14 = vpack.c.bf16 %v1795_v10, %v1791_v9  ;;  %v6343_v3 = vpack.c.bf16 %v2022_v2, %v2018_v1 }
 0x343   :  { %6246 = vmatpush1.bf16.msra.mxu1 %v6245_v18  ;;  %v1793_v18 = vld [vmem:[#allocation6 + $0x710] sm:$0xff] }
 0x344   :  { %6248 = vmatprep.subr.bf16.mxu1 %v6247_v30  ;;  %v6265_v21 = vpack.c.bf16 %v1797_v19, %v1793_v18  ;;  %v1806_v30 = vld [vmem:[#allocation6 + $0x778] sm:$0xff] }
 0x345   :  { %6186 = vmatpush1.bf16.msra.mxu0 %v6185_v26  ;;  %v1799_v26 = vld [vmem:[#allocation6 + $0x740] sm:$0xff]  ;;  %v6267_v43 = vpack.c.bf16 %v1806_v30, %v1802_v28 }
 0x346   :  { %6188 = vmatprep.subr.bf16.mxu0 %v6187_v33  ;;  %v6205_v29 = vpack.c.bf16 %v1803_v27, %v1799_v26 }
 0x347   :  { %6250 = vmatpush1.bf16.msra.mxu1 %v6249_v31  ;;  %v1801_v31 = vld [vmem:[#allocation6 + $0x750] sm:$0xff] }
 0x348   :  { %6252 = vmatprep.subr.bf16.mxu1 %v6251_v41  ;;  %v6269_v33 = vpack.c.bf16 %v1805_v32, %v1801_v31  ;;  %v6209_v41 = vpack.c.bf16 %v1811_v38, %v1807_v36  ;;  %v1507_v38 = vld [vmem:[#allocation8] sm:$0xf] }
 0x349   :  { %6190 = vmatpush1.bf16.msra.mxu0 %v6189_v37  ;;  %v6207_v37 = vpack.c.bf16 %v1812_v35, %v1808_v34 }
 0x34a   :  { %6192 = vmatprep.subr.bf16.mxu0 %v6191_v46  ;;  %v1816_v46 = vld [vmem:[#allocation6 + $0x7c8] sm:$0xff] }
 0x34b   :  { %6254 = vmatpush1.bf16.msra.mxu1 %v6253_v42  ;;  %v6271_v42 = vpack.c.bf16 %v1814_v40, %v1810_v39  ;;  %v6211_v53 = vpack.c.bf16 %v1820_v49, %v1816_v46  ;;  %v1512_v39 = vrot.slane %v1507_v38, %v8202_v11  ;;  %v1516_v40 = vrot.slane %v1507_v38, %v8204_v13 }
 0x34c   :  { %6256 = vmatprep.subr.bf16.mxu1 %v6255_v56  ;;  %v1817_v56 = vld [vmem:[#allocation6 + $0x7d0] sm:$0xff] }
 0x34d   :  { %6194 = vmatpush1.bf16.msra.mxu0 %v6193_v52  ;;  %v1819_v52 = vld [vmem:[#allocation6 + $0x7e0] sm:$0xff]  ;;  %v6277_v63 = vpack.c.bf16 %v1821_v59, %v1817_v56 }
 0x34e   :  { %6196 = vmatprep.subr.bf16.mxu0 %v6195_v60  ;;  %v2016_v60 = vld [vmem:[#allocation6 + $0x8] sm:$0xff] }
 0x34f   :  { %6258 = vmatpush1.bf16.msra.mxu1 %v6257_v57  ;;  %v6213_v57 = vpack.c.bf16 %v1819_v52, %v1815_v51  ;;  %v6279_v62 = vpack.c.bf16 %v2020_v61, %v2016_v60 }
 0x350   :  { %6260 = vmatprep.subr.bf16.mxu1 %v6259_v4 }
 0x351   :  { %6198 = vmatpush1.bf16.msra.mxu0 %v6197_v0  ;;  %v1187_v0 = vld [vmem:[#allocation8 + $0x4] sm:$0xf] }
 0x352   :  { %6200 = vmatprep.subr.bf16.mxu0 %v6199_v8  ;;  %v1192_v4 = vrot.slane %v1187_v0, %v8202_v11  ;;  %v1204_v18 = vrot.slane %v1187_v0, %v8208_v16 }
 0x353   :  { %6262 = vmatpush1.bf16.msra.mxu1 %v6261_v5  ;;  %v1196_v5 = vrot.slane %v1187_v0, %v8204_v13 }
 0x354   :  { %6264 = vmatprep.subr.bf16.mxu1 %v6263_v20  ;;  %v1200_v20 = vrot.slane %v1187_v0, %v8211_v24 }
 0x355   :  { %6202 = vmatpush1.bf16.msra.mxu0 %v6201_v14 }
 0x356   :  { %6204 = vmatprep.subr.bf16.mxu0 %v6203_v25 }
 0x357   :  { %6266 = vmatpush1.bf16.msra.mxu1 %v6265_v21 }
 0x358   :  { %6268 = vmatprep.subr.bf16.mxu1 %v6267_v43 }
 0x359   :  { %6206 = vmatpush1.bf16.msra.mxu0 %v6205_v29 }
 0x35a   :  { %6208 = vmatprep.subr.bf16.mxu0 %v6207_v37 }
 0x35b   :  { %6270 = vmatpush1.bf16.msra.mxu1 %v6269_v33 }
 0x35c   :  { %6272 = vmatprep.subr.bf16.mxu1 %v6271_v42 }
 0x35d   :  { %6210 = vmatpush1.bf16.msra.mxu0 %v6209_v41 }
 0x35e   :  { %6212 = vmatprep.subr.bf16.mxu0 %v6211_v53  ;;  %v1520_v53 = vrot.slane %v1507_v38, %v8211_v24 }
 0x35f   :  { %6274 = vmatpush1.bf16.msra.mxu1 %v6273_v48  ;;  %v1524_v48 = vrot.slane %v1507_v38, %v8208_v16 }
 0x360   :  { %6276 = vmatprep.subr.bf16.mxu1 %v6275_v58 }
 0x361   :  { %6214 = vmatpush1.bf16.msra.mxu0 %v6213_v57 }
 0x362   :  { %6280 = vmatprep.subr.bf16.mxu0 %v6279_v62 }
 0x363   :  { %6278 = vmatpush1.bf16.msra.mxu1 %v6277_v63 }
 0x364   :  { %6344 = vmatprep.subr.bf16.mxu1 %v6343_v3 }
 0x3b7   :  { %v1275_v6 = vpop.f32.mrb[6].mxu0  ;;  %v1346_v7 = vpop.f32.mrb[6].mxu1 }
 0x3b8   :  { %v1276_v8 = vadd.f32 %v1275_v6, %v1192_v4  ;;  %v1277_v9 = vpop.f32.mrb[7].mxu0  ;;  %v1348_v10 = vpop.f32.mrb[7].mxu1  ;;  %v1347_v22 = vadd.f32 %v1346_v7, %v1200_v20  ;;  %v2015_v4 = vld [vmem:[#allocation6] sm:$0xff]  ;;  %v2024_v7 = vld [vmem:[#allocation6 + $0x48] sm:$0xff] }
 0x3b9   :  { %v1278_v12 = vadd.f32 %v1277_v9, %v1196_v5  ;;  %v1349_v19 = vadd.f32 %v1348_v10, %v1204_v18  ;;  %v2019_v5 = vld [vmem:[#allocation6 + $0x20] sm:$0xff]  ;;  %v2017_v9 = vld [vmem:[#allocation6 + $0x10] sm:$0xff]  ;;  %v2030_v18 = vld [vmem:[#allocation6 + $0x78] sm:$0xff] }
 0x3ba   :  { %v5403_v14 = vmul.f32 -1.442695, %v1276_v8  ;;  %v2028_v8 = vld [vmem:[#allocation6 + $0x68] sm:$0xff]  ;;  %v2021_v10 = vld [vmem:[#allocation6 + $0x30] sm:$0xff] }
 0x3bb   :  { %v5404_v15 = vmul.f32 -1.442695, %v1278_v12  ;;  %v5405_v21 = vmul.f32 -1.442695, %v1349_v19  ;;  %v6283_v20 = vpack.c.bf16 %v2028_v8, %v2024_v7  ;;  %v2062_v7 = vld [vmem:[#allocation6 + $0x178] sm:$0xff] }
 0x3bc   :  { %7669 = vpow2.f32 %v5403_v14  ;;  %v6281_v14 = vpack.c.bf16 %v2019_v5, %v2015_v4  ;;  %v2053_v4 = vld [vmem:[#allocation6 + $0x130] sm:$0xff] }
 0x3bd   :  { %7671 = vpow2.f32 %v5404_v15  ;;  %v2026_v15 = vld [vmem:[#allocation6 + $0x58] sm:$0xff] }
 0x3be   :  { %7673 = vpow2.f32 %v5405_v21  ;;  %v2023_v21 = vld [vmem:[#allocation6 + $0x40] sm:$0xff] }
 0x3bf   :  { %7675 = vtanh.f32 %v1347_v22  ;;  %v2032_v22 = vld [vmem:[#allocation6 + $0x88] sm:$0xff] }
 0x3c6   :  { %v7670_v23 = vpop.eup %7669 }
 0x3c7   :  { %v7672_v25 = vpop.eup %7671  ;;  %v1354_v26 = vadd.f32 1.0, %v7670_v23  ;;  %v2036_v23 = vld [vmem:[#allocation6 + $0xa8] sm:$0xff] }
 0x3c8   :  { %v1360_v27 = vadd.f32 1.0, %v7672_v25  ;;  %v7674_v28 = vpop.eup %7673  ;;  %v6345_v25 = vpack.c.bf16 %v2021_v10, %v2017_v9  ;;  %v2055_v9 = vld [vmem:[#allocation6 + $0x140] sm:$0xff] }
 0x3c9   :  { %7677 = vrcp.f32 %v1354_v26  ;;  %v7676_v29 = vpop.eup %7675  ;;  %v1367_v43 = vadd.f32 1.0, %v7674_v28  ;;  %v6347_v26 = vpack.c.bf16 %v2030_v18, %v2026_v15  ;;  %v2029_v28 = vld [vmem:[#allocation6 + $0x70] sm:$0xff]  ;;  %v2059_v10 = vld [vmem:[#allocation6 + $0x160] sm:$0xff] }
 0x3ca   :  { %7679 = vrcp.f32 %v1360_v27  ;;  %v2025_v27 = vld [vmem:[#allocation6 + $0x50] sm:$0xff] }
 0x3cb   :  { %7681 = vrcp.f32 %v1367_v43  ;;  %v2031_v43 = vld [vmem:[#allocation6 + $0x80] sm:$0xff]  ;;  %v6349_v38 = vpack.c.bf16 %v2029_v28, %v2025_v27  ;;  %v2072_v27 = vld [vmem:[#allocation6 + $0x1c8] sm:$0xff] }
 0x3cc   :  { %v2076_v28 = vld [vmem:[#allocation6 + $0x1e8] sm:$0xff] }
 0x3d3   :  { %v7678_v30 = vpop.eup %7677 }
 0x3d4   :  { %v7680_v31 = vpop.eup %7679  ;;  %v1371_v32 = vmul.f32 %v7678_v30, %v7676_v29  ;;  %v2034_v30 = vld [vmem:[#allocation6 + $0x98] sm:$0xff] }
 0x3d5   :  { %v1370_v33 = vmul.f32 %v7680_v31, %v8221_v47  ;;  %v7682_v35 = vpop.eup %7681  ;;  %v2038_v31 = vld [vmem:[#allocation6 + $0xb8] sm:$0xff] }
 0x3d7   :  { %v8241_v34 = vadd.f32 %v1371_v32, %v1370_v33  ;;  %v6287_v32 = vpack.c.bf16 %v2036_v23, %v2032_v22  ;;  %v2035_v33 = vld [vmem:[#allocation6 + $0xa0] sm:$0xff]  ;;  %v2070_v22 = vld [vmem:[#allocation6 + $0x1b8] sm:$0xff] }
 0x3d9   :  { %7683 = vtanh.f32 %v8241_v34 }
 0x3e3   :  { %v7684_v36 = vpop.eup %7683 }
 0x3e4   :  { %v8244_v37 = vmul.f32 %v7684_v36, %v7682_v35  ;;  %v2040_v35 = vld [vmem:[#allocation6 + $0xc8] sm:$0xff] }
 0x3e5   :  { %v2044_v36 = vld [vmem:[#allocation6 + $0xe8] sm:$0xff] }
 0x3e6   :  { %1909 = vmatprep.mubr.f32.mxu0 %v8244_v37  ;;  %1980 = vmatprep.mubr.f32.mxu1 %v8244_v37 }
 0x3f7   :  { %v1595_v41 = vpop.f32.mrb[8].mxu0 }
 0x3f8   :  { %v1596_v47 = vadd.f32 %v1595_v41, %v1512_v39  ;;  %v1597_v42 = vpop.f32.mrb[9].mxu0  ;;  %v6351_v39 = vpack.c.bf16 %v2038_v31, %v2034_v30  ;;  %v2037_v41 = vld [vmem:[#allocation6 + $0xb0] sm:$0xff] }
 0x3f9   :  { %v1598_v44 = vadd.f32 %v1597_v42, %v1516_v40  ;;  %v1666_v45 = vpop.f32.mrb[8].mxu1  ;;  %v2033_v40 = vld [vmem:[#allocation6 + $0x90] sm:$0xff]  ;;  %v2042_v42 = vld [vmem:[#allocation6 + $0xd8] sm:$0xff] }
 0x3fa   :  { %v5406_v46 = vmul.f32 -1.442695, %v1596_v47  ;;  %v1668_v49 = vpop.f32.mrb[9].mxu1  ;;  %v1667_v55 = vadd.f32 %v1666_v45, %v1520_v53  ;;  %v6289_v47 = vpack.c.bf16 %v2035_v33, %v2031_v43  ;;  %v6291_v45 = vpack.c.bf16 %v2044_v36, %v2040_v35  ;;  %v2065_v31 = vld [vmem:[#allocation6 + $0x190] sm:$0xff]  ;;  %v2074_v33 = vld [vmem:[#allocation6 + $0x1d8] sm:$0xff] }
 0x3fb   :  { %v5407_v51 = vmul.f32 -1.442695, %v1598_v44  ;;  %v1669_v52 = vadd.f32 %v1668_v49, %v1524_v48  ;;  %v2046_v44 = vld [vmem:[#allocation6 + $0xf8] sm:$0xff]  ;;  %v2043_v48 = vld [vmem:[#allocation6 + $0xe0] sm:$0xff]  ;;  %v2048_v49 = vld [vmem:[#allocation6 + $0x108] sm:$0xff]  ;;  %v6307_v36 = vpack.c.bf16 %v2076_v28, %v2072_v27 }
 0x3fc   :  { %7685 = vpow2.f32 %v5406_v46  ;;  %v2039_v46 = vld [vmem:[#allocation6 + $0xc0] sm:$0xff]  ;;  %v6355_v53 = vpack.c.bf16 %v2046_v44, %v2042_v42  ;;  %v2078_v35 = vld [vmem:[#allocation6 + $0x1f8] sm:$0xff]  ;;  %v2073_v44 = vld [vmem:[#allocation6 + $0x1d0] sm:$0xff] }
 0x3fd   :  { %7687 = vpow2.f32 %v5407_v51  ;;  %v5408_v54 = vmul.f32 -1.442695, %v1669_v52  ;;  %v2052_v51 = vld [vmem:[#allocation6 + $0x128] sm:$0xff]  ;;  %v6353_v52 = vpack.c.bf16 %v2037_v41, %v2033_v40  ;;  %v6371_v42 = vpack.c.bf16 %v2078_v35, %v2074_v33  ;;  %v2110_v27 = vld [vmem:[#allocation6 + $0x2f8] sm:$0xff]  ;;  %v2105_v35 = vld [vmem:[#allocation6 + $0x2d0] sm:$0xff] }
 0x3fe   :  { %v2080_v40 = vld [vmem:[#allocation6 + $0x208] sm:$0xff] }
 0x3ff   :  { %7689 = vpow2.f32 %v5408_v54  ;;  %v2041_v54 = vld [vmem:[#allocation6 + $0xd0] sm:$0xff]  ;;  %v2084_v41 = vld [vmem:[#allocation6 + $0x228] sm:$0xff] }
 0x400   :  { %7691 = vtanh.f32 %v1667_v55  ;;  %v2045_v55 = vld [vmem:[#allocation6 + $0xf0] sm:$0xff] }
 0x406   :  { %v7686_v56 = vpop.eup %7685 }
 0x407   :  { %v7688_v57 = vpop.eup %7687  ;;  %v1674_v58 = vadd.f32 1.0, %v7686_v56  ;;  %v6293_v56 = vpack.c.bf16 %v2043_v48, %v2039_v46  ;;  %v2082_v48 = vld [vmem:[#allocation6 + $0x218] sm:$0xff] }
 0x408   :  { %v1680_v59 = vadd.f32 1.0, %v7688_v57  ;;  %v2050_v57 = vld [vmem:[#allocation6 + $0x118] sm:$0xff] }
 0x409   :  { %7693 = vrcp.f32 %v1674_v58  ;;  %v7690_v60 = vpop.eup %7689  ;;  %v2054_v58 = vld [vmem:[#allocation6 + $0x138] sm:$0xff] }
 0x40a   :  { %7695 = vrcp.f32 %v1680_v59  ;;  %v7692_v61 = vpop.eup %7691  ;;  %v1687_v63 = vadd.f32 1.0, %v7690_v60  ;;  %v6295_v59 = vpack.c.bf16 %v2052_v51, %v2048_v49  ;;  %v2047_v60 = vld [vmem:[#allocation6 + $0x100] sm:$0xff]  ;;  %v2086_v49 = vld [vmem:[#allocation6 + $0x238] sm:$0xff]  ;;  %v6311_v51 = vpack.c.bf16 %v2084_v41, %v2080_v40 }
 0x40b   :  { %v2118_v40 = vld [vmem:[#allocation6 + $0x338] sm:$0xff] }
 0x40c   :  { %7697 = vrcp.f32 %v1687_v63  ;;  %v2060_v63 = vld [vmem:[#allocation6 + $0x168] sm:$0xff] }
 0x413   :  { %v7694_v62 = vpop.eup %7693 }
 0x414   :  { %v7696_v0 = vpop.eup %7695  ;;  %v1691_v1 = vmul.f32 %v7694_v62, %v7692_v61  ;;  %v2051_v61 = vld [vmem:[#allocation6 + $0x120] sm:$0xff]  ;;  %v2056_v62 = vld [vmem:[#allocation6 + $0x148] sm:$0xff] }
 0x415   :  { %v1690_v2 = vmul.f32 %v7696_v0, %v8233_v17  ;;  %v2027_v17 = vld [vmem:[#allocation6 + $0x60] sm:$0xff]  ;;  %v6357_v0 = vpack.c.bf16 %v2045_v55, %v2041_v54  ;;  %v6297_v5 = vpack.c.bf16 %v2051_v61, %v2047_v60  ;;  %v6299_v8 = vpack.c.bf16 %v2060_v63, %v2056_v62  ;;  %v2088_v54 = vld [vmem:[#allocation6 + $0x248] sm:$0xff]  ;;  %v2090_v61 = vld [vmem:[#allocation6 + $0x258] sm:$0xff] }
 0x416   :  { %v7698_v6 = vpop.eup %7697  ;;  %v6285_v29 = vpack.c.bf16 %v2027_v17, %v2023_v21  ;;  %v6301_v21 = vpack.c.bf16 %v2059_v10, %v2055_v9  ;;  %v2066_v17 = vld [vmem:[#allocation6 + $0x198] sm:$0xff]  ;;  %v2092_v55 = vld [vmem:[#allocation6 + $0x268] sm:$0xff] }
 0x417   :  { %v8253_v3 = vadd.f32 %v1691_v1, %v1690_v2  ;;  %v6359_v1 = vpack.c.bf16 %v2054_v58, %v2050_v57  ;;  %v2049_v2 = vld [vmem:[#allocation6 + $0x110] sm:$0xff]  ;;  %v6367_v30 = vpack.c.bf16 %v2070_v22, %v2066_v17  ;;  %v6375_v57 = vpack.c.bf16 %v2086_v49, %v2082_v48  ;;  %v2094_v62 = vld [vmem:[#allocation6 + $0x278] sm:$0xff] }
 0x418   :  { %v6361_v15 = vpack.c.bf16 %v2053_v4, %v2049_v2  ;;  %v2081_v58 = vld [vmem:[#allocation6 + $0x210] sm:$0xff]  ;;  %v6315_v63 = vpack.c.bf16 %v2092_v55, %v2088_v54  ;;  %v2096_v2 = vld [vmem:[#allocation6 + $0x288] sm:$0xff]  ;;  %v2098_v10 = vld [vmem:[#allocation6 + $0x298] sm:$0xff] }
 0x419   :  { %7699 = vtanh.f32 %v8253_v3  ;;  %v2100_v4 = vld [vmem:[#allocation6 + $0x2a8] sm:$0xff]  ;;  %v2097_v22 = vld [vmem:[#allocation6 + $0x290] sm:$0xff]  ;;  %v2126_v54 = vld [vmem:[#allocation6 + $0x378] sm:$0xff] }
 0x41a   :  { %v2113_v49 = vld [vmem:[#allocation6 + $0x310] sm:$0xff] }
 0x423   :  { %v7700_v12 = vpop.eup %7699 }
 0x424   :  { %v1694_v19 = vmul.f32 %v7700_v12, %v7698_v6  ;;  %v2058_v6 = vld [vmem:[#allocation6 + $0x158] sm:$0xff]  ;;  %v2064_v12 = vld [vmem:[#allocation6 + $0x188] sm:$0xff] }
 0x425   :  { %v6363_v18 = vpack.c.bf16 %v2062_v7, %v2058_v6  ;;  %v6379_v6 = vpack.c.bf16 %v2094_v62, %v2090_v61  ;;  %v2089_v7 = vld [vmem:[#allocation6 + $0x250] sm:$0xff] }
 0x426   :  { %1910 = vmatmul.mubr.f32.vlgmr.msra.gmra.mrb[10].mxu0 %v1694_v19  ;;  %1981 = vmatmul.mubr.f32.vlgmr.msra.gmra.mrb[10].mxu1 %v1694_v19  ;;  %v2121_v62 = vld [vmem:[#allocation6 + $0x350] sm:$0xff] }
 0x427   :  { %6282 = vmatpush1.bf16.msra.mxu0 %v6281_v14  ;;  %2229 = vmatprep.mubr.f32.mxu0 %v1694_v19  ;;  %v2068_v14 = vld [vmem:[#allocation6 + $0x1a8] sm:$0xff] }
 0x428   :  { %2300 = vmatprep.mubr.f32.mxu1 %v1694_v19  ;;  %6284 = vmatprep.subr.bf16.mxu0 %v6283_v20  ;;  %v2057_v19 = vld [vmem:[#allocation6 + $0x150] sm:$0xff]  ;;  %v6303_v23 = vpack.c.bf16 %v2068_v14, %v2064_v12  ;;  %v2102_v12 = vld [vmem:[#allocation6 + $0x2b8] sm:$0xff]  ;;  %v6319_v14 = vpack.c.bf16 %v2100_v4, %v2096_v2 }
 0x429   :  { %6346 = vmatpush1.bf16.msra.mxu1 %v6345_v25  ;;  %v2061_v20 = vld [vmem:[#allocation6 + $0x170] sm:$0xff]  ;;  %v2063_v25 = vld [vmem:[#allocation6 + $0x180] sm:$0xff]  ;;  %v6383_v17 = vpack.c.bf16 %v2102_v12, %v2098_v10  ;;  %v2134_v2 = vld [vmem:[#allocation6 + $0x3b8] sm:$0xff] }
 0x42a   :  { %6348 = vmatprep.subr.bf16.mxu1 %v6347_v26  ;;  %v2067_v26 = vld [vmem:[#allocation6 + $0x1a0] sm:$0xff]  ;;  %v2129_v12 = vld [vmem:[#allocation6 + $0x390] sm:$0xff] }
 0x42b   :  { %6286 = vmatpush1.bf16.msra.mxu0 %v6285_v29  ;;  %v6365_v29 = vpack.c.bf16 %v2061_v20, %v2057_v19  ;;  %v6305_v43 = vpack.c.bf16 %v2067_v26, %v2063_v25  ;;  %v2104_v19 = vld [vmem:[#allocation6 + $0x2c8] sm:$0xff]  ;;  %v2106_v26 = vld [vmem:[#allocation6 + $0x2d8] sm:$0xff] }
 0x42c   :  { %6288 = vmatprep.subr.bf16.mxu0 %v6287_v32  ;;  %v2069_v32 = vld [vmem:[#allocation6 + $0x1b0] sm:$0xff]  ;;  %v2108_v20 = vld [vmem:[#allocation6 + $0x2e8] sm:$0xff]  ;;  %v6387_v33 = vpack.c.bf16 %v2110_v27, %v2106_v26 }
 0x42d   :  { %6350 = vmatpush1.bf16.msra.mxu1 %v6349_v38  ;;  %v2071_v38 = vld [vmem:[#allocation6 + $0x1c0] sm:$0xff]  ;;  %v6323_v28 = vpack.c.bf16 %v2108_v20, %v2104_v19  ;;  %v2142_v19 = vld [vmem:[#allocation6 + $0x3f8] sm:$0xff]  ;;  %v2141_v26 = vld [vmem:[#allocation6 + $0x3f0] sm:$0xff] }
 0x42e   :  { %6352 = vmatprep.subr.bf16.mxu1 %v6351_v39  ;;  %v2075_v39 = vld [vmem:[#allocation6 + $0x1e0] sm:$0xff] }
 0x42f   :  { %6290 = vmatpush1.bf16.msra.mxu0 %v6289_v47  ;;  %v6369_v47 = vpack.c.bf16 %v2069_v32, %v2065_v31  ;;  %v6309_v46 = vpack.c.bf16 %v2075_v39, %v2071_v38  ;;  %v2112_v31 = vld [vmem:[#allocation6 + $0x308] sm:$0xff]  ;;  %v2114_v39 = vld [vmem:[#allocation6 + $0x318] sm:$0xff] }
 0x430   :  { %6292 = vmatprep.subr.bf16.mxu0 %v6291_v45  ;;  %v2077_v45 = vld [vmem:[#allocation6 + $0x1f0] sm:$0xff]  ;;  %v2116_v32 = vld [vmem:[#allocation6 + $0x328] sm:$0xff]  ;;  %v6391_v48 = vpack.c.bf16 %v2118_v40, %v2114_v39 }
 0x431   :  { %6354 = vmatpush1.bf16.msra.mxu1 %v6353_v52  ;;  %v2079_v52 = vld [vmem:[#allocation6 + $0x200] sm:$0xff]  ;;  %v6327_v41 = vpack.c.bf16 %v2116_v32, %v2112_v31  ;;  %v2336_v31 = vld [vmem:[#allocation6 + $0x428] sm:$0xff]  ;;  %v2333_v40 = vld [vmem:[#allocation6 + $0x410] sm:$0xff] }
 0x432   :  { %6356 = vmatprep.subr.bf16.mxu1 %v6355_v53  ;;  %v2083_v53 = vld [vmem:[#allocation6 + $0x220] sm:$0xff] }
 0x433   :  { %6294 = vmatpush1.bf16.msra.mxu0 %v6293_v56  ;;  %v6373_v56 = vpack.c.bf16 %v2077_v45, %v2073_v44  ;;  %v6313_v60 = vpack.c.bf16 %v2083_v53, %v2079_v52  ;;  %v2120_v44 = vld [vmem:[#allocation6 + $0x348] sm:$0xff]  ;;  %v2122_v53 = vld [vmem:[#allocation6 + $0x358] sm:$0xff]  ;;  %v2331_v32 = vld [vmem:[#allocation6 + $0x400] sm:$0xff] }
 0x434   :  { %6296 = vmatprep.subr.bf16.mxu0 %v6295_v59  ;;  %v2085_v59 = vld [vmem:[#allocation6 + $0x230] sm:$0xff]  ;;  %v2124_v45 = vld [vmem:[#allocation6 + $0x368] sm:$0xff]  ;;  %v6395_v61 = vpack.c.bf16 %v2126_v54, %v2122_v53 }
 0x435   :  { %6358 = vmatpush1.bf16.msra.mxu1 %v6357_v0  ;;  %v2087_v0 = vld [vmem:[#allocation6 + $0x240] sm:$0xff]  ;;  %v6331_v55 = vpack.c.bf16 %v2124_v45, %v2120_v44  ;;  %v2344_v44 = vld [vmem:[#allocation6 + $0x468] sm:$0xff]  ;;  %v2341_v54 = vld [vmem:[#allocation6 + $0x450] sm:$0xff] }
 0x436   :  { %6360 = vmatprep.subr.bf16.mxu1 %v6359_v1  ;;  %v2091_v1 = vld [vmem:[#allocation6 + $0x260] sm:$0xff] }
 0x437   :  { %6298 = vmatpush1.bf16.msra.mxu0 %v6297_v5  ;;  %v6377_v5 = vpack.c.bf16 %v2085_v59, %v2081_v58  ;;  %v6317_v9 = vpack.c.bf16 %v2091_v1, %v2087_v0  ;;  %v2128_v58 = vld [vmem:[#allocation6 + $0x388] sm:$0xff]  ;;  %v2130_v1 = vld [vmem:[#allocation6 + $0x398] sm:$0xff]  ;;  %v2339_v45 = vld [vmem:[#allocation6 + $0x440] sm:$0xff] }
 0x438   :  { %6300 = vmatprep.subr.bf16.mxu0 %v6299_v8  ;;  %v2093_v8 = vld [vmem:[#allocation6 + $0x270] sm:$0xff]  ;;  %v2132_v59 = vld [vmem:[#allocation6 + $0x3a8] sm:$0xff]  ;;  %v6399_v10 = vpack.c.bf16 %v2134_v2, %v2130_v1 }
 0x439   :  { %6362 = vmatpush1.bf16.msra.mxu1 %v6361_v15  ;;  %v2095_v15 = vld [vmem:[#allocation6 + $0x280] sm:$0xff]  ;;  %v6335_v4 = vpack.c.bf16 %v2132_v59, %v2128_v58  ;;  %v2352_v58 = vld [vmem:[#allocation6 + $0x4a8] sm:$0xff]  ;;  %v2349_v1 = vld [vmem:[#allocation6 + $0x490] sm:$0xff] }
 0x43a   :  { %6364 = vmatprep.subr.bf16.mxu1 %v6363_v18  ;;  %v2099_v18 = vld [vmem:[#allocation6 + $0x2a0] sm:$0xff] }
 0x43b   :  { %6302 = vmatpush1.bf16.msra.mxu0 %v6301_v21  ;;  %v6381_v21 = vpack.c.bf16 %v2093_v8, %v2089_v7  ;;  %v6321_v25 = vpack.c.bf16 %v2099_v18, %v2095_v15  ;;  %v2136_v7 = vld [vmem:[#allocation6 + $0x3c8] sm:$0xff]  ;;  %v2138_v18 = vld [vmem:[#allocation6 + $0x3d8] sm:$0xff]  ;;  %v2347_v59 = vld [vmem:[#allocation6 + $0x480] sm:$0xff] }
 0x43c   :  { %6304 = vmatprep.subr.bf16.mxu0 %v6303_v23  ;;  %v2101_v23 = vld [vmem:[#allocation6 + $0x2b0] sm:$0xff]  ;;  %v2140_v8 = vld [vmem:[#allocation6 + $0x3e8] sm:$0xff] }
 0x43d   :  { %6366 = vmatpush1.bf16.msra.mxu1 %v6365_v29  ;;  %v2103_v29 = vld [vmem:[#allocation6 + $0x2c0] sm:$0xff]  ;;  %v6339_v20 = vpack.c.bf16 %v2140_v8, %v2136_v7 }
 0x43e   :  { %6368 = vmatprep.subr.bf16.mxu1 %v6367_v30  ;;  %v2107_v30 = vld [vmem:[#allocation6 + $0x2e0] sm:$0xff] }
 0x43f   :  { %6306 = vmatpush1.bf16.msra.mxu0 %v6305_v43  ;;  %v6385_v43 = vpack.c.bf16 %v2101_v23, %v2097_v22  ;;  %v6325_v38 = vpack.c.bf16 %v2107_v30, %v2103_v29  ;;  %v6403_v23 = vpack.c.bf16 %v2142_v19, %v2138_v18  ;;  %v2014_v29 = vld [vmem:[#allocation3 + $0x18] sm:$0xff]  ;;  %v2332_v30 = vld [vmem:[#allocation6 + $0x408] sm:$0xff]  ;;  %v2361_v18 = vld [vmem:[#allocation6 + $0x4f0] sm:$0xff] }
 0x440   :  { %6308 = vmatprep.subr.bf16.mxu0 %v6307_v36  ;;  %v2109_v36 = vld [vmem:[#allocation6 + $0x2f0] sm:$0xff] }
 0x441   :  { %6370 = vmatpush1.bf16.msra.mxu1 %v6369_v47  ;;  %v2111_v47 = vld [vmem:[#allocation6 + $0x300] sm:$0xff] }
 0x442   :  { %6372 = vmatprep.subr.bf16.mxu1 %v6371_v42  ;;  %v2115_v42 = vld [vmem:[#allocation6 + $0x320] sm:$0xff] }
 0x443   :  { %6310 = vmatpush1.bf16.msra.mxu0 %v6309_v46  ;;  %v6389_v46 = vpack.c.bf16 %v2109_v36, %v2105_v35  ;;  %v6329_v52 = vpack.c.bf16 %v2115_v42, %v2111_v47  ;;  %v2334_v35 = vld [vmem:[#allocation6 + $0x418] sm:$0xff]  ;;  %v2340_v42 = vld [vmem:[#allocation6 + $0x448] sm:$0xff] }
 0x444   :  { %6312 = vmatprep.subr.bf16.mxu0 %v6311_v51  ;;  %v2117_v51 = vld [vmem:[#allocation6 + $0x330] sm:$0xff]  ;;  %v2338_v36 = vld [vmem:[#allocation6 + $0x438] sm:$0xff] }
 0x445   :  { %6374 = vmatpush1.bf16.msra.mxu1 %v6373_v56  ;;  %v2119_v56 = vld [vmem:[#allocation6 + $0x340] sm:$0xff]  ;;  %v6471_v39 = vpack.c.bf16 %v2338_v36, %v2334_v35  ;;  %v2376_v35 = vld [vmem:[#allocation6 + $0x568] sm:$0xff] }
 0x446   :  { %6376 = vmatprep.subr.bf16.mxu1 %v6375_v57  ;;  %v2123_v57 = vld [vmem:[#allocation6 + $0x360] sm:$0xff] }
 0x447   :  { %6314 = vmatpush1.bf16.msra.mxu0 %v6313_v60  ;;  %v6393_v60 = vpack.c.bf16 %v2117_v51, %v2113_v49  ;;  %v6333_v0 = vpack.c.bf16 %v2123_v57, %v2119_v56  ;;  %v2342_v49 = vld [vmem:[#allocation6 + $0x458] sm:$0xff]  ;;  %v2348_v56 = vld [vmem:[#allocation6 + $0x488] sm:$0xff] }
 0x448   :  { %6316 = vmatprep.subr.bf16.mxu0 %v6315_v63  ;;  %v2125_v63 = vld [vmem:[#allocation6 + $0x370] sm:$0xff]  ;;  %v2346_v51 = vld [vmem:[#allocation6 + $0x478] sm:$0xff] }
 0x449   :  { %6378 = vmatpush1.bf16.msra.mxu1 %v6377_v5  ;;  %v2127_v5 = vld [vmem:[#allocation6 + $0x380] sm:$0xff]  ;;  %v6475_v53 = vpack.c.bf16 %v2346_v51, %v2342_v49  ;;  %v2384_v49 = vld [vmem:[#allocation6 + $0x5a8] sm:$0xff] }
 0x44a   :  { %6380 = vmatprep.subr.bf16.mxu1 %v6379_v6  ;;  %v2131_v6 = vld [vmem:[#allocation6 + $0x3a0] sm:$0xff] }
 0x44b   :  { %6318 = vmatpush1.bf16.msra.mxu0 %v6317_v9  ;;  %v6397_v9 = vpack.c.bf16 %v2125_v63, %v2121_v62  ;;  %v6337_v15 = vpack.c.bf16 %v2131_v6, %v2127_v5  ;;  %v2350_v63 = vld [vmem:[#allocation6 + $0x498] sm:$0xff]  ;;  %v2356_v5 = vld [vmem:[#allocation6 + $0x4c8] sm:$0xff] }
 0x44c   :  { %6320 = vmatprep.subr.bf16.mxu0 %v6319_v14  ;;  %v2133_v14 = vld [vmem:[#allocation6 + $0x3b0] sm:$0xff]  ;;  %v2360_v6 = vld [vmem:[#allocation6 + $0x4e8] sm:$0xff] }
 0x44d   :  { %6382 = vmatpush1.bf16.msra.mxu1 %v6381_v21  ;;  %v2135_v21 = vld [vmem:[#allocation6 + $0x3c0] sm:$0xff]  ;;  %v6401_v22 = vpack.c.bf16 %v2133_v14, %v2129_v12  ;;  %v6419_v8 = vpack.c.bf16 %v2360_v6, %v2356_v5  ;;  %v2358_v12 = vld [vmem:[#allocation6 + $0x4d8] sm:$0xff]  ;;  %v2389_v6 = vld [vmem:[#allocation6 + $0x5d0] sm:$0xff] }
 0x44e   :  { %6384 = vmatprep.subr.bf16.mxu1 %v6383_v17  ;;  %v2139_v17 = vld [vmem:[#allocation6 + $0x3e0] sm:$0xff]  ;;  %v2362_v14 = vld [vmem:[#allocation6 + $0x4f8] sm:$0xff] }
 0x44f   :  { %6322 = vmatpush1.bf16.msra.mxu0 %v6321_v25  ;;  %v2137_v25 = vld [vmem:[#allocation6 + $0x3d0] sm:$0xff]  ;;  %v6341_v27 = vpack.c.bf16 %v2139_v17, %v2135_v21  ;;  %v2364_v21 = vld [vmem:[#allocation6 + $0x508] sm:$0xff]  ;;  %v2394_v5 = vld [vmem:[#allocation6 + $0x5f8] sm:$0xff] }
 0x450   :  { %6324 = vmatprep.subr.bf16.mxu0 %v6323_v28  ;;  %v6405_v28 = vpack.c.bf16 %v2141_v26, %v2137_v25  ;;  %v2368_v17 = vld [vmem:[#allocation6 + $0x528] sm:$0xff]  ;;  %v2367_v26 = vld [vmem:[#allocation6 + $0x520] sm:$0xff] }
 0x451   :  { %6386 = vmatpush1.bf16.msra.mxu1 %v6385_v43  ;;  %v6407_v43 = vpack.c.bf16 %v2336_v31, %v2332_v30  ;;  %v6423_v25 = vpack.c.bf16 %v2368_v17, %v2364_v21  ;;  %v2365_v31 = vld [vmem:[#allocation6 + $0x510] sm:$0xff]  ;;  %v2402_v21 = vld [vmem:[#allocation6 + $0x638] sm:$0xff] }
 0x452   :  { %6388 = vmatprep.subr.bf16.mxu1 %v6387_v33  ;;  %v2335_v33 = vld [vmem:[#allocation6 + $0x420] sm:$0xff]  ;;  %v2397_v17 = vld [vmem:[#allocation6 + $0x610] sm:$0xff] }
 0x453   :  { %6326 = vmatpush1.bf16.msra.mxu0 %v6325_v38  ;;  %v6409_v38 = vpack.c.bf16 %v2335_v33, %v2331_v32  ;;  %v2369_v32 = vld [vmem:[#allocation6 + $0x530] sm:$0xff]  ;;  %v2372_v33 = vld [vmem:[#allocation6 + $0x548] sm:$0xff] }
 0x454   :  { %6328 = vmatprep.subr.bf16.mxu0 %v6327_v41  ;;  %v2337_v41 = vld [vmem:[#allocation6 + $0x430] sm:$0xff]  ;;  %v6427_v36 = vpack.c.bf16 %v2376_v35, %v2372_v33 }
 0x455   :  { %6390 = vmatpush1.bf16.msra.mxu1 %v6389_v46  ;;  %v6473_v47 = vpack.c.bf16 %v2337_v41, %v2333_v40  ;;  %v6411_v46 = vpack.c.bf16 %v2344_v44, %v2340_v42  ;;  %v2374_v40 = vld [vmem:[#allocation6 + $0x558] sm:$0xff]  ;;  %v2373_v42 = vld [vmem:[#allocation6 + $0x550] sm:$0xff] }
 0x456   :  { %6392 = vmatprep.subr.bf16.mxu1 %v6391_v48  ;;  %v2343_v48 = vld [vmem:[#allocation6 + $0x460] sm:$0xff]  ;;  %v2377_v44 = vld [vmem:[#allocation6 + $0x570] sm:$0xff] }
 0x457   :  { %6330 = vmatpush1.bf16.msra.mxu0 %v6329_v52  ;;  %v6413_v52 = vpack.c.bf16 %v2343_v48, %v2339_v45  ;;  %v2380_v48 = vld [vmem:[#allocation6 + $0x588] sm:$0xff]  ;;  %v2405_v33 = vld [vmem:[#allocation6 + $0x650] sm:$0xff] }
 0x458   :  { %6332 = vmatprep.subr.bf16.mxu0 %v6331_v55  ;;  %v2345_v55 = vld [vmem:[#allocation6 + $0x470] sm:$0xff]  ;;  %v6431_v51 = vpack.c.bf16 %v2384_v49, %v2380_v48 }
 0x459   :  { %6394 = vmatpush1.bf16.msra.mxu1 %v6393_v60  ;;  %v6477_v57 = vpack.c.bf16 %v2345_v55, %v2341_v54  ;;  %v2351_v60 = vld [vmem:[#allocation6 + $0x4a0] sm:$0xff]  ;;  %v2382_v54 = vld [vmem:[#allocation6 + $0x598] sm:$0xff]  ;;  %v2409_v35 = vld [vmem:[#allocation6 + $0x670] sm:$0xff] }
 0x45a   :  { %6396 = vmatprep.subr.bf16.mxu1 %v6395_v61  ;;  %v6415_v61 = vpack.c.bf16 %v2352_v58, %v2348_v56  ;;  %v6417_v62 = vpack.c.bf16 %v2351_v60, %v2347_v59  ;;  %v2386_v56 = vld [vmem:[#allocation6 + $0x5b8] sm:$0xff]  ;;  %v2385_v58 = vld [vmem:[#allocation6 + $0x5b0] sm:$0xff] }
 0x45b   :  { %6334 = vmatpush1.bf16.msra.mxu0 %v6333_v0  ;;  %v2354_v0 = vld [vmem:[#allocation6 + $0x4b8] sm:$0xff]  ;;  %v6495_v59 = vpack.c.bf16 %v2386_v56, %v2382_v54  ;;  %v2413_v48 = vld [vmem:[#allocation6 + $0x690] sm:$0xff]  ;;  %v2424_v54 = vld [vmem:[#allocation6 + $0x6e8] sm:$0xff] }
 0x45c   :  { %6336 = vmatprep.subr.bf16.mxu0 %v6335_v4  ;;  %v6479_v2 = vpack.c.bf16 %v2354_v0, %v2350_v63  ;;  %v2353_v4 = vld [vmem:[#allocation6 + $0x4b0] sm:$0xff]  ;;  %v2387_v0 = vld [vmem:[#allocation6 + $0x5c0] sm:$0xff] }
 0x45d   :  { %6398 = vmatpush1.bf16.msra.mxu1 %v6397_v9  ;;  %v6481_v7 = vpack.c.bf16 %v2353_v4, %v2349_v1  ;;  %v2355_v9 = vld [vmem:[#allocation6 + $0x4c0] sm:$0xff]  ;;  %v2417_v49 = vld [vmem:[#allocation6 + $0x6b0] sm:$0xff] }
 0x45e   :  { %6400 = vmatprep.subr.bf16.mxu1 %v6399_v10  ;;  %v2359_v10 = vld [vmem:[#allocation6 + $0x4e0] sm:$0xff] }
 0x45f   :  { %6338 = vmatpush1.bf16.msra.mxu0 %v6337_v15  ;;  %v2357_v15 = vld [vmem:[#allocation6 + $0x4d0] sm:$0xff]  ;;  %v6421_v19 = vpack.c.bf16 %v2359_v10, %v2355_v9  ;;  %v2391_v1 = vld [vmem:[#allocation6 + $0x5e0] sm:$0xff]  ;;  %v2396_v10 = vld [vmem:[#allocation6 + $0x608] sm:$0xff] }
 0x460   :  { %6340 = vmatprep.subr.bf16.mxu0 %v6339_v20  ;;  %v6483_v20 = vpack.c.bf16 %v2362_v14, %v2358_v12  ;;  %v6437_v4 = vpack.c.bf16 %v2391_v1, %v2387_v0  ;;  %v2400_v12 = vld [vmem:[#allocation6 + $0x628] sm:$0xff]  ;;  %v2419_v56 = vld [vmem:[#allocation6 + $0x6c0] sm:$0xff] }
 0x461   :  { %6402 = vmatpush1.bf16.msra.mxu1 %v6401_v22  ;;  %v2363_v22 = vld [vmem:[#allocation6 + $0x500] sm:$0xff]  ;;  %v6439_v14 = vpack.c.bf16 %v2400_v12, %v2396_v10  ;;  %v2428_v1 = vld [vmem:[#allocation6 + $0x708] sm:$0xff]  ;;  %v2429_v10 = vld [vmem:[#allocation6 + $0x710] sm:$0xff] }
 0x462   :  { %6404 = vmatprep.subr.bf16.mxu1 %v6403_v23  ;;  %v6485_v23 = vpack.c.bf16 %v2361_v18, %v2357_v15  ;;  %v6425_v30 = vpack.c.bf16 %v2367_v26, %v2363_v22  ;;  %v2395_v15 = vld [vmem:[#allocation6 + $0x600] sm:$0xff]  ;;  %v2401_v22 = vld [vmem:[#allocation6 + $0x630] sm:$0xff]  ;;  %v2404_v26 = vld [vmem:[#allocation6 + $0x648] sm:$0xff] }
 0x463   :  { %6342 = vmatpush1.bf16.msra.mxu0 %v6341_v27  ;;  %v2366_v27 = vld [vmem:[#allocation6 + $0x518] sm:$0xff]  ;;  %v2399_v18 = vld [vmem:[#allocation6 + $0x620] sm:$0xff]  ;;  %v2433_v12 = vld [vmem:[#allocation6 + $0x730] sm:$0xff] }
 0x464   :  { %6408 = vmatprep.subr.bf16.mxu0 %v6407_v43  ;;  %v6489_v43 = vpack.c.bf16 %v2369_v32, %v2365_v31  ;;  %v2406_v31 = vld [vmem:[#allocation6 + $0x658] sm:$0xff] }
 0x465   :  { %6406 = vmatpush1.bf16.msra.mxu1 %v6405_v28  ;;  %v2370_v28 = vld [vmem:[#allocation6 + $0x538] sm:$0xff] }
 0x466   :  { %2230 = vmatmul.mubr.f32.vlgmr.msra.gmra.mrb[12].mxu0 %v2014_v29  ;;  %6472 = vmatprep.subr.bf16.mxu1 %v6471_v39  ;;  %v2375_v39 = vld [vmem:[#allocation6 + $0x560] sm:$0xff] }
 0x467   :  { %6410 = vmatpush1.bf16.msra.mxu0 %v6409_v38  ;;  %v2371_v38 = vld [vmem:[#allocation6 + $0x540] sm:$0xff] }
 0x468   :  { %2301 = vmatmul.mubr.f32.vlgmr.msra.gmra.mrb[12].mxu1 %v2014_v29  ;;  %6412 = vmatprep.subr.bf16.mxu0 %v6411_v46  ;;  %v6487_v29 = vpack.c.bf16 %v2370_v28, %v2366_v27  ;;  %v6429_v41 = vpack.c.bf16 %v2375_v39, %v2371_v38  ;;  %v6493_v46 = vpack.c.bf16 %v2377_v44, %v2373_v42  ;;  %v2408_v27 = vld [vmem:[#allocation6 + $0x668] sm:$0xff]  ;;  %v2415_v42 = vld [vmem:[#allocation6 + $0x6a0] sm:$0xff]  ;;  %v2414_v44 = vld [vmem:[#allocation6 + $0x698] sm:$0xff] }
 0x469   :  { %6474 = vmatpush1.bf16.msra.mxu1 %v6473_v47  ;;  %v2378_v47 = vld [vmem:[#allocation6 + $0x578] sm:$0xff]  ;;  %v6443_v28 = vpack.c.bf16 %v2408_v27, %v2404_v26  ;;  %v6509_v38 = vpack.c.bf16 %v2409_v35, %v2405_v33  ;;  %v2412_v39 = vld [vmem:[#allocation6 + $0x688] sm:$0xff]  ;;  %v2437_v26 = vld [vmem:[#allocation6 + $0x750] sm:$0xff] }
 0x46a   :  { %6476 = vmatprep.subr.bf16.mxu1 %v6475_v53  ;;  %v6491_v45 = vpack.c.bf16 %v2378_v47, %v2374_v40  ;;  %v2383_v53 = vld [vmem:[#allocation6 + $0x5a0] sm:$0xff]  ;;  %v2416_v40 = vld [vmem:[#allocation6 + $0x6a8] sm:$0xff]  ;;  %v2441_v27 = vld [vmem:[#allocation6 + $0x770] sm:$0xff] }
 0x46b   :  { %6414 = vmatpush1.bf16.msra.mxu0 %v6413_v52  ;;  %v2379_v52 = vld [vmem:[#allocation6 + $0x580] sm:$0xff]  ;;  %v2446_v35 = vld [vmem:[#allocation6 + $0x798] sm:$0xff] }
 0x46c   :  { %6416 = vmatprep.subr.bf16.mxu0 %v6415_v61  ;;  %v6433_v55 = vpack.c.bf16 %v2383_v53, %v2379_v52  ;;  %v2388_v61 = vld [vmem:[#allocation6 + $0x5c8] sm:$0xff]  ;;  %v2411_v47 = vld [vmem:[#allocation6 + $0x680] sm:$0xff]  ;;  %v6513_v52 = vpack.c.bf16 %v2417_v49, %v2413_v48  ;;  %v2454_v49 = vld [vmem:[#allocation6 + $0x7d8] sm:$0xff] }
 0x46d   :  { %6478 = vmatpush1.bf16.msra.mxu1 %v6477_v57  ;;  %v2381_v57 = vld [vmem:[#allocation6 + $0x590] sm:$0xff]  ;;  %v2420_v53 = vld [vmem:[#allocation6 + $0x6c8] sm:$0xff]  ;;  %v2447_v33 = vld [vmem:[#allocation6 + $0x7a0] sm:$0xff] }
 0x46e   :  { %6480 = vmatprep.subr.bf16.mxu1 %v6479_v2  ;;  %v6497_v60 = vpack.c.bf16 %v2385_v58, %v2381_v57  ;;  %v2390_v2 = vld [vmem:[#allocation6 + $0x5d8] sm:$0xff]  ;;  %v2423_v57 = vld [vmem:[#allocation6 + $0x6e0] sm:$0xff] }
 0x46f   :  { %6418 = vmatpush1.bf16.msra.mxu0 %v6417_v62  ;;  %v2392_v62 = vld [vmem:[#allocation6 + $0x5e8] sm:$0xff]  ;;  %v2422_v58 = vld [vmem:[#allocation6 + $0x6d8] sm:$0xff] }
 0x470   :  { %6420 = vmatprep.subr.bf16.mxu0 %v6419_v8  ;;  %v6435_v63 = vpack.c.bf16 %v2392_v62, %v2388_v61  ;;  %v6499_v8 = vpack.c.bf16 %v2394_v5, %v2390_v2  ;;  %v2421_v61 = vld [vmem:[#allocation6 + $0x6d0] sm:$0xff]  ;;  %v2432_v2 = vld [vmem:[#allocation6 + $0x728] sm:$0xff]  ;;  %v2427_v5 = vld [vmem:[#allocation6 + $0x700] sm:$0xff] }
 0x471   :  { %6482 = vmatpush1.bf16.msra.mxu1 %v6481_v7  ;;  %v2393_v7 = vld [vmem:[#allocation6 + $0x5f0] sm:$0xff] }
 0x472   :  { %6484 = vmatprep.subr.bf16.mxu1 %v6483_v20  ;;  %v6501_v9 = vpack.c.bf16 %v2393_v7, %v2389_v6  ;;  %v6441_v20 = vpack.c.bf16 %v2399_v18, %v2395_v15  ;;  %v2425_v62 = vld [vmem:[#allocation6 + $0x6f0] sm:$0xff]  ;;  %v2431_v6 = vld [vmem:[#allocation6 + $0x720] sm:$0xff]  ;;  %v2430_v7 = vld [vmem:[#allocation6 + $0x718] sm:$0xff]  ;;  %v6521_v15 = vpack.c.bf16 %v2433_v12, %v2429_v10 }
 0x473   :  { %6422 = vmatpush1.bf16.msra.mxu0 %v6421_v19  ;;  %v2398_v19 = vld [vmem:[#allocation6 + $0x618] sm:$0xff]  ;;  %v6517_v0 = vpack.c.bf16 %v2425_v62, %v2421_v61  ;;  %v2436_v18 = vld [vmem:[#allocation6 + $0x748] sm:$0xff] }
 0x474   :  { %6424 = vmatprep.subr.bf16.mxu0 %v6423_v25  ;;  %v6505_v25 = vpack.c.bf16 %v2401_v22, %v2397_v17  ;;  %v2439_v17 = vld [vmem:[#allocation6 + $0x760] sm:$0xff]  ;;  %v2438_v22 = vld [vmem:[#allocation6 + $0x758] sm:$0xff] }
 0x475   :  { %6486 = vmatpush1.bf16.msra.mxu1 %v6485_v23  ;;  %v6503_v23 = vpack.c.bf16 %v2402_v21, %v2398_v19  ;;  %v2440_v19 = vld [vmem:[#allocation6 + $0x768] sm:$0xff]  ;;  %v2435_v21 = vld [vmem:[#allocation6 + $0x740] sm:$0xff]  ;;  %v2654_v61 = vld [vmem:[#allocation6 + $0x18] sm:$0xff] }
 0x476   :  { %6488 = vmatprep.subr.bf16.mxu1 %v6487_v29  ;;  %v2403_v29 = vld [vmem:[#allocation6 + $0x640] sm:$0xff]  ;;  %v2658_v62 = vld [vmem:[#allocation6 + $0x38] sm:$0xff] }
 0x477   :  { %6426 = vmatpush1.bf16.msra.mxu0 %v6425_v30  ;;  %v2407_v30 = vld [vmem:[#allocation6 + $0x660] sm:$0xff] }
 0x478   :  { %6428 = vmatprep.subr.bf16.mxu0 %v6427_v36  ;;  %v6445_v32 = vpack.c.bf16 %v2407_v30, %v2403_v29  ;;  %v6525_v29 = vpack.c.bf16 %v2441_v27, %v2437_v26  ;;  %v2444_v30 = vld [vmem:[#allocation6 + $0x788] sm:$0xff] }
 0x479   :  { %6490 = vmatpush1.bf16.msra.mxu1 %v6489_v43  ;;  %v2410_v43 = vld [vmem:[#allocation6 + $0x678] sm:$0xff] }
 0x47a   :  { %6492 = vmatprep.subr.bf16.mxu1 %v6491_v45  ;;  %v6507_v36 = vpack.c.bf16 %v2410_v43, %v2406_v31  ;;  %v6449_v45 = vpack.c.bf16 %v2415_v42, %v2411_v47  ;;  %v2448_v31 = vld [vmem:[#allocation6 + $0x7a8] sm:$0xff] }
 0x47b   :  { %6430 = vmatpush1.bf16.msra.mxu0 %v6429_v41  ;;  %v6447_v41 = vpack.c.bf16 %v2416_v40, %v2412_v39  ;;  %v6463_v43 = vpack.c.bf16 %v2448_v31, %v2444_v30  ;;  %v2445_v40 = vld [vmem:[#allocation6 + $0x790] sm:$0xff]  ;;  %v2452_v47 = vld [vmem:[#allocation6 + $0x7c8] sm:$0xff] }
 0x47c   :  { %6432 = vmatprep.subr.bf16.mxu0 %v6431_v51 }
 0x47d   :  { %6494 = vmatpush1.bf16.msra.mxu1 %v6493_v46  ;;  %v2418_v46 = vld [vmem:[#allocation6 + $0x6b8] sm:$0xff] }
 0x47e   :  { %6496 = vmatprep.subr.bf16.mxu1 %v6495_v59  ;;  %v6511_v51 = vpack.c.bf16 %v2418_v46, %v2414_v44  ;;  %v6453_v59 = vpack.c.bf16 %v2423_v57, %v2419_v56  ;;  %v2456_v44 = vld [vmem:[#allocation6 + $0x7e8] sm:$0xff]  ;;  %v2455_v46 = vld [vmem:[#allocation6 + $0x7e0] sm:$0xff] }
 0x47f   :  { %6434 = vmatpush1.bf16.msra.mxu0 %v6433_v55  ;;  %v6451_v55 = vpack.c.bf16 %v2424_v54, %v2420_v53  ;;  %v6467_v48 = vpack.c.bf16 %v2456_v44, %v2452_v47  ;;  %v2652_v56 = vld [vmem:[#allocation6 + $0x8] sm:$0xff] }
 0x480   :  { %6436 = vmatprep.subr.bf16.mxu0 %v6435_v63  ;;  %v2656_v57 = vld [vmem:[#allocation6 + $0x28] sm:$0xff] }
 0x481   :  { %6498 = vmatpush1.bf16.msra.mxu1 %v6497_v60  ;;  %v2426_v60 = vld [vmem:[#allocation6 + $0x6f8] sm:$0xff] }
 0x482   :  { %6500 = vmatprep.subr.bf16.mxu1 %v6499_v8  ;;  %v6515_v63 = vpack.c.bf16 %v2426_v60, %v2422_v58  ;;  %v6457_v8 = vpack.c.bf16 %v2431_v6, %v2427_v5  ;;  %v6535_v58 = vpack.c.bf16 %v2656_v57, %v2652_v56  ;;  %v1823_v60 = vld [vmem:[#allocation8 + $0x4] sm:$0xf] }
 0x483   :  { %6438 = vmatpush1.bf16.msra.mxu0 %v6437_v4  ;;  %v6455_v4 = vpack.c.bf16 %v2432_v2, %v2428_v1  ;;  %v1832_v1 = vrot.slane %v1823_v60, %v8204_v13  ;;  %v1840_v12 = vrot.slane %v1823_v60, %v8208_v16 }
 0x484   :  { %6440 = vmatprep.subr.bf16.mxu0 %v6439_v14 }
 0x485   :  { %6502 = vmatpush1.bf16.msra.mxu1 %v6501_v9  ;;  %v2434_v9 = vld [vmem:[#allocation6 + $0x738] sm:$0xff] }
 0x486   :  { %6504 = vmatprep.subr.bf16.mxu1 %v6503_v23  ;;  %v6519_v14 = vpack.c.bf16 %v2434_v9, %v2430_v7  ;;  %v6461_v23 = vpack.c.bf16 %v2439_v17, %v2435_v21 }
 0x487   :  { %6442 = vmatpush1.bf16.msra.mxu0 %v6441_v20  ;;  %v6459_v20 = vpack.c.bf16 %v2440_v19, %v2436_v18 }
 0x488   :  { %6444 = vmatprep.subr.bf16.mxu0 %v6443_v28 }
 0x489   :  { %6506 = vmatpush1.bf16.msra.mxu1 %v6505_v25  ;;  %v2442_v25 = vld [vmem:[#allocation6 + $0x778] sm:$0xff] }
 0x48a   :  { %6508 = vmatprep.subr.bf16.mxu1 %v6507_v36  ;;  %v6523_v28 = vpack.c.bf16 %v2442_v25, %v2438_v22  ;;  %v2450_v36 = vld [vmem:[#allocation6 + $0x7b8] sm:$0xff] }
 0x48b   :  { %6446 = vmatpush1.bf16.msra.mxu0 %v6445_v32  ;;  %v2443_v32 = vld [vmem:[#allocation6 + $0x780] sm:$0xff]  ;;  %v6527_v39 = vpack.c.bf16 %v2450_v36, %v2446_v35 }
 0x48c   :  { %6448 = vmatprep.subr.bf16.mxu0 %v6447_v41  ;;  %v2449_v41 = vld [vmem:[#allocation6 + $0x7b0] sm:$0xff]  ;;  %v2143_v35 = vld [vmem:[#allocation8] sm:$0xf] }
 0x48d   :  { %6510 = vmatpush1.bf16.msra.mxu1 %v6509_v38  ;;  %v6465_v38 = vpack.c.bf16 %v2447_v33, %v2443_v32  ;;  %v6529_v42 = vpack.c.bf16 %v2449_v41, %v2445_v40  ;;  %v2148_v36 = vrot.slane %v2143_v35, %v8202_v11  ;;  %v2160_v44 = vrot.slane %v2143_v35, %v8208_v16 }
 0x48e   :  { %6512 = vmatprep.subr.bf16.mxu1 %v6511_v51  ;;  %v2458_v51 = vld [vmem:[#allocation6 + $0x7f8] sm:$0xff] }
 0x48f   :  { %6450 = vmatpush1.bf16.msra.mxu0 %v6449_v45  ;;  %v2451_v45 = vld [vmem:[#allocation6 + $0x7c0] sm:$0xff]  ;;  %v6531_v54 = vpack.c.bf16 %v2458_v51, %v2454_v49  ;;  %v2156_v49 = vrot.slane %v2143_v35, %v8211_v24 }
 0x490   :  { %6452 = vmatprep.subr.bf16.mxu0 %v6451_v55  ;;  %v6469_v53 = vpack.c.bf16 %v2455_v46, %v2451_v45  ;;  %v2457_v55 = vld [vmem:[#allocation6 + $0x7f0] sm:$0xff] }
 0x491   :  { %6514 = vmatpush1.bf16.msra.mxu1 %v6513_v52  ;;  %v2453_v52 = vld [vmem:[#allocation6 + $0x7d0] sm:$0xff] }
 0x492   :  { %6516 = vmatprep.subr.bf16.mxu1 %v6515_v63  ;;  %v6599_v63 = vpack.c.bf16 %v2658_v62, %v2654_v61 }
 0x493   :  { %6454 = vmatpush1.bf16.msra.mxu0 %v6453_v59  ;;  %v6533_v59 = vpack.c.bf16 %v2457_v55, %v2453_v52 }
 0x494   :  { %6456 = vmatprep.subr.bf16.mxu0 %v6455_v4 }
 0x495   :  { %6518 = vmatpush1.bf16.msra.mxu1 %v6517_v0  ;;  %v1828_v0 = vrot.slane %v1823_v60, %v8202_v11 }
 0x496   :  { %6520 = vmatprep.subr.bf16.mxu1 %v6519_v14 }
 0x497   :  { %6458 = vmatpush1.bf16.msra.mxu0 %v6457_v8 }
 0x498   :  { %6460 = vmatprep.subr.bf16.mxu0 %v6459_v20 }
 0x499   :  { %6522 = vmatpush1.bf16.msra.mxu1 %v6521_v15  ;;  %v1836_v15 = vrot.slane %v1823_v60, %v8211_v24 }
 0x49a   :  { %6524 = vmatprep.subr.bf16.mxu1 %v6523_v28 }
 0x49b   :  { %6462 = vmatpush1.bf16.msra.mxu0 %v6461_v23 }
 0x49c   :  { %6464 = vmatprep.subr.bf16.mxu0 %v6463_v43 }
 0x49d   :  { %6526 = vmatpush1.bf16.msra.mxu1 %v6525_v29 }
 0x49e   :  { %6528 = vmatprep.subr.bf16.mxu1 %v6527_v39 }
 0x49f   :  { %6466 = vmatpush1.bf16.msra.mxu0 %v6465_v38  ;;  %v2152_v38 = vrot.slane %v2143_v35, %v8204_v13  ;;  %v2680_v35 = vld [vmem:[#allocation6 + $0xe8] sm:$0xff] }
 0x4a0   :  { %6468 = vmatprep.subr.bf16.mxu0 %v6467_v48 }
 0x4a1   :  { %6530 = vmatpush1.bf16.msra.mxu1 %v6529_v42 }
 0x4a2   :  { %6532 = vmatprep.subr.bf16.mxu1 %v6531_v54 }
 0x4a3   :  { %6470 = vmatpush1.bf16.msra.mxu0 %v6469_v53 }
 0x4a4   :  { %6536 = vmatprep.subr.bf16.mxu0 %v6535_v58 }
 0x4a5   :  { %6534 = vmatpush1.bf16.msra.mxu1 %v6533_v59 }
 0x4a6   :  { %6600 = vmatprep.subr.bf16.mxu1 %v6599_v63 }
 0x4f9   :  { %v1911_v2 = vpop.f32.mrb[10].mxu0  ;;  %v1982_v4 = vpop.f32.mrb[10].mxu1 }
 0x4fa   :  { %v1912_v5 = vadd.f32 %v1911_v2, %v1828_v0  ;;  %v1913_v6 = vpop.f32.mrb[11].mxu0  ;;  %v1984_v7 = vpop.f32.mrb[11].mxu1  ;;  %v1983_v19 = vadd.f32 %v1982_v4, %v1836_v15  ;;  %v2655_v2 = vld [vmem:[#allocation6 + $0x20] sm:$0xff] }
 0x4fb   :  { %v1914_v8 = vadd.f32 %v1913_v6, %v1832_v1  ;;  %v1985_v14 = vadd.f32 %v1984_v7, %v1840_v12  ;;  %v2651_v1 = vld [vmem:[#allocation6] sm:$0xff]  ;;  %v2664_v6 = vld [vmem:[#allocation6 + $0x68] sm:$0xff]  ;;  %v2653_v7 = vld [vmem:[#allocation6 + $0x10] sm:$0xff] }
 0x4fc   :  { %v5409_v9 = vmul.f32 -1.442695, %v1912_v5  ;;  %v2660_v5 = vld [vmem:[#allocation6 + $0x48] sm:$0xff]  ;;  %v2662_v12 = vld [vmem:[#allocation6 + $0x58] sm:$0xff] }
 0x4fd   :  { %v5410_v10 = vmul.f32 -1.442695, %v1914_v8  ;;  %v5411_v18 = vmul.f32 -1.442695, %v1985_v14  ;;  %v2657_v8 = vld [vmem:[#allocation6 + $0x30] sm:$0xff]  ;;  %v2666_v14 = vld [vmem:[#allocation6 + $0x78] sm:$0xff] }
 0x4fe   :  { %7701 = vpow2.f32 %v5409_v9 }
 0x4ff   :  { %7703 = vpow2.f32 %v5410_v10  ;;  %v6537_v10 = vpack.c.bf16 %v2655_v2, %v2651_v1  ;;  %v2685_v1 = vld [vmem:[#allocation6 + $0x110] sm:$0xff] }
 0x500   :  { %7705 = vpow2.f32 %v5411_v18  ;;  %v6539_v18 = vpack.c.bf16 %v2664_v6, %v2660_v5  ;;  %v2689_v2 = vld [vmem:[#allocation6 + $0x130] sm:$0xff]  ;;  %v2694_v5 = vld [vmem:[#allocation6 + $0x158] sm:$0xff] }
 0x501   :  { %7707 = vtanh.f32 %v1983_v19  ;;  %v2659_v19 = vld [vmem:[#allocation6 + $0x40] sm:$0xff]  ;;  %v2698_v6 = vld [vmem:[#allocation6 + $0x178] sm:$0xff] }
 0x508   :  { %v7702_v20 = vpop.eup %7701 }
 0x509   :  { %v7704_v21 = vpop.eup %7703  ;;  %v1990_v17 = vadd.f32 1.0, %v7702_v20  ;;  %v2668_v20 = vld [vmem:[#allocation6 + $0x88] sm:$0xff] }
 0x50a   :  { %v1996_v22 = vadd.f32 1.0, %v7704_v21  ;;  %v7706_v23 = vpop.eup %7705  ;;  %v2672_v21 = vld [vmem:[#allocation6 + $0xa8] sm:$0xff] }
 0x50b   :  { %7709 = vrcp.f32 %v1990_v17  ;;  %v7708_v25 = vpop.eup %7707  ;;  %v2003_v29 = vadd.f32 1.0, %v7706_v23  ;;  %v6601_v17 = vpack.c.bf16 %v2657_v8, %v2653_v7  ;;  %v2661_v23 = vld [vmem:[#allocation6 + $0x50] sm:$0xff]  ;;  %v2691_v8 = vld [vmem:[#allocation6 + $0x140] sm:$0xff] }
 0x50c   :  { %7711 = vrcp.f32 %v1996_v22  ;;  %v6603_v22 = vpack.c.bf16 %v2666_v14, %v2662_v12  ;;  %v2704_v12 = vld [vmem:[#allocation6 + $0x1a8] sm:$0xff]  ;;  %v6617_v14 = vpack.c.bf16 %v2689_v2, %v2685_v1  ;;  %v2727_v1 = vld [vmem:[#allocation6 + $0x260] sm:$0xff] }
 0x50d   :  { %7713 = vrcp.f32 %v2003_v29  ;;  %v6543_v29 = vpack.c.bf16 %v2672_v21, %v2668_v20  ;;  %v2702_v20 = vld [vmem:[#allocation6 + $0x198] sm:$0xff]  ;;  %v2732_v2 = vld [vmem:[#allocation6 + $0x288] sm:$0xff] }
 0x50e   :  { %v2706_v21 = vld [vmem:[#allocation6 + $0x1b8] sm:$0xff] }
 0x515   :  { %v7710_v26 = vpop.eup %7709 }
 0x516   :  { %v7712_v27 = vpop.eup %7711  ;;  %v2007_v28 = vmul.f32 %v7710_v26, %v7708_v25  ;;  %v2665_v25 = vld [vmem:[#allocation6 + $0x70] sm:$0xff] }
 0x517   :  { %v2006_v30 = vmul.f32 %v7712_v27, %v8241_v34  ;;  %v7714_v32 = vpop.eup %7713  ;;  %v2670_v27 = vld [vmem:[#allocation6 + $0x98] sm:$0xff] }
 0x519   :  { %v8261_v31 = vadd.f32 %v2007_v28, %v2006_v30  ;;  %v2674_v28 = vld [vmem:[#allocation6 + $0xb8] sm:$0xff]  ;;  %v2667_v30 = vld [vmem:[#allocation6 + $0x80] sm:$0xff] }
 0x51b   :  { %7715 = vtanh.f32 %v8261_v31 }
 0x525   :  { %v7716_v43 = vpop.eup %7715 }
 0x526   :  { %v8264_v33 = vmul.f32 %v7716_v43, %v7714_v32  ;;  %v2671_v32 = vld [vmem:[#allocation6 + $0xa0] sm:$0xff]  ;;  %v2676_v43 = vld [vmem:[#allocation6 + $0xc8] sm:$0xff] }
 0x528   :  { %2545 = vmatprep.mubr.f32.mxu0 %v8264_v33  ;;  %2616 = vmatprep.mubr.f32.mxu1 %v8264_v33 }
 0x539   :  { %v2231_v39 = vpop.f32.mrb[12].mxu0 }
 0x53a   :  { %v2232_v34 = vadd.f32 %v2231_v39, %v2148_v36  ;;  %v2233_v40 = vpop.f32.mrb[13].mxu0  ;;  %v6605_v36 = vpack.c.bf16 %v2665_v25, %v2661_v23  ;;  %v2669_v39 = vld [vmem:[#allocation6 + $0x90] sm:$0xff]  ;;  %v2703_v23 = vld [vmem:[#allocation6 + $0x1a0] sm:$0xff]  ;;  %v2708_v25 = vld [vmem:[#allocation6 + $0x1c8] sm:$0xff] }
 0x53b   :  { %v2234_v41 = vadd.f32 %v2233_v40, %v2152_v38  ;;  %v2302_v47 = vpop.f32.mrb[12].mxu1  ;;  %v6607_v38 = vpack.c.bf16 %v2674_v28, %v2670_v27  ;;  %v6545_v40 = vpack.c.bf16 %v2671_v32, %v2667_v30  ;;  %v6623_v28 = vpack.c.bf16 %v2706_v21, %v2702_v20  ;;  %v2705_v30 = vld [vmem:[#allocation6 + $0x1b0] sm:$0xff] }
 0x53c   :  { %v5412_v42 = vmul.f32 -1.442695, %v2232_v34  ;;  %v2304_v45 = vpop.f32.mrb[13].mxu1  ;;  %v2303_v52 = vadd.f32 %v2302_v47, %v2156_v49  ;;  %v2673_v34 = vld [vmem:[#allocation6 + $0xb0] sm:$0xff]  ;;  %v2682_v47 = vld [vmem:[#allocation6 + $0xf8] sm:$0xff] }
 0x53d   :  { %v5413_v46 = vmul.f32 -1.442695, %v2234_v41  ;;  %v2305_v48 = vadd.f32 %v2304_v45, %v2160_v44  ;;  %v2678_v41 = vld [vmem:[#allocation6 + $0xd8] sm:$0xff]  ;;  %v2675_v44 = vld [vmem:[#allocation6 + $0xc0] sm:$0xff]  ;;  %v6609_v49 = vpack.c.bf16 %v2673_v34, %v2669_v39  ;;  %v2716_v34 = vld [vmem:[#allocation6 + $0x208] sm:$0xff] }
 0x53e   :  { %7717 = vpow2.f32 %v5412_v42  ;;  %v6547_v42 = vpack.c.bf16 %v2680_v35, %v2676_v43  ;;  %v2679_v45 = vld [vmem:[#allocation6 + $0xe0] sm:$0xff]  ;;  %v2710_v43 = vld [vmem:[#allocation6 + $0x1d8] sm:$0xff] }
 0x53f   :  { %7719 = vpow2.f32 %v5413_v46  ;;  %v5414_v51 = vmul.f32 -1.442695, %v2305_v48  ;;  %v2684_v46 = vld [vmem:[#allocation6 + $0x108] sm:$0xff]  ;;  %v2714_v35 = vld [vmem:[#allocation6 + $0x1f8] sm:$0xff]  ;;  %v2711_v39 = vld [vmem:[#allocation6 + $0x1e0] sm:$0xff] }
 0x540   :  { %v2688_v48 = vld [vmem:[#allocation6 + $0x128] sm:$0xff] }
 0x541   :  { %7721 = vpow2.f32 %v5414_v51  ;;  %v6611_v51 = vpack.c.bf16 %v2682_v47, %v2678_v41  ;;  %v6627_v47 = vpack.c.bf16 %v2714_v35, %v2710_v43 }
 0x542   :  { %7723 = vtanh.f32 %v2303_v52  ;;  %v2677_v52 = vld [vmem:[#allocation6 + $0xd0] sm:$0xff] }
 0x548   :  { %v7718_v53 = vpop.eup %7717 }
 0x549   :  { %v7720_v54 = vpop.eup %7719  ;;  %v2310_v55 = vadd.f32 1.0, %v7718_v53  ;;  %v2681_v53 = vld [vmem:[#allocation6 + $0xf0] sm:$0xff] }
 0x54a   :  { %v2316_v56 = vadd.f32 1.0, %v7720_v54  ;;  %v6549_v54 = vpack.c.bf16 %v2679_v45, %v2675_v44  ;;  %v2713_v44 = vld [vmem:[#allocation6 + $0x1f0] sm:$0xff] }
 0x54b   :  { %7725 = vrcp.f32 %v2310_v55  ;;  %v7722_v57 = vpop.eup %7721  ;;  %v2686_v55 = vld [vmem:[#allocation6 + $0x118] sm:$0xff] }
 0x54c   :  { %7727 = vrcp.f32 %v2316_v56  ;;  %v7724_v58 = vpop.eup %7723  ;;  %v2323_v60 = vadd.f32 1.0, %v7722_v57  ;;  %v2690_v56 = vld [vmem:[#allocation6 + $0x138] sm:$0xff]  ;;  %v6551_v57 = vpack.c.bf16 %v2688_v48, %v2684_v46 }
 0x54d   :  { %v2718_v46 = vld [vmem:[#allocation6 + $0x218] sm:$0xff] }
 0x54e   :  { %7729 = vrcp.f32 %v2323_v60  ;;  %v2692_v60 = vld [vmem:[#allocation6 + $0x148] sm:$0xff]  ;;  %v2722_v48 = vld [vmem:[#allocation6 + $0x238] sm:$0xff] }
 0x555   :  { %v7726_v59 = vpop.eup %7725 }
 0x556   :  { %v7728_v61 = vpop.eup %7727  ;;  %v2327_v62 = vmul.f32 %v7726_v59, %v7724_v58  ;;  %v2683_v58 = vld [vmem:[#allocation6 + $0x100] sm:$0xff] }
 0x557   :  { %v2326_v63 = vmul.f32 %v7728_v61, %v8253_v3  ;;  %v2663_v3 = vld [vmem:[#allocation6 + $0x60] sm:$0xff]  ;;  %v2696_v61 = vld [vmem:[#allocation6 + $0x168] sm:$0xff] }
 0x558   :  { %v7730_v4 = vpop.eup %7729  ;;  %v6541_v26 = vpack.c.bf16 %v2663_v3, %v2659_v19  ;;  %v2687_v59 = vld [vmem:[#allocation6 + $0x120] sm:$0xff]  ;;  %v6555_v7 = vpack.c.bf16 %v2696_v61, %v2692_v60  ;;  %v2697_v19 = vld [vmem:[#allocation6 + $0x170] sm:$0xff]  ;;  %v2726_v60 = vld [vmem:[#allocation6 + $0x258] sm:$0xff] }
 0x559   :  { %v8273_v0 = vadd.f32 %v2327_v62, %v2326_v63  ;;  %v6613_v62 = vpack.c.bf16 %v2681_v53, %v2677_v52  ;;  %v6615_v63 = vpack.c.bf16 %v2690_v56, %v2686_v55  ;;  %v2719_v52 = vld [vmem:[#allocation6 + $0x220] sm:$0xff]  ;;  %v2724_v53 = vld [vmem:[#allocation6 + $0x248] sm:$0xff]  ;;  %v6631_v56 = vpack.c.bf16 %v2722_v48, %v2718_v46  ;;  %v2730_v61 = vld [vmem:[#allocation6 + $0x278] sm:$0xff] }
 0x55b   :  { %7731 = vtanh.f32 %v8273_v0 }
 0x565   :  { %v7732_v9 = vpop.eup %7731 }
 0x566   :  { %v2330_v15 = vmul.f32 %v7732_v9, %v7730_v4  ;;  %v6553_v4 = vpack.c.bf16 %v2687_v59, %v2683_v58  ;;  %v2695_v9 = vld [vmem:[#allocation6 + $0x160] sm:$0xff]  ;;  %v2721_v58 = vld [vmem:[#allocation6 + $0x230] sm:$0xff] }
 0x567   :  { %v6557_v3 = vpack.c.bf16 %v2695_v9, %v2691_v8  ;;  %v2729_v8 = vld [vmem:[#allocation6 + $0x270] sm:$0xff] }
 0x568   :  { %2546 = vmatmul.mubr.f32.vlgmr.msra.gmra.mrb[14].mxu0 %v2330_v15  ;;  %2617 = vmatmul.mubr.f32.vlgmr.msra.gmra.mrb[14].mxu1 %v2330_v15 }
 0x569   :  { %6538 = vmatpush1.bf16.msra.mxu0 %v6537_v10  ;;  %2865 = vmatprep.mubr.f32.mxu0 %v2330_v15  ;;  %v2700_v10 = vld [vmem:[#allocation6 + $0x188] sm:$0xff] }
 0x56a   :  { %2936 = vmatprep.mubr.f32.mxu1 %v2330_v15  ;;  %6540 = vmatprep.subr.bf16.mxu0 %v6539_v18  ;;  %v6619_v15 = vpack.c.bf16 %v2698_v6, %v2694_v5  ;;  %v2693_v18 = vld [vmem:[#allocation6 + $0x150] sm:$0xff]  ;;  %v6635_v6 = vpack.c.bf16 %v2730_v61, %v2726_v60 }
 0x56b   :  { %6602 = vmatpush1.bf16.msra.mxu1 %v6601_v17  ;;  %v6559_v17 = vpack.c.bf16 %v2704_v12, %v2700_v10  ;;  %v6621_v27 = vpack.c.bf16 %v2697_v19, %v2693_v18  ;;  %v2734_v10 = vld [vmem:[#allocation6 + $0x298] sm:$0xff]  ;;  %v2735_v18 = vld [vmem:[#allocation6 + $0x2a0] sm:$0xff]  ;;  %v2740_v19 = vld [vmem:[#allocation6 + $0x2c8] sm:$0xff] }
 0x56c   :  { %6604 = vmatprep.subr.bf16.mxu1 %v6603_v22  ;;  %v2699_v22 = vld [vmem:[#allocation6 + $0x180] sm:$0xff]  ;;  %v2738_v12 = vld [vmem:[#allocation6 + $0x2b8] sm:$0xff] }
 0x56d   :  { %6542 = vmatpush1.bf16.msra.mxu0 %v6541_v26  ;;  %v2712_v26 = vld [vmem:[#allocation6 + $0x1e8] sm:$0xff]  ;;  %v6561_v32 = vpack.c.bf16 %v2703_v23, %v2699_v22  ;;  %v6639_v21 = vpack.c.bf16 %v2738_v12, %v2734_v10  ;;  %v2737_v22 = vld [vmem:[#allocation6 + $0x2b0] sm:$0xff] }
 0x56e   :  { %6544 = vmatprep.subr.bf16.mxu0 %v6543_v29  ;;  %v2701_v29 = vld [vmem:[#allocation6 + $0x190] sm:$0xff] }
 0x56f   :  { %6606 = vmatpush1.bf16.msra.mxu1 %v6605_v36  ;;  %v6563_v36 = vpack.c.bf16 %v2712_v26, %v2708_v25  ;;  %v6625_v41 = vpack.c.bf16 %v2705_v30, %v2701_v29  ;;  %v2742_v25 = vld [vmem:[#allocation6 + $0x2d8] sm:$0xff]  ;;  %v2743_v29 = vld [vmem:[#allocation6 + $0x2e0] sm:$0xff]  ;;  %v2748_v30 = vld [vmem:[#allocation6 + $0x308] sm:$0xff] }
 0x570   :  { %6608 = vmatprep.subr.bf16.mxu1 %v6607_v38  ;;  %v2707_v38 = vld [vmem:[#allocation6 + $0x1c0] sm:$0xff]  ;;  %v2746_v26 = vld [vmem:[#allocation6 + $0x2f8] sm:$0xff] }
 0x571   :  { %6546 = vmatpush1.bf16.msra.mxu0 %v6545_v40  ;;  %v2720_v40 = vld [vmem:[#allocation6 + $0x228] sm:$0xff]  ;;  %v6565_v45 = vpack.c.bf16 %v2711_v39, %v2707_v38  ;;  %v6643_v35 = vpack.c.bf16 %v2746_v26, %v2742_v25  ;;  %v2745_v38 = vld [vmem:[#allocation6 + $0x2f0] sm:$0xff] }
 0x572   :  { %6548 = vmatprep.subr.bf16.mxu0 %v6547_v42  ;;  %v2709_v42 = vld [vmem:[#allocation6 + $0x1d0] sm:$0xff] }
 0x573   :  { %6610 = vmatpush1.bf16.msra.mxu1 %v6609_v49  ;;  %v6567_v49 = vpack.c.bf16 %v2720_v40, %v2716_v34  ;;  %v6629_v55 = vpack.c.bf16 %v2713_v44, %v2709_v42  ;;  %v2750_v34 = vld [vmem:[#allocation6 + $0x318] sm:$0xff]  ;;  %v2751_v42 = vld [vmem:[#allocation6 + $0x320] sm:$0xff]  ;;  %v2756_v44 = vld [vmem:[#allocation6 + $0x348] sm:$0xff] }
 0x574   :  { %6612 = vmatprep.subr.bf16.mxu1 %v6611_v51  ;;  %v2715_v51 = vld [vmem:[#allocation6 + $0x200] sm:$0xff]  ;;  %v2754_v40 = vld [vmem:[#allocation6 + $0x338] sm:$0xff]  ;;  %v2773_v25 = vld [vmem:[#allocation6 + $0x3d0] sm:$0xff] }
 0x575   :  { %6550 = vmatpush1.bf16.msra.mxu0 %v6549_v54  ;;  %v2728_v54 = vld [vmem:[#allocation6 + $0x268] sm:$0xff]  ;;  %v6569_v59 = vpack.c.bf16 %v2719_v52, %v2715_v51  ;;  %v6647_v48 = vpack.c.bf16 %v2754_v40, %v2750_v34  ;;  %v2753_v51 = vld [vmem:[#allocation6 + $0x330] sm:$0xff] }
 0x576   :  { %6552 = vmatprep.subr.bf16.mxu0 %v6551_v57  ;;  %v2717_v57 = vld [vmem:[#allocation6 + $0x210] sm:$0xff] }
 0x577   :  { %6614 = vmatpush1.bf16.msra.mxu1 %v6613_v62  ;;  %v6571_v62 = vpack.c.bf16 %v2728_v54, %v2724_v53  ;;  %v6633_v5 = vpack.c.bf16 %v2721_v58, %v2717_v57  ;;  %v2758_v53 = vld [vmem:[#allocation6 + $0x358] sm:$0xff]  ;;  %v2759_v57 = vld [vmem:[#allocation6 + $0x360] sm:$0xff]  ;;  %v2764_v58 = vld [vmem:[#allocation6 + $0x388] sm:$0xff] }
 0x578   :  { %6616 = vmatprep.subr.bf16.mxu1 %v6615_v63  ;;  %v2723_v63 = vld [vmem:[#allocation6 + $0x240] sm:$0xff]  ;;  %v2762_v54 = vld [vmem:[#allocation6 + $0x378] sm:$0xff]  ;;  %v2777_v26 = vld [vmem:[#allocation6 + $0x3f0] sm:$0xff] }
 0x579   :  { %6554 = vmatpush1.bf16.msra.mxu0 %v6553_v4  ;;  %v2736_v4 = vld [vmem:[#allocation6 + $0x2a8] sm:$0xff]  ;;  %v6573_v9 = vpack.c.bf16 %v2727_v1, %v2723_v63  ;;  %v6651_v61 = vpack.c.bf16 %v2762_v54, %v2758_v53  ;;  %v2761_v63 = vld [vmem:[#allocation6 + $0x370] sm:$0xff] }
 0x57a   :  { %6556 = vmatprep.subr.bf16.mxu0 %v6555_v7  ;;  %v2725_v7 = vld [vmem:[#allocation6 + $0x250] sm:$0xff] }
 0x57b   :  { %6618 = vmatpush1.bf16.msra.mxu1 %v6617_v14  ;;  %v6575_v14 = vpack.c.bf16 %v2736_v4, %v2732_v2  ;;  %v6637_v20 = vpack.c.bf16 %v2729_v8, %v2725_v7  ;;  %v2766_v2 = vld [vmem:[#allocation6 + $0x398] sm:$0xff]  ;;  %v2767_v7 = vld [vmem:[#allocation6 + $0x3a0] sm:$0xff]  ;;  %v2772_v8 = vld [vmem:[#allocation6 + $0x3c8] sm:$0xff] }
 0x57c   :  { %6620 = vmatprep.subr.bf16.mxu1 %v6619_v15  ;;  %v2731_v15 = vld [vmem:[#allocation6 + $0x280] sm:$0xff]  ;;  %v2770_v4 = vld [vmem:[#allocation6 + $0x3b8] sm:$0xff] }
 0x57d   :  { %6558 = vmatpush1.bf16.msra.mxu0 %v6557_v3  ;;  %v2744_v3 = vld [vmem:[#allocation6 + $0x2e8] sm:$0xff]  ;;  %v6577_v23 = vpack.c.bf16 %v2735_v18, %v2731_v15  ;;  %v6655_v12 = vpack.c.bf16 %v2770_v4, %v2766_v2  ;;  %v2769_v15 = vld [vmem:[#allocation6 + $0x3b0] sm:$0xff]  ;;  %v2990_v2 = vld [vmem:[#allocation6 + $0x4b8] sm:$0xff] }
 0x57e   :  { %6560 = vmatprep.subr.bf16.mxu0 %v6559_v17  ;;  %v2733_v17 = vld [vmem:[#allocation6 + $0x290] sm:$0xff] }
 0x57f   :  { %6622 = vmatpush1.bf16.msra.mxu1 %v6621_v27  ;;  %v6579_v27 = vpack.c.bf16 %v2744_v3, %v2740_v19  ;;  %v6641_v43 = vpack.c.bf16 %v2737_v22, %v2733_v17  ;;  %v2774_v19 = vld [vmem:[#allocation6 + $0x3d8] sm:$0xff]  ;;  %v2775_v17 = vld [vmem:[#allocation6 + $0x3e0] sm:$0xff]  ;;  %v2985_v4 = vld [vmem:[#allocation6 + $0x490] sm:$0xff] }
 0x580   :  { %6624 = vmatprep.subr.bf16.mxu1 %v6623_v28  ;;  %v2739_v28 = vld [vmem:[#allocation6 + $0x2c0] sm:$0xff]  ;;  %v2778_v3 = vld [vmem:[#allocation6 + $0x3f8] sm:$0xff] }
 0x581   :  { %6562 = vmatpush1.bf16.msra.mxu0 %v6561_v32  ;;  %v2752_v32 = vld [vmem:[#allocation6 + $0x328] sm:$0xff]  ;;  %v6581_v39 = vpack.c.bf16 %v2743_v29, %v2739_v28  ;;  %v6661_v28 = vpack.c.bf16 %v2777_v26, %v2773_v25  ;;  %v2650_v29 = vld [vmem:[#allocation3 + $0x20] sm:$0xff] }
 0x582   :  { %6564 = vmatprep.subr.bf16.mxu0 %v6563_v36  ;;  %v2741_v36 = vld [vmem:[#allocation6 + $0x2d0] sm:$0xff] }
 0x583   :  { %6626 = vmatpush1.bf16.msra.mxu1 %v6625_v41  ;;  %v6583_v41 = vpack.c.bf16 %v2752_v32, %v2748_v30  ;;  %v6645_v46 = vpack.c.bf16 %v2745_v38, %v2741_v36  ;;  %v2968_v30 = vld [vmem:[#allocation6 + $0x408] sm:$0xff]  ;;  %v2971_v36 = vld [vmem:[#allocation6 + $0x420] sm:$0xff]  ;;  %v2970_v38 = vld [vmem:[#allocation6 + $0x418] sm:$0xff] }
 0x584   :  { %6628 = vmatprep.subr.bf16.mxu1 %v6627_v47  ;;  %v2747_v47 = vld [vmem:[#allocation6 + $0x300] sm:$0xff]  ;;  %v2972_v32 = vld [vmem:[#allocation6 + $0x428] sm:$0xff] }
 0x585   :  { %6566 = vmatpush1.bf16.msra.mxu0 %v6565_v45  ;;  %v2760_v45 = vld [vmem:[#allocation6 + $0x368] sm:$0xff]  ;;  %v6585_v52 = vpack.c.bf16 %v2751_v42, %v2747_v47  ;;  %v2973_v47 = vld [vmem:[#allocation6 + $0x430] sm:$0xff] }
 0x586   :  { %6568 = vmatprep.subr.bf16.mxu0 %v6567_v49  ;;  %v2749_v49 = vld [vmem:[#allocation6 + $0x310] sm:$0xff] }
 0x587   :  { %6630 = vmatpush1.bf16.msra.mxu1 %v6629_v55  ;;  %v6587_v55 = vpack.c.bf16 %v2760_v45, %v2756_v44  ;;  %v6649_v60 = vpack.c.bf16 %v2753_v51, %v2749_v49  ;;  %v2976_v44 = vld [vmem:[#allocation6 + $0x448] sm:$0xff]  ;;  %v2979_v49 = vld [vmem:[#allocation6 + $0x460] sm:$0xff]  ;;  %v2978_v51 = vld [vmem:[#allocation6 + $0x458] sm:$0xff] }
 0x588   :  { %6632 = vmatprep.subr.bf16.mxu1 %v6631_v56  ;;  %v2755_v56 = vld [vmem:[#allocation6 + $0x340] sm:$0xff]  ;;  %v2980_v45 = vld [vmem:[#allocation6 + $0x468] sm:$0xff] }
 0x589   :  { %6570 = vmatpush1.bf16.msra.mxu0 %v6569_v59  ;;  %v2768_v59 = vld [vmem:[#allocation6 + $0x3a8] sm:$0xff]  ;;  %v6589_v1 = vpack.c.bf16 %v2759_v57, %v2755_v56  ;;  %v2981_v56 = vld [vmem:[#allocation6 + $0x470] sm:$0xff] }
 0x58a   :  { %6572 = vmatprep.subr.bf16.mxu0 %v6571_v62  ;;  %v2757_v62 = vld [vmem:[#allocation6 + $0x350] sm:$0xff]  ;;  %v2984_v57 = vld [vmem:[#allocation6 + $0x488] sm:$0xff] }
 0x58b   :  { %6634 = vmatpush1.bf16.msra.mxu1 %v6633_v5  ;;  %v6591_v5 = vpack.c.bf16 %v2768_v59, %v2764_v58  ;;  %v6653_v10 = vpack.c.bf16 %v2761_v63, %v2757_v62  ;;  %v2988_v59 = vld [vmem:[#allocation6 + $0x4a8] sm:$0xff] }
 0x58c   :  { %6636 = vmatprep.subr.bf16.mxu1 %v6635_v6  ;;  %v2763_v6 = vld [vmem:[#allocation6 + $0x380] sm:$0xff]  ;;  %v6671_v62 = vpack.c.bf16 %v2988_v59, %v2984_v57  ;;  %v3017_v59 = vld [vmem:[#allocation6 + $0x590] sm:$0xff] }
 0x58d   :  { %6574 = vmatpush1.bf16.msra.mxu0 %v6573_v9  ;;  %v2776_v9 = vld [vmem:[#allocation6 + $0x3e8] sm:$0xff]  ;;  %v6593_v18 = vpack.c.bf16 %v2767_v7, %v2763_v6  ;;  %v2989_v6 = vld [vmem:[#allocation6 + $0x4b0] sm:$0xff] }
 0x58e   :  { %6576 = vmatprep.subr.bf16.mxu0 %v6575_v14  ;;  %v2765_v14 = vld [vmem:[#allocation6 + $0x390] sm:$0xff]  ;;  %v2992_v7 = vld [vmem:[#allocation6 + $0x4c8] sm:$0xff] }
 0x58f   :  { %6638 = vmatpush1.bf16.msra.mxu1 %v6637_v20  ;;  %v6595_v20 = vpack.c.bf16 %v2776_v9, %v2772_v8  ;;  %v6657_v22 = vpack.c.bf16 %v2769_v15, %v2765_v14  ;;  %v2996_v8 = vld [vmem:[#allocation6 + $0x4e8] sm:$0xff]  ;;  %v6737_v9 = vpack.c.bf16 %v2989_v6, %v2985_v4  ;;  %v2995_v14 = vld [vmem:[#allocation6 + $0x4e0] sm:$0xff]  ;;  %v2994_v15 = vld [vmem:[#allocation6 + $0x4d8] sm:$0xff] }
 0x590   :  { %6640 = vmatprep.subr.bf16.mxu1 %v6639_v21  ;;  %v2771_v21 = vld [vmem:[#allocation6 + $0x3c0] sm:$0xff]  ;;  %v3026_v6 = vld [vmem:[#allocation6 + $0x5d8] sm:$0xff] }
 0x591   :  { %6578 = vmatpush1.bf16.msra.mxu0 %v6577_v23  ;;  %v6659_v23 = vpack.c.bf16 %v2778_v3, %v2774_v19  ;;  %v2993_v19 = vld [vmem:[#allocation6 + $0x4d0] sm:$0xff]  ;;  %v3023_v4 = vld [vmem:[#allocation6 + $0x5c0] sm:$0xff] }
 0x592   :  { %6580 = vmatprep.subr.bf16.mxu0 %v6579_v27  ;;  %v6597_v27 = vpack.c.bf16 %v2775_v17, %v2771_v21  ;;  %v2997_v3 = vld [vmem:[#allocation6 + $0x4f0] sm:$0xff]  ;;  %v3000_v17 = vld [vmem:[#allocation6 + $0x508] sm:$0xff] }
 0x593   :  { %6642 = vmatpush1.bf16.msra.mxu1 %v6641_v43  ;;  %v2967_v43 = vld [vmem:[#allocation6 + $0x400] sm:$0xff]  ;;  %v6741_v25 = vpack.c.bf16 %v2997_v3, %v2993_v19 }
 0x594   :  { %6644 = vmatprep.subr.bf16.mxu1 %v6643_v35  ;;  %v6663_v35 = vpack.c.bf16 %v2972_v32, %v2968_v30  ;;  %v6665_v34 = vpack.c.bf16 %v2971_v36, %v2967_v43  ;;  %v3001_v43 = vld [vmem:[#allocation6 + $0x510] sm:$0xff]  ;;  %v3031_v3 = vld [vmem:[#allocation6 + $0x600] sm:$0xff] }
 0x595   :  { %6582 = vmatpush1.bf16.msra.mxu0 %v6581_v39  ;;  %v2974_v39 = vld [vmem:[#allocation6 + $0x438] sm:$0xff] }
 0x596   :  { %6584 = vmatprep.subr.bf16.mxu0 %v6583_v41  ;;  %v6727_v40 = vpack.c.bf16 %v2974_v39, %v2970_v38  ;;  %v2969_v41 = vld [vmem:[#allocation6 + $0x410] sm:$0xff]  ;;  %v3008_v38 = vld [vmem:[#allocation6 + $0x548] sm:$0xff] }
 0x597   :  { %6646 = vmatpush1.bf16.msra.mxu1 %v6645_v46  ;;  %v6729_v42 = vpack.c.bf16 %v2973_v47, %v2969_v41  ;;  %v2975_v46 = vld [vmem:[#allocation6 + $0x440] sm:$0xff]  ;;  %v3012_v39 = vld [vmem:[#allocation6 + $0x568] sm:$0xff]  ;;  %v3010_v47 = vld [vmem:[#allocation6 + $0x558] sm:$0xff] }
 0x598   :  { %6648 = vmatprep.subr.bf16.mxu1 %v6647_v48  ;;  %v6667_v48 = vpack.c.bf16 %v2980_v45, %v2976_v44  ;;  %v6669_v53 = vpack.c.bf16 %v2979_v49, %v2975_v46  ;;  %v3011_v41 = vld [vmem:[#allocation6 + $0x560] sm:$0xff]  ;;  %v3014_v44 = vld [vmem:[#allocation6 + $0x578] sm:$0xff]  ;;  %v3009_v45 = vld [vmem:[#allocation6 + $0x550] sm:$0xff] }
 0x599   :  { %6586 = vmatpush1.bf16.msra.mxu0 %v6585_v52  ;;  %v2982_v52 = vld [vmem:[#allocation6 + $0x478] sm:$0xff]  ;;  %v3013_v46 = vld [vmem:[#allocation6 + $0x570] sm:$0xff] }
 0x59a   :  { %6588 = vmatprep.subr.bf16.mxu0 %v6587_v55  ;;  %v6731_v54 = vpack.c.bf16 %v2982_v52, %v2978_v51  ;;  %v2977_v55 = vld [vmem:[#allocation6 + $0x450] sm:$0xff]  ;;  %v6749_v49 = vpack.c.bf16 %v3013_v46, %v3009_v45  ;;  %v3016_v51 = vld [vmem:[#allocation6 + $0x588] sm:$0xff]  ;;  %v3047_v45 = vld [vmem:[#allocation6 + $0x680] sm:$0xff] }
 0x59b   :  { %6650 = vmatpush1.bf16.msra.mxu1 %v6649_v60  ;;  %v6733_v58 = vpack.c.bf16 %v2981_v56, %v2977_v55  ;;  %v2983_v60 = vld [vmem:[#allocation6 + $0x480] sm:$0xff]  ;;  %v3020_v52 = vld [vmem:[#allocation6 + $0x5a8] sm:$0xff]  ;;  %v3018_v56 = vld [vmem:[#allocation6 + $0x598] sm:$0xff] }
 0x59c   :  { %6652 = vmatprep.subr.bf16.mxu1 %v6651_v61  ;;  %v2987_v61 = vld [vmem:[#allocation6 + $0x4a0] sm:$0xff] }
 0x59d   :  { %6590 = vmatpush1.bf16.msra.mxu0 %v6589_v1  ;;  %v6673_v63 = vpack.c.bf16 %v2987_v61, %v2983_v60  ;;  %v2986_v1 = vld [vmem:[#allocation6 + $0x498] sm:$0xff]  ;;  %v3019_v55 = vld [vmem:[#allocation6 + $0x5a0] sm:$0xff]  ;;  %v3021_v60 = vld [vmem:[#allocation6 + $0x5b0] sm:$0xff] }
 0x59e   :  { %6592 = vmatprep.subr.bf16.mxu0 %v6591_v5  ;;  %v6735_v5 = vpack.c.bf16 %v2990_v2, %v2986_v1  ;;  %v3028_v1 = vld [vmem:[#allocation6 + $0x5e8] sm:$0xff]  ;;  %v3051_v46 = vld [vmem:[#allocation6 + $0x6a0] sm:$0xff] }
 0x59f   :  { %6654 = vmatpush1.bf16.msra.mxu1 %v6653_v10  ;;  %v6675_v10 = vpack.c.bf16 %v2996_v8, %v2992_v7  ;;  %v3030_v8 = vld [vmem:[#allocation6 + $0x5f8] sm:$0xff] }
 0x5a0   :  { %6656 = vmatprep.subr.bf16.mxu1 %v6655_v12  ;;  %v2991_v12 = vld [vmem:[#allocation6 + $0x4c0] sm:$0xff] }
 0x5a1   :  { %6594 = vmatpush1.bf16.msra.mxu0 %v6593_v18  ;;  %v2998_v18 = vld [vmem:[#allocation6 + $0x4f8] sm:$0xff] }
 0x5a2   :  { %6596 = vmatprep.subr.bf16.mxu0 %v6595_v20  ;;  %v6677_v20 = vpack.c.bf16 %v2995_v14, %v2991_v12  ;;  %v6739_v21 = vpack.c.bf16 %v2998_v18, %v2994_v15  ;;  %v6755_v12 = vpack.c.bf16 %v3030_v8, %v3026_v6  ;;  %v3032_v15 = vld [vmem:[#allocation6 + $0x608] sm:$0xff] }
 0x5a3   :  { %6658 = vmatpush1.bf16.msra.mxu1 %v6657_v22  ;;  %v3004_v22 = vld [vmem:[#allocation6 + $0x528] sm:$0xff] }
 0x5a4   :  { %6660 = vmatprep.subr.bf16.mxu1 %v6659_v23  ;;  %v2999_v23 = vld [vmem:[#allocation6 + $0x500] sm:$0xff]  ;;  %v6679_v26 = vpack.c.bf16 %v3004_v22, %v3000_v17  ;;  %v3036_v18 = vld [vmem:[#allocation6 + $0x628] sm:$0xff]  ;;  %v3038_v22 = vld [vmem:[#allocation6 + $0x638] sm:$0xff] }
 0x5a5   :  { %6598 = vmatpush1.bf16.msra.mxu0 %v6597_v27  ;;  %v3003_v27 = vld [vmem:[#allocation6 + $0x520] sm:$0xff]  ;;  %v6695_v19 = vpack.c.bf16 %v3036_v18, %v3032_v15  ;;  %v3064_v6 = vld [vmem:[#allocation6 + $0x708] sm:$0xff]  ;;  %v3070_v15 = vld [vmem:[#allocation6 + $0x738] sm:$0xff] }
 0x5a6   :  { %6664 = vmatprep.subr.bf16.mxu0 %v6663_v35  ;;  %v6681_v32 = vpack.c.bf16 %v3003_v27, %v2999_v23  ;;  %v3005_v35 = vld [vmem:[#allocation6 + $0x530] sm:$0xff] }
 0x5a7   :  { %6662 = vmatpush1.bf16.msra.mxu1 %v6661_v28  ;;  %v3002_v28 = vld [vmem:[#allocation6 + $0x518] sm:$0xff]  ;;  %v6745_v36 = vpack.c.bf16 %v3005_v35, %v3001_v43  ;;  %v3033_v23 = vld [vmem:[#allocation6 + $0x610] sm:$0xff]  ;;  %v3043_v43 = vld [vmem:[#allocation6 + $0x660] sm:$0xff] }
 0x5a8   :  { %2866 = vmatmul.mubr.f32.vlgmr.msra.gmra.mrb[16].mxu0 %v2650_v29  ;;  %6728 = vmatprep.subr.bf16.mxu1 %v6727_v40  ;;  %v3007_v40 = vld [vmem:[#allocation6 + $0x540] sm:$0xff]  ;;  %v3042_v35 = vld [vmem:[#allocation6 + $0x658] sm:$0xff]  ;;  %v3065_v18 = vld [vmem:[#allocation6 + $0x710] sm:$0xff] }
 0x5a9   :  { %6666 = vmatpush1.bf16.msra.mxu0 %v6665_v34  ;;  %v6683_v34 = vpack.c.bf16 %v3012_v39, %v3008_v38  ;;  %v3046_v38 = vld [vmem:[#allocation6 + $0x678] sm:$0xff]  ;;  %v3041_v39 = vld [vmem:[#allocation6 + $0x650] sm:$0xff] }
 0x5aa   :  { %2937 = vmatmul.mubr.f32.vlgmr.msra.gmra.mrb[16].mxu1 %v2650_v29  ;;  %6668 = vmatprep.subr.bf16.mxu0 %v6667_v48  ;;  %v3006_v29 = vld [vmem:[#allocation6 + $0x538] sm:$0xff]  ;;  %v6747_v48 = vpack.c.bf16 %v3014_v44, %v3010_v47  ;;  %v3048_v47 = vld [vmem:[#allocation6 + $0x688] sm:$0xff] }
 0x5ab   :  { %6730 = vmatpush1.bf16.msra.mxu1 %v6729_v42  ;;  %v6743_v30 = vpack.c.bf16 %v3006_v29, %v3002_v28  ;;  %v6685_v42 = vpack.c.bf16 %v3011_v41, %v3007_v40  ;;  %v3040_v28 = vld [vmem:[#allocation6 + $0x648] sm:$0xff]  ;;  %v6763_v40 = vpack.c.bf16 %v3046_v38, %v3042_v35  ;;  %v3079_v38 = vld [vmem:[#allocation6 + $0x780] sm:$0xff] }
 0x5ac   :  { %6732 = vmatprep.subr.bf16.mxu1 %v6731_v54  ;;  %v3015_v54 = vld [vmem:[#allocation6 + $0x580] sm:$0xff]  ;;  %v3044_v29 = vld [vmem:[#allocation6 + $0x668] sm:$0xff] }
 0x5ad   :  { %6670 = vmatpush1.bf16.msra.mxu0 %v6669_v53  ;;  %v6687_v53 = vpack.c.bf16 %v3020_v52, %v3016_v51  ;;  %v6689_v57 = vpack.c.bf16 %v3019_v55, %v3015_v54  ;;  %v3054_v51 = vld [vmem:[#allocation6 + $0x6b8] sm:$0xff]  ;;  %v3049_v52 = vld [vmem:[#allocation6 + $0x690] sm:$0xff]  ;;  %v3080_v35 = vld [vmem:[#allocation6 + $0x788] sm:$0xff] }
 0x5ae   :  { %6672 = vmatprep.subr.bf16.mxu0 %v6671_v62  ;;  %v6753_v62 = vpack.c.bf16 %v3021_v60, %v3017_v59  ;;  %v3055_v59 = vld [vmem:[#allocation6 + $0x6c0] sm:$0xff] }
 0x5af   :  { %6734 = vmatpush1.bf16.msra.mxu1 %v6733_v58  ;;  %v3022_v58 = vld [vmem:[#allocation6 + $0x5b8] sm:$0xff]  ;;  %v3059_v60 = vld [vmem:[#allocation6 + $0x6e0] sm:$0xff] }
 0x5b0   :  { %6736 = vmatprep.subr.bf16.mxu1 %v6735_v5  ;;  %v6751_v61 = vpack.c.bf16 %v3022_v58, %v3018_v56  ;;  %v3027_v5 = vld [vmem:[#allocation6 + $0x5e0] sm:$0xff]  ;;  %v3056_v56 = vld [vmem:[#allocation6 + $0x6c8] sm:$0xff] }
 0x5b1   :  { %6674 = vmatpush1.bf16.msra.mxu0 %v6673_v63  ;;  %v3024_v63 = vld [vmem:[#allocation6 + $0x5c8] sm:$0xff]  ;;  %v6693_v7 = vpack.c.bf16 %v3027_v5, %v3023_v4 }
 0x5b2   :  { %6676 = vmatprep.subr.bf16.mxu0 %v6675_v10  ;;  %v6691_v2 = vpack.c.bf16 %v3028_v1, %v3024_v63  ;;  %v3029_v10 = vld [vmem:[#allocation6 + $0x5f0] sm:$0xff]  ;;  %v3062_v63 = vld [vmem:[#allocation6 + $0x6f8] sm:$0xff] }
 0x5b3   :  { %6738 = vmatpush1.bf16.msra.mxu1 %v6737_v9  ;;  %v3025_v9 = vld [vmem:[#allocation6 + $0x5d0] sm:$0xff] }
 0x5b4   :  { %6740 = vmatprep.subr.bf16.mxu1 %v6739_v21  ;;  %v6757_v14 = vpack.c.bf16 %v3029_v10, %v3025_v9  ;;  %v3034_v21 = vld [vmem:[#allocation6 + $0x618] sm:$0xff]  ;;  %v3057_v1 = vld [vmem:[#allocation6 + $0x6d0] sm:$0xff]  ;;  %v3063_v9 = vld [vmem:[#allocation6 + $0x700] sm:$0xff] }
 0x5b5   :  { %6678 = vmatpush1.bf16.msra.mxu0 %v6677_v20  ;;  %v3035_v20 = vld [vmem:[#allocation6 + $0x620] sm:$0xff] }
 0x5b6   :  { %6680 = vmatprep.subr.bf16.mxu0 %v6679_v26  ;;  %v6697_v17 = vpack.c.bf16 %v3035_v20, %v3031_v3  ;;  %v6759_v26 = vpack.c.bf16 %v3038_v22, %v3034_v21  ;;  %v3067_v10 = vld [vmem:[#allocation6 + $0x720] sm:$0xff]  ;;  %v3072_v21 = vld [vmem:[#allocation6 + $0x748] sm:$0xff] }
 0x5b7   :  { %6742 = vmatpush1.bf16.msra.mxu1 %v6741_v25  ;;  %v3037_v25 = vld [vmem:[#allocation6 + $0x630] sm:$0xff] }
 0x5b8   :  { %6744 = vmatprep.subr.bf16.mxu1 %v6743_v30  ;;  %v6761_v27 = vpack.c.bf16 %v3037_v25, %v3033_v23  ;;  %v6699_v30 = vpack.c.bf16 %v3044_v29, %v3040_v28  ;;  %v3071_v23 = vld [vmem:[#allocation6 + $0x740] sm:$0xff]  ;;  %v3078_v28 = vld [vmem:[#allocation6 + $0x778] sm:$0xff]  ;;  %v3073_v29 = vld [vmem:[#allocation6 + $0x750] sm:$0xff] }
 0x5b9   :  { %6682 = vmatpush1.bf16.msra.mxu0 %v6681_v32  ;;  %v3039_v32 = vld [vmem:[#allocation6 + $0x640] sm:$0xff] }
 0x5ba   :  { %6684 = vmatprep.subr.bf16.mxu0 %v6683_v34  ;;  %v3045_v34 = vld [vmem:[#allocation6 + $0x670] sm:$0xff]  ;;  %v3075_v25 = vld [vmem:[#allocation6 + $0x760] sm:$0xff] }
 0x5bb   :  { %6746 = vmatpush1.bf16.msra.mxu1 %v6745_v36  ;;  %v6701_v36 = vpack.c.bf16 %v3043_v43, %v3039_v32  ;;  %v6765_v41 = vpack.c.bf16 %v3045_v34, %v3041_v39  ;;  %v3083_v34 = vld [vmem:[#allocation6 + $0x7a0] sm:$0xff] }
 0x5bc   :  { %6748 = vmatprep.subr.bf16.mxu1 %v6747_v48  ;;  %v3050_v48 = vld [vmem:[#allocation6 + $0x698] sm:$0xff] }
 0x5bd   :  { %6686 = vmatpush1.bf16.msra.mxu0 %v6685_v42  ;;  %v3052_v42 = vld [vmem:[#allocation6 + $0x6a8] sm:$0xff]  ;;  %v6767_v54 = vpack.c.bf16 %v3054_v51, %v3050_v48  ;;  %v3087_v51 = vld [vmem:[#allocation6 + $0x7c0] sm:$0xff] }
 0x5be   :  { %6688 = vmatprep.subr.bf16.mxu0 %v6687_v53  ;;  %v6703_v44 = vpack.c.bf16 %v3052_v42, %v3048_v47  ;;  %v3053_v53 = vld [vmem:[#allocation6 + $0x6b0] sm:$0xff]  ;;  %v6721_v47 = vpack.c.bf16 %v3083_v34, %v3079_v38 }
 0x5bf   :  { %6750 = vmatpush1.bf16.msra.mxu1 %v6749_v49  ;;  %v6705_v49 = vpack.c.bf16 %v3051_v46, %v3047_v45  ;;  %v6769_v55 = vpack.c.bf16 %v3053_v53, %v3049_v52  ;;  %v3085_v45 = vld [vmem:[#allocation6 + $0x7b0] sm:$0xff]  ;;  %v3088_v46 = vld [vmem:[#allocation6 + $0x7c8] sm:$0xff]  ;;  %v3091_v52 = vld [vmem:[#allocation6 + $0x7e0] sm:$0xff] }
 0x5c0   :  { %6752 = vmatprep.subr.bf16.mxu1 %v6751_v61  ;;  %v3058_v61 = vld [vmem:[#allocation6 + $0x6d8] sm:$0xff] }
 0x5c1   :  { %6690 = vmatpush1.bf16.msra.mxu0 %v6689_v57  ;;  %v3060_v57 = vld [vmem:[#allocation6 + $0x6e8] sm:$0xff]  ;;  %v6771_v4 = vpack.c.bf16 %v3062_v63, %v3058_v61 }
 0x5c2   :  { %6692 = vmatprep.subr.bf16.mxu0 %v6691_v2  ;;  %v6707_v58 = vpack.c.bf16 %v3060_v57, %v3056_v56  ;;  %v3061_v2 = vld [vmem:[#allocation6 + $0x6f0] sm:$0xff]  ;;  %v6725_v57 = vpack.c.bf16 %v3091_v52, %v3087_v51  ;;  %v3292_v61 = vld [vmem:[#allocation6 + $0x28] sm:$0xff] }
 0x5c3   :  { %6754 = vmatpush1.bf16.msra.mxu1 %v6753_v62  ;;  %v6709_v62 = vpack.c.bf16 %v3059_v60, %v3055_v59  ;;  %v6773_v5 = vpack.c.bf16 %v3061_v2, %v3057_v1  ;;  %v3089_v56 = vld [vmem:[#allocation6 + $0x7d0] sm:$0xff]  ;;  %v3288_v60 = vld [vmem:[#allocation6 + $0x8] sm:$0xff]  ;;  %v2459_v1 = vld [vmem:[#allocation8 + $0x4] sm:$0xf] }
 0x5c4   :  { %6756 = vmatprep.subr.bf16.mxu1 %v6755_v12  ;;  %v3066_v12 = vld [vmem:[#allocation6 + $0x718] sm:$0xff]  ;;  %v3093_v59 = vld [vmem:[#allocation6 + $0x7f0] sm:$0xff] }
 0x5c5   :  { %6694 = vmatpush1.bf16.msra.mxu0 %v6693_v7  ;;  %v3068_v7 = vld [vmem:[#allocation6 + $0x728] sm:$0xff]  ;;  %v6775_v3 = vpack.c.bf16 %v3070_v15, %v3066_v12  ;;  %v6789_v63 = vpack.c.bf16 %v3093_v59, %v3089_v56  ;;  %v3290_v2 = vld [vmem:[#allocation6 + $0x18] sm:$0xff] }
 0x5c6   :  { %6696 = vmatprep.subr.bf16.mxu0 %v6695_v19  ;;  %v6711_v8 = vpack.c.bf16 %v3068_v7, %v3064_v6  ;;  %v3069_v19 = vld [vmem:[#allocation6 + $0x730] sm:$0xff]  ;;  %v2464_v6 = vrot.slane %v2459_v1, %v8202_v11  ;;  %v2468_v7 = vrot.slane %v2459_v1, %v8204_v13 }
 0x5c7   :  { %6758 = vmatpush1.bf16.msra.mxu1 %v6757_v14  ;;  %v6713_v14 = vpack.c.bf16 %v3067_v10, %v3063_v9  ;;  %v6777_v20 = vpack.c.bf16 %v3069_v19, %v3065_v18 }
 0x5c8   :  { %6760 = vmatprep.subr.bf16.mxu1 %v6759_v26  ;;  %v3074_v26 = vld [vmem:[#allocation6 + $0x758] sm:$0xff] }
 0x5c9   :  { %6698 = vmatpush1.bf16.msra.mxu0 %v6697_v17  ;;  %v3076_v17 = vld [vmem:[#allocation6 + $0x768] sm:$0xff]  ;;  %v6779_v32 = vpack.c.bf16 %v3078_v28, %v3074_v26 }
 0x5ca   :  { %6700 = vmatprep.subr.bf16.mxu0 %v6699_v30  ;;  %v6715_v22 = vpack.c.bf16 %v3076_v17, %v3072_v21  ;;  %v3077_v30 = vld [vmem:[#allocation6 + $0x770] sm:$0xff]  ;;  %v2472_v21 = vrot.slane %v2459_v1, %v8211_v24 }
 0x5cb   :  { %6762 = vmatpush1.bf16.msra.mxu1 %v6761_v27  ;;  %v6717_v27 = vpack.c.bf16 %v3075_v25, %v3071_v23  ;;  %v6781_v43 = vpack.c.bf16 %v3077_v30, %v3073_v29 }
 0x5cc   :  { %6764 = vmatprep.subr.bf16.mxu1 %v6763_v40  ;;  %v3082_v40 = vld [vmem:[#allocation6 + $0x798] sm:$0xff] }
 0x5cd   :  { %6702 = vmatpush1.bf16.msra.mxu0 %v6701_v36  ;;  %v3084_v36 = vld [vmem:[#allocation6 + $0x7a8] sm:$0xff] }
 0x5ce   :  { %6704 = vmatprep.subr.bf16.mxu0 %v6703_v44  ;;  %v6719_v39 = vpack.c.bf16 %v3084_v36, %v3080_v35  ;;  %v3081_v44 = vld [vmem:[#allocation6 + $0x790] sm:$0xff] }
 0x5cf   :  { %6766 = vmatpush1.bf16.msra.mxu1 %v6765_v41  ;;  %v3086_v41 = vld [vmem:[#allocation6 + $0x7b8] sm:$0xff]  ;;  %v6785_v48 = vpack.c.bf16 %v3085_v45, %v3081_v44 }
 0x5d0   :  { %6768 = vmatprep.subr.bf16.mxu1 %v6767_v54  ;;  %v6783_v42 = vpack.c.bf16 %v3086_v41, %v3082_v40  ;;  %v3090_v54 = vld [vmem:[#allocation6 + $0x7d8] sm:$0xff]  ;;  %v2779_v41 = vld [vmem:[#allocation8] sm:$0xf] }
 0x5d1   :  { %6706 = vmatpush1.bf16.msra.mxu0 %v6705_v49  ;;  %v3092_v49 = vld [vmem:[#allocation6 + $0x7e8] sm:$0xff]  ;;  %v2796_v51 = vrot.slane %v2779_v41, %v8208_v16 }
 0x5d2   :  { %6708 = vmatprep.subr.bf16.mxu0 %v6707_v58  ;;  %v6723_v53 = vpack.c.bf16 %v3092_v49, %v3088_v46 }
 0x5d3   :  { %6770 = vmatpush1.bf16.msra.mxu1 %v6769_v55  ;;  %v3094_v55 = vld [vmem:[#allocation6 + $0x7f8] sm:$0xff] }
 0x5d4   :  { %6772 = vmatprep.subr.bf16.mxu1 %v6771_v4  ;;  %v6787_v58 = vpack.c.bf16 %v3094_v55, %v3090_v54  ;;  %v3294_v4 = vld [vmem:[#allocation6 + $0x38] sm:$0xff]  ;;  %v2792_v55 = vrot.slane %v2779_v41, %v8211_v24 }
 0x5d5   :  { %6710 = vmatpush1.bf16.msra.mxu0 %v6709_v62  ;;  %v6791_v62 = vpack.c.bf16 %v3292_v61, %v3288_v60 }
 0x5d6   :  { %6712 = vmatprep.subr.bf16.mxu0 %v6711_v8 }
 0x5d7   :  { %6774 = vmatpush1.bf16.msra.mxu1 %v6773_v5  ;;  %v6855_v5 = vpack.c.bf16 %v3294_v4, %v3290_v2 }
 0x5d8   :  { %6776 = vmatprep.subr.bf16.mxu1 %v6775_v3  ;;  %v2476_v3 = vrot.slane %v2459_v1, %v8208_v16 }
 0x5d9   :  { %6714 = vmatpush1.bf16.msra.mxu0 %v6713_v14 }
 0x5da   :  { %6716 = vmatprep.subr.bf16.mxu0 %v6715_v22 }
 0x5db   :  { %6778 = vmatpush1.bf16.msra.mxu1 %v6777_v20 }
 0x5dc   :  { %6780 = vmatprep.subr.bf16.mxu1 %v6779_v32 }
 0x5dd   :  { %6718 = vmatpush1.bf16.msra.mxu0 %v6717_v27 }
 0x5de   :  { %6720 = vmatprep.subr.bf16.mxu0 %v6719_v39 }
 0x5df   :  { %6782 = vmatpush1.bf16.msra.mxu1 %v6781_v43 }
 0x5e0   :  { %6784 = vmatprep.subr.bf16.mxu1 %v6783_v42  ;;  %v2788_v42 = vrot.slane %v2779_v41, %v8204_v13 }
 0x5e1   :  { %6722 = vmatpush1.bf16.msra.mxu0 %v6721_v47  ;;  %v2784_v47 = vrot.slane %v2779_v41, %v8202_v11  ;;  %v3312_v41 = vld [vmem:[#allocation6 + $0xc8] sm:$0xff] }
 0x5e2   :  { %6724 = vmatprep.subr.bf16.mxu0 %v6723_v53 }
 0x5e3   :  { %6786 = vmatpush1.bf16.msra.mxu1 %v6785_v48 }
 0x5e4   :  { %6788 = vmatprep.subr.bf16.mxu1 %v6787_v58 }
 0x5e5   :  { %6726 = vmatpush1.bf16.msra.mxu0 %v6725_v57 }
 0x5e6   :  { %6792 = vmatprep.subr.bf16.mxu0 %v6791_v62 }
 0x5e7   :  { %6790 = vmatpush1.bf16.msra.mxu1 %v6789_v63 }
 0x5e8   :  { %6856 = vmatprep.subr.bf16.mxu1 %v6855_v5 }
 0x63b   :  { %v2547_v8 = vpop.f32.mrb[14].mxu0  ;;  %v2618_v9 = vpop.f32.mrb[14].mxu1 }
 0x63c   :  { %v2548_v10 = vadd.f32 %v2547_v8, %v2464_v6  ;;  %v2549_v12 = vpop.f32.mrb[15].mxu0  ;;  %v2620_v14 = vpop.f32.mrb[15].mxu1  ;;  %v2619_v22 = vadd.f32 %v2618_v9, %v2472_v21  ;;  %v3287_v8 = vld [vmem:[#allocation6] sm:$0xff]  ;;  %v3302_v21 = vld [vmem:[#allocation6 + $0x78] sm:$0xff] }
 0x63d   :  { %v2550_v15 = vadd.f32 %v2549_v12, %v2468_v7  ;;  %v2621_v20 = vadd.f32 %v2620_v14, %v2476_v3  ;;  %v3291_v9 = vld [vmem:[#allocation6 + $0x20] sm:$0xff]  ;;  %v3296_v12 = vld [vmem:[#allocation6 + $0x48] sm:$0xff] }
 0x63e   :  { %v5415_v18 = vmul.f32 -1.442695, %v2548_v10  ;;  %v3300_v14 = vld [vmem:[#allocation6 + $0x68] sm:$0xff]  ;;  %v6793_v3 = vpack.c.bf16 %v3291_v9, %v3287_v8  ;;  %v3321_v9 = vld [vmem:[#allocation6 + $0x110] sm:$0xff] }
 0x63f   :  { %v5416_v19 = vmul.f32 -1.442695, %v2550_v15  ;;  %v5417_v17 = vmul.f32 -1.442695, %v2621_v20  ;;  %v3289_v15 = vld [vmem:[#allocation6 + $0x10] sm:$0xff]  ;;  %v3298_v20 = vld [vmem:[#allocation6 + $0x58] sm:$0xff] }
 0x640   :  { %7733 = vpow2.f32 %v5415_v18  ;;  %v3293_v18 = vld [vmem:[#allocation6 + $0x30] sm:$0xff] }
 0x641   :  { %7735 = vpow2.f32 %v5416_v19 }
 0x642   :  { %7737 = vpow2.f32 %v5417_v17 }
 0x643   :  { %7739 = vtanh.f32 %v2619_v22  ;;  %v6795_v22 = vpack.c.bf16 %v3300_v14, %v3296_v12  ;;  %v3330_v14 = vld [vmem:[#allocation6 + $0x158] sm:$0xff] }
 0x64a   :  { %v7734_v23 = vpop.eup %7733 }
 0x64b   :  { %v7736_v25 = vpop.eup %7735  ;;  %v2626_v26 = vadd.f32 1.0, %v7734_v23  ;;  %v3295_v23 = vld [vmem:[#allocation6 + $0x40] sm:$0xff] }
 0x64c   :  { %v2632_v27 = vadd.f32 1.0, %v7736_v25  ;;  %v7738_v28 = vpop.eup %7737  ;;  %v3304_v25 = vld [vmem:[#allocation6 + $0x88] sm:$0xff] }
 0x64d   :  { %7741 = vrcp.f32 %v2626_v26  ;;  %v7740_v29 = vpop.eup %7739  ;;  %v2639_v35 = vadd.f32 1.0, %v7738_v28  ;;  %v3308_v26 = vld [vmem:[#allocation6 + $0xa8] sm:$0xff]  ;;  %v6859_v28 = vpack.c.bf16 %v3302_v21, %v3298_v20 }
 0x64e   :  { %7743 = vrcp.f32 %v2632_v27  ;;  %v6857_v27 = vpack.c.bf16 %v3293_v18, %v3289_v15  ;;  %v3334_v15 = vld [vmem:[#allocation6 + $0x178] sm:$0xff]  ;;  %v3336_v20 = vld [vmem:[#allocation6 + $0x188] sm:$0xff] }
 0x64f   :  { %7745 = vrcp.f32 %v2639_v35  ;;  %v3310_v35 = vld [vmem:[#allocation6 + $0xb8] sm:$0xff]  ;;  %v3340_v21 = vld [vmem:[#allocation6 + $0x1a8] sm:$0xff] }
 0x657   :  { %v7742_v30 = vpop.eup %7741 }
 0x658   :  { %v7744_v32 = vpop.eup %7743  ;;  %v2643_v43 = vmul.f32 %v7742_v30, %v7740_v29  ;;  %v3297_v29 = vld [vmem:[#allocation6 + $0x50] sm:$0xff] }
 0x659   :  { %v2642_v36 = vmul.f32 %v7744_v32, %v8261_v31  ;;  %v7746_v39 = vpop.eup %7745  ;;  %v3301_v30 = vld [vmem:[#allocation6 + $0x70] sm:$0xff] }
 0x65b   :  { %v8281_v38 = vadd.f32 %v2643_v43, %v2642_v36  ;;  %v3306_v43 = vld [vmem:[#allocation6 + $0x98] sm:$0xff]  ;;  %v6799_v36 = vpack.c.bf16 %v3308_v26, %v3304_v25 }
 0x65c   :  { %v3338_v26 = vld [vmem:[#allocation6 + $0x198] sm:$0xff] }
 0x65d   :  { %7747 = vtanh.f32 %v8281_v38 }
 0x667   :  { %v7748_v34 = vpop.eup %7747 }
 0x668   :  { %v8284_v40 = vmul.f32 %v7748_v34, %v7746_v39  ;;  %v3303_v39 = vld [vmem:[#allocation6 + $0x80] sm:$0xff] }
 0x669   :  { %v3307_v34 = vld [vmem:[#allocation6 + $0xa0] sm:$0xff] }
 0x66a   :  { %3181 = vmatprep.mubr.f32.mxu0 %v8284_v40  ;;  %3252 = vmatprep.mubr.f32.mxu1 %v8284_v40 }
 0x67b   :  { %v2867_v44 = vpop.f32.mrb[16].mxu0 }
 0x67c   :  { %v2868_v31 = vadd.f32 %v2867_v44, %v2784_v47  ;;  %v2869_v45 = vpop.f32.mrb[17].mxu0  ;;  %v3316_v47 = vld [vmem:[#allocation6 + $0xe8] sm:$0xff]  ;;  %v6863_v44 = vpack.c.bf16 %v3310_v35, %v3306_v43 }
 0x67d   :  { %v2870_v46 = vadd.f32 %v2869_v45, %v2788_v42  ;;  %v2938_v48 = vpop.f32.mrb[16].mxu1  ;;  %v6861_v42 = vpack.c.bf16 %v3301_v30, %v3297_v29  ;;  %v3309_v45 = vld [vmem:[#allocation6 + $0xb0] sm:$0xff]  ;;  %v3335_v29 = vld [vmem:[#allocation6 + $0x180] sm:$0xff]  ;;  %v3348_v43 = vld [vmem:[#allocation6 + $0x1e8] sm:$0xff] }
 0x67e   :  { %v5418_v49 = vmul.f32 -1.442695, %v2868_v31  ;;  %v2940_v52 = vpop.f32.mrb[17].mxu1  ;;  %v2939_v57 = vadd.f32 %v2938_v48, %v2792_v55  ;;  %v3305_v31 = vld [vmem:[#allocation6 + $0x90] sm:$0xff]  ;;  %v3314_v48 = vld [vmem:[#allocation6 + $0xd8] sm:$0xff]  ;;  %v3324_v55 = vld [vmem:[#allocation6 + $0x128] sm:$0xff] }
 0x67f   :  { %v5419_v53 = vmul.f32 -1.442695, %v2870_v46  ;;  %v2941_v54 = vadd.f32 %v2940_v52, %v2796_v51  ;;  %v6801_v46 = vpack.c.bf16 %v3307_v34, %v3303_v39  ;;  %v6803_v51 = vpack.c.bf16 %v3316_v47, %v3312_v41  ;;  %v3311_v52 = vld [vmem:[#allocation6 + $0xc0] sm:$0xff]  ;;  %v3337_v39 = vld [vmem:[#allocation6 + $0x190] sm:$0xff]  ;;  %v3346_v47 = vld [vmem:[#allocation6 + $0x1d8] sm:$0xff] }
 0x680   :  { %7749 = vpow2.f32 %v5418_v49  ;;  %v3318_v49 = vld [vmem:[#allocation6 + $0xf8] sm:$0xff]  ;;  %v3339_v30 = vld [vmem:[#allocation6 + $0x1a0] sm:$0xff]  ;;  %v3341_v34 = vld [vmem:[#allocation6 + $0x1b0] sm:$0xff] }
 0x681   :  { %7751 = vpow2.f32 %v5419_v53  ;;  %v5420_v56 = vmul.f32 -1.442695, %v2941_v54  ;;  %v3315_v53 = vld [vmem:[#allocation6 + $0xe0] sm:$0xff]  ;;  %v3320_v54 = vld [vmem:[#allocation6 + $0x108] sm:$0xff]  ;;  %v6817_v41 = vpack.c.bf16 %v3339_v30, %v3335_v29  ;;  %v3369_v29 = vld [vmem:[#allocation6 + $0x290] sm:$0xff] }
 0x682   :  { %v3373_v30 = vld [vmem:[#allocation6 + $0x2b0] sm:$0xff] }
 0x683   :  { %7753 = vpow2.f32 %v5420_v56  ;;  %v6865_v56 = vpack.c.bf16 %v3309_v45, %v3305_v31  ;;  %v3343_v31 = vld [vmem:[#allocation6 + $0x1c0] sm:$0xff] }
 0x684   :  { %7755 = vtanh.f32 %v2939_v57  ;;  %v6867_v57 = vpack.c.bf16 %v3318_v49, %v3314_v48  ;;  %v3347_v45 = vld [vmem:[#allocation6 + $0x1e0] sm:$0xff]  ;;  %v3356_v48 = vld [vmem:[#allocation6 + $0x228] sm:$0xff]  ;;  %v6881_v49 = vpack.c.bf16 %v3341_v34, %v3337_v39 }
 0x685   :  { %v3375_v39 = vld [vmem:[#allocation6 + $0x2c0] sm:$0xff] }
 0x686   :  { %v3379_v34 = vld [vmem:[#allocation6 + $0x2e0] sm:$0xff] }
 0x68a   :  { %v7750_v58 = vpop.eup %7749 }
 0x68b   :  { %v7752_v59 = vpop.eup %7751  ;;  %v2946_v60 = vadd.f32 1.0, %v7750_v58  ;;  %v3313_v58 = vld [vmem:[#allocation6 + $0xd0] sm:$0xff] }
 0x68c   :  { %v2952_v61 = vadd.f32 1.0, %v7752_v59  ;;  %v3317_v59 = vld [vmem:[#allocation6 + $0xf0] sm:$0xff] }
 0x68d   :  { %7757 = vrcp.f32 %v2946_v60  ;;  %v7754_v62 = vpop.eup %7753  ;;  %v6805_v60 = vpack.c.bf16 %v3315_v53, %v3311_v52  ;;  %v3345_v52 = vld [vmem:[#allocation6 + $0x1d0] sm:$0xff] }
 0x68e   :  { %7759 = vrcp.f32 %v2952_v61  ;;  %v7756_v63 = vpop.eup %7755  ;;  %v2959_v2 = vadd.f32 1.0, %v7754_v62  ;;  %v3322_v61 = vld [vmem:[#allocation6 + $0x118] sm:$0xff]  ;;  %v3349_v53 = vld [vmem:[#allocation6 + $0x1f0] sm:$0xff] }
 0x68f   :  { %v3326_v62 = vld [vmem:[#allocation6 + $0x138] sm:$0xff] }
 0x690   :  { %7761 = vrcp.f32 %v2959_v2  ;;  %v3323_v2 = vld [vmem:[#allocation6 + $0x120] sm:$0xff]  ;;  %v6871_v8 = vpack.c.bf16 %v3326_v62, %v3322_v61  ;;  %v3364_v61 = vld [vmem:[#allocation6 + $0x268] sm:$0xff]  ;;  %v6885_v62 = vpack.c.bf16 %v3349_v53, %v3345_v52 }
 0x691   :  { %v3383_v52 = vld [vmem:[#allocation6 + $0x300] sm:$0xff] }
 0x692   :  { %v3387_v53 = vld [vmem:[#allocation6 + $0x320] sm:$0xff] }
 0x697   :  { %v7758_v1 = vpop.eup %7757 }
 0x698   :  { %v7760_v4 = vpop.eup %7759  ;;  %v2963_v5 = vmul.f32 %v7758_v1, %v7756_v63  ;;  %v6807_v63 = vpack.c.bf16 %v3324_v55, %v3320_v54  ;;  %v3319_v1 = vld [vmem:[#allocation6 + $0x100] sm:$0xff]  ;;  %v6821_v54 = vpack.c.bf16 %v3347_v45, %v3343_v31  ;;  %v3354_v55 = vld [vmem:[#allocation6 + $0x218] sm:$0xff]  ;;  %v3377_v31 = vld [vmem:[#allocation6 + $0x2d0] sm:$0xff] }
 0x699   :  { %v2962_v6 = vmul.f32 %v7760_v4, %v8273_v0  ;;  %v3299_v0 = vld [vmem:[#allocation6 + $0x60] sm:$0xff]  ;;  %v3328_v4 = vld [vmem:[#allocation6 + $0x148] sm:$0xff]  ;;  %v6809_v12 = vpack.c.bf16 %v3323_v2, %v3319_v1  ;;  %v3353_v1 = vld [vmem:[#allocation6 + $0x210] sm:$0xff] }
 0x69a   :  { %v7762_v10 = vpop.eup %7761  ;;  %v6797_v32 = vpack.c.bf16 %v3299_v0, %v3295_v23  ;;  %v3329_v23 = vld [vmem:[#allocation6 + $0x150] sm:$0xff] }
 0x69b   :  { %v8293_v7 = vadd.f32 %v2963_v5, %v2962_v6  ;;  %v3332_v5 = vld [vmem:[#allocation6 + $0x168] sm:$0xff]  ;;  %v6869_v6 = vpack.c.bf16 %v3317_v59, %v3313_v58  ;;  %v3333_v0 = vld [vmem:[#allocation6 + $0x170] sm:$0xff]  ;;  %v3351_v58 = vld [vmem:[#allocation6 + $0x200] sm:$0xff] }
 0x69c   :  { %v6811_v18 = vpack.c.bf16 %v3332_v5, %v3328_v4  ;;  %v6877_v35 = vpack.c.bf16 %v3333_v0, %v3329_v23  ;;  %v3355_v59 = vld [vmem:[#allocation6 + $0x220] sm:$0xff]  ;;  %v3357_v2 = vld [vmem:[#allocation6 + $0x230] sm:$0xff]  ;;  %v3362_v5 = vld [vmem:[#allocation6 + $0x258] sm:$0xff] }
 0x69d   :  { %7763 = vtanh.f32 %v8293_v7  ;;  %v6825_v4 = vpack.c.bf16 %v3355_v59, %v3351_v58  ;;  %v3367_v23 = vld [vmem:[#allocation6 + $0x280] sm:$0xff]  ;;  %v3381_v45 = vld [vmem:[#allocation6 + $0x2f0] sm:$0xff] }
 0x69e   :  { %v3371_v0 = vld [vmem:[#allocation6 + $0x2a0] sm:$0xff]  ;;  %v3385_v58 = vld [vmem:[#allocation6 + $0x310] sm:$0xff] }
 0x69f   :  { %v3389_v59 = vld [vmem:[#allocation6 + $0x330] sm:$0xff] }
 0x6a7   :  { %v7764_v19 = vpop.eup %7763 }
 0x6a8   :  { %v2966_v17 = vmul.f32 %v7764_v19, %v7762_v10  ;;  %v3325_v10 = vld [vmem:[#allocation6 + $0x130] sm:$0xff]  ;;  %v3327_v19 = vld [vmem:[#allocation6 + $0x140] sm:$0xff] }
 0x6aa   :  { %3182 = vmatmul.mubr.f32.vlgmr.msra.gmra.mrb[18].mxu0 %v2966_v17  ;;  %3253 = vmatmul.mubr.f32.vlgmr.msra.gmra.mrb[18].mxu1 %v2966_v17 }
 0x6ab   :  { %6794 = vmatpush1.bf16.msra.mxu0 %v6793_v3  ;;  %3501 = vmatprep.mubr.f32.mxu0 %v2966_v17  ;;  %v3331_v3 = vld [vmem:[#allocation6 + $0x160] sm:$0xff] }
 0x6ac   :  { %3572 = vmatprep.mubr.f32.mxu1 %v2966_v17  ;;  %6796 = vmatprep.subr.bf16.mxu0 %v6795_v22  ;;  %v6873_v17 = vpack.c.bf16 %v3325_v10, %v3321_v9  ;;  %v6875_v22 = vpack.c.bf16 %v3334_v15, %v3330_v14  ;;  %v6813_v25 = vpack.c.bf16 %v3331_v3, %v3327_v19  ;;  %v3359_v9 = vld [vmem:[#allocation6 + $0x240] sm:$0xff]  ;;  %v3372_v14 = vld [vmem:[#allocation6 + $0x2a8] sm:$0xff]  ;;  %v3361_v19 = vld [vmem:[#allocation6 + $0x250] sm:$0xff] }
 0x6ad   :  { %6858 = vmatpush1.bf16.msra.mxu1 %v6857_v27  ;;  %v3342_v27 = vld [vmem:[#allocation6 + $0x1b8] sm:$0xff]  ;;  %v3363_v10 = vld [vmem:[#allocation6 + $0x260] sm:$0xff]  ;;  %v6889_v15 = vpack.c.bf16 %v3357_v2, %v3353_v1  ;;  %v3365_v3 = vld [vmem:[#allocation6 + $0x270] sm:$0xff] }
 0x6ae   :  { %6860 = vmatprep.subr.bf16.mxu1 %v6859_v28  ;;  %v6815_v28 = vpack.c.bf16 %v3340_v21, %v3336_v20  ;;  %v6829_v20 = vpack.c.bf16 %v3363_v10, %v3359_v9  ;;  %v3370_v21 = vld [vmem:[#allocation6 + $0x298] sm:$0xff]  ;;  %v3391_v1 = vld [vmem:[#allocation6 + $0x340] sm:$0xff]  ;;  %v3393_v9 = vld [vmem:[#allocation6 + $0x350] sm:$0xff] }
 0x6af   :  { %6798 = vmatpush1.bf16.msra.mxu0 %v6797_v32  ;;  %v3344_v32 = vld [vmem:[#allocation6 + $0x1c8] sm:$0xff]  ;;  %v3395_v2 = vld [vmem:[#allocation6 + $0x360] sm:$0xff]  ;;  %v3397_v10 = vld [vmem:[#allocation6 + $0x370] sm:$0xff] }
 0x6b0   :  { %6800 = vmatprep.subr.bf16.mxu0 %v6799_v36  ;;  %v6879_v36 = vpack.c.bf16 %v3342_v27, %v3338_v26  ;;  %v3380_v26 = vld [vmem:[#allocation6 + $0x2e8] sm:$0xff]  ;;  %v6893_v27 = vpack.c.bf16 %v3365_v3, %v3361_v19  ;;  %v3399_v19 = vld [vmem:[#allocation6 + $0x380] sm:$0xff] }
 0x6b1   :  { %6862 = vmatpush1.bf16.msra.mxu1 %v6861_v42  ;;  %v3350_v42 = vld [vmem:[#allocation6 + $0x1f8] sm:$0xff]  ;;  %v3403_v3 = vld [vmem:[#allocation6 + $0x3a0] sm:$0xff] }
 0x6b2   :  { %6864 = vmatprep.subr.bf16.mxu1 %v6863_v44  ;;  %v6819_v44 = vpack.c.bf16 %v3348_v43, %v3344_v32  ;;  %v6833_v32 = vpack.c.bf16 %v3371_v0, %v3367_v23  ;;  %v3378_v43 = vld [vmem:[#allocation6 + $0x2d8] sm:$0xff]  ;;  %v3401_v23 = vld [vmem:[#allocation6 + $0x390] sm:$0xff] }
 0x6b3   :  { %6802 = vmatpush1.bf16.msra.mxu0 %v6801_v46  ;;  %v3352_v46 = vld [vmem:[#allocation6 + $0x208] sm:$0xff]  ;;  %v3405_v0 = vld [vmem:[#allocation6 + $0x3b0] sm:$0xff] }
 0x6b4   :  { %6804 = vmatprep.subr.bf16.mxu0 %v6803_v51  ;;  %v6883_v51 = vpack.c.bf16 %v3350_v42, %v3346_v47  ;;  %v3388_v47 = vld [vmem:[#allocation6 + $0x328] sm:$0xff]  ;;  %v6897_v42 = vpack.c.bf16 %v3373_v30, %v3369_v29  ;;  %v3407_v29 = vld [vmem:[#allocation6 + $0x3c0] sm:$0xff] }
 0x6b5   :  { %6866 = vmatpush1.bf16.msra.mxu1 %v6865_v56  ;;  %v3358_v56 = vld [vmem:[#allocation6 + $0x238] sm:$0xff]  ;;  %v3411_v30 = vld [vmem:[#allocation6 + $0x3e0] sm:$0xff] }
 0x6b6   :  { %6868 = vmatprep.subr.bf16.mxu1 %v6867_v57  ;;  %v6823_v57 = vpack.c.bf16 %v3356_v48, %v3352_v46  ;;  %v6837_v46 = vpack.c.bf16 %v3379_v34, %v3375_v39  ;;  %v3386_v48 = vld [vmem:[#allocation6 + $0x318] sm:$0xff]  ;;  %v6853_v39 = vpack.c.bf16 %v3411_v30, %v3407_v29 }
 0x6b7   :  { %6806 = vmatpush1.bf16.msra.mxu0 %v6805_v60  ;;  %v3360_v60 = vld [vmem:[#allocation6 + $0x248] sm:$0xff] }
 0x6b8   :  { %6808 = vmatprep.subr.bf16.mxu0 %v6807_v63  ;;  %v6887_v63 = vpack.c.bf16 %v3358_v56, %v3354_v55  ;;  %v3396_v55 = vld [vmem:[#allocation6 + $0x368] sm:$0xff]  ;;  %v6901_v56 = vpack.c.bf16 %v3381_v45, %v3377_v31  ;;  %v3607_v45 = vld [vmem:[#allocation6 + $0x420] sm:$0xff] }
 0x6b9   :  { %6870 = vmatpush1.bf16.msra.mxu1 %v6869_v6  ;;  %v3366_v6 = vld [vmem:[#allocation6 + $0x278] sm:$0xff] }
 0x6ba   :  { %6872 = vmatprep.subr.bf16.mxu1 %v6871_v8  ;;  %v6827_v8 = vpack.c.bf16 %v3364_v61, %v3360_v60  ;;  %v6841_v60 = vpack.c.bf16 %v3387_v53, %v3383_v52  ;;  %v3394_v61 = vld [vmem:[#allocation6 + $0x358] sm:$0xff]  ;;  %v3605_v52 = vld [vmem:[#allocation6 + $0x410] sm:$0xff] }
 0x6bb   :  { %6810 = vmatpush1.bf16.msra.mxu0 %v6809_v12  ;;  %v3368_v12 = vld [vmem:[#allocation6 + $0x288] sm:$0xff]  ;;  %v3609_v53 = vld [vmem:[#allocation6 + $0x430] sm:$0xff] }
 0x6bc   :  { %6812 = vmatprep.subr.bf16.mxu0 %v6811_v18  ;;  %v6891_v18 = vpack.c.bf16 %v3366_v6, %v3362_v5  ;;  %v3404_v5 = vld [vmem:[#allocation6 + $0x3a8] sm:$0xff]  ;;  %v6905_v6 = vpack.c.bf16 %v3389_v59, %v3385_v58  ;;  %v3615_v59 = vld [vmem:[#allocation6 + $0x460] sm:$0xff] }
 0x6bd   :  { %6874 = vmatpush1.bf16.msra.mxu1 %v6873_v17  ;;  %v3374_v17 = vld [vmem:[#allocation6 + $0x2b8] sm:$0xff] }
 0x6be   :  { %6876 = vmatprep.subr.bf16.mxu1 %v6875_v22  ;;  %v6831_v22 = vpack.c.bf16 %v3372_v14, %v3368_v12  ;;  %v6845_v12 = vpack.c.bf16 %v3395_v2, %v3391_v1  ;;  %v3402_v14 = vld [vmem:[#allocation6 + $0x398] sm:$0xff]  ;;  %v3613_v1 = vld [vmem:[#allocation6 + $0x450] sm:$0xff] }
 0x6bf   :  { %6814 = vmatpush1.bf16.msra.mxu0 %v6813_v25  ;;  %v3376_v25 = vld [vmem:[#allocation6 + $0x2c8] sm:$0xff]  ;;  %v3617_v2 = vld [vmem:[#allocation6 + $0x470] sm:$0xff] }
 0x6c0   :  { %6816 = vmatprep.subr.bf16.mxu0 %v6815_v28  ;;  %v6895_v28 = vpack.c.bf16 %v3374_v17, %v3370_v21  ;;  %v3412_v21 = vld [vmem:[#allocation6 + $0x3e8] sm:$0xff]  ;;  %v6909_v17 = vpack.c.bf16 %v3397_v10, %v3393_v9  ;;  %v3623_v9 = vld [vmem:[#allocation6 + $0x4a0] sm:$0xff] }
 0x6c1   :  { %6878 = vmatpush1.bf16.msra.mxu1 %v6877_v35  ;;  %v3382_v35 = vld [vmem:[#allocation6 + $0x2f8] sm:$0xff] }
 0x6c2   :  { %6880 = vmatprep.subr.bf16.mxu1 %v6879_v36  ;;  %v6835_v36 = vpack.c.bf16 %v3380_v26, %v3376_v25  ;;  %v6849_v25 = vpack.c.bf16 %v3403_v3, %v3399_v19  ;;  %v3410_v26 = vld [vmem:[#allocation6 + $0x3d8] sm:$0xff]  ;;  %v3625_v3 = vld [vmem:[#allocation6 + $0x4b0] sm:$0xff] }
 0x6c3   :  { %6818 = vmatpush1.bf16.msra.mxu0 %v6817_v41  ;;  %v3384_v41 = vld [vmem:[#allocation6 + $0x308] sm:$0xff] }
 0x6c4   :  { %6820 = vmatprep.subr.bf16.mxu0 %v6819_v44  ;;  %v6899_v44 = vpack.c.bf16 %v3382_v35, %v3378_v43  ;;  %v3409_v35 = vld [vmem:[#allocation6 + $0x3d0] sm:$0xff] }
 0x6c5   :  { %6882 = vmatpush1.bf16.msra.mxu1 %v6881_v49  ;;  %v3390_v49 = vld [vmem:[#allocation6 + $0x338] sm:$0xff] }
 0x6c6   :  { %6884 = vmatprep.subr.bf16.mxu1 %v6883_v51  ;;  %v6839_v51 = vpack.c.bf16 %v3388_v47, %v3384_v41  ;;  %v3286_v41 = vld [vmem:[#allocation3 + $0x28] sm:$0xff] }
 0x6c7   :  { %6822 = vmatpush1.bf16.msra.mxu0 %v6821_v54  ;;  %v3392_v54 = vld [vmem:[#allocation6 + $0x348] sm:$0xff] }
 0x6c8   :  { %6824 = vmatprep.subr.bf16.mxu0 %v6823_v57  ;;  %v6903_v57 = vpack.c.bf16 %v3390_v49, %v3386_v48  ;;  %v3604_v47 = vld [vmem:[#allocation6 + $0x408] sm:$0xff]  ;;  %v3610_v48 = vld [vmem:[#allocation6 + $0x438] sm:$0xff] }
 0x6c9   :  { %6886 = vmatpush1.bf16.msra.mxu1 %v6885_v62  ;;  %v3398_v62 = vld [vmem:[#allocation6 + $0x378] sm:$0xff] }
 0x6ca   :  { %6888 = vmatprep.subr.bf16.mxu1 %v6887_v63  ;;  %v6843_v63 = vpack.c.bf16 %v3396_v55, %v3392_v54  ;;  %v6985_v54 = vpack.c.bf16 %v3609_v53, %v3605_v52  ;;  %v3612_v55 = vld [vmem:[#allocation6 + $0x448] sm:$0xff]  ;;  %v3643_v52 = vld [vmem:[#allocation6 + $0x540] sm:$0xff] }
 0x6cb   :  { %6826 = vmatpush1.bf16.msra.mxu0 %v6825_v4  ;;  %v3400_v4 = vld [vmem:[#allocation6 + $0x388] sm:$0xff]  ;;  %v3647_v53 = vld [vmem:[#allocation6 + $0x560] sm:$0xff] }
 0x6cc   :  { %6828 = vmatprep.subr.bf16.mxu0 %v6827_v8  ;;  %v6907_v8 = vpack.c.bf16 %v3398_v62, %v3394_v61  ;;  %v3618_v61 = vld [vmem:[#allocation6 + $0x478] sm:$0xff] }
 0x6cd   :  { %6890 = vmatpush1.bf16.msra.mxu1 %v6889_v15  ;;  %v3406_v15 = vld [vmem:[#allocation6 + $0x3b8] sm:$0xff] }
 0x6ce   :  { %6892 = vmatprep.subr.bf16.mxu1 %v6891_v18  ;;  %v6847_v18 = vpack.c.bf16 %v3404_v5, %v3400_v4  ;;  %v3620_v4 = vld [vmem:[#allocation6 + $0x488] sm:$0xff]  ;;  %v6989_v5 = vpack.c.bf16 %v3617_v2, %v3613_v1  ;;  %v3651_v1 = vld [vmem:[#allocation6 + $0x580] sm:$0xff] }
 0x6cf   :  { %6830 = vmatpush1.bf16.msra.mxu0 %v6829_v20  ;;  %v3408_v20 = vld [vmem:[#allocation6 + $0x3c8] sm:$0xff]  ;;  %v3655_v2 = vld [vmem:[#allocation6 + $0x5a0] sm:$0xff] }
 0x6d0   :  { %6832 = vmatprep.subr.bf16.mxu0 %v6831_v22  ;;  %v6911_v22 = vpack.c.bf16 %v3406_v15, %v3402_v14  ;;  %v3622_v14 = vld [vmem:[#allocation6 + $0x498] sm:$0xff] }
 0x6d1   :  { %6894 = vmatpush1.bf16.msra.mxu1 %v6893_v27  ;;  %v3414_v27 = vld [vmem:[#allocation6 + $0x3f8] sm:$0xff] }
 0x6d2   :  { %6896 = vmatprep.subr.bf16.mxu1 %v6895_v28  ;;  %v6851_v28 = vpack.c.bf16 %v3412_v21, %v3408_v20  ;;  %v6915_v43 = vpack.c.bf16 %v3414_v27, %v3410_v26  ;;  %v3626_v15 = vld [vmem:[#allocation6 + $0x4b8] sm:$0xff]  ;;  %v3628_v20 = vld [vmem:[#allocation6 + $0x4c8] sm:$0xff]  ;;  %v3629_v27 = vld [vmem:[#allocation6 + $0x4d0] sm:$0xff] }
 0x6d3   :  { %6834 = vmatpush1.bf16.msra.mxu0 %v6833_v32  ;;  %v6913_v32 = vpack.c.bf16 %v3405_v0, %v3401_v23  ;;  %v6991_v19 = vpack.c.bf16 %v3626_v15, %v3622_v14  ;;  %v3632_v21 = vld [vmem:[#allocation6 + $0x4e8] sm:$0xff]  ;;  %v3627_v23 = vld [vmem:[#allocation6 + $0x4c0] sm:$0xff]  ;;  %v3634_v26 = vld [vmem:[#allocation6 + $0x4f8] sm:$0xff] }
 0x6d4   :  { %6836 = vmatprep.subr.bf16.mxu0 %v6835_v36  ;;  %v3413_v36 = vld [vmem:[#allocation6 + $0x3f0] sm:$0xff]  ;;  %v3631_v0 = vld [vmem:[#allocation6 + $0x4e0] sm:$0xff]  ;;  %v3660_v14 = vld [vmem:[#allocation6 + $0x5c8] sm:$0xff] }
 0x6d5   :  { %6898 = vmatpush1.bf16.msra.mxu1 %v6897_v42  ;;  %v6917_v34 = vpack.c.bf16 %v3413_v36, %v3409_v35  ;;  %v3608_v42 = vld [vmem:[#allocation6 + $0x428] sm:$0xff]  ;;  %v6933_v29 = vpack.c.bf16 %v3631_v0, %v3627_v23  ;;  %v3635_v35 = vld [vmem:[#allocation6 + $0x500] sm:$0xff]  ;;  %v3665_v23 = vld [vmem:[#allocation6 + $0x5f0] sm:$0xff] }
 0x6d6   :  { %6900 = vmatprep.subr.bf16.mxu1 %v6899_v44  ;;  %v3603_v44 = vld [vmem:[#allocation6 + $0x400] sm:$0xff]  ;;  %v6919_v31 = vpack.c.bf16 %v3608_v42, %v3604_v47  ;;  %v3642_v47 = vld [vmem:[#allocation6 + $0x538] sm:$0xff]  ;;  %v3664_v15 = vld [vmem:[#allocation6 + $0x5e8] sm:$0xff] }
 0x6d7   :  { %6838 = vmatpush1.bf16.msra.mxu0 %v6837_v46  ;;  %v3606_v46 = vld [vmem:[#allocation6 + $0x418] sm:$0xff]  ;;  %v6921_v49 = vpack.c.bf16 %v3607_v45, %v3603_v44  ;;  %v3641_v45 = vld [vmem:[#allocation6 + $0x530] sm:$0xff] }
 0x6d8   :  { %6840 = vmatprep.subr.bf16.mxu0 %v6839_v51  ;;  %v6983_v51 = vpack.c.bf16 %v3610_v48, %v3606_v46  ;;  %v3644_v48 = vld [vmem:[#allocation6 + $0x548] sm:$0xff] }
 0x6d9   :  { %6902 = vmatpush1.bf16.msra.mxu1 %v6901_v56  ;;  %v3616_v56 = vld [vmem:[#allocation6 + $0x468] sm:$0xff] }
 0x6da   :  { %6904 = vmatprep.subr.bf16.mxu1 %v6903_v57  ;;  %v3611_v57 = vld [vmem:[#allocation6 + $0x440] sm:$0xff]  ;;  %v6923_v58 = vpack.c.bf16 %v3616_v56, %v3612_v55  ;;  %v6941_v55 = vpack.c.bf16 %v3647_v53, %v3643_v52  ;;  %v3650_v56 = vld [vmem:[#allocation6 + $0x578] sm:$0xff]  ;;  %v3681_v52 = vld [vmem:[#allocation6 + $0x670] sm:$0xff] }
 0x6db   :  { %6842 = vmatpush1.bf16.msra.mxu0 %v6841_v60  ;;  %v3614_v60 = vld [vmem:[#allocation6 + $0x458] sm:$0xff]  ;;  %v6925_v62 = vpack.c.bf16 %v3615_v59, %v3611_v57  ;;  %v3645_v57 = vld [vmem:[#allocation6 + $0x550] sm:$0xff] }
 0x6dc   :  { %6844 = vmatprep.subr.bf16.mxu0 %v6843_v63  ;;  %v6987_v63 = vpack.c.bf16 %v3618_v61, %v3614_v60  ;;  %v3652_v61 = vld [vmem:[#allocation6 + $0x588] sm:$0xff] }
 0x6dd   :  { %6906 = vmatpush1.bf16.msra.mxu1 %v6905_v6  ;;  %v3624_v6 = vld [vmem:[#allocation6 + $0x4a8] sm:$0xff] }
 0x6de   :  { %6908 = vmatprep.subr.bf16.mxu1 %v6907_v8  ;;  %v3619_v8 = vld [vmem:[#allocation6 + $0x480] sm:$0xff]  ;;  %v6927_v10 = vpack.c.bf16 %v3624_v6, %v3620_v4  ;;  %v3654_v4 = vld [vmem:[#allocation6 + $0x598] sm:$0xff] }
 0x6df   :  { %6846 = vmatpush1.bf16.msra.mxu0 %v6845_v12  ;;  %v6929_v12 = vpack.c.bf16 %v3623_v9, %v3619_v8  ;;  %v3658_v6 = vld [vmem:[#allocation6 + $0x5b8] sm:$0xff]  ;;  %v3653_v8 = vld [vmem:[#allocation6 + $0x590] sm:$0xff] }
 0x6e0   :  { %6848 = vmatprep.subr.bf16.mxu0 %v6847_v18  ;;  %v3621_v18 = vld [vmem:[#allocation6 + $0x490] sm:$0xff] }
 0x6e1   :  { %6910 = vmatpush1.bf16.msra.mxu1 %v6909_v17  ;;  %v6993_v17 = vpack.c.bf16 %v3625_v3, %v3621_v18  ;;  %v3657_v9 = vld [vmem:[#allocation6 + $0x5b0] sm:$0xff]  ;;  %v6947_v18 = vpack.c.bf16 %v3664_v15, %v3660_v14  ;;  %v3663_v3 = vld [vmem:[#allocation6 + $0x5e0] sm:$0xff]  ;;  %v3698_v15 = vld [vmem:[#allocation6 + $0x6f8] sm:$0xff] }
 0x6e2   :  { %6912 = vmatprep.subr.bf16.mxu1 %v6911_v22  ;;  %v6931_v22 = vpack.c.bf16 %v3632_v21, %v3628_v20  ;;  %v3662_v20 = vld [vmem:[#allocation6 + $0x5d8] sm:$0xff] }
 0x6e3   :  { %6850 = vmatpush1.bf16.msra.mxu0 %v6849_v25  ;;  %v3630_v25 = vld [vmem:[#allocation6 + $0x4d8] sm:$0xff] }
 0x6e4   :  { %6852 = vmatprep.subr.bf16.mxu0 %v6851_v28  ;;  %v3633_v28 = vld [vmem:[#allocation6 + $0x4f0] sm:$0xff]  ;;  %v6995_v30 = vpack.c.bf16 %v3634_v26, %v3630_v25  ;;  %v3668_v26 = vld [vmem:[#allocation6 + $0x608] sm:$0xff] }
 0x6e5   :  { %6914 = vmatpush1.bf16.msra.mxu1 %v6913_v32  ;;  %v3636_v32 = vld [vmem:[#allocation6 + $0x508] sm:$0xff]  ;;  %v6997_v36 = vpack.c.bf16 %v3633_v28, %v3629_v27 }
 0x6e6   :  { %6916 = vmatprep.subr.bf16.mxu1 %v6915_v43  ;;  %v3640_v43 = vld [vmem:[#allocation6 + $0x528] sm:$0xff] }
 0x6e7   :  { %6854 = vmatpush1.bf16.msra.mxu0 %v6853_v39  ;;  %v6935_v39 = vpack.c.bf16 %v3640_v43, %v3636_v32  ;;  %v3672_v27 = vld [vmem:[#allocation6 + $0x628] sm:$0xff]  ;;  %v3670_v32 = vld [vmem:[#allocation6 + $0x618] sm:$0xff] }
 0x6e8   :  { %6920 = vmatprep.subr.bf16.mxu0 %v6919_v31  ;;  %v3637_v31 = vld [vmem:[#allocation6 + $0x510] sm:$0xff]  ;;  %v6951_v28 = vpack.c.bf16 %v3672_v27, %v3668_v26  ;;  %v3706_v27 = vld [vmem:[#allocation6 + $0x738] sm:$0xff] }
 0x6e9   :  { %6918 = vmatpush1.bf16.msra.mxu1 %v6917_v34  ;;  %v3639_v34 = vld [vmem:[#allocation6 + $0x520] sm:$0xff]  ;;  %v7001_v46 = vpack.c.bf16 %v3641_v45, %v3637_v31 }
 0x6ea   :  { %3502 = vmatmul.mubr.f32.vlgmr.msra.gmra.mrb[20].mxu0 %v3286_v41  ;;  %6984 = vmatprep.subr.bf16.mxu1 %v6983_v51  ;;  %v6937_v44 = vpack.c.bf16 %v3639_v34, %v3635_v35  ;;  %v3674_v35 = vld [vmem:[#allocation6 + $0x638] sm:$0xff]  ;;  %v3675_v31 = vld [vmem:[#allocation6 + $0x640] sm:$0xff] }
 0x6eb   :  { %6922 = vmatpush1.bf16.msra.mxu0 %v6921_v49  ;;  %v3648_v49 = vld [vmem:[#allocation6 + $0x568] sm:$0xff]  ;;  %v7015_v34 = vpack.c.bf16 %v3674_v35, %v3670_v32  ;;  %v3679_v45 = vld [vmem:[#allocation6 + $0x660] sm:$0xff] }
 0x6ec   :  { %3573 = vmatmul.mubr.f32.vlgmr.msra.gmra.mrb[20].mxu1 %v3286_v41  ;;  %6924 = vmatprep.subr.bf16.mxu0 %v6923_v58  ;;  %v3638_v41 = vld [vmem:[#allocation6 + $0x518] sm:$0xff]  ;;  %v6939_v51 = vpack.c.bf16 %v3648_v49, %v3644_v48  ;;  %v3649_v58 = vld [vmem:[#allocation6 + $0x570] sm:$0xff]  ;;  %v6957_v48 = vpack.c.bf16 %v3679_v45, %v3675_v31  ;;  %v3712_v35 = vld [vmem:[#allocation6 + $0x768] sm:$0xff] }
 0x6ed   :  { %6986 = vmatpush1.bf16.msra.mxu1 %v6985_v54  ;;  %v6999_v42 = vpack.c.bf16 %v3642_v47, %v3638_v41  ;;  %v3646_v54 = vld [vmem:[#allocation6 + $0x558] sm:$0xff]  ;;  %v7005_v60 = vpack.c.bf16 %v3649_v58, %v3645_v57  ;;  %v3676_v47 = vld [vmem:[#allocation6 + $0x648] sm:$0xff]  ;;  %v3683_v58 = vld [vmem:[#allocation6 + $0x680] sm:$0xff] }
 0x6ee   :  { %6988 = vmatprep.subr.bf16.mxu1 %v6987_v63  ;;  %v7003_v59 = vpack.c.bf16 %v3650_v56, %v3646_v54  ;;  %v3682_v49 = vld [vmem:[#allocation6 + $0x678] sm:$0xff]  ;;  %v3688_v56 = vld [vmem:[#allocation6 + $0x6a8] sm:$0xff]  ;;  %v3713_v31 = vld [vmem:[#allocation6 + $0x770] sm:$0xff] }
 0x6ef   :  { %6926 = vmatpush1.bf16.msra.mxu0 %v6925_v62  ;;  %v3656_v62 = vld [vmem:[#allocation6 + $0x5a8] sm:$0xff] }
 0x6f0   :  { %6928 = vmatprep.subr.bf16.mxu0 %v6927_v10  ;;  %v6943_v63 = vpack.c.bf16 %v3656_v62, %v3652_v61  ;;  %v7007_v10 = vpack.c.bf16 %v3658_v6, %v3654_v4  ;;  %v3690_v62 = vld [vmem:[#allocation6 + $0x6b8] sm:$0xff]  ;;  %v3696_v6 = vld [vmem:[#allocation6 + $0x6e8] sm:$0xff] }
 0x6f1   :  { %6990 = vmatpush1.bf16.msra.mxu1 %v6989_v5  ;;  %v6945_v5 = vpack.c.bf16 %v3655_v2, %v3651_v1  ;;  %v3689_v1 = vld [vmem:[#allocation6 + $0x6b0] sm:$0xff] }
 0x6f2   :  { %6992 = vmatprep.subr.bf16.mxu1 %v6991_v19  ;;  %v3659_v19 = vld [vmem:[#allocation6 + $0x5c0] sm:$0xff] }
 0x6f3   :  { %6930 = vmatpush1.bf16.msra.mxu0 %v6929_v12  ;;  %v7009_v12 = vpack.c.bf16 %v3657_v9, %v3653_v8  ;;  %v6949_v21 = vpack.c.bf16 %v3663_v3, %v3659_v19  ;;  %v3691_v9 = vld [vmem:[#allocation6 + $0x6c0] sm:$0xff]  ;;  %v3697_v19 = vld [vmem:[#allocation6 + $0x6f0] sm:$0xff] }
 0x6f4   :  { %6932 = vmatprep.subr.bf16.mxu0 %v6931_v22  ;;  %v3661_v22 = vld [vmem:[#allocation6 + $0x5d0] sm:$0xff] }
 0x6f5   :  { %6994 = vmatpush1.bf16.msra.mxu1 %v6993_v17  ;;  %v3666_v17 = vld [vmem:[#allocation6 + $0x5f8] sm:$0xff]  ;;  %v7013_v25 = vpack.c.bf16 %v3665_v23, %v3661_v22  ;;  %v3699_v23 = vld [vmem:[#allocation6 + $0x700] sm:$0xff] }
 0x6f6   :  { %6996 = vmatprep.subr.bf16.mxu1 %v6995_v30  ;;  %v7011_v0 = vpack.c.bf16 %v3666_v17, %v3662_v20  ;;  %v3671_v30 = vld [vmem:[#allocation6 + $0x620] sm:$0xff]  ;;  %v3704_v17 = vld [vmem:[#allocation6 + $0x728] sm:$0xff] }
 0x6f7   :  { %6934 = vmatpush1.bf16.msra.mxu0 %v6933_v29  ;;  %v3667_v29 = vld [vmem:[#allocation6 + $0x600] sm:$0xff] }
 0x6f8   :  { %6936 = vmatprep.subr.bf16.mxu0 %v6935_v39  ;;  %v6953_v43 = vpack.c.bf16 %v3671_v30, %v3667_v29  ;;  %v3673_v39 = vld [vmem:[#allocation6 + $0x630] sm:$0xff] }
 0x6f9   :  { %6998 = vmatpush1.bf16.msra.mxu1 %v6997_v36  ;;  %v3669_v36 = vld [vmem:[#allocation6 + $0x610] sm:$0xff] }
 0x6fa   :  { %7000 = vmatprep.subr.bf16.mxu1 %v6999_v42  ;;  %v7017_v41 = vpack.c.bf16 %v3673_v39, %v3669_v36  ;;  %v3680_v42 = vld [vmem:[#allocation6 + $0x668] sm:$0xff]  ;;  %v3705_v29 = vld [vmem:[#allocation6 + $0x730] sm:$0xff]  ;;  %v3707_v39 = vld [vmem:[#allocation6 + $0x740] sm:$0xff] }
 0x6fb   :  { %6938 = vmatpush1.bf16.msra.mxu0 %v6937_v44  ;;  %v6955_v44 = vpack.c.bf16 %v3680_v42, %v3676_v47  ;;  %v3714_v42 = vld [vmem:[#allocation6 + $0x778] sm:$0xff] }
 0x6fc   :  { %6940 = vmatprep.subr.bf16.mxu0 %v6939_v51  ;;  %v3677_v51 = vld [vmem:[#allocation6 + $0x650] sm:$0xff] }
 0x6fd   :  { %7002 = vmatpush1.bf16.msra.mxu1 %v7001_v46  ;;  %v3678_v46 = vld [vmem:[#allocation6 + $0x658] sm:$0xff]  ;;  %v7021_v54 = vpack.c.bf16 %v3681_v52, %v3677_v51  ;;  %v3715_v51 = vld [vmem:[#allocation6 + $0x780] sm:$0xff] }
 0x6fe   :  { %7004 = vmatprep.subr.bf16.mxu1 %v7003_v59  ;;  %v7019_v53 = vpack.c.bf16 %v3682_v49, %v3678_v46  ;;  %v3687_v59 = vld [vmem:[#allocation6 + $0x6a0] sm:$0xff]  ;;  %v3720_v49 = vld [vmem:[#allocation6 + $0x7a8] sm:$0xff] }
 0x6ff   :  { %6942 = vmatpush1.bf16.msra.mxu0 %v6941_v55  ;;  %v3684_v55 = vld [vmem:[#allocation6 + $0x688] sm:$0xff]  ;;  %v6961_v61 = vpack.c.bf16 %v3687_v59, %v3683_v58  ;;  %v3717_v58 = vld [vmem:[#allocation6 + $0x790] sm:$0xff] }
 0x700   :  { %6944 = vmatprep.subr.bf16.mxu0 %v6943_v63  ;;  %v6959_v57 = vpack.c.bf16 %v3688_v56, %v3684_v55  ;;  %v3685_v63 = vld [vmem:[#allocation6 + $0x690] sm:$0xff]  ;;  %v3722_v55 = vld [vmem:[#allocation6 + $0x7b8] sm:$0xff] }
 0x701   :  { %7006 = vmatpush1.bf16.msra.mxu1 %v7005_v60  ;;  %v3686_v60 = vld [vmem:[#allocation6 + $0x698] sm:$0xff]  ;;  %v7025_v4 = vpack.c.bf16 %v3689_v1, %v3685_v63  ;;  %v3721_v59 = vld [vmem:[#allocation6 + $0x7b0] sm:$0xff]  ;;  %v3723_v63 = vld [vmem:[#allocation6 + $0x7c0] sm:$0xff] }
 0x702   :  { %7008 = vmatprep.subr.bf16.mxu1 %v7007_v10  ;;  %v7023_v2 = vpack.c.bf16 %v3690_v62, %v3686_v60  ;;  %v3695_v10 = vld [vmem:[#allocation6 + $0x6e0] sm:$0xff]  ;;  %v3724_v60 = vld [vmem:[#allocation6 + $0x7c8] sm:$0xff] }
 0x703   :  { %6946 = vmatpush1.bf16.msra.mxu0 %v6945_v5  ;;  %v3692_v5 = vld [vmem:[#allocation6 + $0x6c8] sm:$0xff]  ;;  %v6965_v14 = vpack.c.bf16 %v3695_v10, %v3691_v9  ;;  %v3727_v1 = vld [vmem:[#allocation6 + $0x7e0] sm:$0xff]  ;;  %v3729_v10 = vld [vmem:[#allocation6 + $0x7f0] sm:$0xff] }
 0x704   :  { %6948 = vmatprep.subr.bf16.mxu0 %v6947_v18  ;;  %v6963_v8 = vpack.c.bf16 %v3696_v6, %v3692_v5  ;;  %v3693_v18 = vld [vmem:[#allocation6 + $0x6d0] sm:$0xff]  ;;  %v3728_v62 = vld [vmem:[#allocation6 + $0x7e8] sm:$0xff]  ;;  %v3730_v5 = vld [vmem:[#allocation6 + $0x7f8] sm:$0xff] }
 0x705   :  { %7010 = vmatpush1.bf16.msra.mxu1 %v7009_v12  ;;  %v3694_v12 = vld [vmem:[#allocation6 + $0x6d8] sm:$0xff]  ;;  %v7029_v20 = vpack.c.bf16 %v3697_v19, %v3693_v18  ;;  %v3725_v6 = vld [vmem:[#allocation6 + $0x7d0] sm:$0xff]  ;;  %v3095_v19 = vld [vmem:[#allocation8 + $0x4] sm:$0xf] }
 0x706   :  { %7012 = vmatprep.subr.bf16.mxu1 %v7011_v0  ;;  %v7027_v3 = vpack.c.bf16 %v3698_v15, %v3694_v12  ;;  %v3703_v0 = vld [vmem:[#allocation6 + $0x720] sm:$0xff]  ;;  %v3924_v12 = vld [vmem:[#allocation6 + $0x8] sm:$0xff]  ;;  %v7045_v18 = vpack.c.bf16 %v3729_v10, %v3725_v6 }
 0x707   :  { %6950 = vmatpush1.bf16.msra.mxu0 %v6949_v21  ;;  %v3700_v21 = vld [vmem:[#allocation6 + $0x708] sm:$0xff]  ;;  %v6969_v26 = vpack.c.bf16 %v3703_v0, %v3699_v23 }
 0x708   :  { %6952 = vmatprep.subr.bf16.mxu0 %v6951_v28  ;;  %v6967_v22 = vpack.c.bf16 %v3704_v17, %v3700_v21  ;;  %v3701_v28 = vld [vmem:[#allocation6 + $0x710] sm:$0xff]  ;;  %v3100_v17 = vrot.slane %v3095_v19, %v8202_v11 }
 0x709   :  { %7014 = vmatpush1.bf16.msra.mxu1 %v7013_v25  ;;  %v3702_v25 = vld [vmem:[#allocation6 + $0x718] sm:$0xff]  ;;  %v7033_v32 = vpack.c.bf16 %v3705_v29, %v3701_v28 }
 0x70a   :  { %7016 = vmatprep.subr.bf16.mxu1 %v7015_v34  ;;  %v7031_v30 = vpack.c.bf16 %v3706_v27, %v3702_v25  ;;  %v3711_v34 = vld [vmem:[#allocation6 + $0x760] sm:$0xff] }
 0x70b   :  { %6954 = vmatpush1.bf16.msra.mxu0 %v6953_v43  ;;  %v3708_v43 = vld [vmem:[#allocation6 + $0x748] sm:$0xff]  ;;  %v6973_v47 = vpack.c.bf16 %v3711_v34, %v3707_v39 }
 0x70c   :  { %6956 = vmatprep.subr.bf16.mxu0 %v6955_v44  ;;  %v6971_v36 = vpack.c.bf16 %v3712_v35, %v3708_v43  ;;  %v3709_v44 = vld [vmem:[#allocation6 + $0x750] sm:$0xff]  ;;  %v3108_v35 = vrot.slane %v3095_v19, %v8211_v24 }
 0x70d   :  { %7018 = vmatpush1.bf16.msra.mxu1 %v7017_v41  ;;  %v3710_v41 = vld [vmem:[#allocation6 + $0x758] sm:$0xff]  ;;  %v7037_v46 = vpack.c.bf16 %v3713_v31, %v3709_v44 }
 0x70e   :  { %7020 = vmatprep.subr.bf16.mxu1 %v7019_v53  ;;  %v7035_v45 = vpack.c.bf16 %v3714_v42, %v3710_v41  ;;  %v3719_v53 = vld [vmem:[#allocation6 + $0x7a0] sm:$0xff] }
 0x70f   :  { %6958 = vmatpush1.bf16.msra.mxu0 %v6957_v48  ;;  %v3716_v48 = vld [vmem:[#allocation6 + $0x788] sm:$0xff]  ;;  %v6977_v56 = vpack.c.bf16 %v3719_v53, %v3715_v51 }
 0x710   :  { %6960 = vmatprep.subr.bf16.mxu0 %v6959_v57  ;;  %v6975_v52 = vpack.c.bf16 %v3720_v49, %v3716_v48 }
 0x711   :  { %7022 = vmatpush1.bf16.msra.mxu1 %v7021_v54  ;;  %v3718_v54 = vld [vmem:[#allocation6 + $0x798] sm:$0xff] }
 0x712   :  { %7024 = vmatprep.subr.bf16.mxu1 %v7023_v2  ;;  %v7039_v57 = vpack.c.bf16 %v3722_v55, %v3718_v54  ;;  %v6979_v2 = vpack.c.bf16 %v3728_v62, %v3724_v60 }
 0x713   :  { %6962 = vmatpush1.bf16.msra.mxu0 %v6961_v61  ;;  %v7041_v61 = vpack.c.bf16 %v3721_v59, %v3717_v58 }
 0x714   :  { %6964 = vmatprep.subr.bf16.mxu0 %v6963_v8  ;;  %v6981_v8 = vpack.c.bf16 %v3727_v1, %v3723_v63 }
 0x715   :  { %7026 = vmatpush1.bf16.msra.mxu1 %v7025_v4  ;;  %v3726_v4 = vld [vmem:[#allocation6 + $0x7d8] sm:$0xff] }
 0x716   :  { %7028 = vmatprep.subr.bf16.mxu1 %v7027_v3  ;;  %v7043_v9 = vpack.c.bf16 %v3730_v5, %v3726_v4  ;;  %v3926_v3 = vld [vmem:[#allocation6 + $0x18] sm:$0xff] }
 0x717   :  { %6966 = vmatpush1.bf16.msra.mxu0 %v6965_v14  ;;  %v3928_v14 = vld [vmem:[#allocation6 + $0x28] sm:$0xff] }
 0x718   :  { %6968 = vmatprep.subr.bf16.mxu0 %v6967_v22  ;;  %v7047_v15 = vpack.c.bf16 %v3928_v14, %v3924_v12  ;;  %v3104_v22 = vrot.slane %v3095_v19, %v8204_v13 }
 0x719   :  { %7030 = vmatpush1.bf16.msra.mxu1 %v7029_v20  ;;  %v3930_v20 = vld [vmem:[#allocation6 + $0x38] sm:$0xff] }
 0x71a   :  { %7032 = vmatprep.subr.bf16.mxu1 %v7031_v30  ;;  %v7111_v21 = vpack.c.bf16 %v3930_v20, %v3926_v3 }
 0x71b   :  { %6970 = vmatpush1.bf16.msra.mxu0 %v6969_v26 }
 0x71c   :  { %6972 = vmatprep.subr.bf16.mxu0 %v6971_v36 }
 0x71d   :  { %7034 = vmatpush1.bf16.msra.mxu1 %v7033_v32  ;;  %v3112_v32 = vrot.slane %v3095_v19, %v8208_v16 }
 0x71e   :  { %7036 = vmatprep.subr.bf16.mxu1 %v7035_v45 }
 0x71f   :  { %6974 = vmatpush1.bf16.msra.mxu0 %v6973_v47 }
 0x720   :  { %6976 = vmatprep.subr.bf16.mxu0 %v6975_v52 }
 0x721   :  { %7038 = vmatpush1.bf16.msra.mxu1 %v7037_v46 }
 0x722   :  { %7040 = vmatprep.subr.bf16.mxu1 %v7039_v57 }
 0x723   :  { %6978 = vmatpush1.bf16.msra.mxu0 %v6977_v56  ;;  %v3415_v56 = vld [vmem:[#allocation8] sm:$0xf] }
 0x724   :  { %6980 = vmatprep.subr.bf16.mxu0 %v6979_v2  ;;  %v3420_v57 = vrot.slane %v3415_v56, %v8202_v11  ;;  %v3424_v58 = vrot.slane %v3415_v56, %v8204_v13  ;;  %v3432_v1 = vrot.slane %v3415_v56, %v8208_v16  ;;  %v3428_v6 = vrot.slane %v3415_v56, %v8211_v24  ;;  %v3943_v56 = vld [vmem:[#allocation6 + $0xa0] sm:$0xff] }
 0x725   :  { %7042 = vmatpush1.bf16.msra.mxu1 %v7041_v61 }
 0x726   :  { %7044 = vmatprep.subr.bf16.mxu1 %v7043_v9 }
 0x727   :  { %6982 = vmatpush1.bf16.msra.mxu0 %v6981_v8 }
 0x728   :  { %7048 = vmatprep.subr.bf16.mxu0 %v7047_v15 }
 0x729   :  { %7046 = vmatpush1.bf16.msra.mxu1 %v7045_v18 }
 0x72a   :  { %7112 = vmatprep.subr.bf16.mxu1 %v7111_v21 }
 0x77d   :  { %v3183_v23 = vpop.f32.mrb[18].mxu0  ;;  %v3254_v0 = vpop.f32.mrb[18].mxu1 }
 0x77e   :  { %v3184_v25 = vadd.f32 %v3183_v23, %v3100_v17  ;;  %v3185_v26 = vpop.f32.mrb[19].mxu0  ;;  %v3256_v27 = vpop.f32.mrb[19].mxu1  ;;  %v3255_v39 = vadd.f32 %v3254_v0, %v3108_v35  ;;  %v3923_v0 = vld [vmem:[#allocation6] sm:$0xff]  ;;  %v3934_v35 = vld [vmem:[#allocation6 + $0x58] sm:$0xff] }
 0x77f   :  { %v3186_v28 = vadd.f32 %v3185_v26, %v3104_v22  ;;  %v3257_v43 = vadd.f32 %v3256_v27, %v3112_v32  ;;  %v3932_v27 = vld [vmem:[#allocation6 + $0x48] sm:$0xff] }
 0x780   :  { %v5421_v29 = vmul.f32 -1.442695, %v3184_v25  ;;  %v3927_v25 = vld [vmem:[#allocation6 + $0x20] sm:$0xff] }
 0x781   :  { %v5422_v30 = vmul.f32 -1.442695, %v3186_v28  ;;  %v5423_v36 = vmul.f32 -1.442695, %v3257_v43  ;;  %v3936_v28 = vld [vmem:[#allocation6 + $0x68] sm:$0xff]  ;;  %v7049_v43 = vpack.c.bf16 %v3927_v25, %v3923_v0 }
 0x782   :  { %7765 = vpow2.f32 %v5421_v29  ;;  %v3925_v29 = vld [vmem:[#allocation6 + $0x10] sm:$0xff] }
 0x783   :  { %7767 = vpow2.f32 %v5422_v30  ;;  %v3929_v30 = vld [vmem:[#allocation6 + $0x30] sm:$0xff] }
 0x784   :  { %7769 = vpow2.f32 %v5423_v36  ;;  %v3938_v36 = vld [vmem:[#allocation6 + $0x78] sm:$0xff] }
 0x785   :  { %7771 = vtanh.f32 %v3255_v39 }
 0x78c   :  { %v7766_v34 = vpop.eup %7765 }
 0x78d   :  { %v7768_v41 = vpop.eup %7767  ;;  %v3262_v47 = vadd.f32 1.0, %v7766_v34  ;;  %v7051_v34 = vpack.c.bf16 %v3936_v28, %v3932_v27  ;;  %v3961_v27 = vld [vmem:[#allocation6 + $0x130] sm:$0xff] }
 0x78e   :  { %v3268_v42 = vadd.f32 1.0, %v7768_v41  ;;  %v7770_v44 = vpop.eup %7769  ;;  %v3931_v41 = vld [vmem:[#allocation6 + $0x40] sm:$0xff] }
 0x78f   :  { %7773 = vrcp.f32 %v3262_v47  ;;  %v7772_v31 = vpop.eup %7771  ;;  %v3275_v49 = vadd.f32 1.0, %v7770_v44  ;;  %v3940_v47 = vld [vmem:[#allocation6 + $0x88] sm:$0xff]  ;;  %v7113_v44 = vpack.c.bf16 %v3929_v30, %v3925_v29  ;;  %v3966_v29 = vld [vmem:[#allocation6 + $0x158] sm:$0xff] }
 0x790   :  { %7775 = vrcp.f32 %v3268_v42  ;;  %v3944_v42 = vld [vmem:[#allocation6 + $0xa8] sm:$0xff]  ;;  %v3970_v30 = vld [vmem:[#allocation6 + $0x178] sm:$0xff] }
 0x791   :  { %7777 = vrcp.f32 %v3275_v49  ;;  %v3942_v49 = vld [vmem:[#allocation6 + $0x98] sm:$0xff] }
 0x799   :  { %v7774_v45 = vpop.eup %7773 }
 0x79a   :  { %v7776_v46 = vpop.eup %7775  ;;  %v3279_v48 = vmul.f32 %v7774_v45, %v7772_v31  ;;  %v7115_v31 = vpack.c.bf16 %v3938_v36, %v3934_v35  ;;  %v3933_v45 = vld [vmem:[#allocation6 + $0x50] sm:$0xff]  ;;  %v3967_v35 = vld [vmem:[#allocation6 + $0x160] sm:$0xff]  ;;  %v3972_v36 = vld [vmem:[#allocation6 + $0x188] sm:$0xff] }
 0x79b   :  { %v3278_v51 = vmul.f32 %v7776_v46, %v8281_v38  ;;  %v7778_v53 = vpop.eup %7777  ;;  %v3937_v46 = vld [vmem:[#allocation6 + $0x70] sm:$0xff] }
 0x79d   :  { %v8301_v52 = vadd.f32 %v3279_v48, %v3278_v51  ;;  %v3946_v51 = vld [vmem:[#allocation6 + $0xb8] sm:$0xff] }
 0x79f   :  { %7779 = vtanh.f32 %v8301_v52 }
 0x7a9   :  { %v7780_v54 = vpop.eup %7779 }
 0x7aa   :  { %v8304_v55 = vmul.f32 %v7780_v54, %v7778_v53  ;;  %v7055_v53 = vpack.c.bf16 %v3944_v42, %v3940_v47  ;;  %v3939_v54 = vld [vmem:[#allocation6 + $0x80] sm:$0xff]  ;;  %v3969_v47 = vld [vmem:[#allocation6 + $0x170] sm:$0xff] }
 0x7ac   :  { %3817 = vmatprep.mubr.f32.mxu0 %v8304_v55  ;;  %3888 = vmatprep.mubr.f32.mxu1 %v8304_v55 }
 0x7bd   :  { %v3503_v59 = vpop.f32.mrb[20].mxu0 }
 0x7be   :  { %v3504_v38 = vadd.f32 %v3503_v59, %v3420_v57  ;;  %v3505_v60 = vpop.f32.mrb[21].mxu0  ;;  %v3948_v57 = vld [vmem:[#allocation6 + $0xc8] sm:$0xff]  ;;  %v7117_v59 = vpack.c.bf16 %v3937_v46, %v3933_v45  ;;  %v3971_v46 = vld [vmem:[#allocation6 + $0x180] sm:$0xff] }
 0x7bf   :  { %v3506_v61 = vadd.f32 %v3505_v60, %v3424_v58  ;;  %v3574_v62 = vpop.f32.mrb[20].mxu1  ;;  %v3952_v58 = vld [vmem:[#allocation6 + $0xe8] sm:$0xff]  ;;  %v3941_v60 = vld [vmem:[#allocation6 + $0x90] sm:$0xff] }
 0x7c0   :  { %v5424_v63 = vmul.f32 -1.442695, %v3504_v38  ;;  %v3576_v2 = vpop.f32.mrb[21].mxu1  ;;  %v3575_v9 = vadd.f32 %v3574_v62, %v3428_v6  ;;  %v7119_v38 = vpack.c.bf16 %v3946_v51, %v3942_v49  ;;  %v7057_v62 = vpack.c.bf16 %v3943_v56, %v3939_v54  ;;  %v3956_v6 = vld [vmem:[#allocation6 + $0x108] sm:$0xff]  ;;  %v3973_v56 = vld [vmem:[#allocation6 + $0x190] sm:$0xff] }
 0x7c1   :  { %v5425_v4 = vmul.f32 -1.442695, %v3506_v61  ;;  %v3577_v5 = vadd.f32 %v3576_v2, %v3432_v1  ;;  %v3945_v61 = vld [vmem:[#allocation6 + $0xb0] sm:$0xff]  ;;  %v3954_v1 = vld [vmem:[#allocation6 + $0xf8] sm:$0xff]  ;;  %v7059_v2 = vpack.c.bf16 %v3952_v58, %v3948_v57  ;;  %v3980_v49 = vld [vmem:[#allocation6 + $0x1c8] sm:$0xff] }
 0x7c2   :  { %7781 = vpow2.f32 %v5424_v63  ;;  %v3950_v63 = vld [vmem:[#allocation6 + $0xd8] sm:$0xff]  ;;  %v3984_v51 = vld [vmem:[#allocation6 + $0x1e8] sm:$0xff]  ;;  %v3977_v57 = vld [vmem:[#allocation6 + $0x1b0] sm:$0xff] }
 0x7c3   :  { %7783 = vpow2.f32 %v5425_v4  ;;  %v5426_v8 = vmul.f32 -1.442695, %v3577_v5  ;;  %v3947_v4 = vld [vmem:[#allocation6 + $0xc0] sm:$0xff] }
 0x7c4   :  { %v3951_v5 = vld [vmem:[#allocation6 + $0xe0] sm:$0xff] }
 0x7c5   :  { %7785 = vpow2.f32 %v5426_v8  ;;  %v3960_v8 = vld [vmem:[#allocation6 + $0x128] sm:$0xff] }
 0x7c6   :  { %7787 = vtanh.f32 %v3575_v9  ;;  %v7121_v9 = vpack.c.bf16 %v3945_v61, %v3941_v60  ;;  %v7075_v60 = vpack.c.bf16 %v3984_v51, %v3980_v49  ;;  %v3979_v61 = vld [vmem:[#allocation6 + $0x1c0] sm:$0xff]  ;;  %v4009_v49 = vld [vmem:[#allocation6 + $0x2b0] sm:$0xff] }
 0x7cc   :  { %v7782_v10 = vpop.eup %7781 }
 0x7cd   :  { %v7784_v12 = vpop.eup %7783  ;;  %v3582_v14 = vadd.f32 1.0, %v7782_v10  ;;  %v7123_v10 = vpack.c.bf16 %v3954_v1, %v3950_v63  ;;  %v3988_v63 = vld [vmem:[#allocation6 + $0x208] sm:$0xff] }
 0x7ce   :  { %v3588_v15 = vadd.f32 1.0, %v7784_v12  ;;  %v3949_v12 = vld [vmem:[#allocation6 + $0xd0] sm:$0xff]  ;;  %v3992_v1 = vld [vmem:[#allocation6 + $0x228] sm:$0xff] }
 0x7cf   :  { %7789 = vrcp.f32 %v3582_v14  ;;  %v7786_v18 = vpop.eup %7785  ;;  %v3953_v14 = vld [vmem:[#allocation6 + $0xf0] sm:$0xff] }
 0x7d0   :  { %7791 = vrcp.f32 %v3588_v15  ;;  %v7788_v19 = vpop.eup %7787  ;;  %v3595_v20 = vadd.f32 1.0, %v7786_v18  ;;  %v7061_v15 = vpack.c.bf16 %v3951_v5, %v3947_v4  ;;  %v3958_v18 = vld [vmem:[#allocation6 + $0x118] sm:$0xff]  ;;  %v7125_v0 = vpack.c.bf16 %v3953_v14, %v3949_v12  ;;  %v3981_v5 = vld [vmem:[#allocation6 + $0x1d0] sm:$0xff]  ;;  %v3987_v14 = vld [vmem:[#allocation6 + $0x200] sm:$0xff] }
 0x7d1   :  { %v7079_v12 = vpack.c.bf16 %v3992_v1, %v3988_v63  ;;  %v4017_v63 = vld [vmem:[#allocation6 + $0x2f0] sm:$0xff] }
 0x7d2   :  { %7793 = vrcp.f32 %v3595_v20  ;;  %v3955_v20 = vld [vmem:[#allocation6 + $0x100] sm:$0xff] }
 0x7d9   :  { %v7790_v3 = vpop.eup %7789 }
 0x7da   :  { %v7792_v21 = vpop.eup %7791  ;;  %v3599_v17 = vmul.f32 %v7790_v3, %v7788_v19  ;;  %v3962_v19 = vld [vmem:[#allocation6 + $0x138] sm:$0xff]  ;;  %v7063_v3 = vpack.c.bf16 %v3960_v8, %v3956_v6  ;;  %v3985_v6 = vld [vmem:[#allocation6 + $0x1f0] sm:$0xff] }
 0x7db   :  { %v3598_v22 = vmul.f32 %v7792_v21, %v8293_v7  ;;  %v3935_v7 = vld [vmem:[#allocation6 + $0x60] sm:$0xff]  ;;  %v7127_v25 = vpack.c.bf16 %v3962_v19, %v3958_v18  ;;  %v3996_v18 = vld [vmem:[#allocation6 + $0x248] sm:$0xff] }
 0x7dc   :  { %v7794_v26 = vpop.eup %7793  ;;  %v7053_v48 = vpack.c.bf16 %v3935_v7, %v3931_v41  ;;  %v3959_v21 = vld [vmem:[#allocation6 + $0x120] sm:$0xff]  ;;  %v7131_v41 = vpack.c.bf16 %v3970_v30, %v3966_v29  ;;  %v3965_v7 = vld [vmem:[#allocation6 + $0x150] sm:$0xff]  ;;  %v4000_v19 = vld [vmem:[#allocation6 + $0x268] sm:$0xff] }
 0x7dd   :  { %v8313_v23 = vadd.f32 %v3599_v17, %v3598_v22  ;;  %v3964_v17 = vld [vmem:[#allocation6 + $0x148] sm:$0xff]  ;;  %v7065_v28 = vpack.c.bf16 %v3959_v21, %v3955_v20  ;;  %v3989_v21 = vld [vmem:[#allocation6 + $0x210] sm:$0xff] }
 0x7de   :  { %v3968_v22 = vld [vmem:[#allocation6 + $0x168] sm:$0xff] }
 0x7df   :  { %7795 = vtanh.f32 %v8313_v23  ;;  %v4004_v29 = vld [vmem:[#allocation6 + $0x288] sm:$0xff] }
 0x7e0   :  { %v4008_v30 = vld [vmem:[#allocation6 + $0x2a8] sm:$0xff] }
 0x7e9   :  { %v7796_v32 = vpop.eup %7795 }
 0x7ea   :  { %v3602_v39 = vmul.f32 %v7796_v32, %v7794_v26  ;;  %v3957_v26 = vld [vmem:[#allocation6 + $0x110] sm:$0xff]  ;;  %v7067_v32 = vpack.c.bf16 %v3968_v22, %v3964_v17 }
 0x7eb   :  { %v3993_v17 = vld [vmem:[#allocation6 + $0x230] sm:$0xff] }
 0x7ec   :  { %3818 = vmatmul.mubr.f32.vlgmr.msra.gmra.mrb[22].mxu0 %v3602_v39  ;;  %3889 = vmatmul.mubr.f32.vlgmr.msra.gmra.mrb[22].mxu1 %v3602_v39 }
 0x7ed   :  { %7050 = vmatpush1.bf16.msra.mxu0 %v7049_v43  ;;  %4137 = vmatprep.mubr.f32.mxu0 %v3602_v39  ;;  %v3963_v43 = vld [vmem:[#allocation6 + $0x140] sm:$0xff] }
 0x7ee   :  { %4208 = vmatprep.mubr.f32.mxu1 %v3602_v39  ;;  %7052 = vmatprep.subr.bf16.mxu0 %v7051_v34  ;;  %v3976_v39 = vld [vmem:[#allocation6 + $0x1a8] sm:$0xff]  ;;  %v7129_v34 = vpack.c.bf16 %v3961_v27, %v3957_v26  ;;  %v7069_v42 = vpack.c.bf16 %v3967_v35, %v3963_v43  ;;  %v7083_v26 = vpack.c.bf16 %v4000_v19, %v3996_v18  ;;  %v3995_v27 = vld [vmem:[#allocation6 + $0x240] sm:$0xff]  ;;  %v3997_v35 = vld [vmem:[#allocation6 + $0x250] sm:$0xff] }
 0x7ef   :  { %7114 = vmatpush1.bf16.msra.mxu1 %v7113_v44  ;;  %v3974_v44 = vld [vmem:[#allocation6 + $0x198] sm:$0xff]  ;;  %v7071_v45 = vpack.c.bf16 %v3976_v39, %v3972_v36  ;;  %v4001_v36 = vld [vmem:[#allocation6 + $0x270] sm:$0xff] }
 0x7f0   :  { %7116 = vmatprep.subr.bf16.mxu1 %v7115_v31  ;;  %v3978_v31 = vld [vmem:[#allocation6 + $0x1b8] sm:$0xff]  ;;  %v4025_v18 = vld [vmem:[#allocation6 + $0x330] sm:$0xff] }
 0x7f1   :  { %7054 = vmatpush1.bf16.msra.mxu0 %v7053_v48  ;;  %v3975_v48 = vld [vmem:[#allocation6 + $0x1a0] sm:$0xff]  ;;  %v7135_v54 = vpack.c.bf16 %v3978_v31, %v3974_v44  ;;  %v4012_v44 = vld [vmem:[#allocation6 + $0x2c8] sm:$0xff] }
 0x7f2   :  { %7056 = vmatprep.subr.bf16.mxu0 %v7055_v53  ;;  %v7133_v53 = vpack.c.bf16 %v3969_v47, %v3965_v7  ;;  %v7073_v58 = vpack.c.bf16 %v3975_v48, %v3971_v46  ;;  %v7087_v7 = vpack.c.bf16 %v4008_v30, %v4004_v29  ;;  %v4003_v47 = vld [vmem:[#allocation6 + $0x280] sm:$0xff]  ;;  %v4016_v31 = vld [vmem:[#allocation6 + $0x2e8] sm:$0xff]  ;;  %v4005_v48 = vld [vmem:[#allocation6 + $0x290] sm:$0xff] }
 0x7f3   :  { %7118 = vmatpush1.bf16.msra.mxu1 %v7117_v59  ;;  %v3982_v59 = vld [vmem:[#allocation6 + $0x1d8] sm:$0xff]  ;;  %v4033_v29 = vld [vmem:[#allocation6 + $0x370] sm:$0xff] }
 0x7f4   :  { %7120 = vmatprep.subr.bf16.mxu1 %v7119_v38  ;;  %v3986_v38 = vld [vmem:[#allocation6 + $0x1f8] sm:$0xff] }
 0x7f5   :  { %7058 = vmatpush1.bf16.msra.mxu0 %v7057_v62  ;;  %v3983_v62 = vld [vmem:[#allocation6 + $0x1e0] sm:$0xff]  ;;  %v7139_v4 = vpack.c.bf16 %v3986_v38, %v3982_v59  ;;  %v4020_v59 = vld [vmem:[#allocation6 + $0x308] sm:$0xff] }
 0x7f6   :  { %7060 = vmatprep.subr.bf16.mxu0 %v7059_v2  ;;  %v7137_v2 = vpack.c.bf16 %v3977_v57, %v3973_v56  ;;  %v7077_v8 = vpack.c.bf16 %v3983_v62, %v3979_v61  ;;  %v7091_v56 = vpack.c.bf16 %v4016_v31, %v4012_v44  ;;  %v4011_v57 = vld [vmem:[#allocation6 + $0x2c0] sm:$0xff]  ;;  %v4024_v38 = vld [vmem:[#allocation6 + $0x328] sm:$0xff]  ;;  %v4013_v62 = vld [vmem:[#allocation6 + $0x2d0] sm:$0xff] }
 0x7f7   :  { %7122 = vmatpush1.bf16.msra.mxu1 %v7121_v9  ;;  %v3990_v9 = vld [vmem:[#allocation6 + $0x218] sm:$0xff]  ;;  %v4041_v44 = vld [vmem:[#allocation6 + $0x3b0] sm:$0xff] }
 0x7f8   :  { %7124 = vmatprep.subr.bf16.mxu1 %v7123_v10  ;;  %v3994_v10 = vld [vmem:[#allocation6 + $0x238] sm:$0xff] }
 0x7f9   :  { %7062 = vmatpush1.bf16.msra.mxu0 %v7061_v15  ;;  %v3991_v15 = vld [vmem:[#allocation6 + $0x220] sm:$0xff]  ;;  %v7143_v20 = vpack.c.bf16 %v3994_v10, %v3990_v9  ;;  %v4028_v9 = vld [vmem:[#allocation6 + $0x348] sm:$0xff] }
 0x7fa   :  { %7064 = vmatprep.subr.bf16.mxu0 %v7063_v3  ;;  %v7141_v3 = vpack.c.bf16 %v3985_v6, %v3981_v5  ;;  %v7081_v22 = vpack.c.bf16 %v3991_v15, %v3987_v14  ;;  %v7095_v5 = vpack.c.bf16 %v4024_v38, %v4020_v59  ;;  %v4019_v6 = vld [vmem:[#allocation6 + $0x300] sm:$0xff]  ;;  %v4032_v10 = vld [vmem:[#allocation6 + $0x368] sm:$0xff]  ;;  %v4021_v15 = vld [vmem:[#allocation6 + $0x310] sm:$0xff] }
 0x7fb   :  { %7126 = vmatpush1.bf16.msra.mxu1 %v7125_v0  ;;  %v3998_v0 = vld [vmem:[#allocation6 + $0x258] sm:$0xff]  ;;  %v3922_v38 = vld [vmem:[#allocation3 + $0x30] sm:$0xff] }
 0x7fc   :  { %7128 = vmatprep.subr.bf16.mxu1 %v7127_v25  ;;  %v4002_v25 = vld [vmem:[#allocation6 + $0x278] sm:$0xff] }
 0x7fd   :  { %7066 = vmatpush1.bf16.msra.mxu0 %v7065_v28  ;;  %v3999_v28 = vld [vmem:[#allocation6 + $0x260] sm:$0xff]  ;;  %v7147_v43 = vpack.c.bf16 %v4002_v25, %v3998_v0  ;;  %v4036_v0 = vld [vmem:[#allocation6 + $0x388] sm:$0xff] }
 0x7fe   :  { %7068 = vmatprep.subr.bf16.mxu0 %v7067_v32  ;;  %v7145_v32 = vpack.c.bf16 %v3993_v17, %v3989_v21  ;;  %v7085_v39 = vpack.c.bf16 %v3999_v28, %v3995_v27  ;;  %v7099_v21 = vpack.c.bf16 %v4032_v10, %v4028_v9  ;;  %v4027_v17 = vld [vmem:[#allocation6 + $0x340] sm:$0xff]  ;;  %v4040_v25 = vld [vmem:[#allocation6 + $0x3a8] sm:$0xff]  ;;  %v4029_v28 = vld [vmem:[#allocation6 + $0x350] sm:$0xff] }
 0x7ff   :  { %7130 = vmatpush1.bf16.msra.mxu1 %v7129_v34  ;;  %v4006_v34 = vld [vmem:[#allocation6 + $0x298] sm:$0xff]  ;;  %v4245_v9 = vld [vmem:[#allocation6 + $0x430] sm:$0xff] }
 0x800   :  { %7132 = vmatprep.subr.bf16.mxu1 %v7131_v41  ;;  %v4010_v41 = vld [vmem:[#allocation6 + $0x2b8] sm:$0xff] }
 0x801   :  { %7070 = vmatpush1.bf16.msra.mxu0 %v7069_v42  ;;  %v4007_v42 = vld [vmem:[#allocation6 + $0x2a0] sm:$0xff]  ;;  %v7151_v46 = vpack.c.bf16 %v4010_v41, %v4006_v34  ;;  %v4044_v34 = vld [vmem:[#allocation6 + $0x3c8] sm:$0xff] }
 0x802   :  { %7072 = vmatprep.subr.bf16.mxu0 %v7071_v45  ;;  %v7149_v45 = vpack.c.bf16 %v4001_v36, %v3997_v35  ;;  %v7089_v51 = vpack.c.bf16 %v4007_v42, %v4003_v47  ;;  %v7103_v35 = vpack.c.bf16 %v4040_v25, %v4036_v0  ;;  %v4035_v36 = vld [vmem:[#allocation6 + $0x380] sm:$0xff]  ;;  %v4048_v41 = vld [vmem:[#allocation6 + $0x3e8] sm:$0xff]  ;;  %v4037_v42 = vld [vmem:[#allocation6 + $0x390] sm:$0xff] }
 0x803   :  { %7134 = vmatpush1.bf16.msra.mxu1 %v7133_v53  ;;  %v4014_v53 = vld [vmem:[#allocation6 + $0x2d8] sm:$0xff]  ;;  %v4253_v0 = vld [vmem:[#allocation6 + $0x470] sm:$0xff]  ;;  %v4256_v25 = vld [vmem:[#allocation6 + $0x488] sm:$0xff] }
 0x804   :  { %7136 = vmatprep.subr.bf16.mxu1 %v7135_v54  ;;  %v4018_v54 = vld [vmem:[#allocation6 + $0x2f8] sm:$0xff] }
 0x805   :  { %7074 = vmatpush1.bf16.msra.mxu0 %v7073_v58  ;;  %v4015_v58 = vld [vmem:[#allocation6 + $0x2e0] sm:$0xff]  ;;  %v7155_v61 = vpack.c.bf16 %v4018_v54, %v4014_v53  ;;  %v7169_v53 = vpack.c.bf16 %v4041_v44, %v4037_v42 }
 0x806   :  { %7076 = vmatprep.subr.bf16.mxu0 %v7075_v60  ;;  %v7153_v60 = vpack.c.bf16 %v4009_v49, %v4005_v48  ;;  %v7093_v1 = vpack.c.bf16 %v4015_v58, %v4011_v57  ;;  %v7107_v48 = vpack.c.bf16 %v4048_v41, %v4044_v34  ;;  %v4043_v49 = vld [vmem:[#allocation6 + $0x3c0] sm:$0xff]  ;;  %v4049_v57 = vld [vmem:[#allocation6 + $0x3f0] sm:$0xff]  ;;  %v4264_v41 = vld [vmem:[#allocation6 + $0x4c8] sm:$0xff] }
 0x807   :  { %7138 = vmatpush1.bf16.msra.mxu1 %v7137_v2  ;;  %v4022_v2 = vld [vmem:[#allocation6 + $0x318] sm:$0xff]  ;;  %v4261_v34 = vld [vmem:[#allocation6 + $0x4b0] sm:$0xff]  ;;  %v4263_v44 = vld [vmem:[#allocation6 + $0x4c0] sm:$0xff] }
 0x808   :  { %7140 = vmatprep.subr.bf16.mxu1 %v7139_v4  ;;  %v4026_v4 = vld [vmem:[#allocation6 + $0x338] sm:$0xff] }
 0x809   :  { %7078 = vmatpush1.bf16.msra.mxu0 %v7077_v8  ;;  %v4023_v8 = vld [vmem:[#allocation6 + $0x320] sm:$0xff]  ;;  %v7159_v14 = vpack.c.bf16 %v4026_v4, %v4022_v2  ;;  %v4242_v2 = vld [vmem:[#allocation6 + $0x418] sm:$0xff] }
 0x80a   :  { %7080 = vmatprep.subr.bf16.mxu0 %v7079_v12  ;;  %v7157_v12 = vpack.c.bf16 %v4017_v63, %v4013_v62  ;;  %v7097_v19 = vpack.c.bf16 %v4023_v8, %v4019_v6  ;;  %v4239_v62 = vld [vmem:[#allocation6 + $0x400] sm:$0xff]  ;;  %v4246_v4 = vld [vmem:[#allocation6 + $0x438] sm:$0xff]  ;;  %v4241_v8 = vld [vmem:[#allocation6 + $0x410] sm:$0xff] }
 0x80b   :  { %7142 = vmatpush1.bf16.msra.mxu1 %v7141_v3  ;;  %v4030_v3 = vld [vmem:[#allocation6 + $0x358] sm:$0xff]  ;;  %v7239_v6 = vpack.c.bf16 %v4246_v4, %v4242_v2  ;;  %v7241_v10 = vpack.c.bf16 %v4245_v9, %v4241_v8  ;;  %v4277_v2 = vld [vmem:[#allocation6 + $0x530] sm:$0xff]  ;;  %v4279_v9 = vld [vmem:[#allocation6 + $0x540] sm:$0xff] }
 0x80c   :  { %7144 = vmatprep.subr.bf16.mxu1 %v7143_v20  ;;  %v4034_v20 = vld [vmem:[#allocation6 + $0x378] sm:$0xff] }
 0x80d   :  { %7082 = vmatpush1.bf16.msra.mxu0 %v7081_v22  ;;  %v4031_v22 = vld [vmem:[#allocation6 + $0x360] sm:$0xff]  ;;  %v7163_v27 = vpack.c.bf16 %v4034_v20, %v4030_v3  ;;  %v4250_v3 = vld [vmem:[#allocation6 + $0x458] sm:$0xff] }
 0x80e   :  { %7084 = vmatprep.subr.bf16.mxu0 %v7083_v26  ;;  %v7161_v26 = vpack.c.bf16 %v4025_v18, %v4021_v15  ;;  %v7101_v30 = vpack.c.bf16 %v4031_v22, %v4027_v17  ;;  %v4247_v15 = vld [vmem:[#allocation6 + $0x440] sm:$0xff]  ;;  %v4254_v20 = vld [vmem:[#allocation6 + $0x478] sm:$0xff]  ;;  %v4249_v22 = vld [vmem:[#allocation6 + $0x450] sm:$0xff] }
 0x80f   :  { %7146 = vmatpush1.bf16.msra.mxu1 %v7145_v32  ;;  %v4038_v32 = vld [vmem:[#allocation6 + $0x398] sm:$0xff]  ;;  %v7243_v17 = vpack.c.bf16 %v4254_v20, %v4250_v3 }
 0x810   :  { %7148 = vmatprep.subr.bf16.mxu1 %v7147_v43  ;;  %v4042_v43 = vld [vmem:[#allocation6 + $0x3b8] sm:$0xff] }
 0x811   :  { %7086 = vmatpush1.bf16.msra.mxu0 %v7085_v39  ;;  %v4039_v39 = vld [vmem:[#allocation6 + $0x3a0] sm:$0xff]  ;;  %v7167_v47 = vpack.c.bf16 %v4042_v43, %v4038_v32  ;;  %v4258_v43 = vld [vmem:[#allocation6 + $0x498] sm:$0xff] }
 0x812   :  { %7088 = vmatprep.subr.bf16.mxu0 %v7087_v7  ;;  %v7165_v7 = vpack.c.bf16 %v4033_v29, %v4029_v28  ;;  %v7105_v31 = vpack.c.bf16 %v4039_v39, %v4035_v36  ;;  %v4255_v28 = vld [vmem:[#allocation6 + $0x480] sm:$0xff]  ;;  %v4257_v36 = vld [vmem:[#allocation6 + $0x490] sm:$0xff] }
 0x813   :  { %7150 = vmatpush1.bf16.msra.mxu1 %v7149_v45  ;;  %v4046_v45 = vld [vmem:[#allocation6 + $0x3d8] sm:$0xff]  ;;  %v4259_v29 = vld [vmem:[#allocation6 + $0x4a0] sm:$0xff] }
 0x814   :  { %7152 = vmatprep.subr.bf16.mxu1 %v7151_v46  ;;  %v4050_v46 = vld [vmem:[#allocation6 + $0x3f8] sm:$0xff]  ;;  %v7185_v32 = vpack.c.bf16 %v4259_v29, %v4255_v28  ;;  %v4289_v29 = vld [vmem:[#allocation6 + $0x590] sm:$0xff] }
 0x815   :  { %7090 = vmatpush1.bf16.msra.mxu0 %v7089_v51  ;;  %v4047_v51 = vld [vmem:[#allocation6 + $0x3e0] sm:$0xff]  ;;  %v7171_v54 = vpack.c.bf16 %v4050_v46, %v4046_v45  ;;  %v4266_v45 = vld [vmem:[#allocation6 + $0x4d8] sm:$0xff] }
 0x816   :  { %7092 = vmatprep.subr.bf16.mxu0 %v7091_v56  ;;  %v4045_v56 = vld [vmem:[#allocation6 + $0x3d0] sm:$0xff]  ;;  %v7109_v58 = vpack.c.bf16 %v4047_v51, %v4043_v49  ;;  %v4270_v46 = vld [vmem:[#allocation6 + $0x4f8] sm:$0xff] }
 0x817   :  { %7154 = vmatpush1.bf16.msra.mxu1 %v7153_v60  ;;  %v7173_v59 = vpack.c.bf16 %v4049_v57, %v4045_v56  ;;  %v4240_v60 = vld [vmem:[#allocation6 + $0x408] sm:$0xff]  ;;  %v4269_v49 = vld [vmem:[#allocation6 + $0x4f0] sm:$0xff]  ;;  %v4271_v57 = vld [vmem:[#allocation6 + $0x500] sm:$0xff] }
 0x818   :  { %7156 = vmatprep.subr.bf16.mxu1 %v7155_v61  ;;  %v4244_v61 = vld [vmem:[#allocation6 + $0x428] sm:$0xff]  ;;  %v4294_v28 = vld [vmem:[#allocation6 + $0x5b8] sm:$0xff] }
 0x819   :  { %7094 = vmatpush1.bf16.msra.mxu0 %v7093_v1  ;;  %v7175_v63 = vpack.c.bf16 %v4244_v61, %v4240_v60  ;;  %v4243_v1 = vld [vmem:[#allocation6 + $0x420] sm:$0xff]  ;;  %v4276_v56 = vld [vmem:[#allocation6 + $0x528] sm:$0xff]  ;;  %v4274_v60 = vld [vmem:[#allocation6 + $0x518] sm:$0xff] }
 0x81a   :  { %7096 = vmatprep.subr.bf16.mxu0 %v7095_v5  ;;  %v7177_v5 = vpack.c.bf16 %v4243_v1, %v4239_v62  ;;  %v4278_v61 = vld [vmem:[#allocation6 + $0x538] sm:$0xff]  ;;  %v4273_v1 = vld [vmem:[#allocation6 + $0x510] sm:$0xff] }
 0x81b   :  { %7158 = vmatpush1.bf16.msra.mxu1 %v7157_v12  ;;  %v4248_v12 = vld [vmem:[#allocation6 + $0x448] sm:$0xff]  ;;  %v7255_v62 = vpack.c.bf16 %v4278_v61, %v4274_v60  ;;  %v7257_v4 = vpack.c.bf16 %v4277_v2, %v4273_v1  ;;  %v4311_v2 = vld [vmem:[#allocation6 + $0x640] sm:$0xff] }
 0x81c   :  { %7160 = vmatprep.subr.bf16.mxu1 %v7159_v14  ;;  %v4252_v14 = vld [vmem:[#allocation6 + $0x468] sm:$0xff] }
 0x81d   :  { %7098 = vmatpush1.bf16.msra.mxu0 %v7097_v19  ;;  %v7179_v18 = vpack.c.bf16 %v4252_v14, %v4248_v12  ;;  %v4251_v19 = vld [vmem:[#allocation6 + $0x460] sm:$0xff]  ;;  %v4282_v12 = vld [vmem:[#allocation6 + $0x558] sm:$0xff] }
 0x81e   :  { %7100 = vmatprep.subr.bf16.mxu0 %v7099_v21  ;;  %v7181_v21 = vpack.c.bf16 %v4251_v19, %v4247_v15  ;;  %v4286_v15 = vld [vmem:[#allocation6 + $0x578] sm:$0xff]  ;;  %v4285_v19 = vld [vmem:[#allocation6 + $0x570] sm:$0xff] }
 0x81f   :  { %7162 = vmatpush1.bf16.msra.mxu1 %v7161_v26  ;;  %v7245_v26 = vpack.c.bf16 %v4253_v0, %v4249_v22  ;;  %v7259_v3 = vpack.c.bf16 %v4286_v15, %v4282_v12  ;;  %v4287_v0 = vld [vmem:[#allocation6 + $0x580] sm:$0xff]  ;;  %v4320_v15 = vld [vmem:[#allocation6 + $0x688] sm:$0xff] }
 0x820   :  { %7164 = vmatprep.subr.bf16.mxu1 %v7163_v27  ;;  %v4260_v27 = vld [vmem:[#allocation6 + $0x4a8] sm:$0xff] }
 0x821   :  { %7102 = vmatpush1.bf16.msra.mxu0 %v7101_v30  ;;  %v7183_v30 = vpack.c.bf16 %v4260_v27, %v4256_v25  ;;  %v4291_v25 = vld [vmem:[#allocation6 + $0x5a0] sm:$0xff] }
 0x822   :  { %7104 = vmatprep.subr.bf16.mxu0 %v7103_v35  ;;  %v4262_v35 = vld [vmem:[#allocation6 + $0x4b8] sm:$0xff]  ;;  %v7201_v27 = vpack.c.bf16 %v4291_v25, %v4287_v0  ;;  %v4321_v0 = vld [vmem:[#allocation6 + $0x690] sm:$0xff] }
 0x823   :  { %7166 = vmatpush1.bf16.msra.mxu1 %v7165_v7  ;;  %v7247_v39 = vpack.c.bf16 %v4262_v35, %v4258_v43  ;;  %v4268_v7 = vld [vmem:[#allocation6 + $0x4e8] sm:$0xff]  ;;  %v4325_v25 = vld [vmem:[#allocation6 + $0x6b0] sm:$0xff] }
 0x824   :  { %7168 = vmatprep.subr.bf16.mxu1 %v7167_v47  ;;  %v7249_v47 = vpack.c.bf16 %v4261_v34, %v4257_v36  ;;  %v7187_v42 = vpack.c.bf16 %v4268_v7, %v4264_v41  ;;  %v4296_v35 = vld [vmem:[#allocation6 + $0x5c8] sm:$0xff]  ;;  %v4295_v34 = vld [vmem:[#allocation6 + $0x5c0] sm:$0xff]  ;;  %v4298_v7 = vld [vmem:[#allocation6 + $0x5d8] sm:$0xff] }
 0x825   :  { %7106 = vmatpush1.bf16.msra.mxu0 %v7105_v31  ;;  %v4267_v31 = vld [vmem:[#allocation6 + $0x4e0] sm:$0xff]  ;;  %v4300_v36 = vld [vmem:[#allocation6 + $0x5e8] sm:$0xff] }
 0x826   :  { %7108 = vmatprep.subr.bf16.mxu0 %v7107_v48  ;;  %v4265_v48 = vld [vmem:[#allocation6 + $0x4d0] sm:$0xff]  ;;  %v7189_v51 = vpack.c.bf16 %v4267_v31, %v4263_v44  ;;  %v4299_v41 = vld [vmem:[#allocation6 + $0x5e0] sm:$0xff] }
 0x827   :  { %7170 = vmatpush1.bf16.msra.mxu1 %v7169_v53  ;;  %v7251_v53 = vpack.c.bf16 %v4270_v46, %v4266_v45  ;;  %v4297_v44 = vld [vmem:[#allocation6 + $0x5d0] sm:$0xff] }
 0x828   :  { %7172 = vmatprep.subr.bf16.mxu1 %v7171_v54  ;;  %v4272_v54 = vld [vmem:[#allocation6 + $0x508] sm:$0xff]  ;;  %v4301_v31 = vld [vmem:[#allocation6 + $0x5f0] sm:$0xff] }
 0x829   :  { %7110 = vmatpush1.bf16.msra.mxu0 %v7109_v58  ;;  %v7253_v58 = vpack.c.bf16 %v4269_v49, %v4265_v48  ;;  %v7269_v46 = vpack.c.bf16 %v4301_v31, %v4297_v44  ;;  %v4304_v48 = vld [vmem:[#allocation6 + $0x608] sm:$0xff] }
 0x82a   :  { %7176 = vmatprep.subr.bf16.mxu0 %v7175_v63  ;;  %v4308_v49 = vld [vmem:[#allocation6 + $0x628] sm:$0xff] }
 0x82b   :  { %7174 = vmatpush1.bf16.msra.mxu1 %v7173_v59  ;;  %v7191_v59 = vpack.c.bf16 %v4276_v56, %v4272_v54  ;;  %v4307_v54 = vld [vmem:[#allocation6 + $0x620] sm:$0xff]  ;;  %v4306_v56 = vld [vmem:[#allocation6 + $0x618] sm:$0xff]  ;;  %v4340_v44 = vld [vmem:[#allocation6 + $0x728] sm:$0xff] }
 0x82c   :  { %4138 = vmatmul.mubr.f32.vlgmr.msra.gmra.mrb[24].mxu0 %v3922_v38  ;;  %7240 = vmatprep.subr.bf16.mxu1 %v7239_v6  ;;  %v4284_v6 = vld [vmem:[#allocation6 + $0x568] sm:$0xff] }
 0x82d   :  { %7178 = vmatpush1.bf16.msra.mxu0 %v7177_v5  ;;  %v4280_v5 = vld [vmem:[#allocation6 + $0x548] sm:$0xff] }
 0x82e   :  { %4209 = vmatmul.mubr.f32.vlgmr.msra.gmra.mrb[24].mxu1 %v3922_v38  ;;  %7180 = vmatprep.subr.bf16.mxu0 %v7179_v18  ;;  %v4275_v38 = vld [vmem:[#allocation6 + $0x520] sm:$0xff]  ;;  %v7195_v8 = vpack.c.bf16 %v4284_v6, %v4280_v5  ;;  %v4281_v18 = vld [vmem:[#allocation6 + $0x550] sm:$0xff]  ;;  %v4314_v5 = vld [vmem:[#allocation6 + $0x658] sm:$0xff] }
 0x82f   :  { %7242 = vmatpush1.bf16.msra.mxu1 %v7241_v10  ;;  %v7193_v63 = vpack.c.bf16 %v4275_v38, %v4271_v57  ;;  %v4283_v10 = vld [vmem:[#allocation6 + $0x560] sm:$0xff]  ;;  %v7261_v20 = vpack.c.bf16 %v4285_v19, %v4281_v18  ;;  %v4309_v38 = vld [vmem:[#allocation6 + $0x630] sm:$0xff]  ;;  %v4324_v18 = vld [vmem:[#allocation6 + $0x6a8] sm:$0xff] }
 0x830   :  { %7244 = vmatprep.subr.bf16.mxu1 %v7243_v17  ;;  %v7197_v14 = vpack.c.bf16 %v4283_v10, %v4279_v9  ;;  %v4292_v17 = vld [vmem:[#allocation6 + $0x5a8] sm:$0xff]  ;;  %v4313_v9 = vld [vmem:[#allocation6 + $0x650] sm:$0xff]  ;;  %v7215_v19 = vpack.c.bf16 %v4324_v18, %v4320_v15  ;;  %v4354_v15 = vld [vmem:[#allocation6 + $0x798] sm:$0xff] }
 0x831   :  { %7182 = vmatpush1.bf16.msra.mxu0 %v7181_v21  ;;  %v4288_v21 = vld [vmem:[#allocation6 + $0x588] sm:$0xff]  ;;  %v4317_v10 = vld [vmem:[#allocation6 + $0x670] sm:$0xff]  ;;  %v4358_v18 = vld [vmem:[#allocation6 + $0x7b8] sm:$0xff] }
 0x832   :  { %7184 = vmatprep.subr.bf16.mxu0 %v7183_v30  ;;  %v7199_v22 = vpack.c.bf16 %v4292_v17, %v4288_v21  ;;  %v4293_v30 = vld [vmem:[#allocation6 + $0x5b0] sm:$0xff]  ;;  %v4322_v21 = vld [vmem:[#allocation6 + $0x698] sm:$0xff] }
 0x833   :  { %7246 = vmatpush1.bf16.msra.mxu1 %v7245_v26  ;;  %v4290_v26 = vld [vmem:[#allocation6 + $0x598] sm:$0xff]  ;;  %v7265_v43 = vpack.c.bf16 %v4293_v30, %v4289_v29  ;;  %v4332_v29 = vld [vmem:[#allocation6 + $0x6e8] sm:$0xff] }
 0x834   :  { %7248 = vmatprep.subr.bf16.mxu1 %v7247_v39  ;;  %v7203_v39 = vpack.c.bf16 %v4300_v36, %v4296_v35  ;;  %v4330_v35 = vld [vmem:[#allocation6 + $0x6d8] sm:$0xff] }
 0x835   :  { %7186 = vmatpush1.bf16.msra.mxu0 %v7185_v32  ;;  %v7263_v32 = vpack.c.bf16 %v4294_v28, %v4290_v26  ;;  %v4328_v28 = vld [vmem:[#allocation6 + $0x6c8] sm:$0xff] }
 0x836   :  { %7188 = vmatprep.subr.bf16.mxu0 %v7187_v42  ;;  %v4302_v42 = vld [vmem:[#allocation6 + $0x5f8] sm:$0xff]  ;;  %v7219_v30 = vpack.c.bf16 %v4332_v29, %v4328_v28 }
 0x837   :  { %7250 = vmatpush1.bf16.msra.mxu1 %v7249_v47  ;;  %v7205_v47 = vpack.c.bf16 %v4299_v41, %v4295_v34  ;;  %v7267_v45 = vpack.c.bf16 %v4302_v42, %v4298_v7  ;;  %v4329_v34 = vld [vmem:[#allocation6 + $0x6d0] sm:$0xff]  ;;  %v4336_v42 = vld [vmem:[#allocation6 + $0x708] sm:$0xff]  ;;  %v4362_v28 = vld [vmem:[#allocation6 + $0x7d8] sm:$0xff] }
 0x838   :  { %7252 = vmatprep.subr.bf16.mxu1 %v7251_v53  ;;  %v4303_v53 = vld [vmem:[#allocation6 + $0x600] sm:$0xff]  ;;  %v4333_v41 = vld [vmem:[#allocation6 + $0x6f0] sm:$0xff]  ;;  %v7223_v31 = vpack.c.bf16 %v4340_v44, %v4336_v42  ;;  %v4366_v29 = vld [vmem:[#allocation6 + $0x7f8] sm:$0xff] }
 0x839   :  { %7190 = vmatpush1.bf16.msra.mxu0 %v7189_v51  ;;  %v7207_v51 = vpack.c.bf16 %v4308_v49, %v4304_v48  ;;  %v7209_v57 = vpack.c.bf16 %v4307_v54, %v4303_v53  ;;  %v4338_v48 = vld [vmem:[#allocation6 + $0x718] sm:$0xff]  ;;  %v4337_v53 = vld [vmem:[#allocation6 + $0x710] sm:$0xff] }
 0x83a   :  { %7192 = vmatprep.subr.bf16.mxu0 %v7191_v59  ;;  %v4305_v59 = vld [vmem:[#allocation6 + $0x610] sm:$0xff]  ;;  %v4566_v42 = vld [vmem:[#allocation6 + $0x38] sm:$0xff] }
 0x83b   :  { %7254 = vmatpush1.bf16.msra.mxu1 %v7253_v58  ;;  %v4310_v58 = vld [vmem:[#allocation6 + $0x638] sm:$0xff]  ;;  %v7273_v61 = vpack.c.bf16 %v4309_v38, %v4305_v59  ;;  %v4341_v54 = vld [vmem:[#allocation6 + $0x730] sm:$0xff]  ;;  %v4348_v59 = vld [vmem:[#allocation6 + $0x768] sm:$0xff] }
 0x83c   :  { %7256 = vmatprep.subr.bf16.mxu1 %v7255_v62  ;;  %v7271_v60 = vpack.c.bf16 %v4310_v58, %v4306_v56  ;;  %v4312_v62 = vld [vmem:[#allocation6 + $0x648] sm:$0xff] }
 0x83d   :  { %7194 = vmatpush1.bf16.msra.mxu0 %v7193_v63  ;;  %v4316_v63 = vld [vmem:[#allocation6 + $0x668] sm:$0xff] }
 0x83e   :  { %7196 = vmatprep.subr.bf16.mxu0 %v7195_v8  ;;  %v7211_v1 = vpack.c.bf16 %v4316_v63, %v4312_v62  ;;  %v4318_v8 = vld [vmem:[#allocation6 + $0x678] sm:$0xff]  ;;  %v4344_v58 = vld [vmem:[#allocation6 + $0x748] sm:$0xff] }
 0x83f   :  { %7258 = vmatpush1.bf16.msra.mxu1 %v7257_v4  ;;  %v4315_v4 = vld [vmem:[#allocation6 + $0x660] sm:$0xff]  ;;  %v7275_v12 = vpack.c.bf16 %v4318_v8, %v4314_v5  ;;  %v7227_v38 = vpack.c.bf16 %v4348_v59, %v4344_v58  ;;  %v4346_v62 = vld [vmem:[#allocation6 + $0x758] sm:$0xff]  ;;  %v4352_v8 = vld [vmem:[#allocation6 + $0x788] sm:$0xff] }
 0x840   :  { %7260 = vmatprep.subr.bf16.mxu1 %v7259_v3  ;;  %v7213_v6 = vpack.c.bf16 %v4315_v4, %v4311_v2  ;;  %v4319_v3 = vld [vmem:[#allocation6 + $0x680] sm:$0xff]  ;;  %v4345_v2 = vld [vmem:[#allocation6 + $0x750] sm:$0xff] }
 0x841   :  { %7198 = vmatpush1.bf16.msra.mxu0 %v7197_v14  ;;  %v7277_v14 = vpack.c.bf16 %v4317_v10, %v4313_v9  ;;  %v4349_v4 = vld [vmem:[#allocation6 + $0x770] sm:$0xff]  ;;  %v4356_v9 = vld [vmem:[#allocation6 + $0x7a8] sm:$0xff]  ;;  %v4351_v10 = vld [vmem:[#allocation6 + $0x780] sm:$0xff] }
 0x842   :  { %7200 = vmatprep.subr.bf16.mxu0 %v7199_v22  ;;  %v4326_v22 = vld [vmem:[#allocation6 + $0x6b8] sm:$0xff] }
 0x843   :  { %7262 = vmatpush1.bf16.msra.mxu1 %v7261_v20  ;;  %v4323_v20 = vld [vmem:[#allocation6 + $0x6a0] sm:$0xff]  ;;  %v7279_v26 = vpack.c.bf16 %v4326_v22, %v4322_v21  ;;  %v4357_v21 = vld [vmem:[#allocation6 + $0x7b0] sm:$0xff] }
 0x844   :  { %7264 = vmatprep.subr.bf16.mxu1 %v7263_v32  ;;  %v7217_v17 = vpack.c.bf16 %v4323_v20, %v4319_v3  ;;  %v4327_v32 = vld [vmem:[#allocation6 + $0x6c0] sm:$0xff]  ;;  %v7295_v3 = vpack.c.bf16 %v4358_v18, %v4354_v15  ;;  %v4353_v20 = vld [vmem:[#allocation6 + $0x790] sm:$0xff] }
 0x845   :  { %7202 = vmatpush1.bf16.msra.mxu0 %v7201_v27  ;;  %v7281_v27 = vpack.c.bf16 %v4325_v25, %v4321_v0  ;;  %v7297_v22 = vpack.c.bf16 %v4357_v21, %v4353_v20  ;;  %v4364_v0 = vld [vmem:[#allocation6 + $0x7e8] sm:$0xff]  ;;  %v4359_v25 = vld [vmem:[#allocation6 + $0x7c0] sm:$0xff] }
 0x846   :  { %7204 = vmatprep.subr.bf16.mxu0 %v7203_v39  ;;  %v4334_v39 = vld [vmem:[#allocation6 + $0x6f8] sm:$0xff] }
 0x847   :  { %7266 = vmatpush1.bf16.msra.mxu1 %v7265_v43  ;;  %v4331_v43 = vld [vmem:[#allocation6 + $0x6e0] sm:$0xff]  ;;  %v7283_v7 = vpack.c.bf16 %v4334_v39, %v4330_v35  ;;  %v4365_v35 = vld [vmem:[#allocation6 + $0x7f0] sm:$0xff]  ;;  %v4564_v39 = vld [vmem:[#allocation6 + $0x28] sm:$0xff] }
 0x848   :  { %7268 = vmatprep.subr.bf16.mxu1 %v7267_v45  ;;  %v7221_v36 = vpack.c.bf16 %v4331_v43, %v4327_v32  ;;  %v4335_v45 = vld [vmem:[#allocation6 + $0x700] sm:$0xff]  ;;  %v7299_v43 = vpack.c.bf16 %v4366_v29, %v4362_v28 }
 0x849   :  { %7206 = vmatpush1.bf16.msra.mxu0 %v7205_v47  ;;  %v7285_v47 = vpack.c.bf16 %v4333_v41, %v4329_v34 }
 0x84a   :  { %7208 = vmatprep.subr.bf16.mxu0 %v7207_v51  ;;  %v4342_v51 = vld [vmem:[#allocation6 + $0x738] sm:$0xff] }
 0x84b   :  { %7270 = vmatpush1.bf16.msra.mxu1 %v7269_v46  ;;  %v4339_v46 = vld [vmem:[#allocation6 + $0x720] sm:$0xff]  ;;  %v7287_v56 = vpack.c.bf16 %v4342_v51, %v4338_v48 }
 0x84c   :  { %7272 = vmatprep.subr.bf16.mxu1 %v7271_v60  ;;  %v7225_v49 = vpack.c.bf16 %v4339_v46, %v4335_v45  ;;  %v4343_v60 = vld [vmem:[#allocation6 + $0x740] sm:$0xff] }
 0x84d   :  { %7210 = vmatpush1.bf16.msra.mxu0 %v7209_v57  ;;  %v7289_v57 = vpack.c.bf16 %v4341_v54, %v4337_v53 }
 0x84e   :  { %7212 = vmatprep.subr.bf16.mxu0 %v7211_v1  ;;  %v4350_v1 = vld [vmem:[#allocation6 + $0x778] sm:$0xff] }
 0x84f   :  { %7274 = vmatpush1.bf16.msra.mxu1 %v7273_v61  ;;  %v4347_v61 = vld [vmem:[#allocation6 + $0x760] sm:$0xff]  ;;  %v7291_v5 = vpack.c.bf16 %v4350_v1, %v4346_v62 }
 0x850   :  { %7276 = vmatprep.subr.bf16.mxu1 %v7275_v12  ;;  %v7229_v63 = vpack.c.bf16 %v4347_v61, %v4343_v60  ;;  %v7231_v12 = vpack.c.bf16 %v4356_v9, %v4352_v8 }
 0x851   :  { %7214 = vmatpush1.bf16.msra.mxu0 %v7213_v6  ;;  %v7293_v6 = vpack.c.bf16 %v4349_v4, %v4345_v2 }
 0x852   :  { %7216 = vmatprep.subr.bf16.mxu0 %v7215_v19 }
 0x853   :  { %7278 = vmatpush1.bf16.msra.mxu1 %v7277_v14  ;;  %v4355_v14 = vld [vmem:[#allocation6 + $0x7a0] sm:$0xff] }
 0x854   :  { %7280 = vmatprep.subr.bf16.mxu1 %v7279_v26  ;;  %v7233_v19 = vpack.c.bf16 %v4355_v14, %v4351_v10  ;;  %v4363_v26 = vld [vmem:[#allocation6 + $0x7e0] sm:$0xff] }
 0x855   :  { %7218 = vmatpush1.bf16.msra.mxu0 %v7217_v17  ;;  %v4360_v17 = vld [vmem:[#allocation6 + $0x7c8] sm:$0xff]  ;;  %v7237_v32 = vpack.c.bf16 %v4363_v26, %v4359_v25 }
 0x856   :  { %7220 = vmatprep.subr.bf16.mxu0 %v7219_v30  ;;  %v4361_v30 = vld [vmem:[#allocation6 + $0x7d0] sm:$0xff] }
 0x857   :  { %7282 = vmatpush1.bf16.msra.mxu1 %v7281_v27  ;;  %v7235_v27 = vpack.c.bf16 %v4364_v0, %v4360_v17  ;;  %v7301_v41 = vpack.c.bf16 %v4365_v35, %v4361_v30 }
 0x858   :  { %7284 = vmatprep.subr.bf16.mxu1 %v7283_v7  ;;  %v3731_v7 = vld [vmem:[#allocation8 + $0x4] sm:$0xf] }
 0x859   :  { %7222 = vmatpush1.bf16.msra.mxu0 %v7221_v36  ;;  %v4560_v36 = vld [vmem:[#allocation6 + $0x8] sm:$0xff]  ;;  %v3740_v45 = vrot.slane %v3731_v7, %v8204_v13  ;;  %v3748_v58 = vrot.slane %v3731_v7, %v8208_v16 }
 0x85a   :  { %7224 = vmatprep.subr.bf16.mxu0 %v7223_v31  ;;  %v7303_v34 = vpack.c.bf16 %v4564_v39, %v4560_v36  ;;  %v3736_v31 = vrot.slane %v3731_v7, %v8202_v11 }
 0x85b   :  { %7286 = vmatpush1.bf16.msra.mxu1 %v7285_v47  ;;  %v4562_v47 = vld [vmem:[#allocation6 + $0x18] sm:$0xff] }
 0x85c   :  { %7288 = vmatprep.subr.bf16.mxu1 %v7287_v56  ;;  %v7367_v44 = vpack.c.bf16 %v4566_v42, %v4562_v47 }
 0x85d   :  { %7226 = vmatpush1.bf16.msra.mxu0 %v7225_v49 }
 0x85e   :  { %7228 = vmatprep.subr.bf16.mxu0 %v7227_v38  ;;  %v3744_v38 = vrot.slane %v3731_v7, %v8211_v24 }
 0x85f   :  { %7290 = vmatpush1.bf16.msra.mxu1 %v7289_v57 }
 0x860   :  { %7292 = vmatprep.subr.bf16.mxu1 %v7291_v5 }
 0x861   :  { %7230 = vmatpush1.bf16.msra.mxu0 %v7229_v63 }
 0x862   :  { %7232 = vmatprep.subr.bf16.mxu0 %v7231_v12 }
 0x863   :  { %7294 = vmatpush1.bf16.msra.mxu1 %v7293_v6 }
 0x864   :  { %7296 = vmatprep.subr.bf16.mxu1 %v7295_v3  ;;  %v4051_v3 = vld [vmem:[#allocation8] sm:$0xf] }
 0x865   :  { %7234 = vmatpush1.bf16.msra.mxu0 %v7233_v19  ;;  %v4056_v20 = vrot.slane %v4051_v3, %v8202_v11  ;;  %v4060_v21 = vrot.slane %v4051_v3, %v8204_v13 }
 0x866   :  { %7236 = vmatprep.subr.bf16.mxu0 %v7235_v27  ;;  %v4068_v27 = vrot.slane %v4051_v3, %v8208_v16 }
 0x867   :  { %7298 = vmatpush1.bf16.msra.mxu1 %v7297_v22 }
 0x868   :  { %7300 = vmatprep.subr.bf16.mxu1 %v7299_v43 }
 0x869   :  { %7238 = vmatpush1.bf16.msra.mxu0 %v7237_v32  ;;  %v4064_v32 = vrot.slane %v4051_v3, %v8211_v24  ;;  %v4575_v3 = vld [vmem:[#allocation6 + $0x80] sm:$0xff] }
 0x86a   :  { %7304 = vmatprep.subr.bf16.mxu0 %v7303_v34 }
 0x86b   :  { %7302 = vmatpush1.bf16.msra.mxu1 %v7301_v41 }
 0x86c   :  { %7368 = vmatprep.subr.bf16.mxu1 %v7367_v44 }
 0x8bf   :  { %v3819_v46 = vpop.f32.mrb[22].mxu0  ;;  %v3890_v48 = vpop.f32.mrb[22].mxu1 }
 0x8c0   :  { %v3820_v49 = vadd.f32 %v3819_v46, %v3736_v31  ;;  %v3821_v51 = vpop.f32.mrb[23].mxu0  ;;  %v3892_v53 = vpop.f32.mrb[23].mxu1  ;;  %v3891_v61 = vadd.f32 %v3890_v48, %v3744_v38 }
 0x8c1   :  { %v3822_v54 = vadd.f32 %v3821_v51, %v3740_v45  ;;  %v3893_v59 = vadd.f32 %v3892_v53, %v3748_v58  ;;  %v4563_v51 = vld [vmem:[#allocation6 + $0x20] sm:$0xff]  ;;  %v4565_v58 = vld [vmem:[#allocation6 + $0x30] sm:$0xff] }
 0x8c2   :  { %v5427_v56 = vmul.f32 -1.442695, %v3820_v49  ;;  %v4559_v49 = vld [vmem:[#allocation6] sm:$0xff] }
 0x8c3   :  { %v5428_v57 = vmul.f32 -1.442695, %v3822_v54  ;;  %v5429_v60 = vmul.f32 -1.442695, %v3893_v59  ;;  %v4568_v54 = vld [vmem:[#allocation6 + $0x48] sm:$0xff]  ;;  %v7305_v38 = vpack.c.bf16 %v4563_v51, %v4559_v49 }
 0x8c4   :  { %7797 = vpow2.f32 %v5427_v56  ;;  %v4572_v56 = vld [vmem:[#allocation6 + $0x68] sm:$0xff] }
 0x8c5   :  { %7799 = vpow2.f32 %v5428_v57  ;;  %v4561_v57 = vld [vmem:[#allocation6 + $0x10] sm:$0xff]  ;;  %v4604_v49 = vld [vmem:[#allocation6 + $0x168] sm:$0xff] }
 0x8c6   :  { %7801 = vpow2.f32 %v5429_v60  ;;  %v4570_v60 = vld [vmem:[#allocation6 + $0x58] sm:$0xff] }
 0x8c7   :  { %7803 = vtanh.f32 %v3891_v61  ;;  %v4574_v61 = vld [vmem:[#allocation6 + $0x78] sm:$0xff] }
 0x8ce   :  { %v7798_v62 = vpop.eup %7797 }
 0x8cf   :  { %v7800_v63 = vpop.eup %7799  ;;  %v3898_v1 = vadd.f32 1.0, %v7798_v62 }
 0x8d0   :  { %v3904_v2 = vadd.f32 1.0, %v7800_v63  ;;  %v7802_v4 = vpop.eup %7801  ;;  %v7307_v63 = vpack.c.bf16 %v4572_v56, %v4568_v54  ;;  %v4593_v54 = vld [vmem:[#allocation6 + $0x110] sm:$0xff] }
 0x8d1   :  { %7805 = vrcp.f32 %v3898_v1  ;;  %v7804_v5 = vpop.eup %7803  ;;  %v3911_v10 = vadd.f32 1.0, %v7802_v4  ;;  %v4567_v1 = vld [vmem:[#allocation6 + $0x40] sm:$0xff]  ;;  %v4580_v4 = vld [vmem:[#allocation6 + $0xa8] sm:$0xff]  ;;  %v4597_v56 = vld [vmem:[#allocation6 + $0x130] sm:$0xff] }
 0x8d2   :  { %7807 = vrcp.f32 %v3904_v2  ;;  %v4576_v2 = vld [vmem:[#allocation6 + $0x88] sm:$0xff] }
 0x8d3   :  { %7809 = vrcp.f32 %v3911_v10 }
 0x8db   :  { %v7806_v6 = vpop.eup %7805 }
 0x8dc   :  { %v7808_v8 = vpop.eup %7807  ;;  %v3915_v9 = vmul.f32 %v7806_v6, %v7804_v5  ;;  %v7369_v5 = vpack.c.bf16 %v4565_v58, %v4561_v57  ;;  %v7371_v6 = vpack.c.bf16 %v4574_v61, %v4570_v60  ;;  %v4602_v58 = vld [vmem:[#allocation6 + $0x158] sm:$0xff]  ;;  %v4599_v60 = vld [vmem:[#allocation6 + $0x140] sm:$0xff] }
 0x8dd   :  { %v3914_v12 = vmul.f32 %v7808_v8, %v8301_v52  ;;  %v7810_v15 = vpop.eup %7809  ;;  %v4569_v8 = vld [vmem:[#allocation6 + $0x50] sm:$0xff]  ;;  %v4603_v61 = vld [vmem:[#allocation6 + $0x160] sm:$0xff] }
 0x8df   :  { %v8321_v14 = vadd.f32 %v3915_v9, %v3914_v12  ;;  %v4573_v9 = vld [vmem:[#allocation6 + $0x70] sm:$0xff]  ;;  %v4578_v12 = vld [vmem:[#allocation6 + $0x98] sm:$0xff] }
 0x8e1   :  { %7811 = vtanh.f32 %v8321_v14 }
 0x8eb   :  { %v7812_v18 = vpop.eup %7811 }
 0x8ec   :  { %v8324_v19 = vmul.f32 %v7812_v18, %v7810_v15  ;;  %v4582_v15 = vld [vmem:[#allocation6 + $0xb8] sm:$0xff]  ;;  %v7311_v18 = vpack.c.bf16 %v4580_v4, %v4576_v2  ;;  %v4601_v2 = vld [vmem:[#allocation6 + $0x150] sm:$0xff] }
 0x8ed   :  { %v4605_v4 = vld [vmem:[#allocation6 + $0x170] sm:$0xff] }
 0x8ee   :  { %4453 = vmatprep.mubr.f32.mxu0 %v8324_v19  ;;  %4524 = vmatprep.mubr.f32.mxu1 %v8324_v19 }
 0x8ff   :  { %v4139_v17 = vpop.f32.mrb[24].mxu0 }
 0x900   :  { %v4140_v52 = vadd.f32 %v4139_v17, %v4056_v20  ;;  %v4141_v22 = vpop.f32.mrb[25].mxu0  ;;  %v4579_v20 = vld [vmem:[#allocation6 + $0xa0] sm:$0xff]  ;;  %v4588_v17 = vld [vmem:[#allocation6 + $0xe8] sm:$0xff] }
 0x901   :  { %v4142_v0 = vadd.f32 %v4141_v22, %v4060_v21  ;;  %v4210_v25 = vpop.f32.mrb[24].mxu1  ;;  %v4584_v21 = vld [vmem:[#allocation6 + $0xc8] sm:$0xff]  ;;  %v7375_v22 = vpack.c.bf16 %v4582_v15, %v4578_v12  ;;  %v4611_v12 = vld [vmem:[#allocation6 + $0x1a0] sm:$0xff] }
 0x902   :  { %v5430_v26 = vmul.f32 -1.442695, %v4140_v52  ;;  %v4212_v28 = vpop.f32.mrb[25].mxu1  ;;  %v4211_v35 = vadd.f32 %v4210_v25, %v4064_v32  ;;  %v7373_v52 = vpack.c.bf16 %v4573_v9, %v4569_v8  ;;  %v4581_v25 = vld [vmem:[#allocation6 + $0xb0] sm:$0xff]  ;;  %v4587_v32 = vld [vmem:[#allocation6 + $0xe0] sm:$0xff]  ;;  %v4614_v8 = vld [vmem:[#allocation6 + $0x1b8] sm:$0xff] }
 0x903   :  { %v5431_v29 = vmul.f32 -1.442695, %v4142_v0  ;;  %v4213_v30 = vadd.f32 %v4212_v28, %v4068_v27  ;;  %v4577_v0 = vld [vmem:[#allocation6 + $0x90] sm:$0xff]  ;;  %v4586_v27 = vld [vmem:[#allocation6 + $0xd8] sm:$0xff]  ;;  %v4616_v15 = vld [vmem:[#allocation6 + $0x1c8] sm:$0xff] }
 0x904   :  { %7813 = vpow2.f32 %v5430_v26  ;;  %v7313_v26 = vpack.c.bf16 %v4579_v20, %v4575_v3  ;;  %v4590_v28 = vld [vmem:[#allocation6 + $0xf8] sm:$0xff]  ;;  %v7389_v3 = vpack.c.bf16 %v4605_v4, %v4601_v2 }
 0x905   :  { %7815 = vpow2.f32 %v5431_v29  ;;  %v5432_v43 = vmul.f32 -1.442695, %v4213_v30  ;;  %v7315_v29 = vpack.c.bf16 %v4588_v17, %v4584_v21  ;;  %v4583_v30 = vld [vmem:[#allocation6 + $0xc0] sm:$0xff]  ;;  %v4609_v21 = vld [vmem:[#allocation6 + $0x190] sm:$0xff]  ;;  %v4646_v2 = vld [vmem:[#allocation6 + $0x2b8] sm:$0xff] }
 0x906   :  { %v4613_v17 = vld [vmem:[#allocation6 + $0x1b0] sm:$0xff] }
 0x907   :  { %7817 = vpow2.f32 %v5432_v43  ;;  %v4592_v43 = vld [vmem:[#allocation6 + $0x108] sm:$0xff] }
 0x908   :  { %7819 = vtanh.f32 %v4211_v35  ;;  %v4596_v35 = vld [vmem:[#allocation6 + $0x128] sm:$0xff] }
 0x90e   :  { %v7814_v36 = vpop.eup %7813 }
 0x90f   :  { %v7816_v39 = vpop.eup %7815  ;;  %v4218_v34 = vadd.f32 1.0, %v7814_v36  ;;  %v7377_v36 = vpack.c.bf16 %v4581_v25, %v4577_v0  ;;  %v4622_v0 = vld [vmem:[#allocation6 + $0x1f8] sm:$0xff] }
 0x910   :  { %v4224_v41 = vadd.f32 1.0, %v7816_v39  ;;  %v7379_v39 = vpack.c.bf16 %v4590_v28, %v4586_v27  ;;  %v4619_v27 = vld [vmem:[#allocation6 + $0x1e0] sm:$0xff]  ;;  %v4624_v28 = vld [vmem:[#allocation6 + $0x208] sm:$0xff] }
 0x911   :  { %7821 = vrcp.f32 %v4218_v34  ;;  %v7818_v7 = vpop.eup %7817  ;;  %v4585_v34 = vld [vmem:[#allocation6 + $0xd0] sm:$0xff] }
 0x912   :  { %7823 = vrcp.f32 %v4224_v41  ;;  %v7820_v47 = vpop.eup %7819  ;;  %v4231_v44 = vadd.f32 1.0, %v7818_v7  ;;  %v4589_v41 = vld [vmem:[#allocation6 + $0xf0] sm:$0xff]  ;;  %v7317_v7 = vpack.c.bf16 %v4587_v32, %v4583_v30  ;;  %v7393_v30 = vpack.c.bf16 %v4613_v17, %v4609_v21  ;;  %v4654_v21 = vld [vmem:[#allocation6 + $0x2f8] sm:$0xff] }
 0x913   :  { %v7381_v51 = vpack.c.bf16 %v4589_v41, %v4585_v34  ;;  %v4630_v34 = vld [vmem:[#allocation6 + $0x238] sm:$0xff] }
 0x914   :  { %7825 = vrcp.f32 %v4231_v44  ;;  %v7319_v44 = vpack.c.bf16 %v4596_v35, %v4592_v43  ;;  %v4617_v43 = vld [vmem:[#allocation6 + $0x1d0] sm:$0xff] }
 0x915   :  { %v4621_v35 = vld [vmem:[#allocation6 + $0x1f0] sm:$0xff] }
 0x91b   :  { %v7822_v42 = vpop.eup %7821 }
 0x91c   :  { %v7824_v31 = vpop.eup %7823  ;;  %v4235_v45 = vmul.f32 %v7822_v42, %v7820_v47  ;;  %v4594_v47 = vld [vmem:[#allocation6 + $0x118] sm:$0xff] }
 0x91d   :  { %v4234_v46 = vmul.f32 %v7824_v31, %v8313_v23  ;;  %v4571_v23 = vld [vmem:[#allocation6 + $0x60] sm:$0xff]  ;;  %v4598_v42 = vld [vmem:[#allocation6 + $0x138] sm:$0xff] }
 0x91e   :  { %v7826_v53 = vpop.eup %7825  ;;  %v7309_v10 = vpack.c.bf16 %v4571_v23, %v4567_v1  ;;  %v4591_v31 = vld [vmem:[#allocation6 + $0x100] sm:$0xff]  ;;  %v7385_v1 = vpack.c.bf16 %v4597_v56, %v4593_v54  ;;  %v4638_v54 = vld [vmem:[#allocation6 + $0x278] sm:$0xff] }
 0x91f   :  { %v8333_v48 = vadd.f32 %v4235_v45, %v4234_v46  ;;  %v4595_v45 = vld [vmem:[#allocation6 + $0x120] sm:$0xff]  ;;  %v4600_v46 = vld [vmem:[#allocation6 + $0x148] sm:$0xff] }
 0x920   :  { %v7321_v57 = vpack.c.bf16 %v4595_v45, %v4591_v31  ;;  %v7397_v31 = vpack.c.bf16 %v4621_v35, %v4617_v43  ;;  %v4662_v43 = vld [vmem:[#allocation6 + $0x338] sm:$0xff] }
 0x921   :  { %7827 = vtanh.f32 %v8333_v48 }
 0x92b   :  { %v7828_v59 = vpop.eup %7827 }
 0x92c   :  { %v4238_v62 = vmul.f32 %v7828_v59, %v7826_v53  ;;  %v7383_v53 = vpack.c.bf16 %v4598_v42, %v4594_v47  ;;  %v4606_v59 = vld [vmem:[#allocation6 + $0x178] sm:$0xff]  ;;  %v4627_v47 = vld [vmem:[#allocation6 + $0x220] sm:$0xff]  ;;  %v4632_v42 = vld [vmem:[#allocation6 + $0x248] sm:$0xff] }
 0x92d   :  { %v7387_v23 = vpack.c.bf16 %v4606_v59, %v4602_v58  ;;  %v4635_v58 = vld [vmem:[#allocation6 + $0x260] sm:$0xff]  ;;  %v4640_v59 = vld [vmem:[#allocation6 + $0x288] sm:$0xff] }
 0x92e   :  { %4454 = vmatmul.mubr.f32.vlgmr.msra.gmra.mrb[26].mxu0 %v4238_v62  ;;  %4525 = vmatmul.mubr.f32.vlgmr.msra.gmra.mrb[26].mxu1 %v4238_v62 }
 0x92f   :  { %7306 = vmatpush1.bf16.msra.mxu0 %v7305_v38  ;;  %4773 = vmatprep.mubr.f32.mxu0 %v4238_v62  ;;  %v7323_v38 = vpack.c.bf16 %v4604_v49, %v4600_v46  ;;  %v4625_v46 = vld [vmem:[#allocation6 + $0x210] sm:$0xff] }
 0x930   :  { %4844 = vmatprep.mubr.f32.mxu1 %v4238_v62  ;;  %7308 = vmatprep.subr.bf16.mxu0 %v7307_v63  ;;  %v4608_v62 = vld [vmem:[#allocation6 + $0x188] sm:$0xff]  ;;  %v4629_v49 = vld [vmem:[#allocation6 + $0x230] sm:$0xff] }
 0x931   :  { %7370 = vmatpush1.bf16.msra.mxu1 %v7369_v5  ;;  %v4612_v63 = vld [vmem:[#allocation6 + $0x1a8] sm:$0xff]  ;;  %v7325_v5 = vpack.c.bf16 %v4603_v61, %v4599_v60  ;;  %v7401_v60 = vpack.c.bf16 %v4629_v49, %v4625_v46  ;;  %v4670_v46 = vld [vmem:[#allocation6 + $0x378] sm:$0xff] }
 0x932   :  { %7372 = vmatprep.subr.bf16.mxu1 %v7371_v6  ;;  %v4610_v6 = vld [vmem:[#allocation6 + $0x198] sm:$0xff]  ;;  %v7327_v9 = vpack.c.bf16 %v4612_v63, %v4608_v62  ;;  %v4633_v62 = vld [vmem:[#allocation6 + $0x250] sm:$0xff] }
 0x933   :  { %7310 = vmatpush1.bf16.msra.mxu0 %v7309_v10  ;;  %v4607_v10 = vld [vmem:[#allocation6 + $0x180] sm:$0xff]  ;;  %v7391_v20 = vpack.c.bf16 %v4614_v8, %v4610_v6  ;;  %v4637_v63 = vld [vmem:[#allocation6 + $0x270] sm:$0xff]  ;;  %v4648_v8 = vld [vmem:[#allocation6 + $0x2c8] sm:$0xff] }
 0x934   :  { %7312 = vmatprep.subr.bf16.mxu0 %v7311_v18  ;;  %v4620_v18 = vld [vmem:[#allocation6 + $0x1e8] sm:$0xff]  ;;  %v4643_v6 = vld [vmem:[#allocation6 + $0x2a0] sm:$0xff] }
 0x935   :  { %7374 = vmatpush1.bf16.msra.mxu1 %v7373_v52  ;;  %v7329_v52 = vpack.c.bf16 %v4611_v12, %v4607_v10  ;;  %v7331_v25 = vpack.c.bf16 %v4620_v18, %v4616_v15  ;;  %v7405_v10 = vpack.c.bf16 %v4637_v63, %v4633_v62  ;;  %v4641_v15 = vld [vmem:[#allocation6 + $0x290] sm:$0xff]  ;;  %v4678_v62 = vld [vmem:[#allocation6 + $0x3b8] sm:$0xff] }
 0x936   :  { %7376 = vmatprep.subr.bf16.mxu1 %v7375_v22  ;;  %v4618_v22 = vld [vmem:[#allocation6 + $0x1d8] sm:$0xff]  ;;  %v4645_v18 = vld [vmem:[#allocation6 + $0x2b0] sm:$0xff] }
 0x937   :  { %7314 = vmatpush1.bf16.msra.mxu0 %v7313_v26  ;;  %v4615_v26 = vld [vmem:[#allocation6 + $0x1c0] sm:$0xff]  ;;  %v7395_v32 = vpack.c.bf16 %v4622_v0, %v4618_v22  ;;  %v4656_v0 = vld [vmem:[#allocation6 + $0x308] sm:$0xff] }
 0x938   :  { %7316 = vmatprep.subr.bf16.mxu0 %v7315_v29  ;;  %v4628_v29 = vld [vmem:[#allocation6 + $0x228] sm:$0xff]  ;;  %v4651_v22 = vld [vmem:[#allocation6 + $0x2e0] sm:$0xff] }
 0x939   :  { %7378 = vmatpush1.bf16.msra.mxu1 %v7377_v36  ;;  %v7333_v36 = vpack.c.bf16 %v4619_v27, %v4615_v26  ;;  %v7335_v41 = vpack.c.bf16 %v4628_v29, %v4624_v28  ;;  %v7409_v26 = vpack.c.bf16 %v4645_v18, %v4641_v15  ;;  %v4649_v28 = vld [vmem:[#allocation6 + $0x2d0] sm:$0xff]  ;;  %v4686_v15 = vld [vmem:[#allocation6 + $0x3f8] sm:$0xff] }
 0x93a   :  { %7380 = vmatprep.subr.bf16.mxu1 %v7379_v39  ;;  %v4626_v39 = vld [vmem:[#allocation6 + $0x218] sm:$0xff]  ;;  %v4653_v29 = vld [vmem:[#allocation6 + $0x2f0] sm:$0xff] }
 0x93b   :  { %7318 = vmatpush1.bf16.msra.mxu0 %v7317_v7  ;;  %v4623_v7 = vld [vmem:[#allocation6 + $0x200] sm:$0xff]  ;;  %v7399_v45 = vpack.c.bf16 %v4630_v34, %v4626_v39  ;;  %v4664_v34 = vld [vmem:[#allocation6 + $0x348] sm:$0xff] }
 0x93c   :  { %7320 = vmatprep.subr.bf16.mxu0 %v7319_v44  ;;  %v4636_v44 = vld [vmem:[#allocation6 + $0x268] sm:$0xff]  ;;  %v4659_v39 = vld [vmem:[#allocation6 + $0x320] sm:$0xff] }
 0x93d   :  { %7382 = vmatpush1.bf16.msra.mxu1 %v7381_v51  ;;  %v7337_v51 = vpack.c.bf16 %v4627_v47, %v4623_v7  ;;  %v7339_v56 = vpack.c.bf16 %v4636_v44, %v4632_v42  ;;  %v7413_v7 = vpack.c.bf16 %v4653_v29, %v4649_v28  ;;  %v4657_v42 = vld [vmem:[#allocation6 + $0x310] sm:$0xff]  ;;  %v4880_v28 = vld [vmem:[#allocation6 + $0x428] sm:$0xff]  ;;  %v4878_v29 = vld [vmem:[#allocation6 + $0x418] sm:$0xff] }
 0x93e   :  { %7384 = vmatprep.subr.bf16.mxu1 %v7383_v53  ;;  %v4634_v53 = vld [vmem:[#allocation6 + $0x258] sm:$0xff]  ;;  %v4661_v44 = vld [vmem:[#allocation6 + $0x330] sm:$0xff] }
 0x93f   :  { %7322 = vmatpush1.bf16.msra.mxu0 %v7321_v57  ;;  %v4631_v57 = vld [vmem:[#allocation6 + $0x240] sm:$0xff]  ;;  %v7403_v61 = vpack.c.bf16 %v4638_v54, %v4634_v53  ;;  %v4672_v54 = vld [vmem:[#allocation6 + $0x388] sm:$0xff] }
 0x940   :  { %7324 = vmatprep.subr.bf16.mxu0 %v7323_v38  ;;  %v4644_v38 = vld [vmem:[#allocation6 + $0x2a8] sm:$0xff]  ;;  %v4667_v53 = vld [vmem:[#allocation6 + $0x360] sm:$0xff] }
 0x941   :  { %7386 = vmatpush1.bf16.msra.mxu1 %v7385_v1  ;;  %v7341_v1 = vpack.c.bf16 %v4635_v58, %v4631_v57  ;;  %v7343_v4 = vpack.c.bf16 %v4644_v38, %v4640_v59  ;;  %v7417_v57 = vpack.c.bf16 %v4661_v44, %v4657_v42  ;;  %v4665_v59 = vld [vmem:[#allocation6 + $0x350] sm:$0xff]  ;;  %v4888_v42 = vld [vmem:[#allocation6 + $0x468] sm:$0xff]  ;;  %v4886_v44 = vld [vmem:[#allocation6 + $0x458] sm:$0xff] }
 0x942   :  { %7388 = vmatprep.subr.bf16.mxu1 %v7387_v23  ;;  %v4642_v23 = vld [vmem:[#allocation6 + $0x298] sm:$0xff]  ;;  %v4669_v38 = vld [vmem:[#allocation6 + $0x370] sm:$0xff] }
 0x943   :  { %7326 = vmatpush1.bf16.msra.mxu0 %v7325_v5  ;;  %v4639_v5 = vld [vmem:[#allocation6 + $0x280] sm:$0xff]  ;;  %v7407_v12 = vpack.c.bf16 %v4646_v2, %v4642_v23  ;;  %v4680_v2 = vld [vmem:[#allocation6 + $0x3c8] sm:$0xff] }
 0x944   :  { %7328 = vmatprep.subr.bf16.mxu0 %v7327_v9  ;;  %v4652_v9 = vld [vmem:[#allocation6 + $0x2e8] sm:$0xff]  ;;  %v4675_v23 = vld [vmem:[#allocation6 + $0x3a0] sm:$0xff] }
 0x945   :  { %7390 = vmatpush1.bf16.msra.mxu1 %v7389_v3  ;;  %v7345_v3 = vpack.c.bf16 %v4643_v6, %v4639_v5  ;;  %v7347_v17 = vpack.c.bf16 %v4652_v9, %v4648_v8  ;;  %v7421_v5 = vpack.c.bf16 %v4669_v38, %v4665_v59  ;;  %v4673_v8 = vld [vmem:[#allocation6 + $0x390] sm:$0xff]  ;;  %v4896_v59 = vld [vmem:[#allocation6 + $0x4a8] sm:$0xff]  ;;  %v4894_v38 = vld [vmem:[#allocation6 + $0x498] sm:$0xff] }
 0x946   :  { %7392 = vmatprep.subr.bf16.mxu1 %v7391_v20  ;;  %v4650_v20 = vld [vmem:[#allocation6 + $0x2d8] sm:$0xff]  ;;  %v4677_v9 = vld [vmem:[#allocation6 + $0x3b0] sm:$0xff] }
 0x947   :  { %7330 = vmatpush1.bf16.msra.mxu0 %v7329_v52  ;;  %v4647_v52 = vld [vmem:[#allocation6 + $0x2c0] sm:$0xff]  ;;  %v7411_v27 = vpack.c.bf16 %v4654_v21, %v4650_v20  ;;  %v7425_v21 = vpack.c.bf16 %v4677_v9, %v4673_v8 }
 0x948   :  { %7332 = vmatprep.subr.bf16.mxu0 %v7331_v25  ;;  %v4660_v25 = vld [vmem:[#allocation6 + $0x328] sm:$0xff]  ;;  %v4683_v20 = vld [vmem:[#allocation6 + $0x3e0] sm:$0xff] }
 0x949   :  { %7394 = vmatpush1.bf16.msra.mxu1 %v7393_v30  ;;  %v7349_v30 = vpack.c.bf16 %v4651_v22, %v4647_v52  ;;  %v7351_v35 = vpack.c.bf16 %v4660_v25, %v4656_v0  ;;  %v4681_v52 = vld [vmem:[#allocation6 + $0x3d0] sm:$0xff] }
 0x94a   :  { %7396 = vmatprep.subr.bf16.mxu1 %v7395_v32  ;;  %v4658_v32 = vld [vmem:[#allocation6 + $0x318] sm:$0xff]  ;;  %v4685_v22 = vld [vmem:[#allocation6 + $0x3f0] sm:$0xff] }
 0x94b   :  { %7334 = vmatpush1.bf16.msra.mxu0 %v7333_v36  ;;  %v4655_v36 = vld [vmem:[#allocation6 + $0x300] sm:$0xff]  ;;  %v7415_v47 = vpack.c.bf16 %v4662_v43, %v4658_v32  ;;  %v7429_v25 = vpack.c.bf16 %v4685_v22, %v4681_v52  ;;  %v4882_v32 = vld [vmem:[#allocation6 + $0x438] sm:$0xff]  ;;  %v4908_v52 = vld [vmem:[#allocation6 + $0x508] sm:$0xff] }
 0x94c   :  { %7336 = vmatprep.subr.bf16.mxu0 %v7335_v41  ;;  %v4668_v41 = vld [vmem:[#allocation6 + $0x368] sm:$0xff]  ;;  %v4875_v43 = vld [vmem:[#allocation6 + $0x400] sm:$0xff] }
 0x94d   :  { %7398 = vmatpush1.bf16.msra.mxu1 %v7397_v31  ;;  %v7353_v31 = vpack.c.bf16 %v4659_v39, %v4655_v36  ;;  %v7355_v49 = vpack.c.bf16 %v4668_v41, %v4664_v34  ;;  %v7495_v36 = vpack.c.bf16 %v4882_v32, %v4878_v29  ;;  %v4877_v34 = vld [vmem:[#allocation6 + $0x410] sm:$0xff]  ;;  %v4912_v22 = vld [vmem:[#allocation6 + $0x528] sm:$0xff]  ;;  %v4911_v29 = vld [vmem:[#allocation6 + $0x520] sm:$0xff] }
 0x94e   :  { %7400 = vmatprep.subr.bf16.mxu1 %v7399_v45  ;;  %v4666_v45 = vld [vmem:[#allocation6 + $0x358] sm:$0xff]  ;;  %v4881_v41 = vld [vmem:[#allocation6 + $0x430] sm:$0xff] }
 0x94f   :  { %7338 = vmatpush1.bf16.msra.mxu0 %v7337_v51  ;;  %v4663_v51 = vld [vmem:[#allocation6 + $0x340] sm:$0xff]  ;;  %v7419_v58 = vpack.c.bf16 %v4670_v46, %v4666_v45  ;;  %v4890_v45 = vld [vmem:[#allocation6 + $0x478] sm:$0xff]  ;;  %v4909_v32 = vld [vmem:[#allocation6 + $0x510] sm:$0xff] }
 0x950   :  { %7340 = vmatprep.subr.bf16.mxu0 %v7339_v56  ;;  %v4676_v56 = vld [vmem:[#allocation6 + $0x3a8] sm:$0xff]  ;;  %v4883_v46 = vld [vmem:[#allocation6 + $0x440] sm:$0xff] }
 0x951   :  { %7402 = vmatpush1.bf16.msra.mxu1 %v7401_v60  ;;  %v7357_v60 = vpack.c.bf16 %v4667_v53, %v4663_v51  ;;  %v7359_v63 = vpack.c.bf16 %v4676_v56, %v4672_v54  ;;  %v7499_v51 = vpack.c.bf16 %v4890_v45, %v4886_v44  ;;  %v4885_v54 = vld [vmem:[#allocation6 + $0x450] sm:$0xff]  ;;  %v4919_v44 = vld [vmem:[#allocation6 + $0x560] sm:$0xff] }
 0x952   :  { %7404 = vmatprep.subr.bf16.mxu1 %v7403_v61  ;;  %v4674_v61 = vld [vmem:[#allocation6 + $0x398] sm:$0xff]  ;;  %v4889_v56 = vld [vmem:[#allocation6 + $0x470] sm:$0xff] }
 0x953   :  { %7342 = vmatpush1.bf16.msra.mxu0 %v7341_v1  ;;  %v4671_v1 = vld [vmem:[#allocation6 + $0x380] sm:$0xff]  ;;  %v7423_v6 = vpack.c.bf16 %v4678_v62, %v4674_v61 }
 0x954   :  { %7344 = vmatprep.subr.bf16.mxu0 %v7343_v4  ;;  %v4684_v4 = vld [vmem:[#allocation6 + $0x3e8] sm:$0xff] }
 0x955   :  { %7406 = vmatpush1.bf16.msra.mxu1 %v7405_v10  ;;  %v7361_v10 = vpack.c.bf16 %v4675_v23, %v4671_v1  ;;  %v7363_v18 = vpack.c.bf16 %v4684_v4, %v4680_v2  ;;  %v4895_v1 = vld [vmem:[#allocation6 + $0x4a0] sm:$0xff]  ;;  %v4893_v23 = vld [vmem:[#allocation6 + $0x490] sm:$0xff] }
 0x956   :  { %7408 = vmatprep.subr.bf16.mxu1 %v7407_v12  ;;  %v4682_v12 = vld [vmem:[#allocation6 + $0x3d8] sm:$0xff]  ;;  %v4897_v4 = vld [vmem:[#allocation6 + $0x4b0] sm:$0xff] }
 0x957   :  { %7346 = vmatpush1.bf16.msra.mxu0 %v7345_v3  ;;  %v4679_v3 = vld [vmem:[#allocation6 + $0x3c0] sm:$0xff]  ;;  %v7505_v8 = vpack.c.bf16 %v4897_v4, %v4893_v23  ;;  %v4932_v23 = vld [vmem:[#allocation6 + $0x5c8] sm:$0xff]  ;;  %v4934_v4 = vld [vmem:[#allocation6 + $0x5d8] sm:$0xff] }
 0x958   :  { %7348 = vmatprep.subr.bf16.mxu0 %v7347_v17  ;;  %v7427_v17 = vpack.c.bf16 %v4686_v15, %v4682_v12  ;;  %v7365_v0 = vpack.c.bf16 %v4683_v20, %v4679_v3  ;;  %v4906_v12 = vld [vmem:[#allocation6 + $0x4f8] sm:$0xff]  ;;  %v4899_v15 = vld [vmem:[#allocation6 + $0x4c0] sm:$0xff]  ;;  %v4901_v20 = vld [vmem:[#allocation6 + $0x4d0] sm:$0xff] }
 0x959   :  { %7410 = vmatpush1.bf16.msra.mxu1 %v7409_v26  ;;  %v4558_v26 = vld [vmem:[#allocation3 + $0x38] sm:$0xff]  ;;  %v4903_v3 = vld [vmem:[#allocation6 + $0x4e0] sm:$0xff] }
 0x95a   :  { %7412 = vmatprep.subr.bf16.mxu1 %v7411_v27  ;;  %v4876_v27 = vld [vmem:[#allocation6 + $0x408] sm:$0xff] }
 0x95b   :  { %7350 = vmatpush1.bf16.msra.mxu0 %v7349_v30  ;;  %v7431_v30 = vpack.c.bf16 %v4880_v28, %v4876_v27  ;;  %v4914_v27 = vld [vmem:[#allocation6 + $0x538] sm:$0xff]  ;;  %v4907_v28 = vld [vmem:[#allocation6 + $0x500] sm:$0xff] }
 0x95c   :  { %7352 = vmatprep.subr.bf16.mxu0 %v7351_v35  ;;  %v4879_v35 = vld [vmem:[#allocation6 + $0x420] sm:$0xff] }
 0x95d   :  { %7414 = vmatpush1.bf16.msra.mxu1 %v7413_v7  ;;  %v7433_v39 = vpack.c.bf16 %v4879_v35, %v4875_v43  ;;  %v7497_v7 = vpack.c.bf16 %v4881_v41, %v4877_v34  ;;  %v4913_v43 = vld [vmem:[#allocation6 + $0x530] sm:$0xff]  ;;  %v7449_v35 = vpack.c.bf16 %v4911_v29, %v4907_v28  ;;  %v4920_v34 = vld [vmem:[#allocation6 + $0x568] sm:$0xff]  ;;  %v4918_v41 = vld [vmem:[#allocation6 + $0x558] sm:$0xff] }
 0x95e   :  { %7416 = vmatprep.subr.bf16.mxu1 %v7415_v47  ;;  %v4884_v47 = vld [vmem:[#allocation6 + $0x448] sm:$0xff]  ;;  %v4941_v28 = vld [vmem:[#allocation6 + $0x610] sm:$0xff] }
 0x95f   :  { %7354 = vmatpush1.bf16.msra.mxu0 %v7353_v31  ;;  %v7435_v31 = vpack.c.bf16 %v4888_v42, %v4884_v47  ;;  %v4922_v47 = vld [vmem:[#allocation6 + $0x578] sm:$0xff]  ;;  %v4915_v42 = vld [vmem:[#allocation6 + $0x540] sm:$0xff]  ;;  %v4945_v29 = vld [vmem:[#allocation6 + $0x630] sm:$0xff] }
 0x960   :  { %7356 = vmatprep.subr.bf16.mxu0 %v7355_v49  ;;  %v4887_v49 = vld [vmem:[#allocation6 + $0x460] sm:$0xff]  ;;  %v7453_v45 = vpack.c.bf16 %v4919_v44, %v4915_v42  ;;  %v4949_v42 = vld [vmem:[#allocation6 + $0x650] sm:$0xff] }
 0x961   :  { %7418 = vmatpush1.bf16.msra.mxu1 %v7417_v57  ;;  %v7437_v53 = vpack.c.bf16 %v4887_v49, %v4883_v46  ;;  %v4892_v57 = vld [vmem:[#allocation6 + $0x488] sm:$0xff]  ;;  %v4917_v46 = vld [vmem:[#allocation6 + $0x550] sm:$0xff] }
 0x962   :  { %7420 = vmatprep.subr.bf16.mxu1 %v7419_v58  ;;  %v7501_v58 = vpack.c.bf16 %v4889_v56, %v4885_v54  ;;  %v7439_v61 = vpack.c.bf16 %v4896_v59, %v4892_v57  ;;  %v4921_v49 = vld [vmem:[#allocation6 + $0x570] sm:$0xff]  ;;  %v4928_v54 = vld [vmem:[#allocation6 + $0x5a8] sm:$0xff]  ;;  %v4926_v56 = vld [vmem:[#allocation6 + $0x598] sm:$0xff] }
 0x963   :  { %7358 = vmatpush1.bf16.msra.mxu0 %v7357_v60  ;;  %v4898_v60 = vld [vmem:[#allocation6 + $0x4b8] sm:$0xff]  ;;  %v4923_v59 = vld [vmem:[#allocation6 + $0x580] sm:$0xff]  ;;  %v4953_v44 = vld [vmem:[#allocation6 + $0x670] sm:$0xff] }
 0x964   :  { %7360 = vmatprep.subr.bf16.mxu0 %v7359_v63  ;;  %v7503_v62 = vpack.c.bf16 %v4898_v60, %v4894_v38  ;;  %v4891_v63 = vld [vmem:[#allocation6 + $0x480] sm:$0xff] }
 0x965   :  { %7422 = vmatpush1.bf16.msra.mxu1 %v7421_v5  ;;  %v7441_v2 = vpack.c.bf16 %v4895_v1, %v4891_v63  ;;  %v4900_v5 = vld [vmem:[#allocation6 + $0x4c8] sm:$0xff]  ;;  %v4927_v38 = vld [vmem:[#allocation6 + $0x5a0] sm:$0xff]  ;;  %v4929_v63 = vld [vmem:[#allocation6 + $0x5b0] sm:$0xff] }
 0x966   :  { %7424 = vmatprep.subr.bf16.mxu1 %v7423_v6  ;;  %v4904_v6 = vld [vmem:[#allocation6 + $0x4e8] sm:$0xff] }
 0x967   :  { %7362 = vmatpush1.bf16.msra.mxu0 %v7361_v10  ;;  %v7443_v9 = vpack.c.bf16 %v4904_v6, %v4900_v5  ;;  %v4902_v10 = vld [vmem:[#allocation6 + $0x4d8] sm:$0xff] }
 0x968   :  { %7364 = vmatprep.subr.bf16.mxu0 %v7363_v18  ;;  %v7507_v18 = vpack.c.bf16 %v4906_v12, %v4902_v10  ;;  %v4938_v6 = vld [vmem:[#allocation6 + $0x5f8] sm:$0xff] }
 0x969   :  { %7426 = vmatpush1.bf16.msra.mxu1 %v7425_v21  ;;  %v4905_v21 = vld [vmem:[#allocation6 + $0x4f0] sm:$0xff]  ;;  %v7523_v10 = vpack.c.bf16 %v4938_v6, %v4934_v4  ;;  %v4967_v4 = vld [vmem:[#allocation6 + $0x6e0] sm:$0xff] }
 0x96a   :  { %7428 = vmatprep.subr.bf16.mxu1 %v7427_v17  ;;  %v7445_v17 = vpack.c.bf16 %v4903_v3, %v4899_v15  ;;  %v4933_v15 = vld [vmem:[#allocation6 + $0x5d0] sm:$0xff] }
 0x96b   :  { %7366 = vmatpush1.bf16.msra.mxu0 %v7365_v0  ;;  %v4910_v0 = vld [vmem:[#allocation6 + $0x518] sm:$0xff] }
 0x96c   :  { %7432 = vmatprep.subr.bf16.mxu0 %v7431_v30  ;;  %v7511_v30 = vpack.c.bf16 %v4914_v27, %v4910_v0  ;;  %v4939_v0 = vld [vmem:[#allocation6 + $0x600] sm:$0xff] }
 0x96d   :  { %7430 = vmatpush1.bf16.msra.mxu1 %v7429_v25  ;;  %v7509_v25 = vpack.c.bf16 %v4905_v21, %v4901_v20  ;;  %v4940_v20 = vld [vmem:[#allocation6 + $0x608] sm:$0xff] }
 0x96e   :  { %4774 = vmatmul.mubr.f32.vlgmr.msra.gmra.mrb[28].mxu0 %v4558_v26  ;;  %7496 = vmatprep.subr.bf16.mxu1 %v7495_v36  ;;  %v7513_v36 = vpack.c.bf16 %v4913_v43, %v4909_v32  ;;  %v4944_v21 = vld [vmem:[#allocation6 + $0x628] sm:$0xff] }
 0x96f   :  { %7434 = vmatpush1.bf16.msra.mxu0 %v7433_v39  ;;  %v4916_v39 = vld [vmem:[#allocation6 + $0x548] sm:$0xff] }
 0x970   :  { %4845 = vmatmul.mubr.f32.vlgmr.msra.gmra.mrb[28].mxu1 %v4558_v26  ;;  %7436 = vmatprep.subr.bf16.mxu0 %v7435_v31  ;;  %v7447_v26 = vpack.c.bf16 %v4912_v22, %v4908_v52  ;;  %v7515_v31 = vpack.c.bf16 %v4922_v47, %v4918_v41  ;;  %v7463_v52 = vpack.c.bf16 %v4944_v21, %v4940_v20  ;;  %v4946_v22 = vld [vmem:[#allocation6 + $0x638] sm:$0xff]  ;;  %v4948_v32 = vld [vmem:[#allocation6 + $0x648] sm:$0xff]  ;;  %v4951_v41 = vld [vmem:[#allocation6 + $0x660] sm:$0xff] }
 0x971   :  { %7498 = vmatpush1.bf16.msra.mxu1 %v7497_v7  ;;  %v7451_v7 = vpack.c.bf16 %v4920_v34, %v4916_v39  ;;  %v4952_v43 = vld [vmem:[#allocation6 + $0x668] sm:$0xff]  ;;  %v4954_v39 = vld [vmem:[#allocation6 + $0x678] sm:$0xff]  ;;  %v4947_v34 = vld [vmem:[#allocation6 + $0x640] sm:$0xff] }
 0x972   :  { %7500 = vmatprep.subr.bf16.mxu1 %v7499_v51  ;;  %v7517_v51 = vpack.c.bf16 %v4921_v49, %v4917_v46  ;;  %v7469_v47 = vpack.c.bf16 %v4951_v41, %v4947_v34  ;;  %v4960_v46 = vld [vmem:[#allocation6 + $0x6a8] sm:$0xff]  ;;  %v4958_v49 = vld [vmem:[#allocation6 + $0x698] sm:$0xff]  ;;  %v4971_v21 = vld [vmem:[#allocation6 + $0x700] sm:$0xff] }
 0x973   :  { %7438 = vmatpush1.bf16.msra.mxu0 %v7437_v53  ;;  %v4924_v53 = vld [vmem:[#allocation6 + $0x588] sm:$0xff]  ;;  %v4978_v20 = vld [vmem:[#allocation6 + $0x738] sm:$0xff]  ;;  %v4981_v34 = vld [vmem:[#allocation6 + $0x750] sm:$0xff] }
 0x974   :  { %7440 = vmatprep.subr.bf16.mxu0 %v7439_v61  ;;  %v7455_v57 = vpack.c.bf16 %v4928_v54, %v4924_v53  ;;  %v7457_v61 = vpack.c.bf16 %v4927_v38, %v4923_v59  ;;  %v4962_v53 = vld [vmem:[#allocation6 + $0x6b8] sm:$0xff]  ;;  %v4955_v54 = vld [vmem:[#allocation6 + $0x680] sm:$0xff]  ;;  %v4957_v59 = vld [vmem:[#allocation6 + $0x690] sm:$0xff] }
 0x975   :  { %7502 = vmatpush1.bf16.msra.mxu1 %v7501_v58  ;;  %v4930_v58 = vld [vmem:[#allocation6 + $0x5b8] sm:$0xff]  ;;  %v4961_v38 = vld [vmem:[#allocation6 + $0x6b0] sm:$0xff] }
 0x976   :  { %7504 = vmatprep.subr.bf16.mxu1 %v7503_v62  ;;  %v7519_v60 = vpack.c.bf16 %v4930_v58, %v4926_v56  ;;  %v4925_v62 = vld [vmem:[#allocation6 + $0x590] sm:$0xff]  ;;  %v4959_v56 = vld [vmem:[#allocation6 + $0x6a0] sm:$0xff] }
 0x977   :  { %7442 = vmatpush1.bf16.msra.mxu0 %v7441_v2  ;;  %v7521_v1 = vpack.c.bf16 %v4929_v63, %v4925_v62  ;;  %v4936_v2 = vld [vmem:[#allocation6 + $0x5e8] sm:$0xff]  ;;  %v7473_v58 = vpack.c.bf16 %v4959_v56, %v4955_v54  ;;  %v4966_v63 = vld [vmem:[#allocation6 + $0x6d8] sm:$0xff]  ;;  %v4985_v41 = vld [vmem:[#allocation6 + $0x770] sm:$0xff] }
 0x978   :  { %7444 = vmatprep.subr.bf16.mxu0 %v7443_v9  ;;  %v7459_v5 = vpack.c.bf16 %v4936_v2, %v4932_v23  ;;  %v4935_v9 = vld [vmem:[#allocation6 + $0x5e0] sm:$0xff]  ;;  %v4968_v62 = vld [vmem:[#allocation6 + $0x6e8] sm:$0xff]  ;;  %v4970_v23 = vld [vmem:[#allocation6 + $0x6f8] sm:$0xff] }
 0x979   :  { %7506 = vmatpush1.bf16.msra.mxu1 %v7505_v8  ;;  %v4931_v8 = vld [vmem:[#allocation6 + $0x5c0] sm:$0xff]  ;;  %v4989_v54 = vld [vmem:[#allocation6 + $0x790] sm:$0xff] }
 0x97a   :  { %7508 = vmatprep.subr.bf16.mxu1 %v7507_v18  ;;  %v7461_v12 = vpack.c.bf16 %v4935_v9, %v4931_v8  ;;  %v4937_v18 = vld [vmem:[#allocation6 + $0x5f0] sm:$0xff]  ;;  %v4963_v2 = vld [vmem:[#allocation6 + $0x6c0] sm:$0xff] }
 0x97b   :  { %7446 = vmatpush1.bf16.msra.mxu0 %v7445_v17  ;;  %v7525_v3 = vpack.c.bf16 %v4937_v18, %v4933_v15  ;;  %v4942_v17 = vld [vmem:[#allocation6 + $0x618] sm:$0xff]  ;;  %v7477_v6 = vpack.c.bf16 %v4967_v4, %v4963_v2  ;;  %v4965_v8 = vld [vmem:[#allocation6 + $0x6d0] sm:$0xff]  ;;  %v4976_v15 = vld [vmem:[#allocation6 + $0x728] sm:$0xff] }
 0x97c   :  { %7448 = vmatprep.subr.bf16.mxu0 %v7447_v26  ;;  %v7527_v26 = vpack.c.bf16 %v4946_v22, %v4942_v17  ;;  %v4969_v9 = vld [vmem:[#allocation6 + $0x6f0] sm:$0xff]  ;;  %v4974_v18 = vld [vmem:[#allocation6 + $0x718] sm:$0xff]  ;;  %v4975_v17 = vld [vmem:[#allocation6 + $0x720] sm:$0xff] }
 0x97d   :  { %7510 = vmatpush1.bf16.msra.mxu1 %v7509_v25  ;;  %v4943_v25 = vld [vmem:[#allocation6 + $0x620] sm:$0xff]  ;;  %v7481_v22 = vpack.c.bf16 %v4975_v17, %v4971_v21  ;;  %v4993_v56 = vld [vmem:[#allocation6 + $0x7b0] sm:$0xff] }
 0x97e   :  { %7512 = vmatprep.subr.bf16.mxu1 %v7511_v30  ;;  %v7465_v27 = vpack.c.bf16 %v4943_v25, %v4939_v0  ;;  %v7529_v30 = vpack.c.bf16 %v4945_v29, %v4941_v28  ;;  %v4973_v0 = vld [vmem:[#allocation6 + $0x710] sm:$0xff]  ;;  %v4984_v28 = vld [vmem:[#allocation6 + $0x768] sm:$0xff]  ;;  %v4982_v29 = vld [vmem:[#allocation6 + $0x758] sm:$0xff] }
 0x97f   :  { %7450 = vmatpush1.bf16.msra.mxu0 %v7449_v35  ;;  %v4950_v35 = vld [vmem:[#allocation6 + $0x658] sm:$0xff]  ;;  %v4977_v25 = vld [vmem:[#allocation6 + $0x730] sm:$0xff] }
 0x980   :  { %7452 = vmatprep.subr.bf16.mxu0 %v7451_v7  ;;  %v7531_v7 = vpack.c.bf16 %v4954_v39, %v4950_v35  ;;  %v4983_v35 = vld [vmem:[#allocation6 + $0x760] sm:$0xff]  ;;  %v5001_v4 = vld [vmem:[#allocation6 + $0x7f0] sm:$0xff] }
 0x981   :  { %7514 = vmatpush1.bf16.msra.mxu1 %v7513_v36  ;;  %v7467_v36 = vpack.c.bf16 %v4952_v43, %v4948_v32  ;;  %v4986_v32 = vld [vmem:[#allocation6 + $0x778] sm:$0xff]  ;;  %v4979_v43 = vld [vmem:[#allocation6 + $0x740] sm:$0xff] }
 0x982   :  { %7516 = vmatprep.subr.bf16.mxu1 %v7515_v31  ;;  %v7533_v31 = vpack.c.bf16 %v4953_v44, %v4949_v42  ;;  %v7485_v39 = vpack.c.bf16 %v4983_v35, %v4979_v43  ;;  %v4992_v42 = vld [vmem:[#allocation6 + $0x7a8] sm:$0xff]  ;;  %v4990_v44 = vld [vmem:[#allocation6 + $0x798] sm:$0xff] }
 0x983   :  { %7454 = vmatpush1.bf16.msra.mxu0 %v7453_v45  ;;  %v4956_v45 = vld [vmem:[#allocation6 + $0x688] sm:$0xff] }
 0x984   :  { %7456 = vmatprep.subr.bf16.mxu0 %v7455_v57  ;;  %v7535_v57 = vpack.c.bf16 %v4962_v53, %v4958_v49  ;;  %v4991_v49 = vld [vmem:[#allocation6 + $0x7a0] sm:$0xff] }
 0x985   :  { %7518 = vmatpush1.bf16.msra.mxu1 %v7517_v51  ;;  %v7471_v51 = vpack.c.bf16 %v4960_v46, %v4956_v45  ;;  %v4994_v45 = vld [vmem:[#allocation6 + $0x7b8] sm:$0xff]  ;;  %v4987_v46 = vld [vmem:[#allocation6 + $0x780] sm:$0xff] }
 0x986   :  { %7520 = vmatprep.subr.bf16.mxu1 %v7519_v60  ;;  %v7537_v60 = vpack.c.bf16 %v4961_v38, %v4957_v59  ;;  %v7489_v53 = vpack.c.bf16 %v4991_v49, %v4987_v46  ;;  %v5000_v59 = vld [vmem:[#allocation6 + $0x7e8] sm:$0xff]  ;;  %v4998_v38 = vld [vmem:[#allocation6 + $0x7d8] sm:$0xff]  ;;  %v4687_v49 = vld [vmem:[#allocation8] sm:$0xf] }
 0x987   :  { %7458 = vmatpush1.bf16.msra.mxu0 %v7457_v61  ;;  %v4964_v61 = vld [vmem:[#allocation6 + $0x6c8] sm:$0xff] }
 0x988   :  { %7460 = vmatprep.subr.bf16.mxu0 %v7459_v5  ;;  %v7539_v5 = vpack.c.bf16 %v4970_v23, %v4966_v63  ;;  %v4995_v63 = vld [vmem:[#allocation6 + $0x7c0] sm:$0xff]  ;;  %v4997_v23 = vld [vmem:[#allocation6 + $0x7d0] sm:$0xff] }
 0x989   :  { %7522 = vmatpush1.bf16.msra.mxu1 %v7521_v1  ;;  %v7475_v1 = vpack.c.bf16 %v4968_v62, %v4964_v61 }
 0x98a   :  { %7524 = vmatprep.subr.bf16.mxu1 %v7523_v10  ;;  %v7541_v10 = vpack.c.bf16 %v4969_v9, %v4965_v8  ;;  %v7557_v8 = vpack.c.bf16 %v5001_v4, %v4997_v23 }
 0x98b   :  { %7462 = vmatpush1.bf16.msra.mxu0 %v7461_v12  ;;  %v4972_v12 = vld [vmem:[#allocation6 + $0x708] sm:$0xff] }
 0x98c   :  { %7464 = vmatprep.subr.bf16.mxu0 %v7463_v52  ;;  %v7543_v52 = vpack.c.bf16 %v4978_v20, %v4974_v18 }
 0x98d   :  { %7526 = vmatpush1.bf16.msra.mxu1 %v7525_v3  ;;  %v7479_v3 = vpack.c.bf16 %v4976_v15, %v4972_v12 }
 0x98e   :  { %7528 = vmatprep.subr.bf16.mxu1 %v7527_v26  ;;  %v7545_v26 = vpack.c.bf16 %v4977_v25, %v4973_v0 }
 0x98f   :  { %7466 = vmatpush1.bf16.msra.mxu0 %v7465_v27  ;;  %v4980_v27 = vld [vmem:[#allocation6 + $0x748] sm:$0xff] }
 0x990   :  { %7468 = vmatprep.subr.bf16.mxu0 %v7467_v36  ;;  %v7547_v36 = vpack.c.bf16 %v4986_v32, %v4982_v29 }
 0x991   :  { %7530 = vmatpush1.bf16.msra.mxu1 %v7529_v30  ;;  %v7483_v30 = vpack.c.bf16 %v4984_v28, %v4980_v27 }
 0x992   :  { %7532 = vmatprep.subr.bf16.mxu1 %v7531_v7  ;;  %v7549_v7 = vpack.c.bf16 %v4985_v41, %v4981_v34 }
 0x993   :  { %7470 = vmatpush1.bf16.msra.mxu0 %v7469_v47  ;;  %v4988_v47 = vld [vmem:[#allocation6 + $0x788] sm:$0xff] }
 0x994   :  { %7472 = vmatprep.subr.bf16.mxu0 %v7471_v51  ;;  %v7551_v51 = vpack.c.bf16 %v4994_v45, %v4990_v44 }
 0x995   :  { %7534 = vmatpush1.bf16.msra.mxu1 %v7533_v31  ;;  %v7487_v31 = vpack.c.bf16 %v4992_v42, %v4988_v47 }
 0x996   :  { %7536 = vmatprep.subr.bf16.mxu1 %v7535_v57  ;;  %v4996_v57 = vld [vmem:[#allocation6 + $0x7c8] sm:$0xff] }
 0x997   :  { %7474 = vmatpush1.bf16.msra.mxu0 %v7473_v58  ;;  %v7553_v58 = vpack.c.bf16 %v4993_v56, %v4989_v54  ;;  %v7491_v61 = vpack.c.bf16 %v5000_v59, %v4996_v57 }
 0x998   :  { %7476 = vmatprep.subr.bf16.mxu0 %v7475_v1  ;;  %v4999_v1 = vld [vmem:[#allocation6 + $0x7e0] sm:$0xff] }
 0x999   :  { %7538 = vmatpush1.bf16.msra.mxu1 %v7537_v60  ;;  %v5002_v60 = vld [vmem:[#allocation6 + $0x7f8] sm:$0xff]  ;;  %v7493_v2 = vpack.c.bf16 %v4999_v1, %v4995_v63  ;;  %v4700_v63 = vrot.slane %v4687_v49, %v8211_v24 }
 0x99a   :  { %7540 = vmatprep.subr.bf16.mxu1 %v7539_v5  ;;  %v7555_v62 = vpack.c.bf16 %v5002_v60, %v4998_v38  ;;  %v5207_v5 = vld [vmem:[#allocation9] sm:$0xff]  ;;  %v4704_v38 = vrot.slane %v4687_v49, %v8208_v16 }
 0x99b   :  { %7478 = vmatpush1.bf16.msra.mxu0 %v7477_v6  ;;  %v5208_v6 = vld [vmem:[#allocation9 + $0x8] sm:$0xff] }
 0x99c   :  { %7480 = vmatprep.subr.bf16.mxu0 %v7479_v3  ;;  %v8336_v9 = vpack.c.bf16 %v5208_v6, %v5207_v5 }
 0x99d   :  { %7542 = vmatpush1.bf16.msra.mxu1 %v7541_v10  ;;  %v4367_v10 = vld [vmem:[#allocation8 + $0x4] sm:$0xf] }
 0x99e   :  { %7544 = vmatprep.subr.bf16.mxu1 %v7543_v52  ;;  %v4372_v12 = vrot.slane %v4367_v10, %v8202_v11  ;;  %v4376_v15 = vrot.slane %v4367_v10, %v8204_v13  ;;  %v4384_v25 = vrot.slane %v4367_v10, %v8208_v16  ;;  %v4380_v27 = vrot.slane %v4367_v10, %v8211_v24 }
 0x99f   :  { %7482 = vmatpush1.bf16.msra.mxu0 %v7481_v22 }
 0x9a0   :  { %7484 = vmatprep.subr.bf16.mxu0 %v7483_v30 }
 0x9a1   :  { %7546 = vmatpush1.bf16.msra.mxu1 %v7545_v26 }
 0x9a2   :  { %7548 = vmatprep.subr.bf16.mxu1 %v7547_v36 }
 0x9a3   :  { %7486 = vmatpush1.bf16.msra.mxu0 %v7485_v39 }
 0x9a4   :  { %7488 = vmatprep.subr.bf16.mxu0 %v7487_v31 }
 0x9a5   :  { %7550 = vmatpush1.bf16.msra.mxu1 %v7549_v7 }
 0x9a6   :  { %7552 = vmatprep.subr.bf16.mxu1 %v7551_v51  ;;  %v4692_v51 = vrot.slane %v4687_v49, %v8202_v11 }
 0x9a7   :  { %7490 = vmatpush1.bf16.msra.mxu0 %v7489_v53  ;;  %v4696_v53 = vrot.slane %v4687_v49, %v8204_v13 }
 0x9a8   :  { %7492 = vmatprep.subr.bf16.mxu0 %v7491_v61 }
 0x9a9   :  { %7554 = vmatpush1.bf16.msra.mxu1 %v7553_v58 }
 0x9aa   :  { %7556 = vmatprep.subr.bf16.mxu1 %v7555_v62 }
 0x9ab   :  { %7494 = vmatpush1.bf16.msra.mxu0 %v7493_v2 }
 0x9ac   :  { %7560 = vmatprep.subr.bf16.mxu0 %v8336_v9 }
 0x9ad   :  { %7558 = vmatpush1.bf16.msra.mxu1 %v7557_v8 }
 0x9ae   :  { %7591 = vmatprep.subr.bf16.mxu1 %v8336_v9 }
 0xa01   :  { %v4455_v18 = vpop.f32.mrb[26].mxu0  ;;  %v4526_v3 = vpop.f32.mrb[26].mxu1 }
 0xa02   :  { %v4456_v20 = vadd.f32 %v4455_v18, %v4372_v12  ;;  %v4457_v21 = vpop.f32.mrb[27].mxu0  ;;  %v4528_v17 = vpop.f32.mrb[27].mxu1  ;;  %v4527_v29 = vadd.f32 %v4526_v3, %v4380_v27  ;;  %v5211_v27 = vld [vmem:[#allocation9 + $0x20] sm:$0xff] }
 0xa03   :  { %v4458_v52 = vadd.f32 %v4457_v21, %v4376_v15  ;;  %v4529_v26 = vadd.f32 %v4528_v17, %v4384_v25 }
 0xa04   :  { %v5433_v22 = vmul.f32 -1.442695, %v4456_v20 }
 0xa05   :  { %v5434_v0 = vmul.f32 -1.442695, %v4458_v52  ;;  %v5435_v28 = vmul.f32 -1.442695, %v4529_v26  ;;  %v5209_v52 = vld [vmem:[#allocation9 + $0x10] sm:$0xff] }
 0xa06   :  { %7829 = vpow2.f32 %v5433_v22  ;;  %v5210_v22 = vld [vmem:[#allocation9 + $0x18] sm:$0xff] }
 0xa07   :  { %7831 = vpow2.f32 %v5434_v0  ;;  %v7563_v26 = vpack.c.bf16 %v5210_v22, %v5209_v52 }
 0xa08   :  { %7833 = vpow2.f32 %v5435_v28  ;;  %v5212_v28 = vld [vmem:[#allocation9 + $0x28] sm:$0xff] }
 0xa09   :  { %7835 = vtanh.f32 %v4527_v29  ;;  %v5213_v29 = vld [vmem:[#allocation9 + $0x30] sm:$0xff] }
 0xa10   :  { %v7830_v30 = vpop.eup %7829 }
 0xa11   :  { %v7832_v32 = vpop.eup %7831  ;;  %v4534_v43 = vadd.f32 1.0, %v7830_v30  ;;  %v5214_v30 = vld [vmem:[#allocation9 + $0x38] sm:$0xff] }
 0xa12   :  { %v4540_v35 = vadd.f32 1.0, %v7832_v32  ;;  %v7834_v36 = vpop.eup %7833  ;;  %v7571_v32 = vpack.c.bf16 %v5214_v30, %v5213_v29 }
 0xa13   :  { %7837 = vrcp.f32 %v4534_v43  ;;  %v7836_v39 = vpop.eup %7835  ;;  %v4547_v47 = vadd.f32 1.0, %v7834_v36  ;;  %v5215_v43 = vld [vmem:[#allocation9 + $0x40] sm:$0xff]  ;;  %v5218_v36 = vld [vmem:[#allocation9 + $0x58] sm:$0xff] }
 0xa14   :  { %7839 = vrcp.f32 %v4540_v35  ;;  %v5216_v35 = vld [vmem:[#allocation9 + $0x48] sm:$0xff] }
 0xa15   :  { %7841 = vrcp.f32 %v4547_v47  ;;  %v5222_v47 = vld [vmem:[#allocation9 + $0x78] sm:$0xff] }
 0xa1d   :  { %v7838_v34 = vpop.eup %7837 }
 0xa1e   :  { %v7840_v41 = vpop.eup %7839  ;;  %v4551_v7 = vmul.f32 %v7838_v34, %v7836_v39  ;;  %v5219_v39 = vld [vmem:[#allocation9 + $0x60] sm:$0xff]  ;;  %v5220_v34 = vld [vmem:[#allocation9 + $0x68] sm:$0xff] }
 0xa1f   :  { %v4550_v42 = vmul.f32 %v7840_v41, %v8321_v14  ;;  %v7842_v31 = vpop.eup %7841  ;;  %v7583_v41 = vpack.c.bf16 %v5220_v34, %v5219_v39 }
 0xa21   :  { %v8345_v44 = vadd.f32 %v4551_v7, %v4550_v42  ;;  %v5221_v7 = vld [vmem:[#allocation9 + $0x70] sm:$0xff] }
 0xa22   :  { %v7587_v42 = vpack.c.bf16 %v5222_v47, %v5221_v7 }
 0xa23   :  { %7843 = vtanh.f32 %v8345_v44 }
 0xa2d   :  { %v7844_v45 = vpop.eup %7843 }
 0xa2e   :  { %v8348_v46 = vmul.f32 %v7844_v45, %v7842_v31  ;;  %v5003_v31 = vld [vmem:[#allocation8 + $0x4] sm:$0xf] }
 0xa2f   :  { %v5008_v45 = vrot.slane %v5003_v31, %v8202_v11  ;;  %v5012_v49 = vrot.slane %v5003_v31, %v8204_v13 }
 0xa30   :  { %5089 = vmatprep.mubr.f32.mxu0 %v8348_v46  ;;  %5160 = vmatprep.mubr.f32.mxu1 %v8348_v46 }
 0xa41   :  { %v4775_v54 = vpop.f32.mrb[28].mxu0 }
 0xa42   :  { %v4776_v14 = vadd.f32 %v4775_v54, %v4692_v51  ;;  %v4777_v56 = vpop.f32.mrb[29].mxu0 }
 0xa43   :  { %v4778_v57 = vadd.f32 %v4777_v56, %v4696_v53  ;;  %v4846_v58 = vpop.f32.mrb[28].mxu1 }
 0xa44   :  { %v5436_v59 = vmul.f32 -1.442695, %v4776_v14  ;;  %v4848_v60 = vpop.f32.mrb[29].mxu1  ;;  %v4847_v23 = vadd.f32 %v4846_v58, %v4700_v63 }
 0xa45   :  { %v5437_v61 = vmul.f32 -1.442695, %v4778_v57  ;;  %v4849_v62 = vadd.f32 %v4848_v60, %v4704_v38 }
 0xa46   :  { %7845 = vpow2.f32 %v5436_v59 }
 0xa47   :  { %7847 = vpow2.f32 %v5437_v61  ;;  %v5438_v1 = vmul.f32 -1.442695, %v4849_v62 }
 0xa49   :  { %7849 = vpow2.f32 %v5438_v1 }
 0xa4a   :  { %7851 = vtanh.f32 %v4847_v23 }
 0xa50   :  { %v7846_v2 = vpop.eup %7845 }
 0xa51   :  { %v7848_v4 = vpop.eup %7847  ;;  %v4854_v5 = vadd.f32 1.0, %v7846_v2 }
 0xa52   :  { %v4860_v6 = vadd.f32 1.0, %v7848_v4 }
 0xa53   :  { %7853 = vrcp.f32 %v4854_v5  ;;  %v7850_v8 = vpop.eup %7849 }
 0xa54   :  { %7855 = vrcp.f32 %v4860_v6  ;;  %v7852_v10 = vpop.eup %7851  ;;  %v4867_v15 = vadd.f32 1.0, %v7850_v8 }
 0xa56   :  { %7857 = vrcp.f32 %v4867_v15 }
 0xa5d   :  { %v7854_v12 = vpop.eup %7853 }
 0xa5e   :  { %v7856_v18 = vpop.eup %7855  ;;  %v4871_v3 = vmul.f32 %v7854_v12, %v7852_v10 }
 0xa5f   :  { %v4870_v20 = vmul.f32 %v7856_v18, %v8333_v48  ;;  %v7567_v48 = vpack.c.bf16 %v5212_v28, %v5211_v27 }
 0xa60   :  { %v7858_v17 = vpop.eup %7857 }
 0xa61   :  { %v4872_v21 = vadd.f32 %v4871_v3, %v4870_v20 }
 0xa63   :  { %7859 = vtanh.f32 %v4872_v21  ;;  %5194 = vst [vmem:[#allocation15] sm:$0xff] %v4872_v21 }
 0xa6d   :  { %v7860_v0 = vpop.eup %7859 }
 0xa6e   :  { %v4874_v25 = vmul.f32 %v7860_v0, %v7858_v17 }
 0xa70   :  { %5090 = vmatmul.mubr.f32.vlgmr.msra.gmra.mrb[30].mxu0 %v4874_v25  ;;  %5193 = vst [vmem:[#allocation13] sm:$0xff] %v4874_v25  ;;  %5161 = vmatmul.mubr.f32.vlgmr.msra.gmra.mrb[30].mxu1 %v4874_v25 }
 0xa71   :  { %7562 = vmatpush3.bf16.msra.mxu0 %v8336_v9  ;;  %7599 = vmatpush3.bf16.msra.mxu1 %v8336_v9  ;;  %v7575_v9 = vpack.c.bf16 %v5216_v35, %v5215_v43 }
 0xa72   :  { %5499 = vmatprep.mubr.f32.mxu0 %v8224_v50  ;;  %5505 = vmatprep.mubr.f32.mxu1 %v8304_v55  ;;  %v5217_v50 = vld [vmem:[#allocation9 + $0x50] sm:$0xff] }
 0xa73   :  { %7564 = vmatprep.subr.bf16.mxu0 %v7563_v26  ;;  %7592 = vmatprep.subr.bf16.mxu1 %v7563_v26  ;;  %v7579_v55 = vpack.c.bf16 %v5218_v36, %v5217_v50 }
 0xa75   :  { %7566 = vmatpush3.bf16.msra.mxu0 %v7563_v26  ;;  %7600 = vmatpush3.bf16.msra.mxu1 %v7563_v26 }
 0xa76   :  { %7568 = vmatprep.subr.bf16.mxu0 %v7567_v48  ;;  %7593 = vmatprep.subr.bf16.mxu1 %v7567_v48 }
 0xa79   :  { %7570 = vmatpush3.bf16.msra.mxu0 %v7567_v48  ;;  %7601 = vmatpush3.bf16.msra.mxu1 %v7567_v48 }
 0xa7a   :  { %7572 = vmatprep.subr.bf16.mxu0 %v7571_v32  ;;  %7594 = vmatprep.subr.bf16.mxu1 %v7571_v32 }
 0xa7d   :  { %7574 = vmatpush3.bf16.msra.mxu0 %v7571_v32  ;;  %7602 = vmatpush3.bf16.msra.mxu1 %v7571_v32 }
 0xa7e   :  { %7576 = vmatprep.subr.bf16.mxu0 %v7575_v9  ;;  %7595 = vmatprep.subr.bf16.mxu1 %v7575_v9 }
 0xa81   :  { %7578 = vmatpush3.bf16.msra.mxu0 %v7575_v9  ;;  %7603 = vmatpush3.bf16.msra.mxu1 %v7575_v9 }
 0xa82   :  { %7580 = vmatprep.subr.bf16.mxu0 %v7579_v55  ;;  %7596 = vmatprep.subr.bf16.mxu1 %v7579_v55 }
 0xa85   :  { %7582 = vmatpush3.bf16.msra.mxu0 %v7579_v55  ;;  %7604 = vmatpush3.bf16.msra.mxu1 %v7579_v55 }
 0xa86   :  { %7584 = vmatprep.subr.bf16.mxu0 %v7583_v41  ;;  %7597 = vmatprep.subr.bf16.mxu1 %v7583_v41 }
 0xa89   :  { %7586 = vmatpush3.bf16.msra.mxu0 %v7583_v41  ;;  %7605 = vmatpush3.bf16.msra.mxu1 %v7583_v41 }
 0xa8a   :  { %7588 = vmatprep.subr.bf16.mxu0 %v7587_v42  ;;  %7598 = vmatprep.subr.bf16.mxu1 %v7587_v42 }
 0xa8d   :  { %7590 = vmatpush3.bf16.msra.mxu0 %v7587_v42  ;;  %7606 = vmatpush3.bf16.msra.mxu1 %v7587_v42 }
 0xa90   :  { %5500 = vmatmul.mubr.f32.vlgmr.msra.gmra.mrb[32].mxu0 %v8244_v37  ;;  %5506 = vmatmul.mubr.f32.vlgmr.msra.gmra.mrb[32].mxu1 %v8324_v19  ;;  %v5020_v19 = vrot.slane %v5003_v31, %v8208_v16 }
 0xa91   :  { %5502 = vmatprep.mubr.f32.mxu0 %v8264_v33  ;;  %5508 = vmatprep.mubr.f32.mxu1 %v8348_v46 }
 0xa94   :  { %5503 = vmatmul.mubr.f32.gmra.mrb[34].mxu0 %v8284_v40  ;;  %v5016_v40 = vrot.slane %v5003_v31, %v8211_v24  ;;  %v8374_v24 = vld [vmem:[%s8433_s4] ss:$0 sm:$0xff]  ;;  %s8074_s4 = smov [#allocation13]  }
 0xa95   :  { %s5360_s1 = sshll.u32 %s8074_s4, 4  ;;  %s5361_s1 = int_to_ptr.vmem [resolvable:$true] %s5360_s1 }
 0xa96   :  { %s7987_s15 = scalar_lea.vmem %s5361_s1, 256  ;;  %p7992_p13 = scmp.lt.s32.totalorder %s5361_s1, %s5361_s1 }
 0xa97   :  { %p7988_p12 = scmp.ne.s32.totalorder %s5361_s1, %s7987_s15  ;;  %p7993_p0 = scmp.lt.s32.totalorder %s7987_s15, %s7987_s15 }
 0xa99   :  { %p7994_p1 = por %p7993_p0, %p7992_p13 }
 0xa9b   :  { %p7995_p2 = pnand %p7994_p1, %p7988_p12 }
 0xb43   :  { %v5091_v51 = vpop.f32.mrb[30].mxu0  ;;  %v5162_v53 = vpop.f32.mrb[30].mxu1 }
 0xb44   :  { %v5092_v54 = vadd.f32 %v5091_v51, %v5008_v45  ;;  %v5093_v14 = vpop.f32.mrb[31].mxu0  ;;  %v5164_v56 = vpop.f32.mrb[31].mxu1  ;;  %v5163_v59 = vadd.f32 %v5162_v53, %v5016_v40 }
 0xb45   :  { %v5094_v57 = vadd.f32 %v5093_v14, %v5012_v49  ;;  %v5165_v33 = vadd.f32 %v5164_v56, %v5020_v19 }
 0xb46   :  { %v5439_v37 = vmul.f32 -1.442695, %v5092_v54 }
 0xb47   :  { %v5440_v58 = vmul.f32 -1.442695, %v5094_v57  ;;  %v5441_v46 = vmul.f32 -1.442695, %v5165_v33 }
 0xb48   :  { %7861 = vpow2.f32 %v5439_v37 }
 0xb49   :  { %7863 = vpow2.f32 %v5440_v58 }
 0xb4a   :  { %7865 = vpow2.f32 %v5441_v46 }
 0xb4b   :  { %7867 = vtanh.f32 %v5163_v59 }
 0xb52   :  { %v7862_v11 = vpop.eup %7861 }
 0xb53   :  { %v7864_v38 = vpop.eup %7863  ;;  %v5170_v13 = vadd.f32 1.0, %v7862_v11 }
 0xb54   :  { %v5176_v60 = vadd.f32 1.0, %v7864_v38  ;;  %v7866_v61 = vpop.eup %7865 }
 0xb55   :  { %7869 = vrcp.f32 %v5170_v13  ;;  %v7868_v62 = vpop.eup %7867  ;;  %v5183_v23 = vadd.f32 1.0, %v7866_v61 }
 0xb56   :  { %7871 = vrcp.f32 %v5176_v60 }
 0xb57   :  { %7873 = vrcp.f32 %v5183_v23 }
 0xb5f   :  { %v7870_v63 = vpop.eup %7869 }
 0xb60   :  { %v7872_v1 = vpop.eup %7871  ;;  %v5187_v16 = vmul.f32 %v7870_v63, %v7868_v62 }
 0xb61   :  { %v5186_v2 = vmul.f32 %v7872_v1, %v8345_v44  ;;  %v7874_v52 = vpop.eup %7873 }
 0xb63   :  { %v5501_v4 = vpop.f32.mrb[32].mxu0  ;;  %v5507_v5 = vpop.f32.mrb[32].mxu1  ;;  %v5188_v6 = vadd.f32 %v5187_v16, %v5186_v2 }
 0xb64   :  { %v5302_v8 = vadd.f32 %v5501_v4, %v8374_v24  ;;  %v5322_v10 = vadd.f32 %v5507_v5, %v8374_v24  ;;  %v5296_v12 = vpop.f32.mrb[33].mxu0  ;;  %v5316_v15 = vpop.f32.mrb[33].mxu1 }
 0xb65   :  { %v5297_v18 = vadd.f32 %v8374_v24, %v5296_v12  ;;  %v5317_v3 = vadd.f32 %v8374_v24, %v5316_v15  ;;  %7875 = vtanh.f32 %v5188_v6  ;;  %5198 = vst [vmem:[#allocation15 + $0x8] sm:$0xff] %v5188_v6 }
 0xb66   :  { %5336 = vst [vmem:[#allocation12 + $0x8] sm:$0xff] %v5302_v8  ;;  %5340 = vst [vmem:[#allocation12 + $0x28] sm:$0xff] %v5322_v10 }
 0xb67   :  { %5335 = vst [vmem:[#allocation12] sm:$0xff] %v5297_v18  ;;  %5339 = vst [vmem:[#allocation12 + $0x20] sm:$0xff] %v5317_v3  ;;  %v5504_v44 = vpop.f32.mrb[34].mxu0 }
 0xb68   :  { %v5312_v20 = vadd.f32 %v5504_v44, %v8374_v24  ;;  %v5306_v21 = vpop.f32.mrb[35].mxu0 }
 0xb69   :  { %v5307_v17 = vadd.f32 %v8374_v24, %v5306_v21 }
 0xb6a   :  { %5338 = vst [vmem:[#allocation12 + $0x18] sm:$0xff] %v5312_v20 }
 0xb6b   :  { %5337 = vst [vmem:[#allocation12 + $0x10] sm:$0xff] %v5307_v17 }
 0xb6f   :  { %v7876_v22 = vpop.eup %7875 }
 0xb70   :  { %v5190_v0 = vmul.f32 %v7876_v22, %v7874_v52 }
 0xb72   :  { %5509 = vmatmul.mubr.f32.gmra.mrb[34].mxu1 %v5190_v0  ;;  %5196 = vst [vmem:[#allocation13 + $0x8] sm:$0xff] %v5190_v0 }
 0xb73   :  { %7998 = shalt.err (!%p7995_p2)
}
 0xb74   :  { %s7999_s26 = scalar_lea.hbm %s8437_s8, 256 }
 0xb75   :  { %p8000_p3 = scmp.ne.s32.totalorder %s8437_s8, %s7999_s26  ;;  %p8003_p4 = scmp.lt.u32.totalorder %s7999_s26, %s8437_s8 }
 0xb77   :  { %p8005_p5 = pnand %p8003_p4, %p8000_p3 }
 0xb79   :  { %8008 = shalt.err (!%p8005_p5)
}
 0xb7a   :  { %5366 = dma.vmem_to_hbm [thread:$0]  %s5361_s1, 256, %s8437_s8, [#allocation14], %s8068_s10, %s8068_s10, %s8069_s14  }
 0xb7b   :  { %s8075_s23 = smov [#allocation15]  }
 0xb7c   :  { %s5372_s25 = sshll.u32 %s8075_s23, 4  ;;  %s5373_s25 = int_to_ptr.vmem [resolvable:$true] %s5372_s25 }
 0xb7d   :  { %s8009_s3 = scalar_lea.vmem %s5373_s25, 256  ;;  %p8014_p7 = scmp.lt.s32.totalorder %s5373_s25, %s5373_s25 }
 0xb7e   :  { %p8010_p6 = scmp.ne.s32.totalorder %s5373_s25, %s8009_s3  ;;  %p8015_p8 = scmp.lt.s32.totalorder %s8009_s3, %s8009_s3 }
 0xb80   :  { %p8016_p9 = por %p8015_p8, %p8014_p7 }
 0xb82   :  { %p8017_p10 = pnand %p8016_p9, %p8010_p6 }
 0xb84   :  { %8020 = shalt.err (!%p8017_p10)
}
 0xb85   :  { %s8021_s29 = scalar_lea.hbm %s8438_s9, 256 }
 0xb86   :  { %p8022_p11 = scmp.ne.s32.totalorder %s8438_s9, %s8021_s29  ;;  %p8025_p12 = scmp.lt.u32.totalorder %s8021_s29, %s8438_s9 }
 0xb88   :  { %p8027_p13 = pnand %p8025_p12, %p8022_p11 }
 0xb8a   :  { %8030 = shalt.err (!%p8027_p13)
}
 0xb8b   :  { %5378 = dma.vmem_to_hbm [thread:$0]  %s5373_s25, 256, %s8438_s9, [#allocation14], %s8068_s10, %s8068_s10, %s8069_s14  }
 0xb8c   :  { %s8076_s12 = smov [#allocation12]  }
 0xb8d   :  { %s5348_s5 = sshll.u32 %s8076_s12, 4  ;;  %s5349_s5 = int_to_ptr.vmem [resolvable:$true] %s5348_s5 }
 0xb8e   :  { %s8031_s13 = scalar_lea.vmem %s5349_s5, 1024  ;;  %p8036_p1 = scmp.lt.s32.totalorder %s5349_s5, %s5349_s5 }
 0xb8f   :  { %p8032_p0 = scmp.ne.s32.totalorder %s5349_s5, %s8031_s13  ;;  %p8037_p2 = scmp.lt.s32.totalorder %s8031_s13, %s8031_s13 }
 0xb91   :  { %p8038_p3 = por %p8037_p2, %p8036_p1 }
 0xb93   :  { %p8039_p4 = pnand %p8038_p3, %p8032_p0 }
 0xc45   :  { %v5510_v25 = vpop.f32.mrb[34].mxu1 }
 0xc46   :  { %v5332_v26 = vadd.f32 %v5510_v25, %v8374_v24  ;;  %v5326_v27 = vpop.f32.mrb[35].mxu1 }
 0xc47   :  { %v5327_v28 = vadd.f32 %v8374_v24, %v5326_v27 }
 0xc48   :  { %5342 = vst [vmem:[#allocation12 + $0x38] sm:$0xff] %v5332_v26 }
 0xc49   :  { %5341 = vst [vmem:[#allocation12 + $0x30] sm:$0xff] %v5327_v28 }
 0xc4a   :  { %8042 = shalt.err (!%p8039_p4)
}
 0xc4b   :  { %s8043_s1 = scalar_lea.hbm %s8436_s7, 1024 }
 0xc4c   :  { %p8044_p5 = scmp.ne.s32.totalorder %s8436_s7, %s8043_s1  ;;  %p8047_p6 = scmp.lt.u32.totalorder %s8043_s1, %s8436_s7 }
 0xc4e   :  { %p8049_p7 = pnand %p8047_p6, %p8044_p5 }
 0xc50   :  { %8052 = shalt.err (!%p8049_p7)
}
 0xc51   :  { %5354 = dma.vmem_to_hbm [thread:$0]  %s5349_s5, 1024, %s8436_s7, [#allocation5], %s8068_s10, %s8068_s10, %s8069_s14  }
 0xc52   :  { %8059 = dma.done.wait [#allocation5], 1024  }
 0xc53   :  { %8060 = vsyncadd [#allocation5], 4294966272 }
 0xc54   :  { %8061 = dma.done.wait [#allocation14], 512  }
 0xc55   :  { %8062 = vsyncadd [#allocation14], 4294966784 }
 0xc56   :  { %5388 = vsyncpa [#allocation4], 1 }
 0xc57   :  { %5389 = vsyncpa [#allocation7], 1 }
 0xc58   :  { %5390 = vsyncpa [#allocation10], 1 }
 0xc59   :  { %5391 = vsyncpa [#allocation5], 1 }
 0xc5a   :  { %5392 = vsyncpa [#allocation14], 1 }

</bundles_post_ra>
